<compile_context>
chip_gen: v5e
topology: v5e:2x2
jax: 0.10.0
libtpu: 0.0.40
codegen_flags: <defaults>
</compile_context>

<pallas_src>
import functools

import jax
import jax.numpy as jnp
from jax import lax
from jax.experimental import pallas as pl
from jax.experimental.pallas import tpu as pltpu


# ----------------------------------------------------------------------------
# Fused kernel: whole Planner forward for ONE image per grid step.
# ----------------------------------------------------------------------------
def _planner_kernel(
    x1_ref,                                   # (R1, S1, 12) bf16, f1 input, phase-packed,
                                              #   width axis grouped [even cols | odd cols]
    wf1_ref, sf1_ref,                         # (108, 32) bf16, (1, 32) f32
    wf2_ref, sf2_ref,                         # (512, 64), (1, 64)
    wf3_ref, sf3_ref,                         # (576, 64), (1, 64)
    wf4_ref, sf4_ref,                         # (576, 128), (1, 128)
    wp1_ref, sp1_ref,                         # (1152, 64), (1, 64)
    wp2_ref, sp2_ref,                         # (576, 32), (1, 32)
    w3_ref, b3_ref,                           # (1, 32) f32, (1, 1) f32   (p3 1x1 conv)
    w1_ref, b1_ref, w2_ref, b2_ref,           # track MLP, f32
    out_ref,                                  # (1, 2) f32
    x2_ref, pad64_ref, pad128_ref,            # VMEM scratch
    *, oh1, ow1, oh2, ow2):
  f32 = jnp.float32
  ow1h = ow1 // 2                       # == ow2
  m2 = oh2 * ow2
  r2 = oh2 + 1
  s1e = x1_ref.shape[1] // 2            # even-column block size of the grouped f1 input

  # -- scratch init: borders must be zero; interiors are fully rewritten below.
  x2_ref[...] = jnp.zeros_like(x2_ref)
  pad64_ref[...] = jnp.zeros_like(pad64_ref)
  pad128_ref[...] = jnp.zeros_like(pad128_ref)

  def im2col(ref, k, oh, ow, col_starts=None):
    """Build the (oh*ow, k*k*Cin) im2col slab from a VMEM ref (static slices)."""
    cin = ref.shape[-1]
    taps = []
    for dy in range(k):
      for dx in range(k):
        c0 = dx if col_starts is None else col_starts[dx]
        t = ref[dy:dy + oh, c0:c0 + ow, :]
        taps.append(t.reshape(oh * ow, cin))
    return jnp.concatenate(taps, axis=-1)

  def conv(slab, w_ref, s_ref, relu=True):
    """One MXU matmul + folded-BN shift (+ReLU); f32 accumulation."""
    acc = jnp.dot(slab, w_ref[...], preferred_element_type=f32)
    acc = acc + s_ref[...]
    return jnp.maximum(acc, 0.0) if relu else acc

  def store_padded(ref, val, oh, ow):
    """Write (oh*ow, C) conv output into the interior of a zero-padded scratch."""
    v = val.astype(ref.dtype)
    for oy in range(oh):
      ref[1 + oy, 1:1 + ow, :] = v[oy * ow:(oy + 1) * ow, :]

  # ---- f1: 5x5 stride-2 conv, K = 3*3*12 = 108, split by output-column parity
  # X1 was width-parity grouped in XLA, so for each tap dx the columns needed by
  # even (resp. odd) output columns form a contiguous slice.
  even_cols = [0, s1e, 1]                # tap dx = 0, 1, 2  ->  even output cols
  odd_cols = [s1e, 1, s1e + 1]           # tap dx = 0, 1, 2  ->  odd output cols
  y1e = conv(im2col(x1_ref, 3, oh1, ow1h, even_cols), wf1_ref, sf1_ref)
  y1o = conv(im2col(x1_ref, 3, oh1, ow1h, odd_cols), wf1_ref, sf1_ref)
  y1e = y1e.astype(jnp.bfloat16)         # rows: (i, j_even/2), i row-major
  y1o = y1o.astype(jnp.bfloat16)

  # ---- in-kernel phase packing of f1's output for f2 (pad=1, stride=2) ----
  # x2[r, s, (2*ry+rx)*32:+32] = y1[2r+ry-1, 2s+rx-1]; border stays zero.
  for r in range(1, r2):                 # ry = 0 -> odd rows of y1
    i = 2 * r - 1
    x2_ref[r, 1:1 + ow2, 0:32] = y1o[i * ow2:(i + 1) * ow2, :]
    x2_ref[r, 0:ow2, 32:64] = y1e[i * ow2:(i + 1) * ow2, :]
  for r in range(0, r2 - 1):             # ry = 1 -> even rows of y1
    i = 2 * r
    x2_ref[r, 1:1 + ow2, 64:96] = y1o[i * ow2:(i + 1) * ow2, :]
    x2_ref[r, 0:ow2, 96:128] = y1e[i * ow2:(i + 1) * ow2, :]

  # ---- f2 (stride-2 as 2x2 valid conv over the packed input), f3, f4 ----
  y2 = conv(im2col(x2_ref, 2, oh2, ow2), wf2_ref, sf2_ref)            # K = 512
  store_padded(pad64_ref, y2, oh2, ow2)
  y3 = conv(im2col(pad64_ref, 3, oh2, ow2), wf3_ref, sf3_ref)         # K = 576
  store_padded(pad64_ref, y3, oh2, ow2)
  y4 = conv(im2col(pad64_ref, 3, oh2, ow2), wf4_ref, sf4_ref)         # K = 576
  pooled = jnp.mean(y4, axis=0, keepdims=True)   # fused AdaptiveAvgPool2d(1), f32
  store_padded(pad128_ref, y4, oh2, ow2)

  # ---- path head ----
  y5 = conv(im2col(pad128_ref, 3, oh2, ow2), wp1_ref, sp1_ref)        # K = 1152
  store_padded(pad64_ref, y5, oh2, ow2)
  h2 = conv(im2col(pad64_ref, 3, oh2, ow2), wp2_ref, sp2_ref)         # (m2, 32) f32

  # p3: 1x1 conv to a single channel -> per-position weighted sum on the VPU.
  logit = jnp.sum(h2 * w3_ref[...], axis=-1, keepdims=True) + b3_ref[...]   # (m2, 1)

  # spatial_argmax: softmax over all positions, expectation of normalized coords.
  mmax = jnp.max(logit, axis=0, keepdims=True)
  e = jnp.exp(logit - mmax)
  z = jnp.sum(e, axis=0, keepdims=True)
  sx = 2.0 / (ow2 - 1) if ow2 > 1 else 0.0
  sy = 2.0 / (oh2 - 1) if oh2 > 1 else 0.0
  jj = lax.broadcasted_iota(jnp.int32, (oh2, ow2, 1), 1).astype(f32)
  ii = lax.broadcasted_iota(jnp.int32, (oh2, ow2, 1), 0).astype(f32)
  cx = (jj * sx - 1.0).reshape(m2, 1)
  cy = (ii * sy - 1.0).reshape(m2, 1)
  ax = jnp.sum(e * cx, axis=0, keepdims=True) / z      # (1, 1)
  ay = jnp.sum(e * cy, axis=0, keepdims=True) / z

  # track_features head on the fused pooled features.
  hm = jnp.maximum(
      jnp.dot(pooled, w1_ref[...], preferred_element_type=f32) + b1_ref[...], 0.0)
  # TODO(synk): Dropout(0.2) is implemented as eval-mode identity (inference).
  track = jnp.dot(hm, w2_ref[...], preferred_element_type=f32) + b2_ref[...]  # (1, 16)
  t = jnp.tanh(track)

  out = jnp.concatenate([ax + 0.1 * t[:, 0:1], ay + 0.1 * t[:, 1:2]], axis=1)
  out_ref[...] = out.astype(out_ref.dtype)


# ----------------------------------------------------------------------------
# XLA-side helpers: space-to-depth for the raw image, parameter folding.
# ----------------------------------------------------------------------------
def _space_to_depth_stride2(x, k, p):
  """Rewrite a stride-2 conv input as a stride-1 'valid' conv input (XLA)."""
  B, H, W, C = x.shape
  kk = (k + 1) // 2
  OH = (H + 2 * p - k) // 2 + 1
  OW = (W + 2 * p - k) // 2 + 1
  R, S = OH + kk - 1, OW + kk - 1
  pad_b, pad_r = 2 * R - H - p, 2 * S - W - p
  assert pad_b >= 0 and pad_r >= 0
  xp = jnp.pad(x, ((0, 0), (p, pad_b), (p, pad_r), (0, 0)))
  phases = [xp[:, ry:ry + 2 * R:2, rx:rx + 2 * S:2, :]
            for ry in range(2) for rx in range(2)]
  return jnp.concatenate(phases, axis=-1), OH, OW


def _stride2_weight_pack(w, k):
  """Scatter (k,k,cin,cout) stride-2 weights into (kk,kk,4,cin,cout) phase form."""
  kk = (k + 1) // 2
  _, _, cin, cout = w.shape
  w2 = jnp.zeros((kk, kk, 4, cin, cout), w.dtype)
  for qy in range(kk):
    for qx in range(kk):
      for ry in range(2):
        for rx in range(2):
          dy, dx = 2 * qy + ry, 2 * qx + rx
          if dy < k and dx < k:
            w2 = w2.at[qy, qx, 2 * ry + rx].set(w[dy, dx])
  return w2


def _make_conv_params(key, k, s, p, cin, cout, with_bn):
  """Synthetic Conv2d (+ folded eval-mode BatchNorm) in kernel-ready layout."""
  kw, kb, kg, kbe, km, kv = jax.random.split(key, 6)
  w = jax.random.normal(kw, (k, k, cin, cout), jnp.float32) * 0.1     # HWIO
  b = jax.random.normal(kb, (cout,), jnp.float32) * 0.05
  if with_bn:
    gamma = 1.0 + 0.1 * jax.random.normal(kg, (cout,), jnp.float32)
    beta = 0.05 * jax.random.normal(kbe, (cout,), jnp.float32)
    mean = 0.05 * jax.random.normal(km, (cout,), jnp.float32)
    var = 1.0 + jnp.abs(0.1 * jax.random.normal(kv, (cout,), jnp.float32))
    inv = gamma / jnp.sqrt(var + 1e-5)
    shift = beta + inv * (b - mean)
  else:
    inv = jnp.ones((cout,), jnp.float32)
    shift = b
  w_scaled = w * inv[None, None, None, :]          # fold BN scale into weights
  if s == 2:
    kk = (k + 1) // 2
    wk = _stride2_weight_pack(w_scaled, k).reshape(kk * kk * 4 * cin, cout)
  else:
    wk = w_scaled.reshape(k * k * cin, cout)
  return {"k": k, "s": s, "p": p,
          "wk": wk.astype(jnp.bfloat16),
          "shift": shift[None, :].astype(jnp.float32),
          "w_hwio": w_scaled}                       # (reference only)


# ----------------------------------------------------------------------------
# Forward wrapper: one pallas_call for the whole network.
# ----------------------------------------------------------------------------
def planner_forward(img_nchw, params):
  """Equivalent of Planner.forward: img (B,3,H,W) NCHW -> aim point (B,2)."""
  B = img_nchw.shape[0]
  x = jnp.transpose(img_nchw, (0, 2, 3, 1)).astype(jnp.bfloat16)      # NHWC

  # f1's space-to-depth on the raw (3-channel) image, then group the width
  # axis by parity so the kernel can split f1's output columns with static
  # slices (needed to re-pack f1's output for f2 entirely inside VMEM).
  X1, OH1, OW1 = _space_to_depth_stride2(x, k=5, p=2)
  if OH1 % 2 or OW1 % 2 or X1.shape[2] % 2:
    raise ValueError("input spatial dims must yield even f1 output dims")
  X1g = jnp.concatenate([X1[:, :, 0::2, :], X1[:, :, 1::2, :]], axis=2)
  X1g = X1g.astype(jnp.bfloat16)
  R1, S1, C1 = X1g.shape[1], X1g.shape[2], X1g.shape[3]
  OH2, OW2 = OH1 // 2, OW1 // 2
  R2, S2 = OH2 + 1, OW2 + 1
  M2 = OH2 * OW2

  w3, b3 = params["p3"]
  w1, b1, w2, b2 = params["track"]
  weights = [
      params["f1"]["wk"], params["f1"]["shift"],
      params["f2"]["wk"], params["f2"]["shift"],
      params["f3"]["wk"], params["f3"]["shift"],
      params["f4"]["wk"], params["f4"]["shift"],
      params["p1"]["wk"], params["p1"]["shift"],
      params["p2"]["wk"], params["p2"]["shift"],
      w3, b3, w1, b1, w2, b2,
  ]

  in_specs = [pl.BlockSpec((None, R1, S1, C1), lambda b: (b, 0, 0, 0))]
  in_specs += [pl.BlockSpec(w.shape, lambda b: (0, 0)) for w in weights]

  # VMEM budget derived from the actual per-image working set (review item).
  weight_bytes = sum(int(w.size) * w.dtype.itemsize for w in weights)
  slab_bytes = 2 * max(OH1 * OW1 * 108, M2 * 1152)       # largest bf16 im2col slab
  scratch_bytes = 2 * (R2 * S2 * 128 + (OH2 + 2) * (OW2 + 2) * (64 + 128))
  act_bytes = 4 * M2 * 128 * 3                           # f32 layer outputs in flight
  x1_bytes = 2 * R1 * S1 * C1 * 2                        # double-buffered input block
  est = weight_bytes + 3 * slab_bytes + scratch_bytes + act_bytes + x1_bytes
  vmem_limit = int(min(64 * 1024 * 1024, max(16 * 1024 * 1024, 2 * est)))

  flops = 2 * B * (OH1 * OW1 * 108 * 32
                   + M2 * (512 * 64 + 576 * 64 + 576 * 128 + 1152 * 64 + 576 * 32)
                   + 128 * 64 + 64 * 16)
  bytes_accessed = int(X1g.size * X1g.dtype.itemsize + weight_bytes + B * 2 * 4)

  kernel = functools.partial(_planner_kernel, oh1=OH1, ow1=OW1, oh2=OH2, ow2=OW2)
  out = pl.pallas_call(
      kernel,
      grid=(B,),
      in_specs=in_specs,
      out_specs=pl.BlockSpec((None, 1, 2), lambda b: (b, 0, 0)),
      out_shape=jax.ShapeDtypeStruct((B, 1, 2), jnp.float32),
      scratch_shapes=[
          pltpu.VMEM((R2, S2, 128), jnp.bfloat16),            # packed f2 input
          pltpu.VMEM((OH2 + 2, OW2 + 2, 64), jnp.bfloat16),   # padded 64-ch act
          pltpu.VMEM((OH2 + 2, OW2 + 2, 128), jnp.bfloat16),  # padded 128-ch act
      ],
      compiler_params=pltpu.CompilerParams(
          dimension_semantics=("parallel",),
          vmem_limit_bytes=vmem_limit),
      cost_estimate=pl.CostEstimate(
          flops=int(flops), transcendentals=int(B * (M2 + 16)),
          bytes_accessed=bytes_accessed),
  )(X1g, *weights)
  return out.reshape(B, 2)


# ----------------------------------------------------------------------------
# Pure-XLA reference (folded-BN weights), used only as a numerical cross-check.
# ----------------------------------------------------------------------------
def _reference_forward(img_nchw, params):
  x = jnp.transpose(img_nchw, (0, 2, 3, 1)).astype(jnp.float32)

  def conv(h, layer, relu=True):
    y = lax.conv_general_dilated(
        h, layer["w_hwio"], (layer["s"], layer["s"]),
        [(layer["p"], layer["p"])] * 2,
        dimension_numbers=("NHWC", "HWIO", "NHWC"))
    y = y + layer["shift"].reshape(1, 1, 1, -1)
    return jnp.maximum(y, 0.0) if relu else y

  f = conv(x, params["f1"])
  f = conv(f, params["f2"])
  f = conv(f, params["f3"])
  f = conv(f, params["f4"])
  h = conv(f, params["p1"])
  h = conv(h, params["p2"])
  w3, b3 = params["p3"]
  logit = jnp.einsum("bhwc,c->bhw", h, w3.reshape(-1)) + b3.reshape(())
  B, Hh, Ww = logit.shape
  wts = jax.nn.softmax(logit.reshape(B, -1), axis=-1).reshape(B, Hh, Ww)
  lx = jnp.linspace(-1.0, 1.0, Ww, dtype=jnp.float32)
  ly = jnp.linspace(-1.0, 1.0, Hh, dtype=jnp.float32)
  aim = jnp.stack([(wts.sum(axis=1) * lx[None]).sum(axis=1),
                   (wts.sum(axis=2) * ly[None]).sum(axis=1)], axis=1)
  pooled = f.mean(axis=(1, 2))
  w1, b1, w2, b2 = params["track"]
  t = jnp.maximum(pooled @ w1 + b1.reshape(-1), 0.0) @ w2 + b2.reshape(-1)
  return aim + 0.1 * jnp.tanh(t[:, 0:2])


if __name__ == "__main__":
  key = jax.random.PRNGKey(0)
  keys = jax.random.split(key, 12)
  params = {
      "f1": _make_conv_params(keys[0], k=5, s=2, p=2, cin=3, cout=32, with_bn=True),
      "f2": _make_conv_params(keys[1], k=3, s=2, p=1, cin=32, cout=64, with_bn=True),
      "f3": _make_conv_params(keys[2], k=3, s=1, p=1, cin=64, cout=64, with_bn=True),
      "f4": _make_conv_params(keys[3], k=3, s=1, p=1, cin=64, cout=128, with_bn=True),
      "p1": _make_conv_params(keys[4], k=3, s=1, p=1, cin=128, cout=64, with_bn=True),
      "p2": _make_conv_params(keys[5], k=3, s=1, p=1, cin=64, cout=32, with_bn=False),
      # p3 (1x1 conv, 32 -> 1 + bias) is fused into the kernel's tail.
      "p3": ((jax.random.normal(keys[6], (32,), jnp.float32) * 0.1).reshape(1, 32),
             (jax.random.normal(keys[7], (1,), jnp.float32) * 0.05).reshape(1, 1)),
      "track": (jax.random.normal(keys[8], (128, 64), jnp.float32) * 0.1,
                jnp.zeros((1, 64), jnp.float32),
                jax.random.normal(keys[9], (64, 16), jnp.float32) * 0.1,
                jnp.zeros((1, 16), jnp.float32)),
  }

  # Small input consistent with Planner.forward (NCHW, 3 channels).
  img = jax.random.normal(keys[10], (2, 3, 16, 16), jnp.float32)

  fwd = jax.jit(lambda im: planner_forward(im, params))
  out = jax.block_until_ready(fwd(img))
  assert out.shape == (2, 2) and out.dtype == jnp.float32

  # Informational cross-check against the pure-XLA reference (bf16 kernel vs
  # f32 reference); warn (but do not fail) if they diverge beyond tolerance.
  ref = jax.jit(lambda im: _reference_forward(im, params))(img)
  err = float(jnp.max(jnp.abs(out - ref)))
  if not (err < 0.1):
    print(f"WARNING: kernel deviates from XLA reference, max_abs_diff={err:.4e}")

  print("KERNEL_OK")
</pallas_src>

<mosaic_0001>
module attributes {stable_mosaic.version = 11 : i64} {
  func.func @_planner_kernel(%arg0: i32, %arg1: memref<1x10x10x12xbf16, #tpu.memory_space<vmem>>, %arg2: memref<108x32xbf16, #tpu.memory_space<vmem>>, %arg3: memref<1x32xf32, #tpu.memory_space<vmem>>, %arg4: memref<512x64xbf16, #tpu.memory_space<vmem>>, %arg5: memref<1x64xf32, #tpu.memory_space<vmem>>, %arg6: memref<576x64xbf16, #tpu.memory_space<vmem>>, %arg7: memref<1x64xf32, #tpu.memory_space<vmem>>, %arg8: memref<576x128xbf16, #tpu.memory_space<vmem>>, %arg9: memref<1x128xf32, #tpu.memory_space<vmem>>, %arg10: memref<1152x64xbf16, #tpu.memory_space<vmem>>, %arg11: memref<1x64xf32, #tpu.memory_space<vmem>>, %arg12: memref<576x32xbf16, #tpu.memory_space<vmem>>, %arg13: memref<1x32xf32, #tpu.memory_space<vmem>>, %arg14: memref<1x32xf32, #tpu.memory_space<vmem>>, %arg15: memref<1x1xf32, #tpu.memory_space<vmem>>, %arg16: memref<128x64xf32, #tpu.memory_space<vmem>>, %arg17: memref<1x64xf32, #tpu.memory_space<vmem>>, %arg18: memref<64x16xf32, #tpu.memory_space<vmem>>, %arg19: memref<1x16xf32, #tpu.memory_space<vmem>>, %arg20: memref<1x1x2xf32, #tpu.memory_space<vmem>>, %arg21: memref<5x5x128xbf16, #tpu.memory_space<vmem>>, %arg22: memref<6x6x64xbf16, #tpu.memory_space<vmem>>, %arg23: memref<6x6x128xbf16, #tpu.memory_space<vmem>>) attributes {dimension_semantics = [#tpu.dimension_semantics<parallel>], iteration_bounds = array<i64: 2>, scalar_prefetch = 0 : i64, scratch_operands = 3 : i64, tpu.core_type = #tpu.core_type<tc>, window_params = [{transform_indices = @transform_0, window_bounds = array<i64: 1, 10, 10, 12>}, {pipeline_mode = #tpu.pipeline_mode<synchronous>, transform_indices = @transform_1, window_bounds = array<i64: 108, 32>}, {pipeline_mode = #tpu.pipeline_mode<synchronous>, transform_indices = @transform_2, window_bounds = array<i64: 1, 32>}, {pipeline_mode = #tpu.pipeline_mode<synchronous>, transform_indices = @transform_3, window_bounds = array<i64: 512, 64>}, {pipeline_mode = #tpu.pipeline_mode<synchronous>, transform_indices = @transform_4, window_bounds = array<i64: 1, 64>}, {pipeline_mode = #tpu.pipeline_mode<synchronous>, transform_indices = @transform_5, window_bounds = array<i64: 576, 64>}, {pipeline_mode = #tpu.pipeline_mode<synchronous>, transform_indices = @transform_6, window_bounds = array<i64: 1, 64>}, {pipeline_mode = #tpu.pipeline_mode<synchronous>, transform_indices = @transform_7, window_bounds = array<i64: 576, 128>}, {pipeline_mode = #tpu.pipeline_mode<synchronous>, transform_indices = @transform_8, window_bounds = array<i64: 1, 128>}, {pipeline_mode = #tpu.pipeline_mode<synchronous>, transform_indices = @transform_9, window_bounds = array<i64: 1152, 64>}, {pipeline_mode = #tpu.pipeline_mode<synchronous>, transform_indices = @transform_10, window_bounds = array<i64: 1, 64>}, {pipeline_mode = #tpu.pipeline_mode<synchronous>, transform_indices = @transform_11, window_bounds = array<i64: 576, 32>}, {pipeline_mode = #tpu.pipeline_mode<synchronous>, transform_indices = @transform_12, window_bounds = array<i64: 1, 32>}, {pipeline_mode = #tpu.pipeline_mode<synchronous>, transform_indices = @transform_13, window_bounds = array<i64: 1, 32>}, {pipeline_mode = #tpu.pipeline_mode<synchronous>, transform_indices = @transform_14, window_bounds = array<i64: 1, 1>}, {pipeline_mode = #tpu.pipeline_mode<synchronous>, transform_indices = @transform_15, window_bounds = array<i64: 128, 64>}, {pipeline_mode = #tpu.pipeline_mode<synchronous>, transform_indices = @transform_16, window_bounds = array<i64: 1, 64>}, {pipeline_mode = #tpu.pipeline_mode<synchronous>, transform_indices = @transform_17, window_bounds = array<i64: 64, 16>}, {pipeline_mode = #tpu.pipeline_mode<synchronous>, transform_indices = @transform_18, window_bounds = array<i64: 1, 16>}, {transform_indices = @transform_19, window_bounds = array<i64: 1, 1, 2>}]} {
    %cst = arith.constant 0.000000e+00 : bf16
    %0 = vector.broadcast %cst : bf16 to vector<5x5x128xbf16>
    %c0 = arith.constant 0 : index
    %c0_0 = arith.constant 0 : index
    %c0_1 = arith.constant 0 : index
    %1 = vector.load %arg21[%c0, %c0_0, %c0_1] : memref<5x5x128xbf16, #tpu.memory_space<vmem>>, vector<5x5x128xbf16>
    tpu.vector_store %arg21[%c0, %c0_0, %c0_1], %0 {strides = array<i32>} : memref<5x5x128xbf16, #tpu.memory_space<vmem>>, vector<5x5x128xbf16>,
    %cst_2 = arith.constant 0.000000e+00 : bf16
    %2 = vector.broadcast %cst_2 : bf16 to vector<6x6x64xbf16>
    %c0_3 = arith.constant 0 : index
    %c0_4 = arith.constant 0 : index
    %c0_5 = arith.constant 0 : index
    %3 = vector.load %arg22[%c0_3, %c0_4, %c0_5] : memref<6x6x64xbf16, #tpu.memory_space<vmem>>, vector<6x6x64xbf16>
    tpu.vector_store %arg22[%c0_3, %c0_4, %c0_5], %2 {strides = array<i32>} : memref<6x6x64xbf16, #tpu.memory_space<vmem>>, vector<6x6x64xbf16>,
    %cst_6 = arith.constant 0.000000e+00 : bf16
    %4 = vector.broadcast %cst_6 : bf16 to vector<6x6x128xbf16>
    %c0_7 = arith.constant 0 : index
    %c0_8 = arith.constant 0 : index
    %c0_9 = arith.constant 0 : index
    %5 = vector.load %arg23[%c0_7, %c0_8, %c0_9] : memref<6x6x128xbf16, #tpu.memory_space<vmem>>, vector<6x6x128xbf16>
    tpu.vector_store %arg23[%c0_7, %c0_8, %c0_9], %4 {strides = array<i32>} : memref<6x6x128xbf16, #tpu.memory_space<vmem>>, vector<6x6x128xbf16>,
    %c0_10 = arith.constant 0 : index
    %c0_11 = arith.constant 0 : index
    %c0_12 = arith.constant 0 : index
    %c0_13 = arith.constant 0 : index
    %6 = vector.load %arg1[%c0_10, %c0_11, %c0_12, %c0_13] : memref<1x10x10x12xbf16, #tpu.memory_space<vmem>>, vector<1x8x4x12xbf16>
    %7 = vector.shape_cast %6 : vector<1x8x4x12xbf16> to vector<8x4x12xbf16>
    %8 = vector.shape_cast %7 : vector<8x4x12xbf16> to vector<32x12xbf16>
    %c0_14 = arith.constant 0 : index
    %c0_15 = arith.constant 0 : index
    %c5 = arith.constant 5 : index
    %c0_16 = arith.constant 0 : index
    %9 = vector.load %arg1[%c0_14, %c0_15, %c5, %c0_16] : memref<1x10x10x12xbf16, #tpu.memory_space<vmem>>, vector<1x8x4x12xbf16>
    %10 = vector.shape_cast %9 : vector<1x8x4x12xbf16> to vector<8x4x12xbf16>
    %11 = vector.shape_cast %10 : vector<8x4x12xbf16> to vector<32x12xbf16>
    %c0_17 = arith.constant 0 : index
    %c0_18 = arith.constant 0 : index
    %c1 = arith.constant 1 : index
    %c0_19 = arith.constant 0 : index
    %12 = vector.load %arg1[%c0_17, %c0_18, %c1, %c0_19] : memref<1x10x10x12xbf16, #tpu.memory_space<vmem>>, vector<1x8x4x12xbf16>
    %13 = vector.shape_cast %12 : vector<1x8x4x12xbf16> to vector<8x4x12xbf16>
    %14 = vector.shape_cast %13 : vector<8x4x12xbf16> to vector<32x12xbf16>
    %c0_20 = arith.constant 0 : index
    %c1_21 = arith.constant 1 : index
    %c0_22 = arith.constant 0 : index
    %c0_23 = arith.constant 0 : index
    %15 = vector.load %arg1[%c0_20, %c1_21, %c0_22, %c0_23] : memref<1x10x10x12xbf16, #tpu.memory_space<vmem>>, vector<1x8x4x12xbf16>
    %16 = vector.shape_cast %15 : vector<1x8x4x12xbf16> to vector<8x4x12xbf16>
    %17 = vector.shape_cast %16 : vector<8x4x12xbf16> to vector<32x12xbf16>
    %c0_24 = arith.constant 0 : index
    %c1_25 = arith.constant 1 : index
    %c5_26 = arith.constant 5 : index
    %c0_27 = arith.constant 0 : index
    %18 = vector.load %arg1[%c0_24, %c1_25, %c5_26, %c0_27] : memref<1x10x10x12xbf16, #tpu.memory_space<vmem>>, vector<1x8x4x12xbf16>
    %19 = vector.shape_cast %18 : vector<1x8x4x12xbf16> to vector<8x4x12xbf16>
    %20 = vector.shape_cast %19 : vector<8x4x12xbf16> to vector<32x12xbf16>
    %c0_28 = arith.constant 0 : index
    %c1_29 = arith.constant 1 : index
    %c1_30 = arith.constant 1 : index
    %c0_31 = arith.constant 0 : index
    %21 = vector.load %arg1[%c0_28, %c1_29, %c1_30, %c0_31] : memref<1x10x10x12xbf16, #tpu.memory_space<vmem>>, vector<1x8x4x12xbf16>
    %22 = vector.shape_cast %21 : vector<1x8x4x12xbf16> to vector<8x4x12xbf16>
    %23 = vector.shape_cast %22 : vector<8x4x12xbf16> to vector<32x12xbf16>
    %c0_32 = arith.constant 0 : index
    %c2 = arith.constant 2 : index
    %c0_33 = arith.constant 0 : index
    %c0_34 = arith.constant 0 : index
    %24 = vector.load %arg1[%c0_32, %c2, %c0_33, %c0_34] : memref<1x10x10x12xbf16, #tpu.memory_space<vmem>>, vector<1x8x4x12xbf16>
    %25 = vector.shape_cast %24 : vector<1x8x4x12xbf16> to vector<8x4x12xbf16>
    %26 = vector.shape_cast %25 : vector<8x4x12xbf16> to vector<32x12xbf16>
    %c0_35 = arith.constant 0 : index
    %c2_36 = arith.constant 2 : index
    %c5_37 = arith.constant 5 : index
    %c0_38 = arith.constant 0 : index
    %27 = vector.load %arg1[%c0_35, %c2_36, %c5_37, %c0_38] : memref<1x10x10x12xbf16, #tpu.memory_space<vmem>>, vector<1x8x4x12xbf16>
    %28 = vector.shape_cast %27 : vector<1x8x4x12xbf16> to vector<8x4x12xbf16>
    %29 = vector.shape_cast %28 : vector<8x4x12xbf16> to vector<32x12xbf16>
    %c0_39 = arith.constant 0 : index
    %c2_40 = arith.constant 2 : index
    %c1_41 = arith.constant 1 : index
    %c0_42 = arith.constant 0 : index
    %30 = vector.load %arg1[%c0_39, %c2_40, %c1_41, %c0_42] : memref<1x10x10x12xbf16, #tpu.memory_space<vmem>>, vector<1x8x4x12xbf16>
    %31 = vector.shape_cast %30 : vector<1x8x4x12xbf16> to vector<8x4x12xbf16>
    %32 = vector.shape_cast %31 : vector<8x4x12xbf16> to vector<32x12xbf16>
    %33 = tpu.concatenate %8, %11, %14, %17, %20, %23, %26, %29, %32 in 1 : vector<32x12xbf16>, vector<32x12xbf16>, vector<32x12xbf16>, vector<32x12xbf16>, vector<32x12xbf16>, vector<32x12xbf16>, vector<32x12xbf16>, vector<32x12xbf16>, vector<32x12xbf16> -> vector<32x108xbf16>
    %c0_43 = arith.constant 0 : index
    %c0_44 = arith.constant 0 : index
    %34 = vector.load %arg2[%c0_43, %c0_44] : memref<108x32xbf16, #tpu.memory_space<vmem>>, vector<108x32xbf16>
    %cst_45 = arith.constant dense<0.000000e+00> : vector<32x32xf32>
    %35 = tpu.matmul %33, %34, %cst_45 {dimension_numbers = #tpu.dot_dimension_numbers<[1], [0], [0], [1], [0, 0, 1, 1], [], []>} : vector<32x108xbf16>, vector<108x32xbf16>, vector<32x32xf32> -> vector<32x32xf32>
    %c0_46 = arith.constant 0 : index
    %c0_47 = arith.constant 0 : index
    %36 = vector.load %arg3[%c0_46, %c0_47] : memref<1x32xf32, #tpu.memory_space<vmem>>, vector<1x32xf32>
    %37 = vector.broadcast %36 : vector<1x32xf32> to vector<32x32xf32>
    %38 = arith.addf %35, %37 : vector<32x32xf32>
    %cst_48 = arith.constant 0.000000e+00 : f32
    %39 = vector.broadcast %cst_48 : f32 to vector<32x32xf32>
    %40 = arith.maximumf %38, %39 : vector<32x32xf32>
    %c0_49 = arith.constant 0 : index
    %c0_50 = arith.constant 0 : index
    %c5_51 = arith.constant 5 : index
    %c0_52 = arith.constant 0 : index
    %41 = vector.load %arg1[%c0_49, %c0_50, %c5_51, %c0_52] : memref<1x10x10x12xbf16, #tpu.memory_space<vmem>>, vector<1x8x4x12xbf16>
    %42 = vector.shape_cast %41 : vector<1x8x4x12xbf16> to vector<8x4x12xbf16>
    %43 = vector.shape_cast %42 : vector<8x4x12xbf16> to vector<32x12xbf16>
    %c0_53 = arith.constant 0 : index
    %c0_54 = arith.constant 0 : index
    %c1_55 = arith.constant 1 : index
    %c0_56 = arith.constant 0 : index
    %44 = vector.load %arg1[%c0_53, %c0_54, %c1_55, %c0_56] : memref<1x10x10x12xbf16, #tpu.memory_space<vmem>>, vector<1x8x4x12xbf16>
    %45 = vector.shape_cast %44 : vector<1x8x4x12xbf16> to vector<8x4x12xbf16>
    %46 = vector.shape_cast %45 : vector<8x4x12xbf16> to vector<32x12xbf16>
    %c0_57 = arith.constant 0 : index
    %c0_58 = arith.constant 0 : index
    %c6 = arith.constant 6 : index
    %c0_59 = arith.constant 0 : index
    %47 = vector.load %arg1[%c0_57, %c0_58, %c6, %c0_59] : memref<1x10x10x12xbf16, #tpu.memory_space<vmem>>, vector<1x8x4x12xbf16>
    %48 = vector.shape_cast %47 : vector<1x8x4x12xbf16> to vector<8x4x12xbf16>
    %49 = vector.shape_cast %48 : vector<8x4x12xbf16> to vector<32x12xbf16>
    %c0_60 = arith.constant 0 : index
    %c1_61 = arith.constant 1 : index
    %c5_62 = arith.constant 5 : index
    %c0_63 = arith.constant 0 : index
    %50 = vector.load %arg1[%c0_60, %c1_61, %c5_62, %c0_63] : memref<1x10x10x12xbf16, #tpu.memory_space<vmem>>, vector<1x8x4x12xbf16>
    %51 = vector.shape_cast %50 : vector<1x8x4x12xbf16> to vector<8x4x12xbf16>
    %52 = vector.shape_cast %51 : vector<8x4x12xbf16> to vector<32x12xbf16>
    %c0_64 = arith.constant 0 : index
    %c1_65 = arith.constant 1 : index
    %c1_66 = arith.constant 1 : index
    %c0_67 = arith.constant 0 : index
    %53 = vector.load %arg1[%c0_64, %c1_65, %c1_66, %c0_67] : memref<1x10x10x12xbf16, #tpu.memory_space<vmem>>, vector<1x8x4x12xbf16>
    %54 = vector.shape_cast %53 : vector<1x8x4x12xbf16> to vector<8x4x12xbf16>
    %55 = vector.shape_cast %54 : vector<8x4x12xbf16> to vector<32x12xbf16>
    %c0_68 = arith.constant 0 : index
    %c1_69 = arith.constant 1 : index
    %c6_70 = arith.constant 6 : index
    %c0_71 = arith.constant 0 : index
    %56 = vector.load %arg1[%c0_68, %c1_69, %c6_70, %c0_71] : memref<1x10x10x12xbf16, #tpu.memory_space<vmem>>, vector<1x8x4x12xbf16>
    %57 = vector.shape_cast %56 : vector<1x8x4x12xbf16> to vector<8x4x12xbf16>
    %58 = vector.shape_cast %57 : vector<8x4x12xbf16> to vector<32x12xbf16>
    %c0_72 = arith.constant 0 : index
    %c2_73 = arith.constant 2 : index
    %c5_74 = arith.constant 5 : index
    %c0_75 = arith.constant 0 : index
    %59 = vector.load %arg1[%c0_72, %c2_73, %c5_74, %c0_75] : memref<1x10x10x12xbf16, #tpu.memory_space<vmem>>, vector<1x8x4x12xbf16>
    %60 = vector.shape_cast %59 : vector<1x8x4x12xbf16> to vector<8x4x12xbf16>
    %61 = vector.shape_cast %60 : vector<8x4x12xbf16> to vector<32x12xbf16>
    %c0_76 = arith.constant 0 : index
    %c2_77 = arith.constant 2 : index
    %c1_78 = arith.constant 1 : index
    %c0_79 = arith.constant 0 : index
    %62 = vector.load %arg1[%c0_76, %c2_77, %c1_78, %c0_79] : memref<1x10x10x12xbf16, #tpu.memory_space<vmem>>, vector<1x8x4x12xbf16>
    %63 = vector.shape_cast %62 : vector<1x8x4x12xbf16> to vector<8x4x12xbf16>
    %64 = vector.shape_cast %63 : vector<8x4x12xbf16> to vector<32x12xbf16>
    %c0_80 = arith.constant 0 : index
    %c2_81 = arith.constant 2 : index
    %c6_82 = arith.constant 6 : index
    %c0_83 = arith.constant 0 : index
    %65 = vector.load %arg1[%c0_80, %c2_81, %c6_82, %c0_83] : memref<1x10x10x12xbf16, #tpu.memory_space<vmem>>, vector<1x8x4x12xbf16>
    %66 = vector.shape_cast %65 : vector<1x8x4x12xbf16> to vector<8x4x12xbf16>
    %67 = vector.shape_cast %66 : vector<8x4x12xbf16> to vector<32x12xbf16>
    %68 = tpu.concatenate %43, %46, %49, %52, %55, %58, %61, %64, %67 in 1 : vector<32x12xbf16>, vector<32x12xbf16>, vector<32x12xbf16>, vector<32x12xbf16>, vector<32x12xbf16>, vector<32x12xbf16>, vector<32x12xbf16>, vector<32x12xbf16>, vector<32x12xbf16> -> vector<32x108xbf16>
    %c0_84 = arith.constant 0 : index
    %c0_85 = arith.constant 0 : index
    %69 = vector.load %arg2[%c0_84, %c0_85] : memref<108x32xbf16, #tpu.memory_space<vmem>>, vector<108x32xbf16>
    %cst_86 = arith.constant dense<0.000000e+00> : vector<32x32xf32>
    %70 = tpu.matmul %68, %69, %cst_86 {dimension_numbers = #tpu.dot_dimension_numbers<[1], [0], [0], [1], [0, 0, 1, 1], [], []>} : vector<32x108xbf16>, vector<108x32xbf16>, vector<32x32xf32> -> vector<32x32xf32>
    %c0_87 = arith.constant 0 : index
    %c0_88 = arith.constant 0 : index
    %71 = vector.load %arg3[%c0_87, %c0_88] : memref<1x32xf32, #tpu.memory_space<vmem>>, vector<1x32xf32>
    %72 = vector.broadcast %71 : vector<1x32xf32> to vector<32x32xf32>
    %73 = arith.addf %70, %72 : vector<32x32xf32>
    %cst_89 = arith.constant 0.000000e+00 : f32
    %74 = vector.broadcast %cst_89 : f32 to vector<32x32xf32>
    %75 = arith.maximumf %73, %74 : vector<32x32xf32>
    %76 = arith.truncf %40 : vector<32x32xf32> to vector<32x32xbf16>
    %77 = arith.truncf %75 : vector<32x32xf32> to vector<32x32xbf16>
    %78 = vector.extract_strided_slice %77 {offsets = [4, 0], sizes = [4, 32], strides = [1, 1]} : vector<32x32xbf16> to vector<4x32xbf16>
    %c1_90 = arith.constant 1 : index
    %c1_91 = arith.constant 1 : index
    %c0_92 = arith.constant 0 : index
    %79 = vector.load %arg21[%c1_90, %c1_91, %c0_92] : memref<5x5x128xbf16, #tpu.memory_space<vmem>>, vector<1x4x32xbf16>
    %80 = vector.shape_cast %79 : vector<1x4x32xbf16> to vector<4x32xbf16>
    %81 = vector.shape_cast %78 : vector<4x32xbf16> to vector<1x4x32xbf16>
    tpu.vector_store %arg21[%c1_90, %c1_91, %c0_92], %81 {strides = array<i32>} : memref<5x5x128xbf16, #tpu.memory_space<vmem>>, vector<1x4x32xbf16>,
    %82 = vector.extract_strided_slice %76 {offsets = [4, 0], sizes = [4, 32], strides = [1, 1]} : vector<32x32xbf16> to vector<4x32xbf16>
    %c1_93 = arith.constant 1 : index
    %c0_94 = arith.constant 0 : index
    %c32 = arith.constant 32 : index
    %83 = vector.load %arg21[%c1_93, %c0_94, %c32] : memref<5x5x128xbf16, #tpu.memory_space<vmem>>, vector<1x4x32xbf16>
    %84 = vector.shape_cast %83 : vector<1x4x32xbf16> to vector<4x32xbf16>
    %85 = vector.shape_cast %82 : vector<4x32xbf16> to vector<1x4x32xbf16>
    tpu.vector_store %arg21[%c1_93, %c0_94, %c32], %85 {strides = array<i32>} : memref<5x5x128xbf16, #tpu.memory_space<vmem>>, vector<1x4x32xbf16>,
    %86 = vector.extract_strided_slice %77 {offsets = [12, 0], sizes = [4, 32], strides = [1, 1]} : vector<32x32xbf16> to vector<4x32xbf16>
    %c2_95 = arith.constant 2 : index
    %c1_96 = arith.constant 1 : index
    %c0_97 = arith.constant 0 : index
    %87 = vector.load %arg21[%c2_95, %c1_96, %c0_97] : memref<5x5x128xbf16, #tpu.memory_space<vmem>>, vector<1x4x32xbf16>
    %88 = vector.shape_cast %87 : vector<1x4x32xbf16> to vector<4x32xbf16>
    %89 = vector.shape_cast %86 : vector<4x32xbf16> to vector<1x4x32xbf16>
    tpu.vector_store %arg21[%c2_95, %c1_96, %c0_97], %89 {strides = array<i32>} : memref<5x5x128xbf16, #tpu.memory_space<vmem>>, vector<1x4x32xbf16>,
    %90 = vector.extract_strided_slice %76 {offsets = [12, 0], sizes = [4, 32], strides = [1, 1]} : vector<32x32xbf16> to vector<4x32xbf16>
    %c2_98 = arith.constant 2 : index
    %c0_99 = arith.constant 0 : index
    %c32_100 = arith.constant 32 : index
    %91 = vector.load %arg21[%c2_98, %c0_99, %c32_100] : memref<5x5x128xbf16, #tpu.memory_space<vmem>>, vector<1x4x32xbf16>
    %92 = vector.shape_cast %91 : vector<1x4x32xbf16> to vector<4x32xbf16>
    %93 = vector.shape_cast %90 : vector<4x32xbf16> to vector<1x4x32xbf16>
    tpu.vector_store %arg21[%c2_98, %c0_99, %c32_100], %93 {strides = array<i32>} : memref<5x5x128xbf16, #tpu.memory_space<vmem>>, vector<1x4x32xbf16>,
    %94 = vector.extract_strided_slice %77 {offsets = [20, 0], sizes = [4, 32], strides = [1, 1]} : vector<32x32xbf16> to vector<4x32xbf16>
    %c3 = arith.constant 3 : index
    %c1_101 = arith.constant 1 : index
    %c0_102 = arith.constant 0 : index
    %95 = vector.load %arg21[%c3, %c1_101, %c0_102] : memref<5x5x128xbf16, #tpu.memory_space<vmem>>, vector<1x4x32xbf16>
    %96 = vector.shape_cast %95 : vector<1x4x32xbf16> to vector<4x32xbf16>
    %97 = vector.shape_cast %94 : vector<4x32xbf16> to vector<1x4x32xbf16>
    tpu.vector_store %arg21[%c3, %c1_101, %c0_102], %97 {strides = array<i32>} : memref<5x5x128xbf16, #tpu.memory_space<vmem>>, vector<1x4x32xbf16>,
    %98 = vector.extract_strided_slice %76 {offsets = [20, 0], sizes = [4, 32], strides = [1, 1]} : vector<32x32xbf16> to vector<4x32xbf16>
    %c3_103 = arith.constant 3 : index
    %c0_104 = arith.constant 0 : index
    %c32_105 = arith.constant 32 : index
    %99 = vector.load %arg21[%c3_103, %c0_104, %c32_105] : memref<5x5x128xbf16, #tpu.memory_space<vmem>>, vector<1x4x32xbf16>
    %100 = vector.shape_cast %99 : vector<1x4x32xbf16> to vector<4x32xbf16>
    %101 = vector.shape_cast %98 : vector<4x32xbf16> to vector<1x4x32xbf16>
    tpu.vector_store %arg21[%c3_103, %c0_104, %c32_105], %101 {strides = array<i32>} : memref<5x5x128xbf16, #tpu.memory_space<vmem>>, vector<1x4x32xbf16>,
    %102 = vector.extract_strided_slice %77 {offsets = [28, 0], sizes = [4, 32], strides = [1, 1]} : vector<32x32xbf16> to vector<4x32xbf16>
    %c4 = arith.constant 4 : index
    %c1_106 = arith.constant 1 : index
    %c0_107 = arith.constant 0 : index
    %103 = vector.load %arg21[%c4, %c1_106, %c0_107] : memref<5x5x128xbf16, #tpu.memory_space<vmem>>, vector<1x4x32xbf16>
    %104 = vector.shape_cast %103 : vector<1x4x32xbf16> to vector<4x32xbf16>
    %105 = vector.shape_cast %102 : vector<4x32xbf16> to vector<1x4x32xbf16>
    tpu.vector_store %arg21[%c4, %c1_106, %c0_107], %105 {strides = array<i32>} : memref<5x5x128xbf16, #tpu.memory_space<vmem>>, vector<1x4x32xbf16>,
    %106 = vector.extract_strided_slice %76 {offsets = [28, 0], sizes = [4, 32], strides = [1, 1]} : vector<32x32xbf16> to vector<4x32xbf16>
    %c4_108 = arith.constant 4 : index
    %c0_109 = arith.constant 0 : index
    %c32_110 = arith.constant 32 : index
    %107 = vector.load %arg21[%c4_108, %c0_109, %c32_110] : memref<5x5x128xbf16, #tpu.memory_space<vmem>>, vector<1x4x32xbf16>
    %108 = vector.shape_cast %107 : vector<1x4x32xbf16> to vector<4x32xbf16>
    %109 = vector.shape_cast %106 : vector<4x32xbf16> to vector<1x4x32xbf16>
    tpu.vector_store %arg21[%c4_108, %c0_109, %c32_110], %109 {strides = array<i32>} : memref<5x5x128xbf16, #tpu.memory_space<vmem>>, vector<1x4x32xbf16>,
    %110 = vector.extract_strided_slice %77 {offsets = [0, 0], sizes = [4, 32], strides = [1, 1]} : vector<32x32xbf16> to vector<4x32xbf16>
    %c0_111 = arith.constant 0 : index
    %c1_112 = arith.constant 1 : index
    %c64 = arith.constant 64 : index
    %111 = vector.load %arg21[%c0_111, %c1_112, %c64] : memref<5x5x128xbf16, #tpu.memory_space<vmem>>, vector<1x4x32xbf16>
    %112 = vector.shape_cast %111 : vector<1x4x32xbf16> to vector<4x32xbf16>
    %113 = vector.shape_cast %110 : vector<4x32xbf16> to vector<1x4x32xbf16>
    tpu.vector_store %arg21[%c0_111, %c1_112, %c64], %113 {strides = array<i32>} : memref<5x5x128xbf16, #tpu.memory_space<vmem>>, vector<1x4x32xbf16>,
    %114 = vector.extract_strided_slice %76 {offsets = [0, 0], sizes = [4, 32], strides = [1, 1]} : vector<32x32xbf16> to vector<4x32xbf16>
    %c0_113 = arith.constant 0 : index
    %c0_114 = arith.constant 0 : index
    %c96 = arith.constant 96 : index
    %115 = vector.load %arg21[%c0_113, %c0_114, %c96] : memref<5x5x128xbf16, #tpu.memory_space<vmem>>, vector<1x4x32xbf16>
    %116 = vector.shape_cast %115 : vector<1x4x32xbf16> to vector<4x32xbf16>
    %117 = vector.shape_cast %114 : vector<4x32xbf16> to vector<1x4x32xbf16>
    tpu.vector_store %arg21[%c0_113, %c0_114, %c96], %117 {strides = array<i32>} : memref<5x5x128xbf16, #tpu.memory_space<vmem>>, vector<1x4x32xbf16>,
    %118 = vector.extract_strided_slice %77 {offsets = [8, 0], sizes = [4, 32], strides = [1, 1]} : vector<32x32xbf16> to vector<4x32xbf16>
    %c1_115 = arith.constant 1 : index
    %c1_116 = arith.constant 1 : index
    %c64_117 = arith.constant 64 : index
    %119 = vector.load %arg21[%c1_115, %c1_116, %c64_117] : memref<5x5x128xbf16, #tpu.memory_space<vmem>>, vector<1x4x32xbf16>
    %120 = vector.shape_cast %119 : vector<1x4x32xbf16> to vector<4x32xbf16>
    %121 = vector.shape_cast %118 : vector<4x32xbf16> to vector<1x4x32xbf16>
    tpu.vector_store %arg21[%c1_115, %c1_116, %c64_117], %121 {strides = array<i32>} : memref<5x5x128xbf16, #tpu.memory_space<vmem>>, vector<1x4x32xbf16>,
    %122 = vector.extract_strided_slice %76 {offsets = [8, 0], sizes = [4, 32], strides = [1, 1]} : vector<32x32xbf16> to vector<4x32xbf16>
    %c1_118 = arith.constant 1 : index
    %c0_119 = arith.constant 0 : index
    %c96_120 = arith.constant 96 : index
    %123 = vector.load %arg21[%c1_118, %c0_119, %c96_120] : memref<5x5x128xbf16, #tpu.memory_space<vmem>>, vector<1x4x32xbf16>
    %124 = vector.shape_cast %123 : vector<1x4x32xbf16> to vector<4x32xbf16>
    %125 = vector.shape_cast %122 : vector<4x32xbf16> to vector<1x4x32xbf16>
    tpu.vector_store %arg21[%c1_118, %c0_119, %c96_120], %125 {strides = array<i32>} : memref<5x5x128xbf16, #tpu.memory_space<vmem>>, vector<1x4x32xbf16>,
    %126 = vector.extract_strided_slice %77 {offsets = [16, 0], sizes = [4, 32], strides = [1, 1]} : vector<32x32xbf16> to vector<4x32xbf16>
    %c2_121 = arith.constant 2 : index
    %c1_122 = arith.constant 1 : index
    %c64_123 = arith.constant 64 : index
    %127 = vector.load %arg21[%c2_121, %c1_122, %c64_123] : memref<5x5x128xbf16, #tpu.memory_space<vmem>>, vector<1x4x32xbf16>
    %128 = vector.shape_cast %127 : vector<1x4x32xbf16> to vector<4x32xbf16>
    %129 = vector.shape_cast %126 : vector<4x32xbf16> to vector<1x4x32xbf16>
    tpu.vector_store %arg21[%c2_121, %c1_122, %c64_123], %129 {strides = array<i32>} : memref<5x5x128xbf16, #tpu.memory_space<vmem>>, vector<1x4x32xbf16>,
    %130 = vector.extract_strided_slice %76 {offsets = [16, 0], sizes = [4, 32], strides = [1, 1]} : vector<32x32xbf16> to vector<4x32xbf16>
    %c2_124 = arith.constant 2 : index
    %c0_125 = arith.constant 0 : index
    %c96_126 = arith.constant 96 : index
    %131 = vector.load %arg21[%c2_124, %c0_125, %c96_126] : memref<5x5x128xbf16, #tpu.memory_space<vmem>>, vector<1x4x32xbf16>
    %132 = vector.shape_cast %131 : vector<1x4x32xbf16> to vector<4x32xbf16>
    %133 = vector.shape_cast %130 : vector<4x32xbf16> to vector<1x4x32xbf16>
    tpu.vector_store %arg21[%c2_124, %c0_125, %c96_126], %133 {strides = array<i32>} : memref<5x5x128xbf16, #tpu.memory_space<vmem>>, vector<1x4x32xbf16>,
    %134 = vector.extract_strided_slice %77 {offsets = [24, 0], sizes = [4, 32], strides = [1, 1]} : vector<32x32xbf16> to vector<4x32xbf16>
    %c3_127 = arith.constant 3 : index
    %c1_128 = arith.constant 1 : index
    %c64_129 = arith.constant 64 : index
    %135 = vector.load %arg21[%c3_127, %c1_128, %c64_129] : memref<5x5x128xbf16, #tpu.memory_space<vmem>>, vector<1x4x32xbf16>
    %136 = vector.shape_cast %135 : vector<1x4x32xbf16> to vector<4x32xbf16>
    %137 = vector.shape_cast %134 : vector<4x32xbf16> to vector<1x4x32xbf16>
    tpu.vector_store %arg21[%c3_127, %c1_128, %c64_129], %137 {strides = array<i32>} : memref<5x5x128xbf16, #tpu.memory_space<vmem>>, vector<1x4x32xbf16>,
    %138 = vector.extract_strided_slice %76 {offsets = [24, 0], sizes = [4, 32], strides = [1, 1]} : vector<32x32xbf16> to vector<4x32xbf16>
    %c3_130 = arith.constant 3 : index
    %c0_131 = arith.constant 0 : index
    %c96_132 = arith.constant 96 : index
    %139 = vector.load %arg21[%c3_130, %c0_131, %c96_132] : memref<5x5x128xbf16, #tpu.memory_space<vmem>>, vector<1x4x32xbf16>
    %140 = vector.shape_cast %139 : vector<1x4x32xbf16> to vector<4x32xbf16>
    %141 = vector.shape_cast %138 : vector<4x32xbf16> to vector<1x4x32xbf16>
    tpu.vector_store %arg21[%c3_130, %c0_131, %c96_132], %141 {strides = array<i32>} : memref<5x5x128xbf16, #tpu.memory_space<vmem>>, vector<1x4x32xbf16>,
    %c0_133 = arith.constant 0 : index
    %c0_134 = arith.constant 0 : index
    %c0_135 = arith.constant 0 : index
    %142 = vector.load %arg21[%c0_133, %c0_134, %c0_135] : memref<5x5x128xbf16, #tpu.memory_space<vmem>>, vector<4x4x128xbf16>
    %143 = vector.shape_cast %142 : vector<4x4x128xbf16> to vector<16x128xbf16>
    %c0_136 = arith.constant 0 : index
    %c1_137 = arith.constant 1 : index
    %c0_138 = arith.constant 0 : index
    %144 = vector.load %arg21[%c0_136, %c1_137, %c0_138] : memref<5x5x128xbf16, #tpu.memory_space<vmem>>, vector<4x4x128xbf16>
    %145 = vector.shape_cast %144 : vector<4x4x128xbf16> to vector<16x128xbf16>
    %c1_139 = arith.constant 1 : index
    %c0_140 = arith.constant 0 : index
    %c0_141 = arith.constant 0 : index
    %146 = vector.load %arg21[%c1_139, %c0_140, %c0_141] : memref<5x5x128xbf16, #tpu.memory_space<vmem>>, vector<4x4x128xbf16>
    %147 = vector.shape_cast %146 : vector<4x4x128xbf16> to vector<16x128xbf16>
    %c1_142 = arith.constant 1 : index
    %c1_143 = arith.constant 1 : index
    %c0_144 = arith.constant 0 : index
    %148 = vector.load %arg21[%c1_142, %c1_143, %c0_144] : memref<5x5x128xbf16, #tpu.memory_space<vmem>>, vector<4x4x128xbf16>
    %149 = vector.shape_cast %148 : vector<4x4x128xbf16> to vector<16x128xbf16>
    %150 = tpu.concatenate %143, %145, %147, %149 in 1 : vector<16x128xbf16>, vector<16x128xbf16>, vector<16x128xbf16>, vector<16x128xbf16> -> vector<16x512xbf16>
    %c0_145 = arith.constant 0 : index
    %c0_146 = arith.constant 0 : index
    %151 = vector.load %arg4[%c0_145, %c0_146] : memref<512x64xbf16, #tpu.memory_space<vmem>>, vector<512x64xbf16>
    %cst_147 = arith.constant dense<0.000000e+00> : vector<16x64xf32>
    %152 = tpu.matmul %150, %151, %cst_147 {dimension_numbers = #tpu.dot_dimension_numbers<[1], [0], [0], [1], [0, 0, 1, 1], [], []>} : vector<16x512xbf16>, vector<512x64xbf16>, vector<16x64xf32> -> vector<16x64xf32>
    %c0_148 = arith.constant 0 : index
    %c0_149 = arith.constant 0 : index
    %153 = vector.load %arg5[%c0_148, %c0_149] : memref<1x64xf32, #tpu.memory_space<vmem>>, vector<1x64xf32>
    %154 = vector.broadcast %153 : vector<1x64xf32> to vector<16x64xf32>
    %155 = arith.addf %152, %154 : vector<16x64xf32>
    %cst_150 = arith.constant 0.000000e+00 : f32
    %156 = vector.broadcast %cst_150 : f32 to vector<16x64xf32>
    %157 = arith.maximumf %155, %156 : vector<16x64xf32>
    %158 = arith.truncf %157 : vector<16x64xf32> to vector<16x64xbf16>
    %159 = vector.extract_strided_slice %158 {offsets = [0, 0], sizes = [4, 64], strides = [1, 1]} : vector<16x64xbf16> to vector<4x64xbf16>
    %c1_151 = arith.constant 1 : index
    %c1_152 = arith.constant 1 : index
    %c0_153 = arith.constant 0 : index
    %160 = vector.load %arg22[%c1_151, %c1_152, %c0_153] : memref<6x6x64xbf16, #tpu.memory_space<vmem>>, vector<1x4x64xbf16>
    %161 = vector.shape_cast %160 : vector<1x4x64xbf16> to vector<4x64xbf16>
    %162 = vector.shape_cast %159 : vector<4x64xbf16> to vector<1x4x64xbf16>
    tpu.vector_store %arg22[%c1_151, %c1_152, %c0_153], %162 {strides = array<i32>} : memref<6x6x64xbf16, #tpu.memory_space<vmem>>, vector<1x4x64xbf16>,
    %163 = vector.extract_strided_slice %158 {offsets = [4, 0], sizes = [4, 64], strides = [1, 1]} : vector<16x64xbf16> to vector<4x64xbf16>
    %c2_154 = arith.constant 2 : index
    %c1_155 = arith.constant 1 : index
    %c0_156 = arith.constant 0 : index
    %164 = vector.load %arg22[%c2_154, %c1_155, %c0_156] : memref<6x6x64xbf16, #tpu.memory_space<vmem>>, vector<1x4x64xbf16>
    %165 = vector.shape_cast %164 : vector<1x4x64xbf16> to vector<4x64xbf16>
    %166 = vector.shape_cast %163 : vector<4x64xbf16> to vector<1x4x64xbf16>
    tpu.vector_store %arg22[%c2_154, %c1_155, %c0_156], %166 {strides = array<i32>} : memref<6x6x64xbf16, #tpu.memory_space<vmem>>, vector<1x4x64xbf16>,
    %167 = vector.extract_strided_slice %158 {offsets = [8, 0], sizes = [4, 64], strides = [1, 1]} : vector<16x64xbf16> to vector<4x64xbf16>
    %c3_157 = arith.constant 3 : index
    %c1_158 = arith.constant 1 : index
    %c0_159 = arith.constant 0 : index
    %168 = vector.load %arg22[%c3_157, %c1_158, %c0_159] : memref<6x6x64xbf16, #tpu.memory_space<vmem>>, vector<1x4x64xbf16>
    %169 = vector.shape_cast %168 : vector<1x4x64xbf16> to vector<4x64xbf16>
    %170 = vector.shape_cast %167 : vector<4x64xbf16> to vector<1x4x64xbf16>
    tpu.vector_store %arg22[%c3_157, %c1_158, %c0_159], %170 {strides = array<i32>} : memref<6x6x64xbf16, #tpu.memory_space<vmem>>, vector<1x4x64xbf16>,
    %171 = vector.extract_strided_slice %158 {offsets = [12, 0], sizes = [4, 64], strides = [1, 1]} : vector<16x64xbf16> to vector<4x64xbf16>
    %c4_160 = arith.constant 4 : index
    %c1_161 = arith.constant 1 : index
    %c0_162 = arith.constant 0 : index
    %172 = vector.load %arg22[%c4_160, %c1_161, %c0_162] : memref<6x6x64xbf16, #tpu.memory_space<vmem>>, vector<1x4x64xbf16>
    %173 = vector.shape_cast %172 : vector<1x4x64xbf16> to vector<4x64xbf16>
    %174 = vector.shape_cast %171 : vector<4x64xbf16> to vector<1x4x64xbf16>
    tpu.vector_store %arg22[%c4_160, %c1_161, %c0_162], %174 {strides = array<i32>} : memref<6x6x64xbf16, #tpu.memory_space<vmem>>, vector<1x4x64xbf16>,
    %c0_163 = arith.constant 0 : index
    %c0_164 = arith.constant 0 : index
    %c0_165 = arith.constant 0 : index
    %175 = vector.load %arg22[%c0_163, %c0_164, %c0_165] : memref<6x6x64xbf16, #tpu.memory_space<vmem>>, vector<4x4x64xbf16>
    %176 = vector.shape_cast %175 : vector<4x4x64xbf16> to vector<16x64xbf16>
    %c0_166 = arith.constant 0 : index
    %c1_167 = arith.constant 1 : index
    %c0_168 = arith.constant 0 : index
    %177 = vector.load %arg22[%c0_166, %c1_167, %c0_168] : memref<6x6x64xbf16, #tpu.memory_space<vmem>>, vector<4x4x64xbf16>
    %178 = vector.shape_cast %177 : vector<4x4x64xbf16> to vector<16x64xbf16>
    %c0_169 = arith.constant 0 : index
    %c2_170 = arith.constant 2 : index
    %c0_171 = arith.constant 0 : index
    %179 = vector.load %arg22[%c0_169, %c2_170, %c0_171] : memref<6x6x64xbf16, #tpu.memory_space<vmem>>, vector<4x4x64xbf16>
    %180 = vector.shape_cast %179 : vector<4x4x64xbf16> to vector<16x64xbf16>
    %c1_172 = arith.constant 1 : index
    %c0_173 = arith.constant 0 : index
    %c0_174 = arith.constant 0 : index
    %181 = vector.load %arg22[%c1_172, %c0_173, %c0_174] : memref<6x6x64xbf16, #tpu.memory_space<vmem>>, vector<4x4x64xbf16>
    %182 = vector.shape_cast %181 : vector<4x4x64xbf16> to vector<16x64xbf16>
    %c1_175 = arith.constant 1 : index
    %c1_176 = arith.constant 1 : index
    %c0_177 = arith.constant 0 : index
    %183 = vector.load %arg22[%c1_175, %c1_176, %c0_177] : memref<6x6x64xbf16, #tpu.memory_space<vmem>>, vector<4x4x64xbf16>
    %184 = vector.shape_cast %183 : vector<4x4x64xbf16> to vector<16x64xbf16>
    %c1_178 = arith.constant 1 : index
    %c2_179 = arith.constant 2 : index
    %c0_180 = arith.constant 0 : index
    %185 = vector.load %arg22[%c1_178, %c2_179, %c0_180] : memref<6x6x64xbf16, #tpu.memory_space<vmem>>, vector<4x4x64xbf16>
    %186 = vector.shape_cast %185 : vector<4x4x64xbf16> to vector<16x64xbf16>
    %c2_181 = arith.constant 2 : index
    %c0_182 = arith.constant 0 : index
    %c0_183 = arith.constant 0 : index
    %187 = vector.load %arg22[%c2_181, %c0_182, %c0_183] : memref<6x6x64xbf16, #tpu.memory_space<vmem>>, vector<4x4x64xbf16>
    %188 = vector.shape_cast %187 : vector<4x4x64xbf16> to vector<16x64xbf16>
    %c2_184 = arith.constant 2 : index
    %c1_185 = arith.constant 1 : index
    %c0_186 = arith.constant 0 : index
    %189 = vector.load %arg22[%c2_184, %c1_185, %c0_186] : memref<6x6x64xbf16, #tpu.memory_space<vmem>>, vector<4x4x64xbf16>
    %190 = vector.shape_cast %189 : vector<4x4x64xbf16> to vector<16x64xbf16>
    %c2_187 = arith.constant 2 : index
    %c2_188 = arith.constant 2 : index
    %c0_189 = arith.constant 0 : index
    %191 = vector.load %arg22[%c2_187, %c2_188, %c0_189] : memref<6x6x64xbf16, #tpu.memory_space<vmem>>, vector<4x4x64xbf16>
    %192 = vector.shape_cast %191 : vector<4x4x64xbf16> to vector<16x64xbf16>
    %193 = tpu.concatenate %176, %178, %180, %182, %184, %186, %188, %190, %192 in 1 : vector<16x64xbf16>, vector<16x64xbf16>, vector<16x64xbf16>, vector<16x64xbf16>, vector<16x64xbf16>, vector<16x64xbf16>, vector<16x64xbf16>, vector<16x64xbf16>, vector<16x64xbf16> -> vector<16x576xbf16>
    %c0_190 = arith.constant 0 : index
    %c0_191 = arith.constant 0 : index
    %194 = vector.load %arg6[%c0_190, %c0_191] : memref<576x64xbf16, #tpu.memory_space<vmem>>, vector<576x64xbf16>
    %cst_192 = arith.constant dense<0.000000e+00> : vector<16x64xf32>
    %195 = tpu.matmul %193, %194, %cst_192 {dimension_numbers = #tpu.dot_dimension_numbers<[1], [0], [0], [1], [0, 0, 1, 1], [], []>} : vector<16x576xbf16>, vector<576x64xbf16>, vector<16x64xf32> -> vector<16x64xf32>
    %c0_193 = arith.constant 0 : index
    %c0_194 = arith.constant 0 : index
    %196 = vector.load %arg7[%c0_193, %c0_194] : memref<1x64xf32, #tpu.memory_space<vmem>>, vector<1x64xf32>
    %197 = vector.broadcast %196 : vector<1x64xf32> to vector<16x64xf32>
    %198 = arith.addf %195, %197 : vector<16x64xf32>
    %cst_195 = arith.constant 0.000000e+00 : f32
    %199 = vector.broadcast %cst_195 : f32 to vector<16x64xf32>
    %200 = arith.maximumf %198, %199 : vector<16x64xf32>
    %201 = arith.truncf %200 : vector<16x64xf32> to vector<16x64xbf16>
    %202 = vector.extract_strided_slice %201 {offsets = [0, 0], sizes = [4, 64], strides = [1, 1]} : vector<16x64xbf16> to vector<4x64xbf16>
    %c1_196 = arith.constant 1 : index
    %c1_197 = arith.constant 1 : index
    %c0_198 = arith.constant 0 : index
    %203 = vector.load %arg22[%c1_196, %c1_197, %c0_198] : memref<6x6x64xbf16, #tpu.memory_space<vmem>>, vector<1x4x64xbf16>
    %204 = vector.shape_cast %203 : vector<1x4x64xbf16> to vector<4x64xbf16>
    %205 = vector.shape_cast %202 : vector<4x64xbf16> to vector<1x4x64xbf16>
    tpu.vector_store %arg22[%c1_196, %c1_197, %c0_198], %205 {strides = array<i32>} : memref<6x6x64xbf16, #tpu.memory_space<vmem>>, vector<1x4x64xbf16>,
    %206 = vector.extract_strided_slice %201 {offsets = [4, 0], sizes = [4, 64], strides = [1, 1]} : vector<16x64xbf16> to vector<4x64xbf16>
    %c2_199 = arith.constant 2 : index
    %c1_200 = arith.constant 1 : index
    %c0_201 = arith.constant 0 : index
    %207 = vector.load %arg22[%c2_199, %c1_200, %c0_201] : memref<6x6x64xbf16, #tpu.memory_space<vmem>>, vector<1x4x64xbf16>
    %208 = vector.shape_cast %207 : vector<1x4x64xbf16> to vector<4x64xbf16>
    %209 = vector.shape_cast %206 : vector<4x64xbf16> to vector<1x4x64xbf16>
    tpu.vector_store %arg22[%c2_199, %c1_200, %c0_201], %209 {strides = array<i32>} : memref<6x6x64xbf16, #tpu.memory_space<vmem>>, vector<1x4x64xbf16>,
    %210 = vector.extract_strided_slice %201 {offsets = [8, 0], sizes = [4, 64], strides = [1, 1]} : vector<16x64xbf16> to vector<4x64xbf16>
    %c3_202 = arith.constant 3 : index
    %c1_203 = arith.constant 1 : index
    %c0_204 = arith.constant 0 : index
    %211 = vector.load %arg22[%c3_202, %c1_203, %c0_204] : memref<6x6x64xbf16, #tpu.memory_space<vmem>>, vector<1x4x64xbf16>
    %212 = vector.shape_cast %211 : vector<1x4x64xbf16> to vector<4x64xbf16>
    %213 = vector.shape_cast %210 : vector<4x64xbf16> to vector<1x4x64xbf16>
    tpu.vector_store %arg22[%c3_202, %c1_203, %c0_204], %213 {strides = array<i32>} : memref<6x6x64xbf16, #tpu.memory_space<vmem>>, vector<1x4x64xbf16>,
    %214 = vector.extract_strided_slice %201 {offsets = [12, 0], sizes = [4, 64], strides = [1, 1]} : vector<16x64xbf16> to vector<4x64xbf16>
    %c4_205 = arith.constant 4 : index
    %c1_206 = arith.constant 1 : index
    %c0_207 = arith.constant 0 : index
    %215 = vector.load %arg22[%c4_205, %c1_206, %c0_207] : memref<6x6x64xbf16, #tpu.memory_space<vmem>>, vector<1x4x64xbf16>
    %216 = vector.shape_cast %215 : vector<1x4x64xbf16> to vector<4x64xbf16>
    %217 = vector.shape_cast %214 : vector<4x64xbf16> to vector<1x4x64xbf16>
    tpu.vector_store %arg22[%c4_205, %c1_206, %c0_207], %217 {strides = array<i32>} : memref<6x6x64xbf16, #tpu.memory_space<vmem>>, vector<1x4x64xbf16>,
    %c0_208 = arith.constant 0 : index
    %c0_209 = arith.constant 0 : index
    %c0_210 = arith.constant 0 : index
    %218 = vector.load %arg22[%c0_208, %c0_209, %c0_210] : memref<6x6x64xbf16, #tpu.memory_space<vmem>>, vector<4x4x64xbf16>
    %219 = vector.shape_cast %218 : vector<4x4x64xbf16> to vector<16x64xbf16>
    %c0_211 = arith.constant 0 : index
    %c1_212 = arith.constant 1 : index
    %c0_213 = arith.constant 0 : index
    %220 = vector.load %arg22[%c0_211, %c1_212, %c0_213] : memref<6x6x64xbf16, #tpu.memory_space<vmem>>, vector<4x4x64xbf16>
    %221 = vector.shape_cast %220 : vector<4x4x64xbf16> to vector<16x64xbf16>
    %c0_214 = arith.constant 0 : index
    %c2_215 = arith.constant 2 : index
    %c0_216 = arith.constant 0 : index
    %222 = vector.load %arg22[%c0_214, %c2_215, %c0_216] : memref<6x6x64xbf16, #tpu.memory_space<vmem>>, vector<4x4x64xbf16>
    %223 = vector.shape_cast %222 : vector<4x4x64xbf16> to vector<16x64xbf16>
    %c1_217 = arith.constant 1 : index
    %c0_218 = arith.constant 0 : index
    %c0_219 = arith.constant 0 : index
    %224 = vector.load %arg22[%c1_217, %c0_218, %c0_219] : memref<6x6x64xbf16, #tpu.memory_space<vmem>>, vector<4x4x64xbf16>
    %225 = vector.shape_cast %224 : vector<4x4x64xbf16> to vector<16x64xbf16>
    %c1_220 = arith.constant 1 : index
    %c1_221 = arith.constant 1 : index
    %c0_222 = arith.constant 0 : index
    %226 = vector.load %arg22[%c1_220, %c1_221, %c0_222] : memref<6x6x64xbf16, #tpu.memory_space<vmem>>, vector<4x4x64xbf16>
    %227 = vector.shape_cast %226 : vector<4x4x64xbf16> to vector<16x64xbf16>
    %c1_223 = arith.constant 1 : index
    %c2_224 = arith.constant 2 : index
    %c0_225 = arith.constant 0 : index
    %228 = vector.load %arg22[%c1_223, %c2_224, %c0_225] : memref<6x6x64xbf16, #tpu.memory_space<vmem>>, vector<4x4x64xbf16>
    %229 = vector.shape_cast %228 : vector<4x4x64xbf16> to vector<16x64xbf16>
    %c2_226 = arith.constant 2 : index
    %c0_227 = arith.constant 0 : index
    %c0_228 = arith.constant 0 : index
    %230 = vector.load %arg22[%c2_226, %c0_227, %c0_228] : memref<6x6x64xbf16, #tpu.memory_space<vmem>>, vector<4x4x64xbf16>
    %231 = vector.shape_cast %230 : vector<4x4x64xbf16> to vector<16x64xbf16>
    %c2_229 = arith.constant 2 : index
    %c1_230 = arith.constant 1 : index
    %c0_231 = arith.constant 0 : index
    %232 = vector.load %arg22[%c2_229, %c1_230, %c0_231] : memref<6x6x64xbf16, #tpu.memory_space<vmem>>, vector<4x4x64xbf16>
    %233 = vector.shape_cast %232 : vector<4x4x64xbf16> to vector<16x64xbf16>
    %c2_232 = arith.constant 2 : index
    %c2_233 = arith.constant 2 : index
    %c0_234 = arith.constant 0 : index
    %234 = vector.load %arg22[%c2_232, %c2_233, %c0_234] : memref<6x6x64xbf16, #tpu.memory_space<vmem>>, vector<4x4x64xbf16>
    %235 = vector.shape_cast %234 : vector<4x4x64xbf16> to vector<16x64xbf16>
    %236 = tpu.concatenate %219, %221, %223, %225, %227, %229, %231, %233, %235 in 1 : vector<16x64xbf16>, vector<16x64xbf16>, vector<16x64xbf16>, vector<16x64xbf16>, vector<16x64xbf16>, vector<16x64xbf16>, vector<16x64xbf16>, vector<16x64xbf16>, vector<16x64xbf16> -> vector<16x576xbf16>
    %c0_235 = arith.constant 0 : index
    %c0_236 = arith.constant 0 : index
    %237 = vector.load %arg8[%c0_235, %c0_236] : memref<576x128xbf16, #tpu.memory_space<vmem>>, vector<576x128xbf16>
    %cst_237 = arith.constant dense<0.000000e+00> : vector<16x128xf32>
    %238 = tpu.matmul %236, %237, %cst_237 {dimension_numbers = #tpu.dot_dimension_numbers<[1], [0], [0], [1], [0, 0, 1, 1], [], []>} : vector<16x576xbf16>, vector<576x128xbf16>, vector<16x128xf32> -> vector<16x128xf32>
    %c0_238 = arith.constant 0 : index
    %c0_239 = arith.constant 0 : index
    %239 = vector.load %arg9[%c0_238, %c0_239] : memref<1x128xf32, #tpu.memory_space<vmem>>, vector<1x128xf32>
    %240 = vector.broadcast %239 : vector<1x128xf32> to vector<16x128xf32>
    %241 = arith.addf %238, %240 : vector<16x128xf32>
    %cst_240 = arith.constant 0.000000e+00 : f32
    %242 = vector.broadcast %cst_240 : f32 to vector<16x128xf32>
    %243 = arith.maximumf %241, %242 : vector<16x128xf32>
    %cst_241 = arith.constant dense<0.000000e+00> : vector<128xf32>
    %244 = vector.multi_reduction <add>, %243, %cst_241 [0] : vector<16x128xf32> to vector<128xf32>
    %245 = vector.shape_cast %244 : vector<128xf32> to vector<1x128xf32>
    %cst_242 = arith.constant 1.600000e+01 : f32
    %246 = vector.broadcast %cst_242 : f32 to vector<1x128xf32>
    %247 = arith.divf %245, %246 : vector<1x128xf32>
    %248 = arith.truncf %243 : vector<16x128xf32> to vector<16x128xbf16>
    %249 = vector.extract_strided_slice %248 {offsets = [0, 0], sizes = [4, 128], strides = [1, 1]} : vector<16x128xbf16> to vector<4x128xbf16>
    %c1_243 = arith.constant 1 : index
    %c1_244 = arith.constant 1 : index
    %c0_245 = arith.constant 0 : index
    %250 = vector.load %arg23[%c1_243, %c1_244, %c0_245] : memref<6x6x128xbf16, #tpu.memory_space<vmem>>, vector<1x4x128xbf16>
    %251 = vector.shape_cast %250 : vector<1x4x128xbf16> to vector<4x128xbf16>
    %252 = vector.shape_cast %249 : vector<4x128xbf16> to vector<1x4x128xbf16>
    tpu.vector_store %arg23[%c1_243, %c1_244, %c0_245], %252 {strides = array<i32>} : memref<6x6x128xbf16, #tpu.memory_space<vmem>>, vector<1x4x128xbf16>,
    %253 = vector.extract_strided_slice %248 {offsets = [4, 0], sizes = [4, 128], strides = [1, 1]} : vector<16x128xbf16> to vector<4x128xbf16>
    %c2_246 = arith.constant 2 : index
    %c1_247 = arith.constant 1 : index
    %c0_248 = arith.constant 0 : index
    %254 = vector.load %arg23[%c2_246, %c1_247, %c0_248] : memref<6x6x128xbf16, #tpu.memory_space<vmem>>, vector<1x4x128xbf16>
    %255 = vector.shape_cast %254 : vector<1x4x128xbf16> to vector<4x128xbf16>
    %256 = vector.shape_cast %253 : vector<4x128xbf16> to vector<1x4x128xbf16>
    tpu.vector_store %arg23[%c2_246, %c1_247, %c0_248], %256 {strides = array<i32>} : memref<6x6x128xbf16, #tpu.memory_space<vmem>>, vector<1x4x128xbf16>,
    %257 = vector.extract_strided_slice %248 {offsets = [8, 0], sizes = [4, 128], strides = [1, 1]} : vector<16x128xbf16> to vector<4x128xbf16>
    %c3_249 = arith.constant 3 : index
    %c1_250 = arith.constant 1 : index
    %c0_251 = arith.constant 0 : index
    %258 = vector.load %arg23[%c3_249, %c1_250, %c0_251] : memref<6x6x128xbf16, #tpu.memory_space<vmem>>, vector<1x4x128xbf16>
    %259 = vector.shape_cast %258 : vector<1x4x128xbf16> to vector<4x128xbf16>
    %260 = vector.shape_cast %257 : vector<4x128xbf16> to vector<1x4x128xbf16>
    tpu.vector_store %arg23[%c3_249, %c1_250, %c0_251], %260 {strides = array<i32>} : memref<6x6x128xbf16, #tpu.memory_space<vmem>>, vector<1x4x128xbf16>,
    %261 = vector.extract_strided_slice %248 {offsets = [12, 0], sizes = [4, 128], strides = [1, 1]} : vector<16x128xbf16> to vector<4x128xbf16>
    %c4_252 = arith.constant 4 : index
    %c1_253 = arith.constant 1 : index
    %c0_254 = arith.constant 0 : index
    %262 = vector.load %arg23[%c4_252, %c1_253, %c0_254] : memref<6x6x128xbf16, #tpu.memory_space<vmem>>, vector<1x4x128xbf16>
    %263 = vector.shape_cast %262 : vector<1x4x128xbf16> to vector<4x128xbf16>
    %264 = vector.shape_cast %261 : vector<4x128xbf16> to vector<1x4x128xbf16>
    tpu.vector_store %arg23[%c4_252, %c1_253, %c0_254], %264 {strides = array<i32>} : memref<6x6x128xbf16, #tpu.memory_space<vmem>>, vector<1x4x128xbf16>,
    %c0_255 = arith.constant 0 : index
    %c0_256 = arith.constant 0 : index
    %c0_257 = arith.constant 0 : index
    %265 = vector.load %arg23[%c0_255, %c0_256, %c0_257] : memref<6x6x128xbf16, #tpu.memory_space<vmem>>, vector<4x4x128xbf16>
    %266 = vector.shape_cast %265 : vector<4x4x128xbf16> to vector<16x128xbf16>
    %c0_258 = arith.constant 0 : index
    %c1_259 = arith.constant 1 : index
    %c0_260 = arith.constant 0 : index
    %267 = vector.load %arg23[%c0_258, %c1_259, %c0_260] : memref<6x6x128xbf16, #tpu.memory_space<vmem>>, vector<4x4x128xbf16>
    %268 = vector.shape_cast %267 : vector<4x4x128xbf16> to vector<16x128xbf16>
    %c0_261 = arith.constant 0 : index
    %c2_262 = arith.constant 2 : index
    %c0_263 = arith.constant 0 : index
    %269 = vector.load %arg23[%c0_261, %c2_262, %c0_263] : memref<6x6x128xbf16, #tpu.memory_space<vmem>>, vector<4x4x128xbf16>
    %270 = vector.shape_cast %269 : vector<4x4x128xbf16> to vector<16x128xbf16>
    %c1_264 = arith.constant 1 : index
    %c0_265 = arith.constant 0 : index
    %c0_266 = arith.constant 0 : index
    %271 = vector.load %arg23[%c1_264, %c0_265, %c0_266] : memref<6x6x128xbf16, #tpu.memory_space<vmem>>, vector<4x4x128xbf16>
    %272 = vector.shape_cast %271 : vector<4x4x128xbf16> to vector<16x128xbf16>
    %c1_267 = arith.constant 1 : index
    %c1_268 = arith.constant 1 : index
    %c0_269 = arith.constant 0 : index
    %273 = vector.load %arg23[%c1_267, %c1_268, %c0_269] : memref<6x6x128xbf16, #tpu.memory_space<vmem>>, vector<4x4x128xbf16>
    %274 = vector.shape_cast %273 : vector<4x4x128xbf16> to vector<16x128xbf16>
    %c1_270 = arith.constant 1 : index
    %c2_271 = arith.constant 2 : index
    %c0_272 = arith.constant 0 : index
    %275 = vector.load %arg23[%c1_270, %c2_271, %c0_272] : memref<6x6x128xbf16, #tpu.memory_space<vmem>>, vector<4x4x128xbf16>
    %276 = vector.shape_cast %275 : vector<4x4x128xbf16> to vector<16x128xbf16>
    %c2_273 = arith.constant 2 : index
    %c0_274 = arith.constant 0 : index
    %c0_275 = arith.constant 0 : index
    %277 = vector.load %arg23[%c2_273, %c0_274, %c0_275] : memref<6x6x128xbf16, #tpu.memory_space<vmem>>, vector<4x4x128xbf16>
    %278 = vector.shape_cast %277 : vector<4x4x128xbf16> to vector<16x128xbf16>
    %c2_276 = arith.constant 2 : index
    %c1_277 = arith.constant 1 : index
    %c0_278 = arith.constant 0 : index
    %279 = vector.load %arg23[%c2_276, %c1_277, %c0_278] : memref<6x6x128xbf16, #tpu.memory_space<vmem>>, vector<4x4x128xbf16>
    %280 = vector.shape_cast %279 : vector<4x4x128xbf16> to vector<16x128xbf16>
    %c2_279 = arith.constant 2 : index
    %c2_280 = arith.constant 2 : index
    %c0_281 = arith.constant 0 : index
    %281 = vector.load %arg23[%c2_279, %c2_280, %c0_281] : memref<6x6x128xbf16, #tpu.memory_space<vmem>>, vector<4x4x128xbf16>
    %282 = vector.shape_cast %281 : vector<4x4x128xbf16> to vector<16x128xbf16>
    %283 = tpu.concatenate %266, %268, %270, %272, %274, %276, %278, %280, %282 in 1 : vector<16x128xbf16>, vector<16x128xbf16>, vector<16x128xbf16>, vector<16x128xbf16>, vector<16x128xbf16>, vector<16x128xbf16>, vector<16x128xbf16>, vector<16x128xbf16>, vector<16x128xbf16> -> vector<16x1152xbf16>
    %c0_282 = arith.constant 0 : index
    %c0_283 = arith.constant 0 : index
    %284 = vector.load %arg10[%c0_282, %c0_283] : memref<1152x64xbf16, #tpu.memory_space<vmem>>, vector<1152x64xbf16>
    %cst_284 = arith.constant dense<0.000000e+00> : vector<16x64xf32>
    %285 = tpu.matmul %283, %284, %cst_284 {dimension_numbers = #tpu.dot_dimension_numbers<[1], [0], [0], [1], [0, 0, 1, 1], [], []>} : vector<16x1152xbf16>, vector<1152x64xbf16>, vector<16x64xf32> -> vector<16x64xf32>
    %c0_285 = arith.constant 0 : index
    %c0_286 = arith.constant 0 : index
    %286 = vector.load %arg11[%c0_285, %c0_286] : memref<1x64xf32, #tpu.memory_space<vmem>>, vector<1x64xf32>
    %287 = vector.broadcast %286 : vector<1x64xf32> to vector<16x64xf32>
    %288 = arith.addf %285, %287 : vector<16x64xf32>
    %cst_287 = arith.constant 0.000000e+00 : f32
    %289 = vector.broadcast %cst_287 : f32 to vector<16x64xf32>
    %290 = arith.maximumf %288, %289 : vector<16x64xf32>
    %291 = arith.truncf %290 : vector<16x64xf32> to vector<16x64xbf16>
    %292 = vector.extract_strided_slice %291 {offsets = [0, 0], sizes = [4, 64], strides = [1, 1]} : vector<16x64xbf16> to vector<4x64xbf16>
    %c1_288 = arith.constant 1 : index
    %c1_289 = arith.constant 1 : index
    %c0_290 = arith.constant 0 : index
    %293 = vector.load %arg22[%c1_288, %c1_289, %c0_290] : memref<6x6x64xbf16, #tpu.memory_space<vmem>>, vector<1x4x64xbf16>
    %294 = vector.shape_cast %293 : vector<1x4x64xbf16> to vector<4x64xbf16>
    %295 = vector.shape_cast %292 : vector<4x64xbf16> to vector<1x4x64xbf16>
    tpu.vector_store %arg22[%c1_288, %c1_289, %c0_290], %295 {strides = array<i32>} : memref<6x6x64xbf16, #tpu.memory_space<vmem>>, vector<1x4x64xbf16>,
    %296 = vector.extract_strided_slice %291 {offsets = [4, 0], sizes = [4, 64], strides = [1, 1]} : vector<16x64xbf16> to vector<4x64xbf16>
    %c2_291 = arith.constant 2 : index
    %c1_292 = arith.constant 1 : index
    %c0_293 = arith.constant 0 : index
    %297 = vector.load %arg22[%c2_291, %c1_292, %c0_293] : memref<6x6x64xbf16, #tpu.memory_space<vmem>>, vector<1x4x64xbf16>
    %298 = vector.shape_cast %297 : vector<1x4x64xbf16> to vector<4x64xbf16>
    %299 = vector.shape_cast %296 : vector<4x64xbf16> to vector<1x4x64xbf16>
    tpu.vector_store %arg22[%c2_291, %c1_292, %c0_293], %299 {strides = array<i32>} : memref<6x6x64xbf16, #tpu.memory_space<vmem>>, vector<1x4x64xbf16>,
    %300 = vector.extract_strided_slice %291 {offsets = [8, 0], sizes = [4, 64], strides = [1, 1]} : vector<16x64xbf16> to vector<4x64xbf16>
    %c3_294 = arith.constant 3 : index
    %c1_295 = arith.constant 1 : index
    %c0_296 = arith.constant 0 : index
    %301 = vector.load %arg22[%c3_294, %c1_295, %c0_296] : memref<6x6x64xbf16, #tpu.memory_space<vmem>>, vector<1x4x64xbf16>
    %302 = vector.shape_cast %301 : vector<1x4x64xbf16> to vector<4x64xbf16>
    %303 = vector.shape_cast %300 : vector<4x64xbf16> to vector<1x4x64xbf16>
    tpu.vector_store %arg22[%c3_294, %c1_295, %c0_296], %303 {strides = array<i32>} : memref<6x6x64xbf16, #tpu.memory_space<vmem>>, vector<1x4x64xbf16>,
    %304 = vector.extract_strided_slice %291 {offsets = [12, 0], sizes = [4, 64], strides = [1, 1]} : vector<16x64xbf16> to vector<4x64xbf16>
    %c4_297 = arith.constant 4 : index
    %c1_298 = arith.constant 1 : index
    %c0_299 = arith.constant 0 : index
    %305 = vector.load %arg22[%c4_297, %c1_298, %c0_299] : memref<6x6x64xbf16, #tpu.memory_space<vmem>>, vector<1x4x64xbf16>
    %306 = vector.shape_cast %305 : vector<1x4x64xbf16> to vector<4x64xbf16>
    %307 = vector.shape_cast %304 : vector<4x64xbf16> to vector<1x4x64xbf16>
    tpu.vector_store %arg22[%c4_297, %c1_298, %c0_299], %307 {strides = array<i32>} : memref<6x6x64xbf16, #tpu.memory_space<vmem>>, vector<1x4x64xbf16>,
    %c0_300 = arith.constant 0 : index
    %c0_301 = arith.constant 0 : index
    %c0_302 = arith.constant 0 : index
    %308 = vector.load %arg22[%c0_300, %c0_301, %c0_302] : memref<6x6x64xbf16, #tpu.memory_space<vmem>>, vector<4x4x64xbf16>
    %309 = vector.shape_cast %308 : vector<4x4x64xbf16> to vector<16x64xbf16>
    %c0_303 = arith.constant 0 : index
    %c1_304 = arith.constant 1 : index
    %c0_305 = arith.constant 0 : index
    %310 = vector.load %arg22[%c0_303, %c1_304, %c0_305] : memref<6x6x64xbf16, #tpu.memory_space<vmem>>, vector<4x4x64xbf16>
    %311 = vector.shape_cast %310 : vector<4x4x64xbf16> to vector<16x64xbf16>
    %c0_306 = arith.constant 0 : index
    %c2_307 = arith.constant 2 : index
    %c0_308 = arith.constant 0 : index
    %312 = vector.load %arg22[%c0_306, %c2_307, %c0_308] : memref<6x6x64xbf16, #tpu.memory_space<vmem>>, vector<4x4x64xbf16>
    %313 = vector.shape_cast %312 : vector<4x4x64xbf16> to vector<16x64xbf16>
    %c1_309 = arith.constant 1 : index
    %c0_310 = arith.constant 0 : index
    %c0_311 = arith.constant 0 : index
    %314 = vector.load %arg22[%c1_309, %c0_310, %c0_311] : memref<6x6x64xbf16, #tpu.memory_space<vmem>>, vector<4x4x64xbf16>
    %315 = vector.shape_cast %314 : vector<4x4x64xbf16> to vector<16x64xbf16>
    %c1_312 = arith.constant 1 : index
    %c1_313 = arith.constant 1 : index
    %c0_314 = arith.constant 0 : index
    %316 = vector.load %arg22[%c1_312, %c1_313, %c0_314] : memref<6x6x64xbf16, #tpu.memory_space<vmem>>, vector<4x4x64xbf16>
    %317 = vector.shape_cast %316 : vector<4x4x64xbf16> to vector<16x64xbf16>
    %c1_315 = arith.constant 1 : index
    %c2_316 = arith.constant 2 : index
    %c0_317 = arith.constant 0 : index
    %318 = vector.load %arg22[%c1_315, %c2_316, %c0_317] : memref<6x6x64xbf16, #tpu.memory_space<vmem>>, vector<4x4x64xbf16>
    %319 = vector.shape_cast %318 : vector<4x4x64xbf16> to vector<16x64xbf16>
    %c2_318 = arith.constant 2 : index
    %c0_319 = arith.constant 0 : index
    %c0_320 = arith.constant 0 : index
    %320 = vector.load %arg22[%c2_318, %c0_319, %c0_320] : memref<6x6x64xbf16, #tpu.memory_space<vmem>>, vector<4x4x64xbf16>
    %321 = vector.shape_cast %320 : vector<4x4x64xbf16> to vector<16x64xbf16>
    %c2_321 = arith.constant 2 : index
    %c1_322 = arith.constant 1 : index
    %c0_323 = arith.constant 0 : index
    %322 = vector.load %arg22[%c2_321, %c1_322, %c0_323] : memref<6x6x64xbf16, #tpu.memory_space<vmem>>, vector<4x4x64xbf16>
    %323 = vector.shape_cast %322 : vector<4x4x64xbf16> to vector<16x64xbf16>
    %c2_324 = arith.constant 2 : index
    %c2_325 = arith.constant 2 : index
    %c0_326 = arith.constant 0 : index
    %324 = vector.load %arg22[%c2_324, %c2_325, %c0_326] : memref<6x6x64xbf16, #tpu.memory_space<vmem>>, vector<4x4x64xbf16>
    %325 = vector.shape_cast %324 : vector<4x4x64xbf16> to vector<16x64xbf16>
    %326 = tpu.concatenate %309, %311, %313, %315, %317, %319, %321, %323, %325 in 1 : vector<16x64xbf16>, vector<16x64xbf16>, vector<16x64xbf16>, vector<16x64xbf16>, vector<16x64xbf16>, vector<16x64xbf16>, vector<16x64xbf16>, vector<16x64xbf16>, vector<16x64xbf16> -> vector<16x576xbf16>
    %c0_327 = arith.constant 0 : index
    %c0_328 = arith.constant 0 : index
    %327 = vector.load %arg12[%c0_327, %c0_328] : memref<576x32xbf16, #tpu.memory_space<vmem>>, vector<576x32xbf16>
    %cst_329 = arith.constant dense<0.000000e+00> : vector<16x32xf32>
    %328 = tpu.matmul %326, %327, %cst_329 {dimension_numbers = #tpu.dot_dimension_numbers<[1], [0], [0], [1], [0, 0, 1, 1], [], []>} : vector<16x576xbf16>, vector<576x32xbf16>, vector<16x32xf32> -> vector<16x32xf32>
    %c0_330 = arith.constant 0 : index
    %c0_331 = arith.constant 0 : index
    %329 = vector.load %arg13[%c0_330, %c0_331] : memref<1x32xf32, #tpu.memory_space<vmem>>, vector<1x32xf32>
    %330 = vector.broadcast %329 : vector<1x32xf32> to vector<16x32xf32>
    %331 = arith.addf %328, %330 : vector<16x32xf32>
    %cst_332 = arith.constant 0.000000e+00 : f32
    %332 = vector.broadcast %cst_332 : f32 to vector<16x32xf32>
    %333 = arith.maximumf %331, %332 : vector<16x32xf32>
    %c0_333 = arith.constant 0 : index
    %c0_334 = arith.constant 0 : index
    %334 = vector.load %arg14[%c0_333, %c0_334] : memref<1x32xf32, #tpu.memory_space<vmem>>, vector<1x32xf32>
    %335 = vector.broadcast %334 : vector<1x32xf32> to vector<16x32xf32>
    %336 = arith.mulf %333, %335 : vector<16x32xf32>
    %cst_335 = arith.constant dense<0.000000e+00> : vector<16xf32>
    %337 = vector.multi_reduction <add>, %336, %cst_335 [1] : vector<16x32xf32> to vector<16xf32>
    %338 = vector.shape_cast %337 : vector<16xf32> to vector<16x1xf32>
    %c0_336 = arith.constant 0 : index
    %c0_337 = arith.constant 0 : index
    %339 = vector.load %arg15[%c0_336, %c0_337] : memref<1x1xf32, #tpu.memory_space<vmem>>, vector<1x1xf32>
    %340 = vector.broadcast %339 : vector<1x1xf32> to vector<16x1xf32>
    %341 = arith.addf %338, %340 : vector<16x1xf32>
    %cst_338 = arith.constant dense<0xFF800000> : vector<1xf32>
    %342 = vector.multi_reduction <maximumf>, %341, %cst_338 [0] : vector<16x1xf32> to vector<1xf32>
    %343 = vector.shape_cast %342 : vector<1xf32> to vector<1x1xf32>
    %344 = vector.broadcast %343 : vector<1x1xf32> to vector<16x1xf32>
    %345 = arith.subf %341, %344 : vector<16x1xf32>
    %346 = math.exp %345 : vector<16x1xf32>
    %cst_339 = arith.constant dense<0.000000e+00> : vector<1xf32>
    %347 = vector.multi_reduction <add>, %346, %cst_339 [0] : vector<16x1xf32> to vector<1xf32>
    %348 = vector.shape_cast %347 : vector<1xf32> to vector<1x1xf32>
    %349 = tpu.iota {dimensions = array<i32: 1>} : vector<4x4x1xi32>
    %350 = arith.sitofp %349 : vector<4x4x1xi32> to vector<4x4x1xf32>
    %351 = tpu.iota {dimensions = array<i32: 0>} : vector<4x4x1xi32>
    %352 = arith.sitofp %351 : vector<4x4x1xi32> to vector<4x4x1xf32>
    %cst_340 = arith.constant 0.666666686 : f32
    %353 = vector.broadcast %cst_340 : f32 to vector<4x4x1xf32>
    %354 = arith.mulf %350, %353 : vector<4x4x1xf32>
    %cst_341 = arith.constant 1.000000e+00 : f32
    %355 = vector.broadcast %cst_341 : f32 to vector<4x4x1xf32>
    %356 = arith.subf %354, %355 : vector<4x4x1xf32>
    %357 = vector.shape_cast %356 : vector<4x4x1xf32> to vector<16x1xf32>
    %cst_342 = arith.constant 0.666666686 : f32
    %358 = vector.broadcast %cst_342 : f32 to vector<4x4x1xf32>
    %359 = arith.mulf %352, %358 : vector<4x4x1xf32>
    %cst_343 = arith.constant 1.000000e+00 : f32
    %360 = vector.broadcast %cst_343 : f32 to vector<4x4x1xf32>
    %361 = arith.subf %359, %360 : vector<4x4x1xf32>
    %362 = vector.shape_cast %361 : vector<4x4x1xf32> to vector<16x1xf32>
    %363 = arith.mulf %346, %357 : vector<16x1xf32>
    %cst_344 = arith.constant dense<0.000000e+00> : vector<1xf32>
    %364 = vector.multi_reduction <add>, %363, %cst_344 [0] : vector<16x1xf32> to vector<1xf32>
    %365 = vector.shape_cast %364 : vector<1xf32> to vector<1x1xf32>
    %366 = arith.divf %365, %348 : vector<1x1xf32>
    %367 = arith.mulf %346, %362 : vector<16x1xf32>
    %cst_345 = arith.constant dense<0.000000e+00> : vector<1xf32>
    %368 = vector.multi_reduction <add>, %367, %cst_345 [0] : vector<16x1xf32> to vector<1xf32>
    %369 = vector.shape_cast %368 : vector<1xf32> to vector<1x1xf32>
    %370 = arith.divf %369, %348 : vector<1x1xf32>
    %c0_346 = arith.constant 0 : index
    %c0_347 = arith.constant 0 : index
    %371 = vector.load %arg16[%c0_346, %c0_347] : memref<128x64xf32, #tpu.memory_space<vmem>>, vector<128x64xf32>
    %cst_348 = arith.constant dense<0.000000e+00> : vector<1x64xf32>
    %372 = tpu.matmul %247, %371, %cst_348 {dimension_numbers = #tpu.dot_dimension_numbers<[1], [0], [0], [1], [0, 0, 1, 1], [], []>} : vector<1x128xf32>, vector<128x64xf32>, vector<1x64xf32> -> vector<1x64xf32>
    %c0_349 = arith.constant 0 : index
    %c0_350 = arith.constant 0 : index
    %373 = vector.load %arg17[%c0_349, %c0_350] : memref<1x64xf32, #tpu.memory_space<vmem>>, vector<1x64xf32>
    %374 = arith.addf %372, %373 : vector<1x64xf32>
    %cst_351 = arith.constant 0.000000e+00 : f32
    %375 = vector.broadcast %cst_351 : f32 to vector<1x64xf32>
    %376 = arith.maximumf %374, %375 : vector<1x64xf32>
    %c0_352 = arith.constant 0 : index
    %c0_353 = arith.constant 0 : index
    %377 = vector.load %arg18[%c0_352, %c0_353] : memref<64x16xf32, #tpu.memory_space<vmem>>, vector<64x16xf32>
    %cst_354 = arith.constant dense<0.000000e+00> : vector<1x16xf32>
    %378 = tpu.matmul %376, %377, %cst_354 {dimension_numbers = #tpu.dot_dimension_numbers<[1], [0], [0], [1], [0, 0, 1, 1], [], []>} : vector<1x64xf32>, vector<64x16xf32>, vector<1x16xf32> -> vector<1x16xf32>
    %c0_355 = arith.constant 0 : index
    %c0_356 = arith.constant 0 : index
    %379 = vector.load %arg19[%c0_355, %c0_356] : memref<1x16xf32, #tpu.memory_space<vmem>>, vector<1x16xf32>
    %380 = arith.addf %378, %379 : vector<1x16xf32>
    %381 = math.tanh %380 : vector<1x16xf32>
    %382 = vector.extract_strided_slice %381 {offsets = [0, 0], sizes = [1, 1], strides = [1, 1]} : vector<1x16xf32> to vector<1x1xf32>
    %cst_357 = arith.constant 1.000000e-01 : f32
    %383 = vector.broadcast %cst_357 : f32 to vector<1x1xf32>
    %384 = arith.mulf %383, %382 : vector<1x1xf32>
    %385 = arith.addf %366, %384 : vector<1x1xf32>
    %386 = vector.extract_strided_slice %381 {offsets = [0, 1], sizes = [1, 1], strides = [1, 1]} : vector<1x16xf32> to vector<1x1xf32>
    %cst_358 = arith.constant 1.000000e-01 : f32
    %387 = vector.broadcast %cst_358 : f32 to vector<1x1xf32>
    %388 = arith.mulf %387, %386 : vector<1x1xf32>
    %389 = arith.addf %370, %388 : vector<1x1xf32>
    %390 = tpu.concatenate %385, %389 in 1 : vector<1x1xf32>, vector<1x1xf32> -> vector<1x2xf32>
    %c0_359 = arith.constant 0 : index
    %c0_360 = arith.constant 0 : index
    %c0_361 = arith.constant 0 : index
    %391 = vector.load %arg20[%c0_359, %c0_360, %c0_361] : memref<1x1x2xf32, #tpu.memory_space<vmem>>, vector<1x1x2xf32>
    %392 = vector.shape_cast %391 : vector<1x1x2xf32> to vector<1x2xf32>
    %393 = vector.shape_cast %390 : vector<1x2xf32> to vector<1x1x2xf32>
    tpu.vector_store %arg20[%c0_359, %c0_360, %c0_361], %393 {strides = array<i32>} : memref<1x1x2xf32, #tpu.memory_space<vmem>>, vector<1x1x2xf32>,
    return
  }
  func.func @transform_0(%arg0: i32) -> (i32, i32, i32, i32) {
    %c0_i32 = arith.constant 0 : i32
    %c0_i32_0 = arith.constant 0 : i32
    %c0_i32_1 = arith.constant 0 : i32
    %c0_i32_2 = arith.constant 0 : i32
    return %arg0, %c0_i32, %c0_i32_0, %c0_i32_1 : i32, i32, i32, i32
  }
  func.func @transform_1(%arg0: i32) -> (i32, i32) {
    %c0_i32 = arith.constant 0 : i32
    %c0_i32_0 = arith.constant 0 : i32
    %c0_i32_1 = arith.constant 0 : i32
    return %c0_i32, %c0_i32_0 : i32, i32
  }
  func.func @transform_2(%arg0: i32) -> (i32, i32) {
    %c0_i32 = arith.constant 0 : i32
    %c0_i32_0 = arith.constant 0 : i32
    %c0_i32_1 = arith.constant 0 : i32
    return %c0_i32, %c0_i32_0 : i32, i32
  }
  func.func @transform_3(%arg0: i32) -> (i32, i32) {
    %c0_i32 = arith.constant 0 : i32
    %c0_i32_0 = arith.constant 0 : i32
    %c0_i32_1 = arith.constant 0 : i32
    return %c0_i32, %c0_i32_0 : i32, i32
  }
  func.func @transform_4(%arg0: i32) -> (i32, i32) {
    %c0_i32 = arith.constant 0 : i32
    %c0_i32_0 = arith.constant 0 : i32
    %c0_i32_1 = arith.constant 0 : i32
    return %c0_i32, %c0_i32_0 : i32, i32
  }
  func.func @transform_5(%arg0: i32) -> (i32, i32) {
    %c0_i32 = arith.constant 0 : i32
    %c0_i32_0 = arith.constant 0 : i32
    %c0_i32_1 = arith.constant 0 : i32
    return %c0_i32, %c0_i32_0 : i32, i32
  }
  func.func @transform_6(%arg0: i32) -> (i32, i32) {
    %c0_i32 = arith.constant 0 : i32
    %c0_i32_0 = arith.constant 0 : i32
    %c0_i32_1 = arith.constant 0 : i32
    return %c0_i32, %c0_i32_0 : i32, i32
  }
  func.func @transform_7(%arg0: i32) -> (i32, i32) {
    %c0_i32 = arith.constant 0 : i32
    %c0_i32_0 = arith.constant 0 : i32
    %c0_i32_1 = arith.constant 0 : i32
    return %c0_i32, %c0_i32_0 : i32, i32
  }
  func.func @transform_8(%arg0: i32) -> (i32, i32) {
    %c0_i32 = arith.constant 0 : i32
    %c0_i32_0 = arith.constant 0 : i32
    %c0_i32_1 = arith.constant 0 : i32
    return %c0_i32, %c0_i32_0 : i32, i32
  }
  func.func @transform_9(%arg0: i32) -> (i32, i32) {
    %c0_i32 = arith.constant 0 : i32
    %c0_i32_0 = arith.constant 0 : i32
    %c0_i32_1 = arith.constant 0 : i32
    return %c0_i32, %c0_i32_0 : i32, i32
  }
  func.func @transform_10(%arg0: i32) -> (i32, i32) {
    %c0_i32 = arith.constant 0 : i32
    %c0_i32_0 = arith.constant 0 : i32
    %c0_i32_1 = arith.constant 0 : i32
    return %c0_i32, %c0_i32_0 : i32, i32
  }
  func.func @transform_11(%arg0: i32) -> (i32, i32) {
    %c0_i32 = arith.constant 0 : i32
    %c0_i32_0 = arith.constant 0 : i32
    %c0_i32_1 = arith.constant 0 : i32
    return %c0_i32, %c0_i32_0 : i32, i32
  }
  func.func @transform_12(%arg0: i32) -> (i32, i32) {
    %c0_i32 = arith.constant 0 : i32
    %c0_i32_0 = arith.constant 0 : i32
    %c0_i32_1 = arith.constant 0 : i32
    return %c0_i32, %c0_i32_0 : i32, i32
  }
  func.func @transform_13(%arg0: i32) -> (i32, i32) {
    %c0_i32 = arith.constant 0 : i32
    %c0_i32_0 = arith.constant 0 : i32
    %c0_i32_1 = arith.constant 0 : i32
    return %c0_i32, %c0_i32_0 : i32, i32
  }
  func.func @transform_14(%arg0: i32) -> (i32, i32) {
    %c0_i32 = arith.constant 0 : i32
    %c0_i32_0 = arith.constant 0 : i32
    %c0_i32_1 = arith.constant 0 : i32
    return %c0_i32, %c0_i32_0 : i32, i32
  }
  func.func @transform_15(%arg0: i32) -> (i32, i32) {
    %c0_i32 = arith.constant 0 : i32
    %c0_i32_0 = arith.constant 0 : i32
    %c0_i32_1 = arith.constant 0 : i32
    return %c0_i32, %c0_i32_0 : i32, i32
  }
  func.func @transform_16(%arg0: i32) -> (i32, i32) {
    %c0_i32 = arith.constant 0 : i32
    %c0_i32_0 = arith.constant 0 : i32
    %c0_i32_1 = arith.constant 0 : i32
    return %c0_i32, %c0_i32_0 : i32, i32
  }
  func.func @transform_17(%arg0: i32) -> (i32, i32) {
    %c0_i32 = arith.constant 0 : i32
    %c0_i32_0 = arith.constant 0 : i32
    %c0_i32_1 = arith.constant 0 : i32
    return %c0_i32, %c0_i32_0 : i32, i32
  }
  func.func @transform_18(%arg0: i32) -> (i32, i32) {
    %c0_i32 = arith.constant 0 : i32
    %c0_i32_0 = arith.constant 0 : i32
    %c0_i32_1 = arith.constant 0 : i32
    return %c0_i32, %c0_i32_0 : i32, i32
  }
  func.func @transform_19(%arg0: i32) -> (i32, i32, i32) {
    %c0_i32 = arith.constant 0 : i32
    %c0_i32_0 = arith.constant 0 : i32
    %c0_i32_1 = arith.constant 0 : i32
    return %arg0, %c0_i32, %c0_i32_0 : i32, i32, i32
  }
}

</mosaic_0001>

<bundles_post_ra>
// kernel: _lambda_.1
= control target key start
LH: loop header
LB: loop body
LE: loop exit
PB: predicated region body
PF: predicated region fallthrough
CT: control target
= control target key end

     0   :  { %s12265_s0 = inlined_call_operand.vmem [shape: bf16[2,10,10,12], index: 0, kind: input, shape index: {}]   ;;  %s12266_s1 = inlined_call_operand.vmem [shape: bf16[108,32], index: 1, kind: input, shape index: {}]   ;;  %s12267_s2 = inlined_call_operand.vmem [shape: f32[1,32], index: 2, kind: input, shape index: {}]   ;;  %s12268_s3 = inlined_call_operand.vmem [shape: bf16[512,64], index: 3, kind: input, shape index: {}]   ;;  %s12269_s4 = inlined_call_operand.vmem [shape: f32[1,64], index: 4, kind: input, shape index: {}]   ;;  %s12270_s5 = inlined_call_operand.vmem [shape: bf16[576,64], index: 5, kind: input, shape index: {}]   ;;  %s12271_s6 = inlined_call_operand.vmem [shape: f32[1,64], index: 6, kind: input, shape index: {}]   ;;  %s12272_s7 = inlined_call_operand.vmem [shape: bf16[576,128], index: 7, kind: input, shape index: {}]   ;;  %s12273_s8 = inlined_call_operand.vmem [shape: f32[1,128], index: 8, kind: input, shape index: {}]   ;;  %s12274_s9 = inlined_call_operand.vmem [shape: bf16[1152,64], index: 9, kind: input, shape index: {}]   ;;  %s12275_s10 = inlined_call_operand.vmem [shape: f32[1,64], index: 10, kind: input, shape index: {}]   ;;  %s12276_s11 = inlined_call_operand.vmem [shape: bf16[576,32], index: 11, kind: input, shape index: {}]   ;;  %s12277_s12 = inlined_call_operand.vmem [shape: f32[1,32], index: 12, kind: input, shape index: {}]   ;;  %s12278_s13 = inlined_call_operand.vmem [shape: f32[1,32], index: 13, kind: input, shape index: {}]   ;;  %s12279_s14 = inlined_call_operand.<no memory space> [shape: f32[1,1], index: 14, kind: input, shape index: {}]   ;;  %s12280_s15 = inlined_call_operand.vmem [shape: f32[128,64], index: 15, kind: input, shape index: {}]   ;;  %s12281_s16 = inlined_call_operand.vmem [shape: f32[1,64], index: 16, kind: input, shape index: {}]   ;;  %s12282_s17 = inlined_call_operand.vmem [shape: f32[64,16], index: 17, kind: input, shape index: {}]   ;;  %s12283_s18 = inlined_call_operand.vmem [shape: f32[1,16], index: 18, kind: input, shape index: {}]   ;;  %s12284_s19 = inlined_call_operand.hbm [shape: f32[2,1,2], index: 19, kind: output, shape index: {}]  }
   0x1   :  { %12347 = sst [smem:[#allocation57_spill]] %s12265_s0  ;;  %v24_v0 = vstv %s12279_s14 }
   0x2   :  { %12348 = sst [smem:[#allocation58_spill]] %s12266_s1  ;;  %25 = vst [vmem:[#allocation5] sm:$0x1] %v24_v0 }
   0x3   :  { %12349 = sst [smem:[#allocation59_spill]] %s12267_s2 }
   0x4   :  { %12350 = sst [smem:[#allocation60_spill]] %s12268_s3 }
   0x5   :  { %12351 = sst [smem:[#allocation61_spill]] %s12269_s4 }
   0x6   :  { %26 = vsyncpa [#allocation7], 0 }
   0x7   :  { %28 = vsyncpa [#allocation7 + $0x1], 0  ;;  %s9586_s20 = smov 0   ;;  %s9588_s21 = smov 0  }
   0x8   :  { %s9590_s1 = smov 0   ;;  %s9592_s22 = smov 0  }
   0x9 LB: > { %12352 = sst [smem:[#allocation9_spill]] %s9459_s1  ;;  %s9607_s14 = sadd.s32 4294967295, %s9463_s22   ;;  %s9463_s22 = sphi %s9592_s22, %s12549_s22   ;;  %s9459_s1 = sphi %s9590_s1, %s12551_s1   ;;  %s9455_s21 = sphi %s9588_s21, %s12553_s21   ;;  %s9451_s20 = sphi %s9586_s20, %s12552_s20  }
   0xa   : > { %s7994_s2 = sadd.s32 4294967294, %s9463_s22   ;;  %s9611_s23 = sadd.s32 1, %s9463_s22  }
   0xb   : > { %12353 = sst [smem:[#allocation10_spill]] %s9611_s23  ;;  %s445_s24 = sadd.s32 1, %s9459_s1 }
   0xc   : > { %s442_s25 = ssub.s32 %s9463_s22, %s9611_s23  ;;  %p455_p0 = scmp.ne.s32.totalorder %s9459_s1, %s9455_s21 }
   0xd   : > { %p443_p1 = scmp.eq.s32.totalorder %s442_s25, 0  ;;  %p456_p2 = scmp.eq.s32.totalorder %s9607_s14, 1 }
   0xe   : > { %p461_p3 = scmp.ne.s32.totalorder %s9455_s21, %s9451_s20  ;;  %p462_p4 = scmp.eq.s32.totalorder %s7994_s2, 1 }
   0xf   : > { %s9622_s3 = scalar_select %p443_p1, %s9459_s1, %s445_s24  }
  0x10   : > { %p9624_p5 = por %p456_p2, %p455_p0  ;;  %p9628_p6 = por %p462_p4, %p461_p3 }
  0x11   : > { %12354 = sst [smem:[#allocation11_spill]] %s9622_s3  ;;  %p7997_p7 = scmp.ge.s32.totalorder %s9463_s22, 1 }
  0x12   : > { %s12356_s27 = scalar_select %p9628_p6, 1, 0 }
  0x13   : > { %p542_p8 = scmp.lt.s32.totalorder %s9463_s22, 3 }
  0x14   : > { %12357 = sst [smem:[#allocation12_spill]] %s12356_s27 }
  0x15   : > { %p543_p9 = pnand %p7997_p7, %p542_p8 }
  0x17   : > { %546 = sbr.rel (%p543_p9) target bundleno = 2727 (0xaa7), region = 96 }
  0x1c   : > { %p597_p10 = scmp.lt.s32.totalorder %s9607_s14, 1  ;;  %s12358_s2 = sld [smem:[#allocation57_spill]]  ;;  %vm837_vm0 = vcmask 1041408   ;;  %vm841_vm1 = vcmask 1043458   ;;  %vm710_vm2 = vsmask.f32 1280 }
  0x1d   : > { %vm711_vm3 = vsmask.f32 3336  ;;  %vm713_vm4 = vsmask.f32 5392  ;;  %vm715_vm5 = vsmask.f32 7448  ;;  %s7935_s1 = scalar_lea.hbm %s12284_s19, %s9607_s14 }
  0x1e   : > { %s598_s28 = scalar_select %p597_p10, %s9607_s14, 1  ;;  %vm712_vm6 = vmor %vm710_vm2, %vm711_vm3  ;;  %vm2177_vm9 = vcmask 1040384   ;;  %vm2178_vm10 = vcmask 1042434   ;;  %vm2180_vm12 = vcmask 1044484   ;;  %vm2182_vm14 = vcmask 1046534  }
  0x1f   : > { %vm714_vm7 = vmor %vm712_vm6, %vm713_vm4  ;;  %s9465_s25 = smov 24   ;;  %s12335_s0 = smov 60   ;;  %vm2066_vm2 = vcmask 1045504   ;;  %vm1962_vm3 = vcmask 97280   ;;  %vm1967_vm4 = vcmask 195584   ;;  %vm1977_vm6 = vcmask 392192  }
  0x20   : > { %s9325_s29 = smul.u32 80, %s598_s28  ;;  %vm9823_vm8 = vmor %vm714_vm7, %vm715_vm5  ;;  %s9466_s28 = smov 12   ;;  %vm1972_vm5 = vcmask 293888   ;;  %vm1982_vm7 = vcmask 490496  }
  0x21   : > { %s12339_s30 = smov 36   ;;  %vm2179_vm11 = vmor %vm2177_vm9, %vm2178_vm10  ;;  %vm1987_vm9 = vcmask 588800   ;;  %vm1992_vm10 = vcmask 687104   ;;  %s12542_s4 = sld [smem:[#allocation61_spill]] }
  0x22   : > { %s9639_s24 = scalar_lea.vmem %s12358_s2, %s9325_s29  ;;  %s12337_s29 = smov 48   ;;  %vm2181_vm13 = vmor %vm2179_vm11, %vm2180_vm12  ;;  %vm1997_vm11 = vcmask 785408   ;;  %vm2061_vm12 = vcmask 883712  }
  0x23   : > { %v642_v1 = vld [vmem:[%s9639_s24] sm:$0xc]  ;;  %v643_v2 = vld [vmem:[%s9639_s24 + $0x4] sm:$0x1]  ;;  %v644_v3 = vld [vmem:[%s9639_s24 + $0x8] sm:$0xc] }
  0x24   : > { %v645_v4 = vld [vmem:[%s9639_s24 + $0xc] sm:$0x1]  ;;  %659 = vst.sshfl [vmem:[#allocation1] sm:$0xff pattern:$0x75643120] %v642_v1  ;;  %s12319_s2 = smov 72   ;;  %vm10621_vm15 = vmor %vm2181_vm13, %vm2182_vm14 }
  0x25   : > { %661 = vst.sshfl [vmem:[#allocation1 + $0x10] sm:$0xff pattern:$0x75643120] %v643_v2  ;;  %v646_v5 = vld [vmem:[%s9639_s24 + $0x10] sm:$0xc]  ;;  %vm603_vm13 = vcmask 1042432  }
  0x26   : > { %667 = vst.sshfl [vmem:[#allocation1 + $0x20] sm:$0xff pattern:$0x75643120] %v644_v3  ;;  %v647_v6 = vld [vmem:[%s9639_s24 + $0x14] sm:$0x1]  ;;  %s12545_s27 = smov 64  }
  0x27   : > { %669 = vst.sshfl [vmem:[#allocation1 + $0x30] sm:$0xff pattern:$0x75643120] %v645_v4  ;;  %v648_v7 = vld [vmem:[%s9639_s24 + $0x18] sm:$0xc]  ;;  %s9482_s23 = smov 1  }
  0x28   : > { %v649_v8 = vld [vmem:[%s9639_s24 + $0x1c] sm:$0x1]  ;;  %v650_v13 = vld [vmem:[%s9639_s24 + $0x20] sm:$0xc]  ;;  %v651_v14 = vld [vmem:[%s9639_s24 + $0x24] sm:$0x1] }
  0x29   : > { %v652_v15 = vld [vmem:[%s9639_s24 + $0x28] sm:$0xc]  ;;  %v653_v16 = vld [vmem:[%s9639_s24 + $0x2c] sm:$0x1]  ;;  %v654_v21 = vld [vmem:[%s9639_s24 + $0x30] sm:$0xc] }
  0x2a   : > { %v655_v22 = vld [vmem:[%s9639_s24 + $0x34] sm:$0x1]  ;;  %v656_v23 = vld [vmem:[%s9639_s24 + $0x38] sm:$0xc]  ;;  %v657_v24 = vld [vmem:[%s9639_s24 + $0x3c] sm:$0x1] }
  0x2b   : > { %v9649_v9 = vld [vmem:[#allocation1 + $0x1] ss:$2 sm:$0xff]  ;;  %v8008_v32 = vld [vmem:[%s9639_s24 + $0xc] sm:$0x1]  ;;  %v8009_v34 = vld [vmem:[%s9639_s24 + $0x10] sm:$0xc] }
  0x2c   : > { %v9651_v10 = vld [vmem:[#allocation1 + $0x10] ss:$2 sm:$0xff]  ;;  %675 = vst.sshfl [vmem:[#allocation1] sm:$0xff pattern:$0x75643120] %v646_v5 }
  0x2d   : > { %v9653_v11 = vld [vmem:[#allocation1 + $0x21] ss:$2 sm:$0xff]  ;;  %677 = vst.sshfl [vmem:[#allocation1 + $0x10] sm:$0xff pattern:$0x75643120] %v647_v6 }
  0x2e   : > { %v9655_v12 = vld [vmem:[#allocation1 + $0x30] ss:$2 sm:$0xff]  ;;  %681 = vst.sshfl [vmem:[#allocation1 + $0x20] sm:$0xff pattern:$0x75643120] %v648_v7 }
  0x2f   : > { %683 = vst.sshfl [vmem:[#allocation1 + $0x30] sm:$0xff pattern:$0x75643120] %v649_v8  ;;  %v8007_v30 = vld [vmem:[%s9639_s24 + $0x8] sm:$0xc] }
  0x30   : > { %v8010_v35 = vld [vmem:[%s9639_s24 + $0x14] sm:$0x1]  ;;  %v8011_v37 = vld [vmem:[%s9639_s24 + $0x18] sm:$0xc]  ;;  %v8012_v38 = vld [vmem:[%s9639_s24 + $0x1c] sm:$0x1] }
  0x31   : > { %v8013_v39 = vld [vmem:[%s9639_s24 + $0x20] sm:$0xc]  ;;  %v8014_v40 = vld [vmem:[%s9639_s24 + $0x24] sm:$0x1]  ;;  %v8015_v45 = vld [vmem:[%s9639_s24 + $0x28] sm:$0xc] }
  0x32   : > { %v8016_v46 = vld [vmem:[%s9639_s24 + $0x2c] sm:$0x1]  ;;  %v8017_v47 = vld [vmem:[%s9639_s24 + $0x30] sm:$0xc]  ;;  %v8018_v48 = vld [vmem:[%s9639_s24 + $0x34] sm:$0x1] }
  0x33   : > { %v9661_v17 = vld [vmem:[#allocation1 + $0x1] ss:$2 sm:$0xff]  ;;  %v8019_v55 = vld [vmem:[%s9639_s24 + $0x38] sm:$0xc]  ;;  %v819_v56 = vld [vmem:[%s9639_s24 + $0x30] sm:$0x7] }
  0x34   : > { %v9663_v18 = vld [vmem:[#allocation1 + $0x10] ss:$2 sm:$0xff]  ;;  %687 = vst.sshfl [vmem:[#allocation1] sm:$0xff pattern:$0x75643120] %v650_v13  ;;  %v835_v4 = vrot.slane %v819_v56, 2 }
  0x35   : > { %v9665_v19 = vld [vmem:[#allocation1 + $0x21] ss:$2 sm:$0xff]  ;;  %689 = vst.sshfl [vmem:[#allocation1 + $0x10] sm:$0xff pattern:$0x75643120] %v651_v14 }
  0x36   : > { %v9667_v20 = vld [vmem:[#allocation1 + $0x30] ss:$2 sm:$0xff]  ;;  %693 = vst.sshfl [vmem:[#allocation1 + $0x20] sm:$0xff pattern:$0x75643120] %v652_v15  ;;  %v878_v8 = vsel %vm841_vm1, %v819_v56, %v835_v4 }
  0x37   : > { %695 = vst.sshfl [vmem:[#allocation1 + $0x30] sm:$0xff pattern:$0x75643120] %v653_v16  ;;  %v817_v53 = vld [vmem:[%s9639_s24 + $0x20] sm:$0x7]  ;;  %v877_v16 = vsel %vm837_vm0, %v819_v56, %v835_v4 }
  0x38   : > { %v818_v54 = vld [vmem:[%s9639_s24 + $0x28] sm:$0x7]  ;;  %v833_v57 = vrot.slane %v817_v53, 2  ;;  %v8020_v58 = vld [vmem:[%s9639_s24 + $0x3c] sm:$0x1] }
  0x39   : > { %v8021_v59 = vld [vmem:[%s9639_s24 + $0x40] sm:$0xc]  ;;  %v8022_v60 = vld [vmem:[%s9639_s24 + $0x44] sm:$0x1]  ;;  %v834_v0 = vrot.slane %v818_v54, 2 }
  0x3a   : > { %v865_v1 = vsel %vm837_vm0, %v817_v53, %v833_v57  ;;  %v866_v2 = vsel %vm841_vm1, %v817_v53, %v833_v57  ;;  %v820_v5 = vld [vmem:[%s9639_s24 + $0x38] sm:$0x7]  ;;  %vm604_vm14 = vsmask.f32 2304 }
  0x3b   : > { %v9673_v25 = vld [vmem:[#allocation1 + $0x1] ss:$2 sm:$0xff]  ;;  %v868_v6 = vrot.slane %v866_v2, 2  ;;  %v872_v7 = vsel %vm841_vm1, %v818_v54, %v834_v0  ;;  %v939_v13 = vshrl.u32 %v865_v1, 16  ;;  %v871_v14 = vsel %vm837_vm0, %v818_v54, %v834_v0  ;;  %v8041_v53 = vld [vmem:[%s9639_s24 + $0x18] sm:$0xc] }
  0x3c   : > { %v9675_v26 = vld [vmem:[#allocation1 + $0x10] ss:$2 sm:$0xff]  ;;  %699 = vst.sshfl [vmem:[#allocation1] sm:$0xff pattern:$0x75643120] %v654_v21  ;;  %v942_v15 = vshll.u32 %v865_v1, 16 }
  0x3d   : > { %v9677_v27 = vld [vmem:[#allocation1 + $0x21] ss:$2 sm:$0xff]  ;;  %701 = vst.sshfl [vmem:[#allocation1 + $0x10] sm:$0xff pattern:$0x75643120] %v655_v22  ;;  %v836_v21 = vrot.slane %v820_v5, 2 }
  0x3e   : > { %v9679_v28 = vld [vmem:[#allocation1 + $0x30] ss:$2 sm:$0xff]  ;;  %705 = vst.sshfl [vmem:[#allocation1 + $0x20] sm:$0xff pattern:$0x75643120] %v656_v23  ;;  %v874_v22 = vrot.slane %v872_v7, 2 }
  0x3f   : > { %707 = vst.sshfl [vmem:[#allocation1 + $0x30] sm:$0xff pattern:$0x75643120] %v657_v24  ;;  %v880_v23 = vrot.slane %v878_v8, 2  ;;  %v941_v24 = vrot.slane %v939_v13, 6  ;;  %v884_v56 = vsel %vm841_vm1, %v820_v5, %v836_v21 }
  0x40   : > { %v8042_v54 = vld [vmem:[%s9639_s24 + $0x1c] sm:$0x1]  ;;  %v886_v0 = vrot.slane %v884_v56, 2 }
  0x43   : > { %v9681_v29 = vld [vmem:[#allocation1 + $0x1] ss:$2 sm:$0xff] }
  0x44   : > { %v9684_v31 = vld [vmem:[#allocation1 + $0x10] ss:$2 sm:$0xff]  ;;  %1017 = vst.sshfl [vmem:[#allocation1] sm:$0xff pattern:$0x75643120] %v8007_v30  ;;  %v9739_v30 = vshll.u32 %v868_v6, 16 }
  0x45   : > { %v9687_v33 = vld [vmem:[#allocation1 + $0x21] ss:$2 sm:$0xff]  ;;  %1019 = vst.sshfl [vmem:[#allocation1 + $0x10] sm:$0xff pattern:$0x75643120] %v8008_v32  ;;  %v952_v32 = vshrl.u32 %v871_v14, 16 }
  0x46   : > { %v9691_v36 = vld [vmem:[#allocation1 + $0x30] ss:$2 sm:$0xff]  ;;  %1025 = vst.sshfl [vmem:[#allocation1 + $0x20] sm:$0xff pattern:$0x75643120] %v8009_v34  ;;  %v955_v34 = vshll.u32 %v871_v14, 16 }
  0x47   : > { %1027 = vst.sshfl [vmem:[#allocation1 + $0x30] sm:$0xff pattern:$0x75643120] %v8010_v35  ;;  %v944_v35 = vrot.slane %v942_v15, 7  ;;  %v9760_v14 = vshll.u32 %v880_v23, 16  ;;  %v809_v7 = vshll.u32 %v9691_v36, 16 }
  0x48   : > { %v8043_v15 = vld [vmem:[%s9639_s24 + $0x20] sm:$0xc] }
  0x49   : > { %v945_v1 = vor.u32 %v944_v35, %v941_v24  ;;  %v780_v24 = vshll.u32 %v9677_v27, 16  ;;  %v883_v35 = vsel %vm837_vm0, %v820_v5, %v836_v21 }
  0x4b   : > { %v9697_v41 = vld [vmem:[#allocation1 + $0x1] ss:$2 sm:$0xff]  ;;  %v9773_v23 = vrot.slane %v945_v1, 2 }
  0x4c   : > { %12359 = vst [vmem:[#allocation13_spill] sm:$0xff] %v9697_v41  ;;  %v9699_v42 = vld [vmem:[#allocation1 + $0x10] ss:$2 sm:$0xff] }
  0x4d   : > { %12360 = vst [vmem:[#allocation14_spill] sm:$0xff] %v9699_v42  ;;  %v9701_v43 = vld [vmem:[#allocation1 + $0x21] ss:$2 sm:$0xff] }
  0x4e   : > { %1033 = vst.sshfl [vmem:[#allocation1] sm:$0xff pattern:$0x75643120] %v8011_v37  ;;  %v9703_v44 = vld [vmem:[#allocation1 + $0x30] ss:$2 sm:$0xff]  ;;  %v965_v37 = vshrl.u32 %v877_v16, 16 }
  0x4f   : > { %12361 = vst [vmem:[#allocation15_spill] sm:$0xff] %v9701_v43 }
  0x50   : > { %1035 = vst.sshfl [vmem:[#allocation1 + $0x10] sm:$0xff pattern:$0x75643120] %v8012_v38 }
  0x51   : > { %12362 = vst [vmem:[#allocation16_spill] sm:$0xff] %v9703_v44 }
  0x52   : > { %1039 = vst.sshfl [vmem:[#allocation1 + $0x20] sm:$0xff pattern:$0x75643120] %v8013_v39  ;;  %v8039_v39 = vld [vmem:[%s9639_s24 + $0x10] sm:$0xc] }
  0x53   : > { %1041 = vst.sshfl [vmem:[#allocation1 + $0x30] sm:$0xff pattern:$0x75643120] %v8014_v40  ;;  %v765_v40 = vshrl.u32 %v9673_v25, 16 }
  0x55   : > { %v9709_v49 = vld [vmem:[#allocation1 + $0x1] ss:$2 sm:$0xff]  ;;  %v767_v2 = vrot.slane %v765_v40, 6 }
  0x56   : > { %12363 = vst [vmem:[#allocation17_spill] sm:$0xff] %v9709_v49  ;;  %v9847_v49 = vrot.slane %v809_v7, 7  ;;  %v639_v7 = vld [vmem:[%s9639_s24 + $0x28] sm:$0x3] }
  0x57   : > { %v9711_v50 = vld [vmem:[#allocation1 + $0x10] ss:$2 sm:$0xff]  ;;  %1045 = vst.sshfl [vmem:[#allocation1] sm:$0xff pattern:$0x75643120] %v8015_v45  ;;  %v968_v45 = vshll.u32 %v877_v16, 16 }
  0x58   : > { %12364 = vst [vmem:[#allocation18_spill] sm:$0xff] %v9711_v50  ;;  %v773_v16 = vshll.u32 %v9675_v26, 16 }
  0x59   : > { %v9713_v51 = vld [vmem:[#allocation1 + $0x21] ss:$2 sm:$0xff]  ;;  %1047 = vst.sshfl [vmem:[#allocation1 + $0x10] sm:$0xff pattern:$0x75643120] %v8016_v46  ;;  %v970_v6 = vrot.slane %v968_v45, 7 }
  0x5a   : > { %12365 = vst [vmem:[#allocation19_spill] sm:$0xff] %v9713_v51  ;;  %v9715_v52 = vld [vmem:[#allocation1 + $0x30] ss:$2 sm:$0xff]  ;;  %v775_v21 = vrot.slane %v773_v16, 7 }
  0x5b   : > { %12366 = vst [vmem:[#allocation20_spill] sm:$0xff] %v9715_v52 }
  0x5c   : > { %1051 = vst.sshfl [vmem:[#allocation1 + $0x20] sm:$0xff pattern:$0x75643120] %v8017_v47  ;;  %v8040_v47 = vld [vmem:[%s9639_s24 + $0x14] sm:$0x1] }
  0x5d   : > { %1053 = vst.sshfl [vmem:[#allocation1 + $0x30] sm:$0xff pattern:$0x75643120] %v8018_v48 }
  0x5e   : > { %v9724_v61 = vld [vmem:[#allocation1 + $0x1] ss:$2 sm:$0xff] }
  0x5f   : > { %1057 = vst.sshfl [vmem:[#allocation1] sm:$0xff pattern:$0x75643120] %v8019_v55  ;;  %v768_v55 = vshll.u32 %v9673_v25, 16  ;;  %v967_v25 = vrot.slane %v965_v37, 6 }
  0x60   : > { %v9726_v62 = vld [vmem:[#allocation1 + $0x10] ss:$2 sm:$0xff]  ;;  %v8045_v37 = vld [vmem:[%s9639_s24 + $0x28] sm:$0xc] }
  0x61   : > { %1059 = vst.sshfl [vmem:[#allocation1 + $0x10] sm:$0xff pattern:$0x75643120] %v8020_v58  ;;  %v954_v58 = vrot.slane %v952_v32, 6  ;;  %v770_v4 = vrot.slane %v768_v55, 7  ;;  %v785_v32 = vshll.u32 %v9679_v28, 16 }
  0x62   : > { %v978_v28 = vshrl.u32 %v883_v35, 16  ;;  %v782_v55 = vrot.slane %v780_v24, 7  ;;  %v8048_v24 = vld [vmem:[%s9639_s24 + $0x34] sm:$0x1] }
  0x63   : > { %v9728_v63 = vld [vmem:[#allocation1 + $0x21] ss:$2 sm:$0xff]  ;;  %v771_v45 = vor.u32 %v770_v4, %v767_v2  ;;  %v789_v2 = vshrl.u32 %v9681_v29, 16  ;;  %v792_v4 = vshll.u32 %v9681_v29, 16  ;;  %v801_v29 = vshrl.u32 %v9687_v33, 16 }
  0x64   : > { %v9732_v3 = vld [vmem:[#allocation1 + $0x30] ss:$2 sm:$0xff]  ;;  %1063 = vst.sshfl [vmem:[#allocation1 + $0x20] sm:$0xff pattern:$0x75643120] %v8021_v59  ;;  %v957_v59 = vrot.slane %v955_v34, 7 }
  0x65   : > { %1065 = vst.sshfl [vmem:[#allocation1 + $0x30] sm:$0xff pattern:$0x75643120] %v8022_v60  ;;  %v9756_v60 = vshll.u32 %v874_v22, 16  ;;  %v777_v22 = vshrl.u32 %v9677_v27, 16  ;;  %v772_v56 = vrot.slane %v771_v45, 2 }
  0x66   : > { %v9741_v38 = vld [vmem:[#allocation1 + $0x1] ss:$2 sm:$0xff]  ;;  %v958_v8 = vor.u32 %v957_v59, %v954_v58  ;;  %v8044_v34 = vld [vmem:[%s9639_s24 + $0x24] sm:$0x1]  ;;  %v9783_v58 = vrot.slane %v785_v32, 7  ;;  %v9794_v16 = vrot.slane %v978_v28, 6 }
  0x67   : > { %1366 = vst.sshfl [vmem:[#allocation1] sm:$0xff pattern:$0x75643120] %v8039_v39  ;;  %v8046_v39 = vld [vmem:[%s9639_s24 + $0x2c] sm:$0x1]  ;;  %v803_v13 = vrot.slane %v801_v29, 6 }
  0x68   : > { %v9745_v46 = vld [vmem:[#allocation1 + $0x10] ss:$2 sm:$0xff]  ;;  %v9777_v26 = vrot.slane %v958_v8, 2 }
  0x69   : > { %1368 = vst.sshfl [vmem:[#allocation1 + $0x10] sm:$0xff pattern:$0x75643120] %v8040_v47  ;;  %v971_v47 = vor.u32 %v970_v6, %v967_v25  ;;  %v981_v25 = vshll.u32 %v883_v35, 16  ;;  %v9790_v6 = vshll.u32 %v886_v0, 16 }
  0x6a   : > { %v8047_v8 = vld [vmem:[%s9639_s24 + $0x30] sm:$0xc] }
  0x6b   : > { %v9748_v48 = vld [vmem:[#allocation1 + $0x21] ss:$2 sm:$0xff]  ;;  %v9785_v59 = vrot.slane %v971_v47, 2 }
  0x6c   : > { %v9754_v57 = vld [vmem:[#allocation1 + $0x30] ss:$2 sm:$0xff]  ;;  %1374 = vst.sshfl [vmem:[#allocation1 + $0x20] sm:$0xff pattern:$0x75643120] %v8041_v53 }
  0x6d   : > { %1376 = vst.sshfl [vmem:[#allocation1 + $0x30] sm:$0xff pattern:$0x75643120] %v8042_v54  ;;  %v779_v54 = vrot.slane %v777_v22, 6  ;;  %v8027_v22 = vld [vmem:[%s9639_s24 + $0x28] sm:$0x7] }
  0x6e   : > { %v9771_v40 = vld [vmem:[#allocation1 + $0x1] ss:$2 sm:$0xff]  ;;  %v1184_v47 = vrot.slane %v8027_v22, 2 }
  0x6f   : > { %12367 = vst [vmem:[#allocation21_spill] sm:$0xff] %v9771_v40  ;;  %v783_v32 = vor.u32 %v782_v55, %v779_v54  ;;  %v8029_v55 = vld [vmem:[%s9639_s24 + $0x38] sm:$0x7] }
  0x70   : > { %v9775_v53 = vld [vmem:[#allocation1 + $0x10] ss:$2 sm:$0xff]  ;;  %1382 = vst.sshfl [vmem:[#allocation1] sm:$0xff pattern:$0x75643120] %v8043_v15  ;;  %v797_v15 = vshll.u32 %v9684_v31, 16 }
  0x71   : > { %12368 = vst [vmem:[#allocation22_spill] sm:$0xff] %v9775_v53  ;;  %v804_v31 = vshll.u32 %v9687_v33, 16  ;;  %v9814_v54 = vrot.slane %v783_v32, 2  ;;  %v794_v33 = vrot.slane %v792_v4, 7  ;;  %v12375_v32 = vmov 0 }
  0x72   : > { %1384 = vst.sshfl [vmem:[#allocation1 + $0x10] sm:$0xff pattern:$0x75643120] %v8044_v34  ;;  %v8028_v34 = vld [vmem:[%s9639_s24 + $0x30] sm:$0x7]  ;;  %v9817_v1 = vrot.slane %v797_v15, 7  ;;  %v1214_v4 = vsel %vm837_vm0, %v8027_v22, %v1184_v47 }
  0x73   : > { %v9779_v27 = vld [vmem:[#allocation1 + $0x21] ss:$2 sm:$0xff]  ;;  %v12376_v32 = vsel %vm9823_vm8, 4294967295, %v12375_v32  ;;  %v8052_v15 = vld [vmem:[%s9639_s24 + $0x44] sm:$0x1]  ;;  %v1291_v52 = vshll.u32 %v1214_v4, 16 }
  0x74   : > { %12369 = vst [vmem:[#allocation23_spill] sm:$0xff] %v9779_v27  ;;  %v9781_v5 = vld [vmem:[#allocation1 + $0x30] ss:$2 sm:$0xff]  ;;  %v8053_v53 = vld [vmem:[%s9639_s24 + $0x48] sm:$0xc]  ;;  %v1288_v27 = vshrl.u32 %v1214_v4, 16 }
  0x75   : > { %12370 = vst [vmem:[#allocation24_spill] sm:$0xff] %v9781_v5  ;;  %v8030_v5 = vld [vmem:[%s9639_s24 + $0x40] sm:$0x7] }
  0x76   : > { %1388 = vst.sshfl [vmem:[#allocation1 + $0x20] sm:$0xff pattern:$0x75643120] %v8045_v37  ;;  %v8049_v37 = vld [vmem:[%s9639_s24 + $0x38] sm:$0xc]  ;;  %v1290_v4 = vrot.slane %v1288_v27, 6 }
  0x77   : > { %1390 = vst.sshfl [vmem:[#allocation1 + $0x30] sm:$0xff pattern:$0x75643120] %v8046_v39  ;;  %v8050_v39 = vld [vmem:[%s9639_s24 + $0x3c] sm:$0x1] }
  0x78   : > { %v9801_v45 = vld [vmem:[#allocation1 + $0x1] ss:$2 sm:$0xff]  ;;  %12377 = vst [vmem:[#allocation29_spill] sm:$0xff] %v12376_v32 }
  0x79   : > { %12371 = vst [vmem:[#allocation25_spill] sm:$0xff] %v9801_v45  ;;  %v9806_v0 = vld [vmem:[#allocation1 + $0x10] ss:$2 sm:$0xff] }
  0x7a   : > { %12372 = vst [vmem:[#allocation26_spill] sm:$0xff] %v9806_v0  ;;  %v8051_v0 = vld [vmem:[%s9639_s24 + $0x40] sm:$0xc] }
  0x7b   : > { %1394 = vst.sshfl [vmem:[#allocation1] sm:$0xff pattern:$0x75643120] %v8047_v8  ;;  %v791_v8 = vrot.slane %v789_v2, 6  ;;  %v1186_v2 = vrot.slane %v8029_v55, 2 }
  0x7c   : > { %1396 = vst.sshfl [vmem:[#allocation1 + $0x10] sm:$0xff pattern:$0x75643120] %v8048_v24  ;;  %v1185_v24 = vrot.slane %v8028_v34, 2 }
  0x7d   : > { %v9809_v35 = vld [vmem:[#allocation1 + $0x21] ss:$2 sm:$0xff]  ;;  %v1226_v51 = vsel %vm837_vm0, %v8029_v55, %v1186_v2 }
  0x7e   : > { %12373 = vst [vmem:[#allocation27_spill] sm:$0xff] %v9809_v35  ;;  %v9811_v28 = vld [vmem:[#allocation1 + $0x30] ss:$2 sm:$0xff]  ;;  %v8054_v35 = vld [vmem:[%s9639_s24 + $0x4c] sm:$0x1] }
  0x7f   : > { %12374 = vst [vmem:[#allocation28_spill] sm:$0xff] %v9811_v28  ;;  %v983_v28 = vrot.slane %v981_v25, 7  ;;  %v1220_v25 = vsel %vm837_vm0, %v8028_v34, %v1185_v24 }
  0x80   : > { %1400 = vst.sshfl [vmem:[#allocation1 + $0x20] sm:$0xff pattern:$0x75643120] %v8049_v37  ;;  %v1215_v37 = vsel %vm841_vm1, %v8027_v22, %v1184_v47  ;;  %v795_v22 = vor.u32 %v794_v33, %v791_v8  ;;  %v1221_v47 = vsel %vm841_vm1, %v8028_v34, %v1185_v24  ;;  %v1304_v44 = vshll.u32 %v1220_v25, 16  ;;  %v638_v24 = vld [vmem:[%s9639_s24 + $0x20] sm:$0x3] }
  0x81   : > { %1402 = vst.sshfl [vmem:[#allocation1 + $0x30] sm:$0xff pattern:$0x75643120] %v8050_v39  ;;  %v806_v39 = vrot.slane %v804_v31, 7  ;;  %v1217_v36 = vrot.slane %v1215_v37, 2  ;;  %v9841_v31 = vsel %vm9823_vm8, %v772_v56, %v775_v21  ;;  %v1187_v37 = vrot.slane %v8030_v5, 2 }
  0x82   : > { %v9832_v29 = vld [vmem:[#allocation1 + $0x1] ss:$2 sm:$0xff]  ;;  %12378 = vst [vmem:[#allocation30_spill] sm:$0xff] %v9841_v31  ;;  %v984_v21 = vor.u32 %v983_v28, %v9794_v16  ;;  %v1223_v34 = vrot.slane %v1221_v47, 2  ;;  %v1227_v8 = vsel %vm841_vm1, %v8029_v55, %v1186_v2  ;;  %v1119_v16 = vshll.u32 %v9724_v61, 16 }
  0x83   : > { %v9835_v45 = vld [vmem:[#allocation1 + $0x10] ss:$2 sm:$0xff]  ;;  %1406 = vst.sshfl [vmem:[#allocation1] sm:$0xff pattern:$0x75643120] %v8051_v0  ;;  %v1301_v0 = vshrl.u32 %v1220_v25, 16 }
  0x84   : > { %1408 = vst.sshfl [vmem:[#allocation1 + $0x10] sm:$0xff pattern:$0x75643120] %v8052_v15  ;;  %v807_v15 = vor.u32 %v806_v39, %v803_v13  ;;  %v9855_v33 = vshll.u32 %v1217_v36, 16  ;;  %v1293_v25 = vrot.slane %v1291_v52, 7  ;;  %v1317_v13 = vshll.u32 %v1226_v51, 16 }
  0x85   : > { %v1116_v39 = vshrl.u32 %v9724_v61, 16  ;;  %v1303_v28 = vrot.slane %v1301_v0, 6  ;;  %v1306_v56 = vrot.slane %v1304_v44, 7  ;;  %v640_v47 = vld [vmem:[%s9639_s24 + $0x30] sm:$0x3]  ;;  %v796_v55 = vrot.slane %v795_v22, 2 }
  0x86   : > { %12380 = vst [vmem:[#allocation32_spill] sm:$0xff] %v9855_v33  ;;  %v808_v2 = vrot.slane %v807_v15, 2  ;;  %v9862_v42 = vrot.slane %v984_v21, 2  ;;  %v1232_v36 = vsel %vm837_vm0, %v8030_v5, %v1187_v37  ;;  %v1229_v43 = vrot.slane %v1227_v8, 2  ;;  %v641_v21 = vld [vmem:[%s9639_s24 + $0x38] sm:$0x3] }
  0x87   : > { %v9837_v40 = vld [vmem:[#allocation1 + $0x21] ss:$2 sm:$0xff]  ;;  %v9867_v27 = vshll.u32 %v1223_v34, 16  ;;  %v1128_v61 = vshrl.u32 %v9728_v63, 16  ;;  %v1131_v44 = vshll.u32 %v9728_v63, 16  ;;  %v1319_v22 = vrot.slane %v1317_v13, 7 }
  0x88   : > { %v9844_v50 = vld [vmem:[#allocation1 + $0x30] ss:$2 sm:$0xff]  ;;  %1412 = vst.sshfl [vmem:[#allocation1 + $0x20] sm:$0xff pattern:$0x75643120] %v8053_v53  ;;  %v9853_v53 = vsel %vm841_vm1, %v8030_v5, %v1187_v37  ;;  %v1121_v5 = vrot.slane %v1119_v16, 7  ;;  %v1294_v37 = vor.u32 %v1293_v25, %v1290_v4  ;;  %v1307_v8 = vor.u32 %v1306_v56, %v1303_v28 }
  0x89   : > { %12379 = vst [vmem:[#allocation31_spill] sm:$0xff] %v9844_v50  ;;  %v1235_v52 = vrot.slane %v9853_v53, 2  ;;  %v1118_v50 = vrot.slane %v1116_v39, 6  ;;  %v1140_v53 = vshrl.u32 %v9741_v38, 16  ;;  %v1143_v34 = vshll.u32 %v9741_v38, 16 }
  0x8a   : > { %1414 = vst.sshfl [vmem:[#allocation1 + $0x30] sm:$0xff pattern:$0x75643120] %v8054_v35  ;;  %v1314_v35 = vshrl.u32 %v1226_v51, 16  ;;  %v1327_v51 = vshrl.u32 %v1232_v36, 16  ;;  %v1124_v33 = vshll.u32 %v9726_v62, 16 }
  0x8b   : > { %v1152_v63 = vshrl.u32 %v9748_v48, 16  ;;  %v1130_v4 = vrot.slane %v1128_v61, 6  ;;  %v1133_v56 = vrot.slane %v1131_v44, 7  ;;  %v9882_v25 = vshll.u32 %v1229_v43, 16 }
  0x8c   : > { %v1316_v0 = vrot.slane %v1314_v35, 6  ;;  %v1155_v35 = vshll.u32 %v9748_v48, 16  ;;  %v1122_v38 = vor.u32 %v1121_v5, %v1118_v50  ;;  %v1136_v39 = vshll.u32 %v9732_v3, 16 }
  0x8d   : > { %v9887_v62 = vrot.slane %v1307_v8, 2  ;;  %v1142_v48 = vrot.slane %v1140_v53, 6  ;;  %v1145_v16 = vrot.slane %v1143_v34, 7  ;;  %v1329_v28 = vrot.slane %v1327_v51, 6  ;;  %v9911_v51 = vld [vmem:[%s9639_s24 + $0x40] sm:$0x7] }
  0x8e   : > { %v9890_v61 = vrot.slane %v1124_v33, 7  ;;  %v1148_v43 = vshll.u32 %v9745_v46, 16  ;;  %v1154_v44 = vrot.slane %v1152_v63, 6  ;;  %v1157_v50 = vrot.slane %v1155_v35, 7  ;;  %v8060_v46 = vld [vmem:[%s9639_s24 + $0x38] sm:$0x7] }
  0x8f   : > { %v9869_v41 = vld [vmem:[#allocation1 + $0x21] ss:$2 sm:$0xff]  ;;  %v9897_v3 = vsel %vm9823_vm8, %v9814_v54, %v9783_v58  ;;  %v1134_v33 = vor.u32 %v1133_v56, %v1130_v4  ;;  %v9918_v58 = vrot.slane %v1136_v39, 7  ;;  %v9923_v8 = vshll.u32 %v1235_v52, 16 }
  0x90   : > { %12381 = vst [vmem:[#allocation33_spill] sm:$0xff] %v9869_v41  ;;  %v1330_v41 = vshll.u32 %v1232_v36, 16  ;;  %v8059_v36 = vld [vmem:[%s9639_s24 + $0x30] sm:$0x7]  ;;  %v12298_v53 = vrot.slane %v9911_v51, 2  ;;  %v9931_v4 = vrot.slane %v1148_v43, 7 }
  0x91   : > { %v9873_v15 = vld [vmem:[#allocation1 + $0x30] ss:$2 sm:$0xff]  ;;  %1705 = vst [vmem:[#allocation1 + $0x21] ss:$4 sm:$0xff] %v639_v7  ;;  %v9885_v7 = vrot.slane %v1294_v37, 2  ;;  %v1533_v5 = vrot.slane %v8059_v36, 2 }
  0x92   : > { %1702 = vst [vmem:[#allocation1 + $0x20] ss:$4 sm:$0xff] %v638_v24  ;;  %v1320_v24 = vor.u32 %v1319_v22, %v1316_v0  ;;  %v9902_v0 = vsel %vm9823_vm8, %v796_v55, %v9817_v1  ;;  %v9914_v22 = vld [vmem:[%s9639_s24 + $0x48] sm:$0x7]  ;;  %v1146_v1 = vor.u32 %v1145_v16, %v1142_v48  ;;  %v1160_v55 = vshll.u32 %v9754_v57, 16 }
  0x93   : > { %1708 = vst [vmem:[#allocation1 + $0x22] ss:$4 sm:$0xff] %v640_v47  ;;  %v1332_v47 = vrot.slane %v1330_v41, 7  ;;  %v9907_v41 = vsel %vm9823_vm8, %v808_v2, %v9847_v49  ;;  %v1158_v49 = vor.u32 %v1157_v50, %v1154_v44  ;;  %v1534_v2 = vrot.slane %v8060_v46, 2 }
  0x94   : > { %1711 = vst [vmem:[#allocation1 + $0x23] ss:$4 sm:$0xff] %v641_v21  ;;  %v9916_v21 = vrot.slane %v1122_v38, 2  ;;  %v9920_v54 = vrot.slane %v1320_v24, 2  ;;  %v12297_v34 = vrot.slane %v9914_v22, 2  ;;  %v9929_v35 = vrot.slane %v1134_v33, 2 }
  0x95   : > { %12382 = vst [vmem:[#allocation34_spill] sm:$0xff] %v9897_v3  ;;  %v1333_v37 = vor.u32 %v1332_v47, %v1329_v28  ;;  %v1564_v24 = vsel %vm841_vm1, %v8059_v36, %v1533_v5  ;;  %v9937_v57 = vsel %vm837_vm0, %v8059_v36, %v1533_v5  ;;  %v9940_v52 = vsel %vm841_vm1, %v8060_v46, %v1534_v2 }
  0x96   : > { %12383 = vst [vmem:[#allocation35_spill] sm:$0xff] %v9902_v0  ;;  %v9946_v38 = vsel %vm841_vm1, %v9911_v51, %v12298_v53  ;;  %v9952_v39 = vsel %vm841_vm1, %v9914_v22, %v12297_v34  ;;  %v9955_v48 = vrot.slane %v1146_v1, 2  ;;  %v9957_v16 = vrot.slane %v1160_v55, 7  ;;  %v9980_v34 = vld [vmem:[#allocation1 + $0x1] ss:$2 sm:$0xff] }
  0x97   : > { %12384 = vst [vmem:[#allocation36_spill] sm:$0xff] %v9907_v41  ;;  %v9959_v28 = vrot.slane %v1333_v37, 2  ;;  %v9963_v36 = vrot.slane %v1158_v49, 2  ;;  %v1566_v43 = vrot.slane %v1564_v24, 2  ;;  %v9966_v44 = vsel %vm837_vm0, %v8060_v46, %v1534_v2  ;;  %v634_v37 = vld [vmem:[%s9639_s24] sm:$0x3] }
  0x98   : > { %12386 = vst [vmem:[#allocation38_spill] sm:$0xff] %v9952_v39  ;;  %v717_v50 = vshrl.u32 %v9649_v9, 16  ;;  %v1572_v33 = vrot.slane %v9940_v52, 2  ;;  %v9975_v49 = vld [vmem:[#allocation1 + $0x10] ss:$2 sm:$0xff]  ;;  %v720_v46 = vshll.u32 %v9649_v9, 16 }
  0x99   : > { %v635_v24 = vld [vmem:[%s9639_s24 + $0x8] sm:$0x3]  ;;  %v729_v2 = vshrl.u32 %v9653_v11, 16  ;;  %v732_v5 = vshll.u32 %v9653_v11, 16  ;;  %v741_v1 = vshrl.u32 %v9661_v17, 16  ;;  %v744_v47 = vshll.u32 %v9661_v17, 16 }
  0x9a   : > { %v9986_v56 = vshll.u32 %v1566_v43, 16  ;;  %v719_v55 = vrot.slane %v717_v50, 6  ;;  %v725_v9 = vshll.u32 %v9651_v10, 16  ;;  %v813_v53 = vld [vmem:[%s9639_s24] sm:$0x7]  ;;  %v753_v52 = vshrl.u32 %v9665_v19, 16 }
  0x9b   : > { %v9927_v63 = vld.sshfl [vmem:[#allocation1 + $0x20] sm:$0xff pattern:$0x73625140]  ;;  %v756_v17 = vshll.u32 %v9665_v19, 16  ;;  %v814_v43 = vld [vmem:[%s9639_s24 + $0x8] sm:$0x7] }
  0x9c   : > { %12385 = vst [vmem:[#allocation37_spill] sm:$0xff] %v9927_v63  ;;  %v12388_v63 = vrot.slane %v9739_v30, 7  ;;  %v12390_v13 = vrot.slane %v9756_v60, 7  ;;  %v722_v30 = vrot.slane %v720_v46, 7  ;;  %v731_v50 = vrot.slane %v729_v2, 6 }
  0x9d   : > { %1727 = vst [vmem:[#allocation1 + $0x20] ss:$4 sm:$0xff] %v9841_v31  ;;  %v636_v60 = vld [vmem:[%s9639_s24 + $0x10] sm:$0x3]  ;;  %v755_v46 = vrot.slane %v753_v52, 6  ;;  %v10043_v2 = vsel %vm9823_vm8, %v9929_v35, %v9918_v58  ;;  %v761_v35 = vshll.u32 %v9667_v20, 16 }
  0x9e   : > { %1730 = vst [vmem:[#allocation1 + $0x21] ss:$4 sm:$0xff] %v9897_v3  ;;  %v9996_v11 = vsel %vm9823_vm8, %v9773_v23, %v12388_v63  ;;  %v10006_v10 = vsel %vm9823_vm8, %v9777_v26, %v12390_v13  ;;  %v12392_v23 = vrot.slane %v9760_v14, 7  ;;  %v743_v3 = vrot.slane %v741_v1, 6 }
  0x9f   : > { %1733 = vst [vmem:[#allocation1 + $0x22] ss:$4 sm:$0xff] %v9902_v0  ;;  %v746_v26 = vrot.slane %v744_v47, 7  ;;  %v12394_v13 = vrot.slane %v9790_v6, 7  ;;  %v10032_v14 = vsel %vm9823_vm8, %v9916_v21, %v9890_v61  ;;  %v830_v1 = vrot.slane %v814_v43, 2 }
  0xa0   : > { %1736 = vst [vmem:[#allocation1 + $0x23] ss:$4 sm:$0xff] %v9907_v41  ;;  %v10009_v41 = vld [vmem:[%s9639_s24 + $0x10] sm:$0x7]  ;;  %v10016_v19 = vsel %vm9823_vm8, %v9785_v59, %v12392_v23  ;;  %v816_v59 = vld [vmem:[%s9639_s24 + $0x18] sm:$0x7]  ;;  %v723_v23 = vor.u32 %v722_v30, %v719_v55 }
  0xa1   : > { %12387 = vst [vmem:[#allocation39_spill] sm:$0xff] %v9986_v56  ;;  %v737_v6 = vshll.u32 %v9655_v12, 16  ;;  %v749_v47 = vshll.u32 %v9663_v18, 16  ;;  %v637_v21 = vld [vmem:[%s9639_s24 + $0x18] sm:$0x3]  ;;  %v10050_v18 = vshll.u32 %v1572_v33, 16  ;;  %v747_v58 = vor.u32 %v746_v26, %v743_v3 }
  0xa2   : > { %12389 = vst [vmem:[#allocation40_spill] sm:$0xff] %v9996_v11  ;;  %v727_v55 = vrot.slane %v725_v9, 7  ;;  %v8003_v33 = vld [vmem:[%s9639_s24 + $0x28] sm:$0x3]  ;;  %v848_v3 = vsel %vm841_vm1, %v814_v43, %v830_v1  ;;  %v8006_v0 = vld [vmem:[%s9639_s24 + $0x40] sm:$0x3] }
  0xa3   : > { %1690 = vst [vmem:[#allocation1] ss:$4 sm:$0xff] %v634_v37  ;;  %v734_v37 = vrot.slane %v732_v5, 7  ;;  %v829_v5 = vrot.slane %v813_v53, 2  ;;  %v739_v30 = vrot.slane %v737_v6, 7 }
  0xa4   : > { %12391 = vst [vmem:[#allocation41_spill] sm:$0xff] %v10006_v10  ;;  %v8005_v6 = vld [vmem:[%s9639_s24 + $0x38] sm:$0x3] }
  0xa5   : > { %1693 = vst [vmem:[#allocation1 + $0x1] ss:$4 sm:$0xff] %v635_v24  ;;  %v10026_v24 = vsel %vm9823_vm8, %v9862_v42, %v12394_v13  ;;  %v758_v42 = vrot.slane %v756_v17, 7  ;;  %v831_v13 = vrot.slane %v10009_v41, 2  ;;  %v735_v52 = vor.u32 %v734_v37, %v731_v50  ;;  %v8004_v37 = vld [vmem:[%s9639_s24 + $0x30] sm:$0x3] }
  0xa6   : > { %12393 = vst [vmem:[#allocation42_spill] sm:$0xff] %v10016_v19  ;;  %v832_v17 = vrot.slane %v816_v59, 2  ;;  %v840_v61 = vsel %vm837_vm0, %v813_v53, %v829_v5  ;;  %v842_v50 = vsel %vm841_vm1, %v813_v53, %v829_v5 }
  0xa7   : > { %v10018_v63 = vld.sshfl [vmem:[#allocation1 + $0x20] sm:$0xff pattern:$0x73625140]  ;;  %12395 = vst [vmem:[#allocation43_spill] sm:$0xff] %v10026_v24  ;;  %v759_v12 = vor.u32 %v758_v42, %v755_v46  ;;  %v853_v20 = vsel %vm837_vm0, %v10009_v41, %v831_v13  ;;  %v748_v46 = vrot.slane %v747_v58, 2  ;;  %v763_v42 = vrot.slane %v761_v35, 7 }
  0xa8   : > { %12396 = vst [vmem:[#allocation44_spill] sm:$0xff] %v10032_v14  ;;  %v859_v26 = vsel %vm837_vm0, %v816_v59, %v832_v17  ;;  %v844_v31 = vrot.slane %v842_v50, 2  ;;  %v913_v53 = vshrl.u32 %v853_v20, 16  ;;  %v916_v5 = vshll.u32 %v853_v20, 16 }
  0xa9   : > { %1758 = vst [vmem:[#allocation1 + $0x20] ss:$4 sm:$0xff] %v9996_v11  ;;  %v890_v11 = vshll.u32 %v840_v61, 16  ;;  %v926_v56 = vshrl.u32 %v859_v26, 16  ;;  %v929_v39 = vshll.u32 %v859_v26, 16  ;;  %v12400_v35 = vrot.slane %v9911_v51, 2 }
  0xaa   : > { %1761 = vst [vmem:[#allocation1 + $0x21] ss:$4 sm:$0xff] %v10006_v10  ;;  %v751_v10 = vrot.slane %v749_v47, 7  ;;  %v736_v47 = vrot.slane %v735_v52, 2 }
  0xab   : > { %12397 = vst [vmem:[#allocation45_spill] sm:$0xff] %v10043_v2 }
  0xac   : > { %1764 = vst [vmem:[#allocation1 + $0x22] ss:$4 sm:$0xff] %v10016_v19  ;;  %v847_v19 = vsel %vm837_vm0, %v814_v43, %v830_v1  ;;  %v850_v1 = vrot.slane %v848_v3, 2  ;;  %v928_v3 = vrot.slane %v926_v56, 6  ;;  %v12403_v56 = vshll.u32 %v9937_v57, 16 }
  0xad   : > { %12398 = vst [vmem:[#allocation46_spill] sm:$0xff] %v10050_v18  ;;  %v900_v9 = vshrl.u32 %v847_v19, 16  ;;  %v854_v18 = vsel %vm841_vm1, %v10009_v41, %v831_v13  ;;  %v10079_v41 = vsel %vm837_vm0, %v9911_v51, %v12400_v35  ;;  %v10093_v51 = vsel %vm9823_vm8, %v748_v46, %v751_v10 }
  0xae   : > { %1767 = vst [vmem:[#allocation1 + $0x23] ss:$4 sm:$0xff] %v10026_v24  ;;  %v724_v24 = vrot.slane %v723_v23, 2  ;;  %v760_v23 = vrot.slane %v759_v12, 2  ;;  %v10073_v12 = vsel %vm9823_vm8, %v9955_v48, %v9931_v4  ;;  %v856_v4 = vrot.slane %v854_v18, 2 }
  0xaf   : > { %1696 = vst [vmem:[#allocation1 + $0x2] ss:$4 sm:$0xff] %v636_v60  ;;  %v887_v60 = vshrl.u32 %v840_v61, 16  ;;  %v860_v61 = vsel %vm841_vm1, %v816_v59, %v832_v17  ;;  %v902_v58 = vrot.slane %v900_v9, 6  ;;  %v10089_v17 = vsel %vm9823_vm8, %v736_v47, %v739_v30 }
  0xb0   : > { %1699 = vst [vmem:[#allocation1 + $0x3] ss:$4 sm:$0xff] %v637_v21  ;;  %v903_v21 = vshll.u32 %v847_v19, 16  ;;  %v892_v19 = vrot.slane %v890_v11, 7  ;;  %v10083_v13 = vsel %vm9823_vm8, %v724_v24, %v727_v55  ;;  %v915_v48 = vrot.slane %v913_v53, 6 }
  0xb1   : > { %v889_v52 = vrot.slane %v887_v60, 6  ;;  %12399 = vst [vmem:[#allocation47_spill] sm:$0xff] %v10073_v12  ;;  %v862_v50 = vrot.slane %v860_v61, 2  ;;  %v931_v24 = vrot.slane %v929_v39, 7  ;;  %v1468_v55 = vshll.u32 %v9832_v29, 16 }
  0xb2   : > { %v905_v59 = vrot.slane %v903_v21, 7  ;;  %v10098_v20 = vsel %vm9823_vm8, %v760_v23, %v763_v42  ;;  %v896_v30 = vshll.u32 %v844_v31, 16  ;;  %v12402_v18 = vshrl.u32 %v9937_v57, 16 }
  0xb3   : > { %v1663_v10 = vshrl.u32 %v10079_v41, 16  ;;  %v909_v60 = vshll.u32 %v850_v1, 16  ;;  %v10109_v39 = vrot.slane %v12403_v56, 7  ;;  %v922_v31 = vshll.u32 %v856_v4, 16 }
  0xb4   : > { %v906_v26 = vor.u32 %v905_v59, %v902_v58  ;;  %v12404_v47 = vshrl.u32 %v9966_v44, 16  ;;  %v12405_v42 = vshll.u32 %v9966_v44, 16  ;;  %v932_v23 = vor.u32 %v931_v24, %v928_v3 }
  0xb5   : > { %v1770_v43 = vld.sshfl [vmem:[#allocation1 + $0x20] sm:$0xff pattern:$0x73625140]  ;;  %v935_v53 = vshll.u32 %v862_v50, 16  ;;  %v12406_v57 = vshrl.u32 %v9832_v29, 16  ;;  %v898_v61 = vrot.slane %v896_v30, 7  ;;  %v10131_v44 = vsel %vm9823_vm8, %v9963_v36, %v9957_v16 }
  0xb6   : > { %1774 = vrot.lane.b32.xlu1 %v1770_v43, %s9465_s25  ;;  %1789 = vst [vmem:[#allocation1 + $0x20] ss:$4 sm:$0xff] %v8003_v33  ;;  %v918_v33 = vrot.slane %v916_v5, 7  ;;  %v10115_v46 = vrot.slane %v12404_v47, 6  ;;  %v10119_v21 = vrot.slane %v12405_v42, 7  ;;  %v1470_v43 = vrot.slane %v1468_v55, 7 }
  0xb7   : > { %1792 = vst [vmem:[#allocation1 + $0x21] ss:$4 sm:$0xff] %v8004_v37  ;;  %v10085_v11 = vld.sshfl [vmem:[#allocation1] sm:$0xff pattern:$0x73625140]  ;;  %v893_v37 = vor.u32 %v892_v19, %v889_v52  ;;  %v1467_v5 = vrot.slane %v12406_v57, 6 }
  0xb8   : > { %12401 = vst [vmem:[#allocation48_spill] sm:$0xff] %v10085_v11  ;;  %v1473_v52 = vshll.u32 %v9835_v45, 16  ;;  %v10125_v19 = vrot.slane %v1663_v10, 6  ;;  %v907_v58 = vrot.slane %v906_v26, 2  ;;  %v911_v35 = vrot.slane %v909_v60, 7  ;;  %v12409_v50 = vld [vmem:[#allocation31_spill] sm:$0xff] }
  0xb9   : > { %1795 = vst [vmem:[#allocation1 + $0x22] ss:$4 sm:$0xff] %v8005_v6  ;;  %v919_v6 = vor.u32 %v918_v33, %v915_v48  ;;  %v894_v1 = vrot.slane %v893_v37, 2  ;;  %v1477_v59 = vshrl.u32 %v9837_v40, 16  ;;  %v924_v48 = vrot.slane %v922_v31, 7  ;;  %v12410_v36 = vld [vmem:[#allocation13_spill] sm:$0xff] }
  0xba   : > { %1798 = vst [vmem:[#allocation1 + $0x23] ss:$4 sm:$0xff] %v8006_v0  ;;  %v10103_v0 = vrot.slane %v12402_v18, 6  ;;  %v1480_v33 = vshll.u32 %v9837_v40, 16  ;;  %v1485_v45 = vshll.u32 %v12409_v50, 16  ;;  %v933_v3 = vrot.slane %v932_v23, 2 }
  0xbb   : > { %1715 = vst [vmem:[#allocation1] ss:$4 sm:$0xff] %v10083_v13  ;;  %v920_v29 = vrot.slane %v919_v6, 2  ;;  %v937_v24 = vrot.slane %v935_v53, 7  ;;  %v1471_v55 = vor.u32 %v1470_v43, %v1467_v5  ;;  %v10142_v16 = vsel %vm9823_vm8, %v894_v1, %v898_v61  ;;  %v12412_v26 = vld [vmem:[#allocation15_spill] sm:$0xff]  ;;  %v12415_v53 = vld [vmem:[#allocation32_spill] sm:$0xff] }
  0xbc   : > { %1718 = vst [vmem:[#allocation1 + $0x1] ss:$4 sm:$0xff] %v10089_v17  ;;  %v1068_v37 = vshrl.u32 %v12410_v36, 16  ;;  %v1071_v30 = vshll.u32 %v12410_v36, 16  ;;  %v1489_v18 = vshrl.u32 %v9980_v34, 16  ;;  %v1492_v40 = vshll.u32 %v9980_v34, 16 }
  0xbd   : > { %1721 = vst [vmem:[#allocation1 + $0x2] ss:$4 sm:$0xff] %v10093_v51  ;;  %v10151_v10 = vsel %vm9823_vm8, %v907_v58, %v911_v35  ;;  %v1080_v60 = vshrl.u32 %v12412_v26, 16  ;;  %v10157_v56 = vsel %vm9823_vm8, %v920_v29, %v924_v48  ;;  %v1083_v31 = vshll.u32 %v12412_v26, 16  ;;  %v12419_v48 = vld [vmem:[#allocation14_spill] sm:$0xff] }
  0xbe   : > { %1724 = vst [vmem:[#allocation1 + $0x3] ss:$4 sm:$0xff] %v10098_v20  ;;  %v10160_v47 = vrot.slane %v1473_v52, 7  ;;  %v10162_v34 = vrot.slane %v1477_v59, 6  ;;  %v10164_v42 = vrot.slane %v1480_v33, 7  ;;  %v10168_v23 = vsel %vm9823_vm8, %v933_v3, %v937_v24 }
  0xbf   : > { %12407 = vst [vmem:[#allocation49_spill] sm:$0xff] %v10131_v44  ;;  %v12416_v57 = vrot.slane %v12415_v53, 7  ;;  %v10178_v43 = vrot.slane %v1485_v45, 7  ;;  %v1070_v1 = vrot.slane %v1068_v37, 6  ;;  %v1073_v61 = vrot.slane %v1071_v30, 7 }
  0xc0   : > { %12411 = vst [vmem:[#allocation31_spill] sm:$0xff] %v10151_v10  ;;  %v10181_v52 = vrot.slane %v1471_v55, 2  ;;  %v10183_v58 = vrot.slane %v1489_v18, 6  ;;  %v10185_v35 = vrot.slane %v1492_v40, 7  ;;  %v1076_v33 = vshll.u32 %v12419_v48, 16  ;;  %v12420_v55 = vld [vmem:[#allocation17_spill] sm:$0xff] }
  0xc1   : > { %v10134_v4 = vld.sshfl [vmem:[#allocation1 + $0x20] sm:$0xff pattern:$0x73625140]  ;;  %12413 = vst [vmem:[#allocation13_spill] sm:$0xff] %v10157_v56  ;;  %v10176_v5 = vsel %vm9823_vm8, %v9885_v7, %v12416_v57  ;;  %v12418_v7 = vld [vmem:[#allocation33_spill] sm:$0xff]  ;;  %v1082_v50 = vrot.slane %v1080_v60, 6  ;;  %v1074_v26 = vor.u32 %v1073_v61, %v1070_v1 }
  0xc2   : > { %12408 = vst [vmem:[#allocation50_spill] sm:$0xff] %v10134_v4  ;;  %v1501_v29 = vshrl.u32 %v12418_v7, 16  ;;  %v1085_v45 = vrot.slane %v1083_v31, 7  ;;  %v1504_v3 = vshll.u32 %v12418_v7, 16  ;;  %v1092_v36 = vshrl.u32 %v12420_v55, 16  ;;  %v12423_v60 = vld [vmem:[#allocation16_spill] sm:$0xff] }
  0xc3   : > { %1820 = vst [vmem:[#allocation1 + $0x20] ss:$4 sm:$0xff] %v10032_v14  ;;  %v1095_v37 = vshll.u32 %v12420_v55, 16  ;;  %v8023_v30 = vld [vmem:[%s9639_s24 + $0x8] sm:$0x7]  ;;  %v12421_v18 = vrot.slane %v9867_v27, 7 }
  0xc4   : > { %1823 = vst [vmem:[#allocation1 + $0x21] ss:$4 sm:$0xff] %v10043_v2  ;;  %v12424_v31 = vld [vmem:[#allocation19_spill] sm:$0xff]  ;;  %v8024_v57 = vld [vmem:[%s9639_s24 + $0x10] sm:$0x7]  ;;  %v12425_v48 = vrot.slane %v9882_v25, 7  ;;  %v1086_v24 = vor.u32 %v1085_v45, %v1082_v50 }
  0xc5   : > { %1826 = vst [vmem:[#allocation1 + $0x22] ss:$4 sm:$0xff] %v10073_v12  ;;  %v1737_v6 = vld.sshfl [vmem:[#allocation1] sm:$0xff pattern:$0x73625140]  ;;  %v10203_v40 = vsel %vm9823_vm8, %v9887_v62, %v12421_v18  ;;  %v1104_v53 = vshrl.u32 %v12424_v31, 16 }
  0xc6   : > { %1829 = vst [vmem:[#allocation1 + $0x23] ss:$4 sm:$0xff] %v10131_v44  ;;  %1741 = vrot.lane.b32.xlu2 %v1737_v6, %s9466_s28  ;;  %v1088_v6 = vshll.u32 %v12423_v60, 16  ;;  %v8025_v7 = vld [vmem:[%s9639_s24 + $0x18] sm:$0x7]  ;;  %v10214_v55 = vsel %vm9823_vm8, %v9920_v54, %v12425_v48  ;;  %v12427_v27 = vrot.slane %v9923_v8, 7 }
  0xc7   : > { %12414 = vst [vmem:[#allocation15_spill] sm:$0xff] %v10168_v23  ;;  %v7999_v61 = vld [vmem:[%s9639_s24 + $0x8] sm:$0x3]  ;;  %v1107_v18 = vshll.u32 %v12424_v31, 16  ;;  %v8026_v60 = vld [vmem:[%s9639_s24 + $0x20] sm:$0x7] }
  0xc8   : > { %1746 = vst [vmem:[#allocation1] ss:$4 sm:$0xff] %v10142_v16  ;;  %v10221_v62 = vsel %vm9823_vm8, %v9959_v28, %v12427_v27  ;;  %v8000_v25 = vld [vmem:[%s9639_s24 + $0x10] sm:$0x3]  ;;  %v1078_v9 = vrot.slane %v1076_v33, 7  ;;  %v12430_v54 = vld [vmem:[#allocation18_spill] sm:$0xff] }
  0xc9   : > { %12417 = vst [vmem:[#allocation32_spill] sm:$0xff] %v10176_v5  ;;  %v1100_v48 = vshll.u32 %v12430_v54, 16  ;;  %v1180_v59 = vrot.slane %v8023_v30, 2  ;;  %v8001_v8 = vld [vmem:[%s9639_s24 + $0x18] sm:$0x3]  ;;  %v1094_v4 = vrot.slane %v1092_v36, 6 }
  0xca   : > { %1749 = vst [vmem:[#allocation1 + $0x1] ss:$4 sm:$0xff] %v10151_v10  ;;  %v1097_v28 = vrot.slane %v1095_v37, 7  ;;  %v12431_v27 = vld [vmem:[#allocation20_spill] sm:$0xff]  ;;  %v1075_v31 = vrot.slane %v1074_v26, 2  ;;  %v1106_v44 = vrot.slane %v1104_v53, 6 }
  0xcb   : > { %1752 = vst [vmem:[#allocation1 + $0x2] ss:$4 sm:$0xff] %v10157_v56  ;;  %v1112_v11 = vshll.u32 %v12431_v27, 16  ;;  %v1183_v12 = vrot.slane %v8026_v60, 2  ;;  %v12432_v50 = vrot.slane %v9914_v22, 2  ;;  %v1109_v37 = vrot.slane %v1107_v18, 7 }
  0xcc   : > { %1755 = vst [vmem:[#allocation1 + $0x3] ss:$4 sm:$0xff] %v10168_v23  ;;  %v10248_v53 = vrot.slane %v1501_v29, 6  ;;  %v10250_v54 = vrot.slane %v1504_v3, 7  ;;  %v8002_v27 = vld [vmem:[%s9639_s24 + $0x20] sm:$0x3]  ;;  %v1098_v26 = vor.u32 %v1097_v28, %v1094_v4  ;;  %v1191_v4 = vsel %vm841_vm1, %v8023_v30, %v1180_v59 }
  0xcd   : > { %12422 = vst [vmem:[#allocation33_spill] sm:$0xff] %v10203_v40  ;;  %v10223_v1 = vld.sshfl [vmem:[#allocation1 + $0x20] sm:$0xff pattern:$0x73625140]  ;;  %v10241_v45 = vsel %vm837_vm0, %v9914_v22, %v12432_v50  ;;  %v1190_v22 = vsel %vm837_vm0, %v8023_v30, %v1180_v59  ;;  %v1087_v50 = vrot.slane %v1086_v24, 2  ;;  %v1090_v18 = vrot.slane %v1088_v6, 7 }
  0xce   : > { %12426 = vst [vmem:[#allocation14_spill] sm:$0xff] %v10214_v55  ;;  %1743 = vrot.lane.b32.xlu2 %v10018_v63, %s9466_s28  ;;  %v1102_v33 = vrot.slane %v1100_v48, 7  ;;  %v1114_v29 = vrot.slane %v1112_v11, 7  ;;  %v1110_v24 = vor.u32 %v1109_v37, %v1106_v44  ;;  %v1236_v6 = vshrl.u32 %v1190_v22, 16 }
  0xcf   : > { %12428 = vst [vmem:[#allocation17_spill] sm:$0xff] %v10221_v62  ;;  %v1239_v48 = vshll.u32 %v1190_v22, 16  ;;  %v10273_v44 = vsel %vm9823_vm8, %v1087_v50, %v1090_v18  ;;  %v1209_v37 = vsel %vm841_vm1, %v8026_v60, %v1183_v12  ;;  %v12435_v18 = vor.u32 %v10185_v35, %v10183_v58 }
  0xd0   : > { %12429 = vst [vmem:[#allocation16_spill] sm:$0xff] %v10223_v1  ;;  %v1181_v1 = vrot.slane %v8024_v57, 2  ;;  %v1111_v30 = vrot.slane %v1110_v24, 2  ;;  %v10308_v58 = vsel %vm9823_vm8, %v10181_v52, %v10160_v47 }
  0xd1   : > { %1851 = vst [vmem:[#allocation1 + $0x20] ss:$4 sm:$0xff] %v10176_v5  ;;  %v1182_v5 = vrot.slane %v8025_v7, 2 }
  0xd2   : > { %1854 = vst [vmem:[#allocation1 + $0x21] ss:$4 sm:$0xff] %v10203_v40  ;;  %v1196_v63 = vsel %vm837_vm0, %v8024_v57, %v1181_v1  ;;  %v1197_v11 = vsel %vm841_vm1, %v8024_v57, %v1181_v1  ;;  %v8038_v40 = vld [vmem:[%s9639_s24 + $0x48] sm:$0x3]  ;;  %v1193_v57 = vrot.slane %v1191_v4, 2  ;;  %v1238_v1 = vrot.slane %v1236_v6, 6 }
  0xd3   : > { %1857 = vst [vmem:[#allocation1 + $0x22] ss:$4 sm:$0xff] %v10214_v55  ;;  %v1768_v36 = vld.sshfl [vmem:[#allocation1] sm:$0xff pattern:$0x73625140]  ;;  %v1202_v3 = vsel %vm837_vm0, %v8025_v7, %v1182_v5  ;;  %v1252_v28 = vshll.u32 %v1196_v63, 16  ;;  %v1203_v2 = vsel %vm841_vm1, %v8025_v7, %v1182_v5 }
  0xd4   : > { %1860 = vst [vmem:[#allocation1 + $0x23] ss:$4 sm:$0xff] %v10221_v62  ;;  %1772 = vrot.lane.b32.xlu0 %v1768_v36, %s9465_s25  ;;  %v1208_v36 = vsel %vm837_vm0, %v8026_v60, %v1183_v12  ;;  %v8035_v62 = vld [vmem:[%s9639_s24 + $0x30] sm:$0x3]  ;;  %v8037_v55 = vld [vmem:[%s9639_s24 + $0x40] sm:$0x3] }
  0xd5   : > { %1777 = vst [vmem:[#allocation1] ss:$4 sm:$0xff] %v7999_v61  ;;  %v10261_v61 = vsel %vm9823_vm8, %v1075_v31, %v1078_v9  ;;  %v1262_v14 = vshrl.u32 %v1202_v3, 16  ;;  %v1265_v23 = vshll.u32 %v1202_v3, 16  ;;  %v1275_v56 = vshrl.u32 %v1208_v36, 16 }
  0xd6   : > { %1780 = vst [vmem:[#allocation1 + $0x1] ss:$4 sm:$0xff] %v8000_v25  ;;  %v8036_v25 = vld [vmem:[%s9639_s24 + $0x38] sm:$0x3]  ;;  %v1099_v31 = vrot.slane %v1098_v26, 2  ;;  %v1278_v59 = vshll.u32 %v1208_v36, 16  ;;  %v1507_v26 = vor.u32 %v10250_v54, %v10248_v53 }
  0xd7   : > { %1783 = vst [vmem:[#allocation1 + $0x2] ss:$4 sm:$0xff] %v8001_v8  ;;  %v1249_v8 = vshrl.u32 %v1196_v63, 16  ;;  %v1199_v5 = vrot.slane %v1197_v11, 2  ;;  %v1205_v7 = vrot.slane %v1203_v2, 2  ;;  %v1254_v63 = vrot.slane %v1252_v28, 7 }
  0xd8   : > { %1786 = vst [vmem:[#allocation1 + $0x3] ss:$4 sm:$0xff] %v8002_v27  ;;  %v1241_v27 = vrot.slane %v1239_v48, 7  ;;  %v1211_v3 = vrot.slane %v1209_v37, 2  ;;  %v1267_v10 = vrot.slane %v1265_v23, 7  ;;  %v1277_v50 = vrot.slane %v1275_v56, 6 }
  0xd9   : > { %v1251_v22 = vrot.slane %v1249_v8, 6  ;;  %v10280_v12 = vsel %vm9823_vm8, %v1099_v31, %v1102_v33  ;;  %v1280_v60 = vrot.slane %v1278_v59, 7  ;;  %v1676_v2 = vshrl.u32 %v10241_v45, 16 }
  0xda   : > { %v1245_v56 = vshll.u32 %v1193_v57, 16  ;;  %v12434_v23 = vor.u32 %v10164_v42, %v10162_v34  ;;  %v1679_v33 = vshll.u32 %v10241_v45, 16  ;;  %v1258_v54 = vshll.u32 %v1199_v5, 16 }
  0xdb   : > { %v10269_v9 = vld.sshfl [vmem:[#allocation1 + $0x20] sm:$0xff pattern:$0x73625140]  ;;  %v1255_v53 = vor.u32 %v1254_v63, %v1251_v22  ;;  %v1496_v36 = vrot.slane %v12435_v18, 2  ;;  %v1271_v48 = vshll.u32 %v1205_v7, 16  ;;  %v12437_v34 = vshll.u32 %v9873_v15, 16 }
  0xdc   : > { %12433 = vst [vmem:[#allocation19_spill] sm:$0xff] %v10269_v9  ;;  %v1264_v9 = vrot.slane %v1262_v14, 6  ;;  %v1242_v14 = vor.u32 %v1241_v27, %v1238_v1  ;;  %v1281_v45 = vor.u32 %v1280_v60, %v1277_v50  ;;  %v1284_v4 = vshll.u32 %v1211_v3, 16  ;;  %v12441_v63 = vld [vmem:[#allocation38_spill] sm:$0xff] }
  0xdd   : > { %1882 = vst [vmem:[#allocation1 + $0x20] ss:$4 sm:$0xff] %v8035_v62  ;;  %v1511_v42 = vrot.slane %v12437_v34, 7  ;;  %v1678_v8 = vrot.slane %v1676_v2, 6  ;;  %v1256_v28 = vrot.slane %v1255_v53, 2  ;;  %v1681_v37 = vrot.slane %v1679_v33, 7 }
  0xde   : > { %1885 = vst [vmem:[#allocation1 + $0x21] ss:$4 sm:$0xff] %v8036_v25  ;;  %v1268_v6 = vor.u32 %v1267_v10, %v1264_v9  ;;  %v1508_v25 = vrot.slane %v1507_v26, 2  ;;  %v1243_v11 = vrot.slane %v1242_v14, 2  ;;  %v1247_v10 = vrot.slane %v1245_v56, 7  ;;  %v12444_v60 = vld [vmem:[#allocation46_spill] sm:$0xff] }
  0xdf   : > { %1888 = vst [vmem:[#allocation1 + $0x22] ss:$4 sm:$0xff] %v8037_v55  ;;  %v10282_v62 = vld.sshfl [vmem:[#allocation1] sm:$0xff pattern:$0x73625140]  ;;  %v10287_v55 = vsel %vm9823_vm8, %v1111_v30, %v1114_v29  ;;  %v12436_v29 = vshll.u32 %v9975_v49, 16  ;;  %v1656_v1 = vor.u32 %v10119_v21, %v10115_v46 }
  0xe0   : > { %1891 = vst [vmem:[#allocation1 + $0x23] ss:$4 sm:$0xff] %v8038_v40  ;;  %v1484_v40 = vrot.slane %v12434_v23, 2  ;;  %v12438_v49 = vshll.u32 %v10079_v41, 16  ;;  %v1260_v9 = vrot.slane %v1258_v54, 7  ;;  %v1269_v52 = vrot.slane %v1268_v6, 2  ;;  %1803 = vrot.lane.b32.xlu2 %v10282_v62, %s12339_s30 }
  0xe1   : > { %1808 = vst [vmem:[#allocation1] ss:$4 sm:$0xff] %v10261_v61  ;;  %v1499_v24 = vrot.slane %v12436_v29, 7  ;;  %v1273_v41 = vrot.slane %v1271_v48, 7  ;;  %v10325_v59 = vsel %vm9823_vm8, %v1508_v25, %v1511_v42  ;;  %v1282_v30 = vrot.slane %v1281_v45, 2  ;;  %v12445_v23 = vld [vmem:[#allocation21_spill] sm:$0xff] }
  0xe2   : > { %1811 = vst [vmem:[#allocation1 + $0x1] ss:$4 sm:$0xff] %v10273_v44  ;;  %v1668_v35 = vrot.slane %v12438_v49, 7  ;;  %v10315_v15 = vsel %vm9823_vm8, %v1484_v40, %v10178_v43  ;;  %v1643_v43 = vor.u32 %v10109_v39, %v10103_v0  ;;  %v1286_v57 = vrot.slane %v1284_v4, 7  ;;  %v12446_v53 = vld [vmem:[#allocation23_spill] sm:$0xff]  ;;  %v12447_v48 = vld [vmem:[#allocation25_spill] sm:$0xff] }
  0xe3   : > { %1814 = vst [vmem:[#allocation1 + $0x2] ss:$4 sm:$0xff] %v10280_v12  ;;  %v10319_v31 = vsel %vm9823_vm8, %v1496_v36, %v1499_v24  ;;  %v10335_v27 = vsel %vm9823_vm8, %v1243_v11, %v1247_v10  ;;  %v12440_v7 = vrot.slane %v9946_v38, 2  ;;  %v10343_v0 = vsel %vm9823_vm8, %v1256_v28, %v1260_v9  ;;  %v12443_v38 = vld [vmem:[#allocation39_spill] sm:$0xff]  ;;  %v2096_v10 = vld [vmem:[%s9639_s24 + $0xc] sm:$0x1] }
  0xe4   : > { %1817 = vst [vmem:[#allocation1 + $0x3] ss:$4 sm:$0xff] %v10287_v55  ;;  %v1669_v5 = vor.u32 %v1668_v35, %v10125_v19  ;;  %v1682_v39 = vor.u32 %v1681_v37, %v1678_v8  ;;  %v12442_v46 = vrot.slane %v12441_v63, 2  ;;  %v10350_v50 = vsel %vm9823_vm8, %v1269_v52, %v1273_v41  ;;  %v8055_v9 = vld [vmem:[%s9639_s24 + $0x10] sm:$0x7]  ;;  %v12454_v63 = vld [vmem:[#allocation22_spill] sm:$0xff] }
  0xe5   : > { %v1672_v22 = vshll.u32 %v12440_v7, 16  ;;  %v1644_v19 = vrot.slane %v1643_v43, 2  ;;  %v1648_v26 = vrot.slane %v12443_v38, 7  ;;  %v1661_v2 = vrot.slane %v12444_v60, 7  ;;  %v8031_v52 = vld [vmem:[%s9639_s24 + $0x10] sm:$0x3] }
  0xe6   : > { %v1685_v21 = vshll.u32 %v12442_v46, 16  ;;  %v10357_v14 = vsel %vm9823_vm8, %v1282_v30, %v1286_v57  ;;  %v1657_v56 = vrot.slane %v1656_v1, 2  ;;  %v1417_v40 = vshrl.u32 %v12445_v23, 16  ;;  %v12453_v43 = vld [vmem:[#allocation27_spill] sm:$0xff]  ;;  %v8056_v57 = vld [vmem:[%s9639_s24 + $0x18] sm:$0x7] }
  0xe7   : > { %v10321_v47 = vld.sshfl [vmem:[#allocation1 + $0x20] sm:$0xff pattern:$0x73625140]  ;;  %v1420_v33 = vshll.u32 %v12445_v23, 16  ;;  %v1429_v54 = vshrl.u32 %v12446_v53, 16  ;;  %v1670_v18 = vrot.slane %v1669_v5, 2  ;;  %v10370_v34 = vsel %vm9823_vm8, %v1644_v19, %v1648_v26 }
  0xe8   : > { %12439 = vst [vmem:[#allocation18_spill] sm:$0xff] %v10321_v47  ;;  %v1674_v36 = vrot.slane %v1672_v22, 7  ;;  %v1432_v29 = vshll.u32 %v12446_v53, 16  ;;  %v1683_v24 = vrot.slane %v1682_v39, 2  ;;  %v1687_v6 = vrot.slane %v1685_v21, 7 }
  0xe9   : > { %1913 = vst [vmem:[#allocation1 + $0x20] ss:$4 sm:$0xff] %v10308_v58  ;;  %v1441_v25 = vshrl.u32 %v12447_v48, 16  ;;  %v1444_v42 = vshll.u32 %v12447_v48, 16  ;;  %v10375_v45 = vsel %vm9823_vm8, %v1657_v56, %v1661_v2  ;;  %v1419_v4 = vrot.slane %v1417_v40, 6  ;;  %v12455_v56 = vld [vmem:[#allocation24_spill] sm:$0xff] }
  0xea   : > { %1916 = vst [vmem:[#allocation1 + $0x21] ss:$4 sm:$0xff] %v10315_v15  ;;  %v1422_v49 = vrot.slane %v1420_v33, 7  ;;  %v1431_v35 = vrot.slane %v1429_v54, 6  ;;  %v10379_v11 = vsel %vm9823_vm8, %v1670_v18, %v1674_v36  ;;  %v1434_v28 = vrot.slane %v1432_v29, 7  ;;  %v12456_v40 = vld [vmem:[#allocation26_spill] sm:$0xff] }
  0xeb   : > { %1919 = vst [vmem:[#allocation1 + $0x22] ss:$4 sm:$0xff] %v10319_v31  ;;  %v1830_v3 = vld.sshfl [vmem:[#allocation1] sm:$0xff pattern:$0x73625140]  ;;  %v10387_v37 = vsel %vm9823_vm8, %v1683_v24, %v1687_v6  ;;  %v1443_v41 = vrot.slane %v1441_v25, 6 }
  0xec   : > { %1922 = vst [vmem:[#allocation1 + $0x23] ss:$4 sm:$0xff] %v10325_v59  ;;  %1834 = vrot.lane.b32.xlu1 %v1830_v3, %s12337_s29  ;;  %v1453_v30 = vshrl.u32 %v12453_v43, 16  ;;  %v8032_v1 = vld [vmem:[%s9639_s24 + $0x18] sm:$0x3]  ;;  %v1446_v5 = vrot.slane %v1444_v42, 7  ;;  %v1423_v26 = vor.u32 %v1422_v49, %v1419_v4  ;;  %v1435_v2 = vor.u32 %v1434_v28, %v1431_v35 }
  0xed   : > { %1839 = vst [vmem:[#allocation1] ss:$4 sm:$0xff] %v10335_v27  ;;  %v1456_v7 = vshll.u32 %v12453_v43, 16  ;;  %v8057_v22 = vld [vmem:[%s9639_s24 + $0x20] sm:$0x7]  ;;  %v1425_v46 = vshll.u32 %v12454_v63, 16 }
  0xee   : > { %1842 = vst [vmem:[#allocation1 + $0x1] ss:$4 sm:$0xff] %v10343_v0  ;;  %v8033_v39 = vld [vmem:[%s9639_s24 + $0x20] sm:$0x3]  ;;  %v8058_v21 = vld [vmem:[%s9639_s24 + $0x28] sm:$0x7]  ;;  %v1447_v54 = vor.u32 %v1446_v5, %v1443_v41 }
  0xef   : > { %1845 = vst [vmem:[#allocation1 + $0x2] ss:$4 sm:$0xff] %v10350_v50  ;;  %v1529_v3 = vrot.slane %v8055_v9, 2  ;;  %v8034_v38 = vld [vmem:[%s9639_s24 + $0x28] sm:$0x3]  ;;  %v1530_v60 = vrot.slane %v8056_v57, 2 }
  0xf0   : > { %1848 = vst [vmem:[#allocation1 + $0x3] ss:$4 sm:$0xff] %v10357_v14  ;;  %v1437_v23 = vshll.u32 %v12455_v56, 16  ;;  %v1449_v33 = vshll.u32 %v12456_v40, 16  ;;  %v1455_v53 = vrot.slane %v1453_v30, 6  ;;  %v1458_v18 = vrot.slane %v1456_v7, 7 }
  0xf1   : > { %12448 = vst [vmem:[#allocation20_spill] sm:$0xff] %v10370_v34  ;;  %v12457_v36 = vld [vmem:[#allocation28_spill] sm:$0xff]  ;;  %v1531_v24 = vrot.slane %v8057_v22, 2  ;;  %v1532_v6 = vrot.slane %v8058_v21, 2  ;;  %v1424_v25 = vrot.slane %v1423_v26, 2  ;;  %v1427_v42 = vrot.slane %v1425_v46, 7 }
  0xf2   : > { %12449 = vst [vmem:[#allocation38_spill] sm:$0xff] %v10375_v45  ;;  %v1461_v29 = vshll.u32 %v12457_v36, 16  ;;  %v2095_v48 = vld [vmem:[%s9639_s24 + $0x8] sm:$0x8]  ;;  %v1539_v4 = vsel %vm837_vm0, %v8055_v9, %v1529_v3  ;;  %v1545_v49 = vsel %vm837_vm0, %v8056_v57, %v1530_v60  ;;  %v1436_v35 = vrot.slane %v1435_v2, 2  ;;  %s12498_s29 = smov 48  }
  0xf3   : > { %12450 = vst [vmem:[#allocation39_spill] sm:$0xff] %v10379_v11  ;;  %v10382_v8 = vld.sshfl [vmem:[#allocation1 + $0x20] sm:$0xff pattern:$0x73625140]  ;;  %v1451_v28 = vrot.slane %v1449_v33, 7  ;;  %v1448_v43 = vrot.slane %v1447_v54, 2  ;;  %v1459_v30 = vor.u32 %v1458_v18, %v1455_v53  ;;  %v1557_v7 = vsel %vm837_vm0, %v8058_v21, %v1532_v6 }
  0xf4   : > { %12451 = vst [vmem:[#allocation46_spill] sm:$0xff] %v10382_v8  ;;  %v2100_v41 = vld [vmem:[%s9639_s24 + $0x1c] sm:$0x1]  ;;  %v1463_v5 = vrot.slane %v1461_v29, 7  ;;  %v1588_v63 = vshll.u32 %v1539_v4, 16  ;;  %v1598_v46 = vshrl.u32 %v1545_v49, 16  ;;  %v1540_v26 = vsel %vm841_vm1, %v8055_v9, %v1529_v3 }
  0xf5   : > { %12452 = vst [vmem:[#allocation21_spill] sm:$0xff] %v10387_v37  ;;  %v1601_v2 = vshll.u32 %v1545_v49, 16  ;;  %v1546_v56 = vsel %vm841_vm1, %v8056_v57, %v1530_v60  ;;  %v1460_v33 = vrot.slane %v1459_v30, 2  ;;  %v1552_v53 = vsel %vm841_vm1, %v8057_v22, %v1531_v24  ;;  %v2099_v36 = vld [vmem:[%s9639_s24 + $0x18] sm:$0x8] }
  0xf6   : > { %1944 = vst [vmem:[#allocation1 + $0x20] ss:$4 sm:$0xff] %v10370_v34  ;;  %v1624_v54 = vshrl.u32 %v1557_v7, 16  ;;  %v1627_v18 = vshll.u32 %v1557_v7, 16  ;;  %v1542_v29 = vrot.slane %v1540_v26, 2  ;;  %v1558_v9 = vsel %vm841_vm1, %v8058_v21, %v1532_v6 }
  0xf7   : > { %1947 = vst [vmem:[#allocation1 + $0x21] ss:$4 sm:$0xff] %v10375_v45  ;;  %v1861_v19 = vld.sshfl [vmem:[#allocation1] sm:$0xff pattern:$0x73625140]  ;;  %v1548_v57 = vrot.slane %v1546_v56, 2 }
  0xf8   : > { %1950 = vst [vmem:[#allocation1 + $0x22] ss:$4 sm:$0xff] %v10379_v11  ;;  %1865 = vrot.lane.b32.xlu0 %v1861_v19, %s12335_s0  ;;  %v1600_v60 = vrot.slane %v1598_v46, 6  ;;  %v1603_v49 = vrot.slane %v1601_v2, 7  ;;  %v1560_v21 = vrot.slane %v1558_v9, 2  ;;  %v1626_v6 = vrot.slane %v1624_v54, 6 }
  0xf9   : > { %1953 = vst [vmem:[#allocation1 + $0x23] ss:$4 sm:$0xff] %v10387_v37  ;;  %v1594_v30 = vshll.u32 %v1542_v29, 16  ;;  %v8131_v47 = vld [vmem:[%s9639_s24 + $0x28] sm:$0x8]  ;;  %s12525_s0 = smov 96  }
  0xfa   : > { %2122 = vst.sshfl [vmem:[#allocation1 + $0x30] sm:$0xff pattern:$0x75643120] %v2096_v10  ;;  %v1439_v10 = vrot.slane %v1437_v23, 7  ;;  %v1604_v7 = vor.u32 %v1603_v49, %v1600_v60  ;;  %v1633_v2 = vshll.u32 %v1560_v21, 16 }
  0xfb   : > { %1870 = vst [vmem:[#allocation1] ss:$4 sm:$0xff] %v8031_v52  ;;  %v1551_v52 = vsel %vm837_vm0, %v8057_v22, %v1531_v24  ;;  %v1554_v22 = vrot.slane %v1552_v53, 2  ;;  %v1596_v56 = vrot.slane %v1594_v30, 7  ;;  %v2094_v49 = vld [vmem:[%s9639_s24 + $0x4] sm:$0x1] }
  0xfc   : > { %1873 = vst [vmem:[#allocation1 + $0x1] ss:$4 sm:$0xff] %v8032_v1  ;;  %v10426_v62 = vsel %vm9823_vm8, %v1436_v35, %v1439_v10  ;;  %v1611_v23 = vshrl.u32 %v1551_v52, 16  ;;  %v1614_v40 = vshll.u32 %v1551_v52, 16  ;;  %v1629_v10 = vrot.slane %v1627_v18, 7 }
  0xfd   : > { %1876 = vst [vmem:[#allocation1 + $0x2] ss:$4 sm:$0xff] %v8033_v39  ;;  %v1585_v39 = vshrl.u32 %v1539_v4, 16  ;;  %v1620_v46 = vshll.u32 %v1554_v22, 16  ;;  %v2108_v18 = vld [vmem:[%s9639_s24 + $0x3c] sm:$0x1] }
  0xfe   : > { %1879 = vst [vmem:[#allocation1 + $0x3] ss:$4 sm:$0xff] %v8034_v38  ;;  %v10421_v38 = vsel %vm9823_vm8, %v1424_v25, %v1427_v42  ;;  %v2104_v25 = vld [vmem:[%s9639_s24 + $0x2c] sm:$0x1]  ;;  %v10435_v42 = vsel %vm9823_vm8, %v1448_v43, %v1451_v28  ;;  %v1613_v24 = vrot.slane %v1611_v23, 6  ;;  %v1616_v35 = vrot.slane %v1614_v40, 7 }
  0xff   : > { %v1587_v3 = vrot.slane %v1585_v39, 6  ;;  %v10444_v28 = vsel %vm9823_vm8, %v1460_v33, %v1463_v5  ;;  %v1607_v39 = vshll.u32 %v1548_v57, 16  ;;  %v1630_v26 = vor.u32 %v1629_v10, %v1626_v6  ;;  %v2103_v33 = vld [vmem:[%s9639_s24 + $0x28] sm:$0x8]  ;;  %v2107_v22 = vld [vmem:[%s9639_s24 + $0x38] sm:$0x8] }
 0x100   : > { %v10414_v1 = vld.sshfl [vmem:[#allocation1 + $0x20] sm:$0xff pattern:$0x73625140]  ;;  %v1605_v23 = vrot.slane %v1604_v7, 2  ;;  %v1622_v54 = vrot.slane %v1620_v46, 7  ;;  %v1635_v29 = vrot.slane %v1633_v2, 7 }
 0x101   : > { %12458 = vst [vmem:[#allocation23_spill] sm:$0xff] %v10414_v1  ;;  %v10417_v19 = vld [vmem:[#allocation1 + $0x30] ss:$2 sm:$0xff]  ;;  %v1609_v40 = vrot.slane %v1607_v39, 7  ;;  %v8103_v30 = vld [vmem:[%s9639_s24 + $0x10] sm:$0x8] }
 0x102   : > { %2120 = vst.sshfl [vmem:[#allocation1 + $0x20] sm:$0xff pattern:$0x75643120] %v2095_v48  ;;  %v1590_v48 = vrot.slane %v1588_v63, 7  ;;  %v1617_v63 = vor.u32 %v1616_v35, %v1613_v24  ;;  %v8104_v24 = vld [vmem:[%s9639_s24 + $0x14] sm:$0x1] }
 0x103   : > { %2140 = vst.sshfl [vmem:[#allocation1 + $0x30] sm:$0xff pattern:$0x75643120] %v2100_v41  ;;  %v2098_v6 = vld [vmem:[%s9639_s24 + $0x14] sm:$0x1] }
 0x104   : > { %v1591_v43 = vor.u32 %v1590_v48, %v1587_v3  ;;  %v1618_v53 = vrot.slane %v1617_v63, 2  ;;  %v8108_v39 = vld [vmem:[%s9639_s24 + $0x24] sm:$0x1]  ;;  %v2097_v2 = vld [vmem:[%s9639_s24 + $0x10] sm:$0x8] }
 0x105   : > { %v1892_v4 = vld.sshfl [vmem:[#allocation1] sm:$0xff pattern:$0x73625140]  ;;  %v8136_v8 = vld [vmem:[%s9639_s24 + $0x3c] sm:$0x1] }
 0x106   : > { %1896 = vrot.lane.b32.xlu1 %v1892_v4, %s12319_s2  ;;  %1901 = vst [vmem:[#allocation1] ss:$4 sm:$0xff] %v10421_v38  ;;  %v1592_v5 = vrot.slane %v1591_v43, 2  ;;  %v10466_v4 = vsel %vm9823_vm8, %v1618_v53, %v1622_v54  ;;  %s12321_s2 = smov 84   ;;  %v2093_v43 = vld [vmem:[%s9639_s24] sm:$0x8] }
 0x107   : > { %1904 = vst [vmem:[#allocation1 + $0x1] ss:$4 sm:$0xff] %v10426_v62  ;;  %v2106_v54 = vld [vmem:[%s9639_s24 + $0x34] sm:$0x1] }
 0x108   : > { %1907 = vst [vmem:[#allocation1 + $0x2] ss:$4 sm:$0xff] %v10435_v42  ;;  %v10456_v3 = vsel %vm9823_vm8, %v1592_v5, %v1596_v56  ;;  %v8107_v5 = vld [vmem:[%s9639_s24 + $0x20] sm:$0x8]  ;;  %v8112_v56 = vld [vmem:[%s9639_s24 + $0x34] sm:$0x1] }
 0x109   : > { %v10440_v41 = vld [vmem:[#allocation1 + $0x21] ss:$2 sm:$0xff]  ;;  %1910 = vst [vmem:[#allocation1 + $0x3] ss:$4 sm:$0xff] %v10444_v28 }
 0x10a   : > { %2138 = vst.sshfl [vmem:[#allocation1 + $0x20] sm:$0xff pattern:$0x75643120] %v2099_v36  ;;  %v10447_v52 = vld [vmem:[#allocation1 + $0x30] ss:$2 sm:$0xff]  ;;  %v1631_v36 = vrot.slane %v1630_v26, 2 }
 0x10b   : > { %2156 = vst.sshfl [vmem:[#allocation1 + $0x30] sm:$0xff pattern:$0x75643120] %v2104_v25  ;;  %v10462_v25 = vsel %vm9823_vm8, %v1605_v23, %v1609_v40  ;;  %v2102_v26 = vld [vmem:[%s9639_s24 + $0x24] sm:$0x1] }
 0x10c   : > { %12459 = vst [vmem:[#allocation25_spill] sm:$0xff] %v10456_v3  ;;  %v10470_v60 = vsel %vm9823_vm8, %v1631_v36, %v1635_v29  ;;  %v8111_v36 = vld [vmem:[%s9639_s24 + $0x30] sm:$0x8]  ;;  %v8116_v29 = vld [vmem:[%s9639_s24 + $0x44] sm:$0x1] }
 0x10d   : > { %12460 = vst [vmem:[#allocation27_spill] sm:$0xff] %v10462_v25 }
 0x10e   : > { %12461 = vst [vmem:[#allocation22_spill] sm:$0xff] %v10466_v4 }
 0x10f   : > { %12462 = vst [vmem:[#allocation24_spill] sm:$0xff] %v10470_v60 }
 0x110   : > { %v1923_v57 = vld.sshfl [vmem:[#allocation1] sm:$0xff pattern:$0x73625140] }
 0x111   : > { %v10452_v9 = vld [vmem:[#allocation1 + $0x21] ss:$2 sm:$0xff]  ;;  %1932 = vst [vmem:[#allocation1] ss:$4 sm:$0xff] %v10456_v3  ;;  %1927 = vrot.lane.b32.xlu2 %v1923_v57, %s12321_s2  ;;  %s12333_s2 = smov 96  }
 0x112   : > { %2154 = vst.sshfl [vmem:[#allocation1 + $0x20] sm:$0xff pattern:$0x75643120] %v2103_v33  ;;  %v10458_v48 = vld [vmem:[#allocation1 + $0x30] ss:$2 sm:$0xff] }
 0x113   : > { %2172 = vst.sshfl [vmem:[#allocation1 + $0x30] sm:$0xff pattern:$0x75643120] %v2108_v18  ;;  %v2101_v18 = vld [vmem:[%s9639_s24 + $0x20] sm:$0x8] }
 0x114   : > { %1935 = vst [vmem:[#allocation1 + $0x1] ss:$4 sm:$0xff] %v10462_v25 }
 0x115   : > { %1938 = vst [vmem:[#allocation1 + $0x2] ss:$4 sm:$0xff] %v10466_v4  ;;  %v8140_v4 = vld [vmem:[%s9639_s24 + $0x4c] sm:$0x1] }
 0x116   : > { %1941 = vst [vmem:[#allocation1 + $0x3] ss:$4 sm:$0xff] %v10470_v60 }
 0x117   : > { %2112 = vst.sshfl [vmem:[#allocation1 + $0x10] sm:$0xff pattern:$0x75643120] %v2094_v49 }
 0x119   : > { %v10480_v35 = vld [vmem:[#allocation1 + $0x21] ss:$2 sm:$0xff] }
 0x11a   : > { %2170 = vst.sshfl [vmem:[#allocation1 + $0x20] sm:$0xff pattern:$0x75643120] %v2107_v22  ;;  %v10482_v21 = vld [vmem:[#allocation1 + $0x30] ss:$2 sm:$0xff] }
 0x11b   : > { %2245 = vst.sshfl [vmem:[#allocation1 + $0x30] sm:$0xff pattern:$0x75643120] %v8104_v24 }
 0x11d   : > { %v1954_v10 = vld.sshfl [vmem:[#allocation1] sm:$0xff pattern:$0x73625140] }
 0x11e   : > { %v10487_v7 = vld [vmem:[#allocation1 + $0x10] ss:$2 sm:$0xff]  ;;  %1958 = vrot.lane.b32.xlu0 %v1954_v10, %s12333_s2  ;;  %2110 = vst.sshfl [vmem:[#allocation1] sm:$0xff pattern:$0x75643120] %v2093_v43  ;;  %s12495_s2 = sld [smem:[#allocation58_spill]] }
 0x11f   : > { %2132 = vst.sshfl [vmem:[#allocation1 + $0x10] sm:$0xff pattern:$0x75643120] %v2098_v6  ;;  %v8102_v6 = vld [vmem:[%s9639_s24 + $0xc] sm:$0x1] }
 0x120   : > { %v2105_v10 = vld [vmem:[%s9639_s24 + $0x30] sm:$0x8]  ;;  %v8115_v43 = vld [vmem:[%s9639_s24 + $0x40] sm:$0x8] }
 0x121   : > { %v10491_v63 = vld [vmem:[#allocation1 + $0x21] ss:$2 sm:$0xff] }
 0x122   : > { %2243 = vst.sshfl [vmem:[#allocation1 + $0x20] sm:$0xff pattern:$0x75643120] %v8103_v30  ;;  %v10493_v46 = vld [vmem:[#allocation1 + $0x30] ss:$2 sm:$0xff] }
 0x123   : > { %2263 = vst.sshfl [vmem:[#allocation1 + $0x30] sm:$0xff pattern:$0x75643120] %v8108_v39  ;;  %v8128_v30 = vld [vmem:[%s9639_s24 + $0x1c] sm:$0x1] }
 0x125   : > { %v10501_v40 = vld [vmem:[#allocation1 + $0x1] ss:$2 sm:$0xff] }
 0x126   : > { %v10499_v23 = vld [vmem:[#allocation1 + $0x10] ss:$2 sm:$0xff]  ;;  %2130 = vst.sshfl [vmem:[#allocation1] sm:$0xff pattern:$0x75643120] %v2097_v2 }
 0x127   : > { %2148 = vst.sshfl [vmem:[#allocation1 + $0x10] sm:$0xff pattern:$0x75643120] %v2102_v26 }
 0x129   : > { %v10503_v33 = vld [vmem:[#allocation1 + $0x21] ss:$2 sm:$0xff] }
 0x12a   : > { %2261 = vst.sshfl [vmem:[#allocation1 + $0x20] sm:$0xff pattern:$0x75643120] %v8107_v5  ;;  %v10505_v53 = vld [vmem:[#allocation1 + $0x30] ss:$2 sm:$0xff] }
 0x12b   : > { %2279 = vst.sshfl [vmem:[#allocation1 + $0x30] sm:$0xff pattern:$0x75643120] %v8112_v56  ;;  %v8106_v56 = vld [vmem:[%s9639_s24 + $0x1c] sm:$0x1] }
 0x12d   : > { %v10513_v49 = vld [vmem:[#allocation1 + $0x1] ss:$2 sm:$0xff] }
 0x12e   : > { %v10511_v57 = vld [vmem:[#allocation1 + $0x10] ss:$2 sm:$0xff]  ;;  %2146 = vst.sshfl [vmem:[#allocation1] sm:$0xff pattern:$0x75643120] %v2101_v18 }
 0x12f   : > { %2164 = vst.sshfl [vmem:[#allocation1 + $0x10] sm:$0xff pattern:$0x75643120] %v2106_v54  ;;  %v8101_v54 = vld [vmem:[%s9639_s24 + $0x8] sm:$0x8] }
 0x130   : > { %v8127_v18 = vld [vmem:[%s9639_s24 + $0x18] sm:$0x8] }
 0x131   : > { %v10515_v22 = vld [vmem:[#allocation1 + $0x21] ss:$2 sm:$0xff] }
 0x132   : > { %2277 = vst.sshfl [vmem:[#allocation1 + $0x20] sm:$0xff pattern:$0x75643120] %v8111_v36  ;;  %v10517_v24 = vld [vmem:[#allocation1 + $0x30] ss:$2 sm:$0xff] }
 0x133   : > { %2295 = vst.sshfl [vmem:[#allocation1 + $0x30] sm:$0xff pattern:$0x75643120] %v8116_v29  ;;  %v8132_v36 = vld [vmem:[%s9639_s24 + $0x2c] sm:$0x1] }
 0x135   : > { %v10525_v26 = vld [vmem:[#allocation1 + $0x1] ss:$2 sm:$0xff] }
 0x136   : > { %v10523_v39 = vld [vmem:[#allocation1 + $0x10] ss:$2 sm:$0xff]  ;;  %2162 = vst.sshfl [vmem:[#allocation1] sm:$0xff pattern:$0x75643120] %v2105_v10 }
 0x137   : > { %2235 = vst.sshfl [vmem:[#allocation1 + $0x10] sm:$0xff pattern:$0x75643120] %v8102_v6 }
 0x139   : > { %v10527_v2 = vld [vmem:[#allocation1 + $0x21] ss:$2 sm:$0xff] }
 0x13a   : > { %2293 = vst.sshfl [vmem:[#allocation1 + $0x20] sm:$0xff pattern:$0x75643120] %v8115_v43  ;;  %v10529_v5 = vld [vmem:[#allocation1 + $0x30] ss:$2 sm:$0xff] }
 0x13b   : > { %2361 = vst.sshfl [vmem:[#allocation1 + $0x30] sm:$0xff pattern:$0x75643120] %v8128_v30  ;;  %v8110_v43 = vld [vmem:[%s9639_s24 + $0x2c] sm:$0x1] }
 0x13c   : > { %v8105_v30 = vld [vmem:[%s9639_s24 + $0x18] sm:$0x8] }
 0x13d   : > { %v10537_v6 = vld [vmem:[#allocation1 + $0x1] ss:$2 sm:$0xff] }
 0x13e   : > { %v10535_v29 = vld [vmem:[#allocation1 + $0x10] ss:$2 sm:$0xff]  ;;  %2233 = vst.sshfl [vmem:[#allocation1] sm:$0xff pattern:$0x75643120] %v8101_v54 }
 0x13f   : > { %2255 = vst.sshfl [vmem:[#allocation1 + $0x10] sm:$0xff pattern:$0x75643120] %v8106_v56 }
 0x141   : > { %v10539_v32 = vld [vmem:[#allocation1 + $0x21] ss:$2 sm:$0xff] }
 0x142   : > { %2359 = vst.sshfl [vmem:[#allocation1 + $0x20] sm:$0xff pattern:$0x75643120] %v8127_v18  ;;  %v10541_v10 = vld [vmem:[#allocation1 + $0x30] ss:$2 sm:$0xff] }
 0x143   : > { %12463 = vst [vmem:[#allocation26_spill] sm:$0xff] %v10541_v10  ;;  %v8114_v18 = vld [vmem:[%s9639_s24 + $0x3c] sm:$0x1]  ;;  %v8135_v10 = vld [vmem:[%s9639_s24 + $0x38] sm:$0x8] }
 0x144   : > { %2379 = vst.sshfl [vmem:[#allocation1 + $0x30] sm:$0xff pattern:$0x75643120] %v8132_v36  ;;  %v8109_v36 = vld [vmem:[%s9639_s24 + $0x28] sm:$0x8] }
 0x145   : > { %v10549_v56 = vld [vmem:[#allocation1 + $0x1] ss:$2 sm:$0xff] }
 0x146   : > { %v10547_v1 = vld [vmem:[#allocation1 + $0x10] ss:$2 sm:$0xff]  ;;  %2253 = vst.sshfl [vmem:[#allocation1] sm:$0xff pattern:$0x75643120] %v8105_v30 }
 0x147   : > { %2271 = vst.sshfl [vmem:[#allocation1 + $0x10] sm:$0xff pattern:$0x75643120] %v8110_v43  ;;  %v8126_v30 = vld [vmem:[%s9639_s24 + $0x14] sm:$0x1] }
 0x149   : > { %v10551_v60 = vld [vmem:[#allocation1 + $0x21] ss:$2 sm:$0xff] }
 0x14a   : > { %12464 = vst [vmem:[#allocation28_spill] sm:$0xff] %v10551_v60 }
 0x14b   : > { %2377 = vst.sshfl [vmem:[#allocation1 + $0x20] sm:$0xff pattern:$0x75643120] %v8131_v47  ;;  %v10553_v54 = vld [vmem:[#allocation1 + $0x30] ss:$2 sm:$0xff] }
 0x14c   : > { %12465 = vst [vmem:[#allocation51_spill] sm:$0xff] %v10553_v54  ;;  %v8139_v54 = vld [vmem:[%s9639_s24 + $0x48] sm:$0x8] }
 0x14d   : > { %2395 = vst.sshfl [vmem:[#allocation1 + $0x30] sm:$0xff pattern:$0x75643120] %v8136_v8  ;;  %v10561_v43 = vld [vmem:[#allocation1 + $0x1] ss:$2 sm:$0xff] }
 0x14e   : > { %v10559_v25 = vld [vmem:[#allocation1 + $0x10] ss:$2 sm:$0xff]  ;;  %2269 = vst.sshfl [vmem:[#allocation1] sm:$0xff pattern:$0x75643120] %v8109_v36 }
 0x14f   : > { %2287 = vst.sshfl [vmem:[#allocation1 + $0x10] sm:$0xff pattern:$0x75643120] %v8114_v18  ;;  %v8113_v8 = vld [vmem:[%s9639_s24 + $0x38] sm:$0x8] }
 0x152   : > { %v10563_v3 = vld [vmem:[#allocation1 + $0x21] ss:$2 sm:$0xff] }
 0x153   : > { %12466 = vst [vmem:[#allocation52_spill] sm:$0xff] %v10563_v3  ;;  %v12471_v3 = vld [vmem:[#allocation35_spill] sm:$0xff] }
 0x154   : > { %2393 = vst.sshfl [vmem:[#allocation1 + $0x20] sm:$0xff pattern:$0x75643120] %v8135_v10  ;;  %v10565_v47 = vld [vmem:[#allocation1 + $0x30] ss:$2 sm:$0xff] }
 0x155   : > { %12467 = vst [vmem:[#allocation53_spill] sm:$0xff] %v10565_v47  ;;  %v10572_v37 = vld [vmem:[#allocation1 + $0x1] ss:$2 sm:$0xff]  ;;  %v12470_v10 = vld [vmem:[#allocation30_spill] sm:$0xff]  ;;  %v8125_v47 = vld [vmem:[%s9639_s24 + $0x10] sm:$0x8] }
 0x156   : > { %2411 = vst.sshfl [vmem:[#allocation1 + $0x30] sm:$0xff pattern:$0x75643120] %v8140_v4  ;;  %v10570_v60 = vld [vmem:[#allocation1 + $0x10] ss:$2 sm:$0xff] }
 0x157   : > { %2351 = vst.sshfl [vmem:[#allocation1 + $0x10] sm:$0xff pattern:$0x75643120] %v8126_v30  ;;  %v8130_v4 = vld [vmem:[%s9639_s24 + $0x24] sm:$0x1] }
 0x158   : > { %2285 = vst.sshfl [vmem:[#allocation1] sm:$0xff pattern:$0x75643120] %v8113_v8  ;;  %v12475_v8 = vld [vmem:[#allocation36_spill] sm:$0xff] }
 0x15b   : > { %v10574_v18 = vld [vmem:[#allocation1 + $0x21] ss:$2 sm:$0xff] }
 0x15c   : > { %12468 = vst [vmem:[#allocation54_spill] sm:$0xff] %v10574_v18 }
 0x15d   : > { %2409 = vst.sshfl [vmem:[#allocation1 + $0x20] sm:$0xff pattern:$0x75643120] %v8139_v54  ;;  %v10576_v36 = vld [vmem:[#allocation1 + $0x30] ss:$2 sm:$0xff] }
 0x15e   : > { %12469 = vst [vmem:[#allocation55_spill] sm:$0xff] %v10576_v36  ;;  %v10582_v11 = vld [vmem:[#allocation1 + $0x10] ss:$2 sm:$0xff]  ;;  %v8129_v36 = vld [vmem:[%s9639_s24 + $0x20] sm:$0x8] }
 0x15f   : > { %2456 = vst [vmem:[#allocation1 + $0x20] ss:$4 sm:$0xff] %v12470_v10  ;;  %v10584_v30 = vld [vmem:[#allocation1 + $0x1] ss:$2 sm:$0xff]  ;;  %v12474_v54 = vld [vmem:[#allocation34_spill] sm:$0xff] }
 0x160   : > { %2460 = vst [vmem:[#allocation1 + $0x22] ss:$4 sm:$0xff] %v12471_v3  ;;  %v8134_v10 = vld [vmem:[%s9639_s24 + $0x34] sm:$0x1] }
 0x161   : > { %12472 = vst [vmem:[#allocation30_spill] sm:$0xff] %v10582_v11  ;;  %v8138_v11 = vld [vmem:[%s9639_s24 + $0x44] sm:$0x1] }
 0x162   : > { %2371 = vst.sshfl [vmem:[#allocation1 + $0x10] sm:$0xff pattern:$0x75643120] %v8130_v4  ;;  %v8133_v4 = vld [vmem:[%s9639_s24 + $0x30] sm:$0x8] }
 0x163   : > { %2349 = vst.sshfl [vmem:[#allocation1] sm:$0xff pattern:$0x75643120] %v8125_v47  ;;  %v8137_v47 = vld [vmem:[%s9639_s24 + $0x40] sm:$0x8]  ;;  %s12508_s24 = smov 72  }
 0x164   : > { %v10586_v45 = vld [vmem:[#allocation1 + $0x21] ss:$2 sm:$0xff] }
 0x165   : > { %12473 = vst [vmem:[#allocation35_spill] sm:$0xff] %v10586_v45 }
 0x166   : > { %2458 = vst [vmem:[#allocation1 + $0x21] ss:$4 sm:$0xff] %v12474_v54 }
 0x167   : > { %2462 = vst [vmem:[#allocation1 + $0x23] ss:$4 sm:$0xff] %v12475_v8 }
 0x169   : > { %v10592_v3 = vld [vmem:[#allocation1 + $0x10] ss:$2 sm:$0xff] }
 0x16a   : > { %12476 = vst [vmem:[#allocation34_spill] sm:$0xff] %v10592_v3  ;;  %v10594_v18 = vld [vmem:[#allocation1 + $0x1] ss:$2 sm:$0xff] }
 0x16b   : > { %2387 = vst.sshfl [vmem:[#allocation1 + $0x10] sm:$0xff pattern:$0x75643120] %v8134_v10  ;;  %v12479_v10 = vld [vmem:[#allocation40_spill] sm:$0xff] }
 0x16c   : > { %2369 = vst.sshfl [vmem:[#allocation1] sm:$0xff pattern:$0x75643120] %v8129_v36 }
 0x172   : > { %v10598_v34 = vld [vmem:[#allocation1 + $0x10] ss:$2 sm:$0xff] }
 0x173   : > { %2403 = vst.sshfl [vmem:[#allocation1 + $0x10] sm:$0xff pattern:$0x75643120] %v8138_v11  ;;  %v10600_v45 = vld [vmem:[#allocation1 + $0x1] ss:$2 sm:$0xff] }
 0x174   : > { %12477 = vst [vmem:[#allocation36_spill] sm:$0xff] %v10600_v45  ;;  %v10612_v11 = vld.sshfl [vmem:[#allocation1 + $0x20] sm:$0xff pattern:$0x73625140] }
 0x175   : > { %2385 = vst.sshfl [vmem:[#allocation1] sm:$0xff pattern:$0x75643120] %v8133_v4  ;;  %v12480_v4 = vld [vmem:[#allocation41_spill] sm:$0xff] }
 0x176   : > { %12478 = vst [vmem:[#allocation56_spill] sm:$0xff] %v10612_v11  ;;  %v9322_v11 = vld [vmem:[%s12276_s11 + $0x108] sm:$0xff] }
 0x177   : > { %2473 = vst [vmem:[#allocation1 + $0x20] ss:$4 sm:$0xff] %v12479_v10  ;;  %v2206_v10 = vrot.slane %v10458_v48, 7 }
 0x178   : > { %2475 = vst [vmem:[#allocation1 + $0x21] ss:$4 sm:$0xff] %v12480_v4  ;;  %v8099_v4 = vrot.slane %v10537_v6, 9 }
 0x17a   : > { %v10603_v54 = vld [vmem:[#allocation1 + $0x10] ss:$2 sm:$0xff] }
 0x17c   : > { %v10605_v8 = vld [vmem:[#allocation1 + $0x1] ss:$2 sm:$0xff] }
 0x17d   : > { %2401 = vst.sshfl [vmem:[#allocation1] sm:$0xff pattern:$0x75643120] %v8137_v47  ;;  %v8097_v47 = vrot.slane %v10525_v26, 9  ;;  %v2214_v26 = vrot.slane %v10482_v21, 7  ;;  %v2186_v21 = vrot.slane %v10487_v7, 7 }
 0x17e   : > { %2448 = vst [vmem:[#allocation1] ss:$4 sm:$0xff] %v10083_v13  ;;  %v12481_v13 = vld [vmem:[#allocation42_spill] sm:$0xff]  ;;  %v8096_v7 = vrot.slane %v10452_v9, 9  ;;  %v12489_v9 = vld [vmem:[#allocation44_spill] sm:$0xff] }
 0x17f   : > { %2452 = vst [vmem:[#allocation1 + $0x2] ss:$4 sm:$0xff] %v10093_v51  ;;  %v12482_v51 = vld [vmem:[#allocation43_spill] sm:$0xff] }
 0x180   : > { %2477 = vst [vmem:[#allocation1 + $0x22] ss:$4 sm:$0xff] %v12481_v13  ;;  %v2210_v13 = vrot.slane %v10523_v39, 7 }
 0x181   : > { %2479 = vst [vmem:[#allocation1 + $0x23] ss:$4 sm:$0xff] %v12482_v51  ;;  %v8100_v51 = vrot.slane %v10491_v63, 9 }
 0x182   : > { %v2211_v63 = vsel %vm10621_vm15, %v8099_v4, %v2210_v13  ;;  %v12491_v4 = vld [vmem:[#allocation47_spill] sm:$0xff]  ;;  %v12492_v13 = vld [vmem:[#allocation49_spill] sm:$0xff] }
 0x183   : > { %v2215_v39 = vsel %vm10621_vm15, %v8100_v51, %v2214_v26 }
 0x184   : > { %v10609_v36 = vld [vmem:[#allocation1 + $0x1] ss:$2 sm:$0xff] }
 0x185   : > { %2450 = vst [vmem:[#allocation1 + $0x1] ss:$4 sm:$0xff] %v10089_v17  ;;  %v2202_v17 = vrot.slane %v10511_v57, 7  ;;  %v12486_v57 = vld [vmem:[#allocation31_spill] sm:$0xff] }
 0x186   : > { %2454 = vst [vmem:[#allocation1 + $0x3] ss:$4 sm:$0xff] %v10098_v20  ;;  %v8098_v20 = vrot.slane %v10480_v35, 9  ;;  %v12487_v35 = vld [vmem:[#allocation13_spill] sm:$0xff] }
 0x187   : > { %v2203_v3 = vsel %vm10621_vm15, %v8097_v47, %v2202_v17  ;;  %v8094_v47 = vrot.slane %v10440_v41, 9  ;;  %v2190_v17 = vrot.slane %v10417_v19, 7 }
 0x188   : > { %v2207_v48 = vsel %vm10621_vm15, %v8098_v20, %v2206_v10  ;;  %v2482_v6 = vld.sshfl [vmem:[#allocation1 + $0x20] sm:$0xff pattern:$0x73625140]  ;;  %v8095_v20 = vrot.slane %v10513_v49, 9  ;;  %v12490_v49 = vld [vmem:[#allocation45_spill] sm:$0xff] }
 0x189   : > { %2486 = vrot.lane.b32.xlu1 %v2482_v6, %s9466_s28  ;;  %2501 = vst [vmem:[#allocation1 + $0x20] ss:$4 sm:$0xff] %v2203_v3  ;;  %v2191_v3 = vsel %vm10621_vm15, %v8094_v47, %v2190_v17  ;;  %v12496_v6 = vld [vmem:[#allocation14_spill] sm:$0xff]  ;;  %v2322_v47 = vrot.slane %v10517_v24, 7 }
 0x18a   : > { %2504 = vst [vmem:[#allocation1 + $0x21] ss:$4 sm:$0xff] %v2207_v48  ;;  %v8089_v48 = vld [vmem:[%s12495_s2 + $0x30] sm:$0xf] }
 0x18b   : > { %2507 = vst [vmem:[#allocation1 + $0x22] ss:$4 sm:$0xff] %v2211_v63  ;;  %v12497_v63 = vld [vmem:[#allocation17_spill] sm:$0xff] }
 0x18c   : > { %2510 = vst [vmem:[#allocation1 + $0x23] ss:$4 sm:$0xff] %v2215_v39  ;;  %v8122_v39 = vrot.slane %v10527_v2, 9  ;;  %v9111_v2 = vld [vmem:[%s12495_s2 + $0x28] sm:$0xff] }
 0x18d   : > { %v10627_v45 = vld.sshfl [vmem:[#allocation1] sm:$0xff pattern:$0x73625140] }
 0x18e   : > { %12485 = vst [vmem:[#allocation40_spill] sm:$0xff] %v10627_v45  ;;  %v12488_v45 = vld [vmem:[#allocation15_spill] sm:$0xff] }
 0x18f   : > { %2465 = vst [vmem:[#allocation1] ss:$4 sm:$0xff] %v10142_v16  ;;  %v8093_v16 = vrot.slane %v10501_v40, 9  ;;  %v2198_v40 = vrot.slane %v10447_v52, 7 }
 0x190   : > { %2467 = vst [vmem:[#allocation1 + $0x1] ss:$4 sm:$0xff] %v12486_v57  ;;  %v12493_v57 = vld [vmem:[#allocation32_spill] sm:$0xff] }
 0x191   : > { %2469 = vst [vmem:[#allocation1 + $0x2] ss:$4 sm:$0xff] %v12487_v35  ;;  %v2187_v10 = vsel %vm10621_vm15, %v8093_v16, %v2186_v21  ;;  %v12494_v35 = vld [vmem:[#allocation33_spill] sm:$0xff]  ;;  %v2318_v21 = vrot.slane %v10559_v25, 7  ;;  %v10686_v16 = vpop.permute.xlu2 %1741  ;;  %v2330_v25 = vrot.slane %v10529_v5, 7  ;;  %v2302_v5 = vrot.slane %v10535_v29, 7 }
 0x192   : > { %2471 = vst [vmem:[#allocation1 + $0x3] ss:$4 sm:$0xff] %v12488_v45  ;;  %v2194_v45 = vrot.slane %v10499_v23, 7  ;;  %v2199_v23 = vsel %vm10621_vm15, %v8096_v7, %v2198_v40  ;;  %v8118_v7 = vrot.slane %v10503_v33, 9  ;;  %v10717_v40 = vpop.permute.xlu1 %1774  ;;  %v8119_v29 = vrot.slane %v10561_v43, 9  ;;  %v1773_v33 = vpop.permute.xlu0 %1772 }
 0x193   : > { %v2513_v52 = vld.sshfl [vmem:[#allocation1 + $0x20] sm:$0xff pattern:$0x73625140] }
 0x194   : > { %v2195_v19 = vsel %vm10621_vm15, %v8095_v20, %v2194_v45  ;;  %2527 = vst [vmem:[#allocation1 + $0x20] ss:$4 sm:$0xff] %v12489_v9  ;;  %2517 = vrot.lane.b32.xlu2 %v2513_v52, %s9465_s25  ;;  %v8123_v45 = vrot.slane %v10584_v30, 9  ;;  %v2326_v20 = vrot.slane %v10570_v60, 7 }
 0x195   : > { %2529 = vst [vmem:[#allocation1 + $0x21] ss:$4 sm:$0xff] %v12490_v49 }
 0x196   : > { %2531 = vst [vmem:[#allocation1 + $0x22] ss:$4 sm:$0xff] %v12491_v4  ;;  %v2327_v60 = vsel %vm10621_vm15, %v8123_v45, %v2326_v20  ;;  %v12506_v45 = vld [vmem:[#allocation53_spill] sm:$0xff] }
 0x197   : > { %2533 = vst [vmem:[#allocation1 + $0x23] ss:$4 sm:$0xff] %v12492_v13  ;;  %v9107_v13 = vld [vmem:[%s12495_s2 + $0x8] sm:$0xff]  ;;  %v2438_v20 = vrot.slane %v12506_v45, 7 }
 0x199   : > { %v2480_v41 = vld.sshfl [vmem:[#allocation1] sm:$0xff pattern:$0x73625140] }
 0x19a   : > { %2489 = vst [vmem:[#allocation1] ss:$4 sm:$0xff] %v2187_v10  ;;  %2484 = vrot.lane.b32.xlu0 %v2480_v41, %s9466_s28  ;;  %v2310_v10 = vrot.slane %v10547_v1, 7  ;;  %v9109_v1 = vld [vmem:[%s12495_s2 + $0x18] sm:$0xff]  ;;  %v1835_v52 = vpop.permute.xlu1 %1834  ;;  %s12499_s28 = smov 60   ;;  %v1866_v4 = vpop.permute.xlu0 %1865 }
 0x19b   : > { %2492 = vst [vmem:[#allocation1 + $0x1] ss:$4 sm:$0xff] %v2191_v3  ;;  %v8120_v3 = vrot.slane %v10515_v22, 9  ;;  %v9108_v22 = vld [vmem:[%s12495_s2 + $0x10] sm:$0xff] }
 0x19c   : > { %2495 = vst [vmem:[#allocation1 + $0x2] ss:$4 sm:$0xff] %v2195_v19  ;;  %v2314_v19 = vrot.slane %v10505_v53, 7  ;;  %v2311_v41 = vsel %vm10621_vm15, %v8119_v29, %v2310_v10  ;;  %v12515_v29 = vld [vmem:[#allocation28_spill] sm:$0xff] }
 0x19d   : > { %2498 = vst [vmem:[#allocation1 + $0x3] ss:$4 sm:$0xff] %v2199_v23 }
 0x19e   : > { %v2536_v26 = vld.sshfl [vmem:[#allocation1 + $0x20] sm:$0xff pattern:$0x73625140]  ;;  %v2315_v53 = vsel %vm10621_vm15, %v8120_v3, %v2314_v19  ;;  %v8142_v3 = vrot.slane %v12515_v29, 9  ;;  %v12516_v19 = vld [vmem:[#allocation26_spill] sm:$0xff] }
 0x19f   : > { %2550 = vst [vmem:[#allocation1 + $0x20] ss:$4 sm:$0xff] %v12493_v57 }
 0x1a0   : > { %2552 = vst [vmem:[#allocation1 + $0x21] ss:$4 sm:$0xff] %v12494_v35 }
 0x1a1   : > { %2554 = vst [vmem:[#allocation1 + $0x22] ss:$4 sm:$0xff] %v12496_v6 }
 0x1a2   : > { %2556 = vst [vmem:[#allocation1 + $0x23] ss:$4 sm:$0xff] %v12497_v63  ;;  %v1959_v63 = vpop.permute.xlu0 %1958 }
 0x1a4   : > { %v2511_v51 = vld.sshfl [vmem:[#allocation1] sm:$0xff pattern:$0x73625140] }
 0x1a5   : > { %2519 = vst [vmem:[#allocation1] ss:$4 sm:$0xff] %v10261_v61  ;;  %2515 = vrot.lane.b32.xlu0 %v2511_v51, %s9465_s25  ;;  %v9112_v61 = vld [vmem:[%s12495_s2 + $0x30] sm:$0x30]  ;;  %v12500_v51 = vld [vmem:[#allocation48_spill] sm:$0xff]  ;;  %s12521_s25 = smov 84  }
 0x1a6   : > { %2521 = vst [vmem:[#allocation1 + $0x1] ss:$4 sm:$0xff] %v10273_v44  ;;  %v8090_v44 = vor.u32 %v9112_v61, %v8089_v48  ;;  %v1897_v48 = vpop.permute.xlu1 %1896 }
 0x1a7   : > { %2523 = vst [vmem:[#allocation1 + $0x2] ss:$4 sm:$0xff] %v10280_v12 }
 0x1a8   : > { %2525 = vst [vmem:[#allocation1 + $0x3] ss:$4 sm:$0xff] %v10287_v55  ;;  %v2068_v12 = vsel %vm2066_vm2, %v8090_v44, 0  ;;  %v8121_v55 = vrot.slane %v10572_v37, 9  ;;  %v8124_v37 = vrot.slane %v10539_v32, 9  ;;  %vm10872_vm2 = vmand %vm603_vm13, %vm604_vm14  ;;  %vm4043_vm14 = vcmask 523264  }
 0x1a9   : > { %2071 = vmatpush.bf16.msra.mxu0 %v2068_v12  ;;  %2710 = vmatpush.bf16.msra.mxu1 %v2068_v12  ;;  %v2559_v32 = vld.sshfl [vmem:[#allocation1 + $0x20] sm:$0xff pattern:$0x73625140] }
 0x1aa   : > { %v2319_v24 = vsel %vm10621_vm15, %v8121_v55, %v2318_v21  ;;  %v2331_v30 = vsel %vm10621_vm15, %v8124_v37, %v2330_v25  ;;  %2584 = vst [vmem:[#allocation1 + $0x22] ss:$4 sm:$0xff] %v2327_v60  ;;  %v12501_v55 = vld [vmem:[#allocation20_spill] sm:$0xff]  ;;  %v12502_v21 = vld [vmem:[#allocation38_spill] sm:$0xff]  ;;  %v8147_v37 = vrot.slane %v10609_v36, 9  ;;  %v2442_v25 = vrot.slane %v10603_v54, 7 }
 0x1ab   : > { %2578 = vst [vmem:[#allocation1 + $0x20] ss:$4 sm:$0xff] %v2319_v24  ;;  %v12509_v24 = vld [vmem:[#allocation35_spill] sm:$0xff] }
 0x1ac   : > { %2587 = vst [vmem:[#allocation1 + $0x23] ss:$4 sm:$0xff] %v2331_v30  ;;  %v2443_v30 = vsel %vm10621_vm15, %v8147_v37, %v2442_v25 }
 0x1ad   : > { %2540 = vrot.lane.b32.xlu0 %v2536_v26, %s12339_s30  ;;  %2072 = vmatpush.bf16.msra.mxu0 %v9111_v2  ;;  %v1964_v26 = vsel %vm1962_vm3, %v12500_v51, %v10686_v16  ;;  %v12504_v16 = vld [vmem:[#allocation21_spill] sm:$0xff]  ;;  %v12522_v51 = vld [vmem:[#allocation19_spill] sm:$0xff] }
 0x1ae   : > { %2711 = vmatpush.bf16.msra.mxu1 %v9111_v2  ;;  %v1969_v57 = vsel %vm1967_vm4, %v1964_v26, %v1773_v33  ;;  %v12507_v2 = vld [vmem:[#allocation25_spill] sm:$0xff]  ;;  %v2422_v33 = vrot.slane %v12516_v19, 7  ;;  %v12524_v26 = vld [vmem:[#allocation50_spill] sm:$0xff] }
 0x1af   : > { %v2534_v17 = vld.sshfl [vmem:[#allocation1] sm:$0xff pattern:$0x73625140] }
 0x1b0   : > { %2542 = vst [vmem:[#allocation1] ss:$4 sm:$0xff] %v10335_v27  ;;  %2538 = vrot.lane.b32.xlu1 %v2534_v17, %s12339_s30  ;;  %v2323_v27 = vsel %vm10621_vm15, %v8122_v39, %v2322_v47  ;;  %v8145_v39 = vrot.slane %v10605_v8, 9  ;;  %v2434_v47 = vrot.slane %v10598_v34, 7  ;;  %v12511_v8 = vld [vmem:[#allocation27_spill] sm:$0xff]  ;;  %s12523_s30 = smov 36  }
 0x1b1   : > { %2544 = vst [vmem:[#allocation1 + $0x1] ss:$4 sm:$0xff] %v10343_v0  ;;  %v8117_v0 = vrot.slane %v10549_v56, 9  ;;  %v10721_v56 = vpop.permute.xlu2 %1743 }
 0x1b2   : > { %2546 = vst [vmem:[#allocation1 + $0x2] ss:$4 sm:$0xff] %v10350_v50  ;;  %v9110_v50 = vld [vmem:[%s12495_s2 + $0x20] sm:$0xff]  ;;  %v2435_v34 = vsel %vm10621_vm15, %v8145_v39, %v2434_v47 }
 0x1b3   : > { %2548 = vst [vmem:[#allocation1 + $0x3] ss:$4 sm:$0xff] %v10357_v14  ;;  %v2306_v14 = vrot.slane %v10493_v46, 7  ;;  %2073 = vmatpush.bf16.msra.mxu0 %v9110_v50  ;;  %2712 = vmatpush.bf16.msra.mxu1 %v9110_v50  ;;  %v2303_v46 = vsel %vm10621_vm15, %v8117_v0, %v2302_v5  ;;  %v12512_v5 = vld [vmem:[#allocation22_spill] sm:$0xff]  ;;  %v12513_v0 = vld [vmem:[#allocation24_spill] sm:$0xff] }
 0x1b4   : > { %2581 = vst [vmem:[#allocation1 + $0x21] ss:$4 sm:$0xff] %v2323_v27  ;;  %v8148_v27 = vrot.slane %v12509_v24, 9  ;;  %v12514_v50 = vld [vmem:[#allocation30_spill] sm:$0xff]  ;;  %v12531_v47 = vld [vmem:[#allocation40_spill] sm:$0xff] }
 0x1b5   : > { %v2307_v43 = vsel %vm10621_vm15, %v8118_v7, %v2306_v14  ;;  %v2418_v7 = vrot.slane %v12514_v50, 7  ;;  %v8141_v14 = vrot.slane %v10594_v18, 9 }
 0x1b7   : > { %2074 = vmatpush.bf16.msra.mxu0 %v9109_v1  ;;  %2713 = vmatpush.bf16.msra.mxu1 %v9109_v1  ;;  %v2419_v18 = vsel %vm10621_vm15, %v8141_v14, %v2418_v7  ;;  %v12533_v7 = vld [vmem:[#allocation56_spill] sm:$0xff] }
 0x1b9   : > { %v1804_v49 = vpop.permute.xlu2 %1803 }
 0x1ba   : > { %v2557_v23 = vld.sshfl [vmem:[#allocation1] sm:$0xff pattern:$0x73625140] }
 0x1bb   : > { %2566 = vst [vmem:[#allocation1] ss:$4 sm:$0xff] %v2303_v46  ;;  %2561 = vrot.lane.b32.xlu1 %v2557_v23, %s12498_s29  ;;  %v2590_v9 = vld.sshfl [vmem:[#allocation1 + $0x20] sm:$0xff pattern:$0x73625140]  ;;  %2075 = vmatpush.bf16.msra.mxu0 %v9108_v22  ;;  %v12517_v46 = vld [vmem:[#allocation34_spill] sm:$0xff] }
 0x1bc   : > { %2569 = vst [vmem:[#allocation1 + $0x1] ss:$4 sm:$0xff] %v2307_v43  ;;  %2714 = vmatpush.bf16.msra.mxu1 %v9108_v22  ;;  %2594 = vrot.lane.b32.xlu0 %v2590_v9, %s12499_s28  ;;  %v2426_v1 = vrot.slane %v12517_v46, 7  ;;  %v12518_v43 = vld [vmem:[#allocation36_spill] sm:$0xff]  ;;  %v12520_v22 = vld [vmem:[#allocation51_spill] sm:$0xff]  ;;  %v2423_v9 = vsel %vm10621_vm15, %v8142_v3, %v2422_v33 }
 0x1bd   : > { %2572 = vst [vmem:[#allocation1 + $0x2] ss:$4 sm:$0xff] %v2311_v41  ;;  %v8143_v41 = vrot.slane %v12518_v43, 9  ;;  %v12519_v23 = vld [vmem:[#allocation52_spill] sm:$0xff] }
 0x1be   : > { %2575 = vst [vmem:[#allocation1 + $0x3] ss:$4 sm:$0xff] %v2315_v53  ;;  %v8144_v53 = vrot.slane %v12519_v23, 9 }
 0x1bf   : > { %2604 = vst [vmem:[#allocation1 + $0x20] ss:$4 sm:$0xff] %v10308_v58  ;;  %2076 = vmatpush.bf16.msra.mxu0 %v9107_v13  ;;  %v1974_v58 = vsel %vm1972_vm5, %v1969_v57, %v1804_v49  ;;  %v2427_v49 = vsel %vm10621_vm15, %v8143_v41, %v2426_v1 }
 0x1c0   : > { %2606 = vst [vmem:[#allocation1 + $0x21] ss:$4 sm:$0xff] %v10315_v15  ;;  %2715 = vmatpush.bf16.msra.mxu1 %v9107_v13  ;;  %v1979_v15 = vsel %vm1977_vm6, %v1974_v58, %v1835_v52  ;;  %v2430_v52 = vrot.slane %v12520_v22, 7 }
 0x1c1   : > { %2608 = vst [vmem:[#allocation1 + $0x22] ss:$4 sm:$0xff] %v10319_v31  ;;  %v9106_v31 = vld [vmem:[%s12495_s2] sm:$0xff]  ;;  %v1928_v6 = vpop.permute.xlu2 %1927  ;;  %s9477_s2 = smov 127  }
 0x1c2   : > { %2610 = vst [vmem:[#allocation1 + $0x23] ss:$4 sm:$0xff] %v10325_v59  ;;  %v1984_v59 = vsel %vm1982_vm7, %v1979_v15, %v1866_v4  ;;  %v2431_v13 = vsel %vm10621_vm15, %v8144_v53, %v2430_v52  ;;  %v12526_v15 = vld [vmem:[#allocation23_spill] sm:$0xff] }
 0x1c3   : > { %2563 = vrot.lane.b32.xlu1 %v2559_v32, %s12498_s29  ;;  %v1989_v61 = vsel %vm1987_vm9, %v1984_v59, %v1897_v48  ;;  %2077 = vmatpush.bf16.msra.mxu0 %v9106_v31  ;;  %v12510_v32 = vld [vmem:[#allocation55_spill] sm:$0xff]  ;;  %v12529_v59 = vld [vmem:[#allocation37_spill] sm:$0xff] }
 0x1c4   : > { %v1994_v44 = vsel %vm1992_vm10, %v1989_v61, %v1928_v6  ;;  %2716 = vmatpush.bf16.msra.mxu1 %v9106_v31  ;;  %v2446_v60 = vrot.slane %v12510_v32, 7  ;;  %v12527_v31 = vld [vmem:[#allocation46_spill] sm:$0xff]  ;;  %v1966_v48 = vsel %vm1962_vm3, %v12529_v59, %v10721_v56 }
 0x1c5   : > { %v2588_v35 = vld.sshfl [vmem:[#allocation1] sm:$0xff pattern:$0x73625140]  ;;  %v1999_v12 = vsel %vm1997_vm11, %v1994_v44, %v1959_v63  ;;  %v1971_v61 = vsel %vm1967_vm4, %v1966_v48, %v10717_v40  ;;  %v12530_v6 = vld [vmem:[#allocation18_spill] sm:$0xff]  ;;  %v612_v48 = vld [vmem:[#allocation2 + $0x8] sm:$0x7] }
 0x1c6   : > { %2596 = vst [vmem:[#allocation1] ss:$4 sm:$0xff] %v10421_v38  ;;  %2592 = vrot.lane.b32.xlu2 %v2588_v35, %s12499_s28  ;;  %8091 = vmatmul.msk.bf16.vlgmr.msra.gmra.mxu0 %vm2061_vm12, %v1999_v12  ;;  %v2447_v10 = vsel %vm10621_vm15, %v8148_v27, %v2446_v60  ;;  %v12528_v35 = vld [vmem:[#allocation16_spill] sm:$0xff] }
 0x1c7   : > { %2598 = vst [vmem:[#allocation1 + $0x1] ss:$4 sm:$0xff] %v10426_v62  ;;  %v12503_v62 = vld [vmem:[#allocation39_spill] sm:$0xff] }
 0x1c8   : > { %2600 = vst [vmem:[#allocation1 + $0x2] ss:$4 sm:$0xff] %v10435_v42  ;;  %v12505_v42 = vld [vmem:[#allocation54_spill] sm:$0xff] }
 0x1c9   : > { %2602 = vst [vmem:[#allocation1 + $0x3] ss:$4 sm:$0xff] %v10444_v28  ;;  %v2613_v38 = vld.sshfl [vmem:[#allocation1 + $0x20] sm:$0xff pattern:$0x73625140]  ;;  %v8146_v17 = vrot.slane %v12505_v42, 9 }
 0x1ca   : > { %2627 = vst [vmem:[#allocation1 + $0x20] ss:$4 sm:$0xff] %v12501_v55 }
 0x1cb   : > { %2629 = vst [vmem:[#allocation1 + $0x21] ss:$4 sm:$0xff] %v12502_v21  ;;  %v2439_v36 = vsel %vm10621_vm15, %v8146_v17, %v2438_v20 }
 0x1cc   : > { %2631 = vst [vmem:[#allocation1 + $0x22] ss:$4 sm:$0xff] %v12503_v62 }
 0x1cd   : > { %2633 = vst [vmem:[#allocation1 + $0x23] ss:$4 sm:$0xff] %v12504_v16 }
 0x1d0   : > { %v2611_v28 = vld.sshfl [vmem:[#allocation1] sm:$0xff pattern:$0x73625140] }
 0x1d1   : > { %2619 = vst [vmem:[#allocation1] ss:$4 sm:$0xff] %v12507_v2  ;;  %2615 = vrot.lane.b32.xlu1 %v2611_v28, %s12508_s24 }
 0x1d2   : > { %2621 = vst [vmem:[#allocation1 + $0x1] ss:$4 sm:$0xff] %v12511_v8 }
 0x1d3   : > { %2623 = vst [vmem:[#allocation1 + $0x2] ss:$4 sm:$0xff] %v12512_v5 }
 0x1d4   : > { %2625 = vst [vmem:[#allocation1 + $0x3] ss:$4 sm:$0xff] %v12513_v0  ;;  %v2636_v54 = vld.sshfl [vmem:[#allocation1 + $0x20] sm:$0xff pattern:$0x73625140] }
 0x1d5   : > { %2655 = vst [vmem:[#allocation1 + $0x20] ss:$4 sm:$0xff] %v2435_v34 }
 0x1d6   : > { %2658 = vst [vmem:[#allocation1 + $0x21] ss:$4 sm:$0xff] %v2439_v36 }
 0x1d7   : > { %2661 = vst [vmem:[#allocation1 + $0x22] ss:$4 sm:$0xff] %v2443_v30 }
 0x1d8   : > { %2664 = vst [vmem:[#allocation1 + $0x23] ss:$4 sm:$0xff] %v2447_v10 }
 0x1d9   : > { %2640 = vrot.lane.b32.xlu1 %v2636_v54, %s12521_s25 }
 0x1db   : > { %v2634_v4 = vld.sshfl [vmem:[#allocation1] sm:$0xff pattern:$0x73625140] }
 0x1dc   : > { %2643 = vst [vmem:[#allocation1] ss:$4 sm:$0xff] %v2419_v18  ;;  %2638 = vrot.lane.b32.xlu0 %v2634_v4, %s12521_s25 }
 0x1dd   : > { %2646 = vst [vmem:[#allocation1 + $0x1] ss:$4 sm:$0xff] %v2423_v9 }
 0x1de   : > { %2649 = vst [vmem:[#allocation1 + $0x2] ss:$4 sm:$0xff] %v2427_v49 }
 0x1df   : > { %2652 = vst [vmem:[#allocation1 + $0x3] ss:$4 sm:$0xff] %v2431_v13  ;;  %v2667_v58 = vld.sshfl [vmem:[#allocation1 + $0x20] sm:$0xff pattern:$0x73625140] }
 0x1e1   : > { %1867 = vrot.lane.b32.xlu1 %v12522_v51, %s12499_s28  ;;  %s12540_s28 = sld [smem:[#allocation60_spill]] }
 0x1e4   : > { %1805 = vrot.lane.b32.xlu0 %v12524_v26, %s12523_s30  ;;  %s12340_s30 = smov 64  }
 0x1e6   : > { %v2665_v57 = vld.sshfl [vmem:[#allocation1] sm:$0xff pattern:$0x73625140] }
 0x1e7   : > { %2669 = vrot.lane.b32.xlu2 %v2665_v57, %s12525_s0 }
 0x1e9   : > { %1960 = vrot.lane.b32.xlu1 %v12526_v15, %s12525_s0 }
 0x1ec   : > { %2671 = vrot.lane.b32.xlu0 %v2667_v58, %s12525_s0 }
 0x1ef   : > { %2617 = vrot.lane.b32.xlu2 %v2613_v38, %s12508_s24  ;;  %v2518_v38 = vpop.permute.xlu2 %2517 }
 0x1f4   : > { %1929 = vrot.lane.b32.xlu0 %v12527_v31, %s12521_s25  ;;  %s12532_s25 = sld [smem:[#allocation59_spill]] }
 0x1f7   : > { %1836 = vrot.lane.b32.xlu2 %v12528_v35, %s12498_s29  ;;  %v609_v35 = vld [vmem:[#allocation2 + $0x4] sm:$0x7]  ;;  %s7939_s29 = sshll.u32 %s7935_s1, 4  ;;  %s7940_s29 = int_to_ptr.hbm [resolvable:$true] %s7939_s29 }
 0x1f8   : > { %v610_v59 = vsel %vm10872_vm2, 0, %v609_v35 }
 0x1f9   : > { %611 = vst [vmem:[#allocation2 + $0x4] sm:$0x7] %v610_v59 }
 0x1fa   : > { %v10836_v56 = vld [vmem:[%s12532_s25] ss:$0 sm:$0xff] }
 0x1fb   : > { %v2487_v44 = vpop.permute.xlu1 %2486 }
 0x1fc   : > { %v2676_v14 = vsel %vm1962_vm3, %v12533_v7, %v2487_v44 }
 0x1fd   : > { %v2680_v29 = vsel %vm1967_vm4, %v2676_v14, %v2518_v38 }
 0x1ff   : > { %1898 = vrot.lane.b32.xlu2 %v12530_v6, %s12508_s24  ;;  %s9473_s24 = smov 32   ;;  %v615_v6 = vld [vmem:[#allocation2 + $0xc] sm:$0x7] }
 0x200   : > { %v616_v44 = vsel %vm10872_vm2, 0, %v615_v6 }
 0x201   : > { %617 = vst [vmem:[#allocation2 + $0xc] sm:$0x7] %v616_v44 }
 0x20c   : > { %v2485_v63 = vpop.permute.xlu0 %2484 }
 0x20d   : > { %v2674_v42 = vsel %vm1962_vm3, %v12531_v47, %v2485_v63  ;;  %vm2751_vm3 = vcmask 256000  }
 0x217   : > { %v2516_v55 = vpop.permute.xlu0 %2515 }
 0x218   : > { %v2678_v40 = vsel %vm1967_vm4, %v2674_v42, %v2516_v55  ;;  %vm2752_vm4 = vsmask.f32 2306 }
 0x21f   : > { %v2541_v16 = vpop.permute.xlu0 %2540 }
 0x220   : > { %v2593_v62 = vpop.permute.xlu2 %2592  ;;  %v2684_v46 = vsel %vm1972_vm5, %v2680_v29, %v2541_v16  ;;  %v618_v16 = vld [vmem:[#allocation2 + $0x10] sm:$0x7] }
 0x221   : > { %v619_v47 = vsel %vm10872_vm2, 0, %v618_v16 }
 0x222   : > { %v2539_v12 = vpop.permute.xlu1 %2538  ;;  %620 = vst [vmem:[#allocation2 + $0x10] sm:$0x7] %v619_v47 }
 0x223   : > { %v2682_v37 = vsel %vm1972_vm5, %v2678_v40, %v2539_v12 }
 0x229   : > { %v2818_v47 = vld [vmem:[#allocation2 + $0x10] sm:$0x7] }
 0x22d   : > { %v2562_v21 = vpop.permute.xlu1 %2561 }
 0x22e   : > { %v2595_v17 = vpop.permute.xlu0 %2594  ;;  %v2686_v2 = vsel %vm1977_vm6, %v2682_v37, %v2562_v21 }
 0x22f   : > { %v2690_v32 = vsel %vm1982_vm7, %v2686_v2, %v2593_v62  ;;  %v2754_v2 = vld [vmem:[#allocation2 + $0x4] sm:$0x7] }
 0x235   : > { %v2564_v39 = vpop.permute.xlu1 %2563 }
 0x236   : > { %v2688_v1 = vsel %vm1977_vm6, %v2684_v46, %v2564_v39 }
 0x237   : > { %v2692_v41 = vsel %vm1982_vm7, %v2688_v1, %v2595_v17 }
 0x241   : > { %v2670_v20 = vpop.permute.xlu2 %2669 }
 0x243   : > { %v2079_v45 = vpop.f32.mrf.mxu0  ;;  %v2616_v24 = vpop.permute.xlu1 %2615 }
 0x244   : > { %v2080_v28 = vadd.f32 %v10836_v56, %v2079_v45  ;;  %v2694_v8 = vsel %vm1987_vm9, %v2690_v32, %v2616_v24 }
 0x246   : > { %v2089_v25 = vmax.f32 %v2080_v28, 0.0 }
 0x248   : > { %v2732_v27 = vpack.c.bf16 %v2089_v25, %v2089_v25  ;;  %v9120_v25 = vld [vmem:[%s12540_s28 + $0x38] sm:$0xff] }
 0x249   : > { %v2618_v30 = vpop.permute.xlu2 %2617  ;;  %3375 = vmatpush.bf16.msra.mxu2 %v9120_v25 }
 0x24a   : > { %v8151_v60 = vrot.slane %v2732_v27, 10  ;;  %2838 = vrot.lane.b32.xlu0 %v2732_v27, %s12525_s0  ;;  %v2696_v23 = vsel %vm1987_vm9, %v2692_v41, %v2618_v30 }
 0x24b   : > { %v2081_v5 = vpop.f32.mrf.mxu0  ;;  %v2641_v3 = vpop.permute.xlu1 %2640 }
 0x24c   : > { %v2082_v0 = vadd.f32 %v10836_v56, %v2081_v5  ;;  %2760 = vrot.lane.b32.xlu2 %v8151_v60, %s9473_s24  ;;  %v2700_v52 = vsel %vm1992_vm10, %v2696_v23, %v2641_v3 }
 0x24e   : > { %v2639_v34 = vpop.permute.xlu0 %2638  ;;  %v2090_v50 = vmax.f32 %v2082_v0, 0.0 }
 0x24f   : > { %v2698_v36 = vsel %vm1992_vm10, %v2694_v8, %v2639_v34 }
 0x250   : > { %v2702_v54 = vsel %vm1997_vm11, %v2698_v36, %v2670_v20  ;;  %v10852_v10 = vpack.c.bf16 %v2090_v50, %v2090_v50 }
 0x251   : > { %8149 = vmatmul.msk.bf16.vlgmr.msra.gmra.mxu1 %vm2061_vm12, %v2702_v54  ;;  %v1837_v43 = vpop.permute.xlu2 %1836 }
 0x252   : > { %v8152_v19 = vrot.slane %v10852_v10, 10 }
 0x253   : > { %v1868_v22 = vpop.permute.xlu1 %1867 }
 0x254   : > { %2782 = vrot.lane.b32.xlu0 %v8152_v19, %s9473_s24 }
 0x256   : > { %v1806_v33 = vpop.permute.xlu0 %1805 }
 0x257   : > { %v1976_v53 = vsel %vm1972_vm5, %v1971_v61, %v1806_v33  ;;  %v613_v61 = vsel %vm10872_vm2, 0, %v612_v48  ;;  %vm10887_vm5 = vmand %vm2751_vm3, %vm2752_vm4 }
 0x258   : > { %v1981_v49 = vsel %vm1977_vm6, %v1976_v53, %v1837_v43  ;;  %614 = vst [vmem:[#allocation2 + $0x8] sm:$0x7] %v613_v61  ;;  %vm2763_vm6 = vcmask 517376  }
 0x259   : > { %v1986_v4 = vsel %vm1982_vm7, %v1981_v49, %v1868_v22  ;;  %v1899_v13 = vpop.permute.xlu2 %1898  ;;  %v606_v49 = vld [vmem:[#allocation2] sm:$0x7]  ;;  %vm2833_vm7 = vcmask 780800  }
 0x25a   : > { %v1991_v26 = vsel %vm1987_vm9, %v1986_v4, %v1899_v13  ;;  %vm10920_vm9 = vmand %vm2833_vm7, %vm2752_vm4 }
 0x25b   : > { %v1961_v51 = vpop.permute.xlu1 %1960 }
 0x25e   : > { %v2672_v18 = vpop.permute.xlu0 %2671 }
 0x25f   : > { %v2704_v9 = vsel %vm1997_vm11, %v2700_v52, %v2672_v18  ;;  %v2776_v3 = vld [vmem:[#allocation2 + $0x8] sm:$0x7] }
 0x261   : > { %8150 = vmatmul.msk.bf16.gmra.mxu1 %vm2061_vm12, %v2704_v9 }
 0x266   : > { %v1930_v57 = vpop.permute.xlu0 %1929 }
 0x267   : > { %v1996_v58 = vsel %vm1992_vm10, %v1991_v26, %v1930_v57  ;;  %v2797_v57 = vld [vmem:[#allocation2 + $0xc] sm:$0x7]  ;;  %vm2841_vm10 = vcmask 1042176  }
 0x268   : > { %v2001_v15 = vsel %vm1997_vm11, %v1996_v58, %v1961_v51  ;;  %v607_v51 = vsel %vm10872_vm2, 0, %v606_v49  ;;  %v9123_v49 = vld [vmem:[%s12540_s28 + $0x50] sm:$0xff]  ;;  %vm621_vm11 = vcmask 518144   ;;  %vm11559_vm2 = vmand %vm603_vm13, %vm2752_vm4 }
 0x269   : > { %8092 = vmatmul.msk.bf16.gmra.mxu0 %vm2061_vm12, %v2001_v15  ;;  %608 = vst [vmem:[#allocation2] sm:$0x7] %v607_v51  ;;  %vm11078_vm12 = vmand %vm621_vm11, %vm2752_vm4 }
 0x2a6   : > { %v2761_v60 = vpop.permute.xlu2 %2760 }
 0x2bc   : > { %v10891_v24 = vpop.permute.xlu0 %2838 }
 0x2c6   : > { %v2783_v46 = vpop.permute.xlu0 %2782 }
 0x2ce   : > { %v2718_v63 = vpop.f32.mrf.mxu1 }
 0x2cf   : > { %v2719_v12 = vadd.f32 %v10836_v56, %v2718_v63 }
 0x2d1   : > { %v2728_v38 = vmax.f32 %v2719_v12, 0.0 }
 0x2d3   : > { %v2736_v55 = vpack.c.bf16 %v2728_v38, %v2728_v38 }
 0x2d5   : > { %v2741_v21 = vshrl.u32 %v2736_v55, 16  ;;  %v2744_v62 = vshll.u32 %v2736_v55, 16 }
 0x2d6   : > { %v2720_v39 = vpop.f32.mrf.mxu1 }
 0x2d7   : > { %v2743_v42 = vrot.slane %v2741_v21, 5  ;;  %v2746_v40 = vrot.slane %v2744_v62, 6  ;;  %v2828_v17 = vrot.slane %v2741_v21, 7  ;;  %v2721_v45 = vadd.f32 %v10836_v56, %v2720_v39 }
 0x2d9   : > { %v2747_v20 = vor.u32 %v2746_v40, %v2743_v42  ;;  %v2729_v28 = vmax.f32 %v2721_v45, 0.0  ;;  %v2829_v37 = vor.u32 %v2828_v17, %v2744_v62  ;;  %v9140_v45 = vld [vmem:[%s12540_s28 + $0xd8] sm:$0xff] }
 0x2db   : > { %v2748_v27 = vrot.slane %v2747_v20, 4  ;;  %v2737_v32 = vpack.c.bf16 %v2729_v28, %v2729_v28  ;;  %2830 = vrot.lane.b32.xlu2 %v2829_v37, %s12340_s30  ;;  %v2835_v20 = vld [vmem:[#allocation2] sm:$0x7] }
 0x2dd   : > { %v2766_v8 = vshrl.u32 %v2737_v32, 16  ;;  %v2769_v34 = vshll.u32 %v2737_v32, 16  ;;  %v2755_v5 = vsel %vm10887_vm5, %v2748_v27, %v2754_v2  ;;  %v9119_v2 = vld [vmem:[%s12540_s28 + $0x30] sm:$0xff]  ;;  %v9118_v27 = vld [vmem:[%s12540_s28 + $0x28] sm:$0xff] }
 0x2de   : > { %2756 = vst [vmem:[#allocation2 + $0x4] sm:$0x7] %v2755_v5  ;;  %v2723_v36 = vpop.f32.mrf.mxu1  ;;  %3376 = vmatpush.bf16.msra.mxu2 %v9119_v2  ;;  %v9116_v5 = vld [vmem:[%s12540_s28 + $0x18] sm:$0xff] }
 0x2df   : > { %v2768_v0 = vrot.slane %v2766_v8, 5  ;;  %v2771_v54 = vrot.slane %v2769_v34, 6  ;;  %v2843_v30 = vrot.slane %v2766_v8, 7  ;;  %2764 = vst.msk [vmem:[#allocation2 + $0x4] sm:$0x3] %vm2763_vm6, %v2761_v60  ;;  %v2724_v50 = vadd.f32 %v10836_v56, %v2723_v36  ;;  %v9117_v8 = vld [vmem:[%s12540_s28 + $0x20] sm:$0xff] }
 0x2e0   : > { %v9127_v36 = vld [vmem:[%s12540_s28 + $0x70] sm:$0xff] }
 0x2e1   : > { %v2772_v7 = vor.u32 %v2771_v54, %v2768_v0  ;;  %v2730_v14 = vmax.f32 %v2724_v50, 0.0  ;;  %v2844_v29 = vor.u32 %v2843_v30, %v2769_v34  ;;  %v9128_v34 = vld [vmem:[%s12540_s28 + $0x78] sm:$0xff]  ;;  %v9115_v0 = vld [vmem:[%s12540_s28 + $0x10] sm:$0xff]  ;;  %v9126_v54 = vld [vmem:[%s12540_s28 + $0x68] sm:$0xff] }
 0x2e2   : > { %3377 = vmatpush.bf16.msra.mxu2 %v9118_v27  ;;  %3389 = vmatpush.bf16.msra.mxu3 %v9128_v34  ;;  %v9136_v30 = vld [vmem:[%s12540_s28 + $0xb8] sm:$0xff] }
 0x2e3   : > { %v2773_v19 = vrot.slane %v2772_v7, 4  ;;  %v2738_v33 = vpack.c.bf16 %v2730_v14, %v2730_v14  ;;  %2845 = vrot.lane.b32.xlu0 %v2844_v29, %s12340_s30  ;;  %3403 = vmatpush.bf16.msrb.mxu0 %v9136_v30  ;;  %v9114_v14 = vld [vmem:[%s12540_s28 + $0x8] sm:$0xff]  ;;  %v9125_v29 = vld [vmem:[%s12540_s28 + $0x60] sm:$0xff] }
 0x2e5   : > { %v2787_v1 = vshrl.u32 %v2738_v33, 16  ;;  %v2790_v43 = vshll.u32 %v2738_v33, 16  ;;  %v2777_v41 = vsel %vm10887_vm5, %v2773_v19, %v2776_v3  ;;  %v9135_v3 = vld [vmem:[%s12540_s28 + $0xb0] sm:$0xff]  ;;  %v9144_v19 = vld [vmem:[%s12540_s28 + $0xf8] sm:$0xff]  ;;  %v9113_v33 = vld [vmem:[%s12540_s28] sm:$0xff] }
 0x2e6   : > { %v2084_v23 = vpop.f32.mrf.mxu0  ;;  %v2725_v53 = vpop.f32.mrf.mxu1  ;;  %2778 = vst [vmem:[#allocation2 + $0x8] sm:$0x7] %v2777_v41  ;;  %v2848_v32 = vld [vmem:[#allocation2 + $0x4] sm:$0x7]  ;;  %3378 = vmatpush.bf16.msra.mxu2 %v9117_v8  ;;  %3390 = vmatpush.bf16.msra.mxu3 %v9127_v36 }
 0x2e7   : > { %v2789_v22 = vrot.slane %v2787_v1, 5  ;;  %v2792_v52 = vrot.slane %v2790_v43, 6  ;;  %v2085_v18 = vadd.f32 %v10836_v56, %v2084_v23  ;;  %2785 = vst.msk [vmem:[#allocation2 + $0x8] sm:$0x3] %vm2763_vm6, %v2783_v46  ;;  %v2726_v9 = vadd.f32 %v10836_v56, %v2725_v53  ;;  %3404 = vmatpush.bf16.msrb.mxu0 %v9135_v3  ;;  %v9124_v46 = vld [vmem:[%s12540_s28 + $0x58] sm:$0xff]  ;;  %v9134_v23 = vld [vmem:[%s12540_s28 + $0xa8] sm:$0xff]  ;;  %3417 = vmatpush.bf16.msrb.mxu1 %v9144_v19 }
 0x2e8   : > { %v2855_v55 = vrot.slane %v2787_v1, 7 }
 0x2e9   : > { %v2793_v4 = vor.u32 %v2792_v52, %v2789_v22  ;;  %v2091_v13 = vmax.f32 %v2085_v18, 0.0  ;;  %v2731_v26 = vmax.f32 %v2726_v9, 0.0  ;;  %v9143_v9 = vld [vmem:[%s12540_s28 + $0xf0] sm:$0xff] }
 0x2ea   : > { %v2856_v40 = vor.u32 %v2855_v55, %v2790_v43  ;;  %3379 = vmatpush.bf16.msra.mxu2 %v9116_v5  ;;  %3391 = vmatpush.bf16.msra.mxu3 %v9126_v54 }
 0x2eb   : > { %v2794_v58 = vrot.slane %v2793_v4, 4  ;;  %v2734_v15 = vpack.c.bf16 %v2091_v13, %v2091_v13  ;;  %v2739_v35 = vpack.c.bf16 %v2731_v26, %v2731_v26  ;;  %3405 = vmatpush.bf16.msrb.mxu0 %v9134_v23  ;;  %v9133_v4 = vld [vmem:[%s12540_s28 + $0xa0] sm:$0xff]  ;;  %3418 = vmatpush.bf16.msrb.mxu1 %v9143_v9  ;;  %v9142_v26 = vld [vmem:[%s12540_s28 + $0xe8] sm:$0xff] }
 0x2ed   : > { %v8153_v59 = vrot.slane %v2734_v15, 10  ;;  %v2798_v48 = vsel %vm10887_vm5, %v2794_v58, %v2797_v57  ;;  %v2808_v61 = vshrl.u32 %v2739_v35, 16  ;;  %v2811_v6 = vshll.u32 %v2739_v35, 16  ;;  %v9122_v57 = vld [vmem:[%s12540_s28 + $0x48] sm:$0xff]  ;;  %v9132_v58 = vld [vmem:[%s12540_s28 + $0x98] sm:$0xff] }
 0x2ee   : > { %v2086_v44 = vpop.f32.mrf.mxu0  ;;  %2799 = vst [vmem:[#allocation2 + $0xc] sm:$0x7] %v2798_v48  ;;  %3380 = vmatpush.bf16.msra.mxu2 %v9115_v0  ;;  %3392 = vmatpush.bf16.msra.mxu3 %v9125_v29  ;;  %v2860_v41 = vld [vmem:[#allocation2 + $0x8] sm:$0x7] }
 0x2ef   : > { %v2087_v63 = vadd.f32 %v10836_v56, %v2086_v44  ;;  %2803 = vrot.lane.b32.xlu1 %v8153_v59, %s9473_s24  ;;  %v2810_v31 = vrot.slane %v2808_v61, 5  ;;  %v2813_v12 = vrot.slane %v2811_v6, 6  ;;  %v2867_v38 = vrot.slane %v2808_v61, 7  ;;  %3406 = vmatpush.bf16.msrb.mxu0 %v9133_v4  ;;  %v9139_v0 = vld [vmem:[%s12540_s28 + $0xd0] sm:$0xff] }
 0x2f0   : > { %3419 = vmatpush.bf16.msrb.mxu1 %v9142_v26  ;;  %v9290_v26 = vld [vmem:[%s12276_s11 + $0x8] sm:$0xff] }
 0x2f1   : > { %v2092_v21 = vmax.f32 %v2087_v63, 0.0  ;;  %v2814_v62 = vor.u32 %v2813_v12, %v2810_v31  ;;  %v2868_v16 = vor.u32 %v2867_v38, %v2811_v6  ;;  %v9141_v63 = vld [vmem:[%s12540_s28 + $0xe0] sm:$0xff] }
 0x2f2   : > { %3381 = vmatpush.bf16.msra.mxu2 %v9114_v14  ;;  %3393 = vmatpush.bf16.msra.mxu3 %v9124_v46  ;;  %v9121_v38 = vld [vmem:[%s12540_s28 + $0x40] sm:$0xff] }
 0x2f3   : > { %v2735_v39 = vpack.c.bf16 %v2092_v21, %v2092_v21  ;;  %v2815_v42 = vrot.slane %v2814_v62, 4  ;;  %2869 = vrot.lane.b32.xlu2 %v2868_v16, %s12340_s30  ;;  %3407 = vmatpush.bf16.msrb.mxu0 %v9132_v58  ;;  %v9131_v16 = vld [vmem:[%s12540_s28 + $0x90] sm:$0xff]  ;;  %v9129_v14 = vld [vmem:[%s12540_s28 + $0x80] sm:$0xff] }
 0x2f4   : > { %3420 = vmatpush.bf16.msrb.mxu1 %v9141_v63 }
 0x2f5   : > { %2875 = vrot.lane.b32.xlu0 %v2735_v39, %s12525_s0  ;;  %v2819_v56 = vsel %vm10887_vm5, %v2815_v42, %v2818_v47  ;;  %v8154_v17 = vrot.slane %v2735_v39, 10  ;;  %vm7924_vm5 = vcmask 8192  }
 0x2f6   : > { %2820 = vst [vmem:[#allocation2 + $0x10] sm:$0x7] %v2819_v56  ;;  %3382 = vmatpush.bf16.msra.mxu2 %v9113_v33  ;;  %3394 = vmatpush.bf16.msra.mxu3 %v9123_v49 }
 0x2f7   : > { %2857 = vrot.lane.b32.xlu1 %v2856_v40, %s12340_s30  ;;  %3408 = vmatpush.bf16.msrb.mxu0 %v9131_v16  ;;  %s595_s30 = sand.u32 1, %s9455_s21  }
 0x2f8   : > { %3421 = vmatpush.bf16.msrb.mxu1 %v9140_v45  ;;  %s596_s3 = scalar_lea.vmem [#allocation6], %s595_s30  ;;  %s7927_s25 = scalar_lea.sflag [#allocation7], %s595_s30 }
 0x2fa   : > { %3395 = vmatpush.bf16.msra.mxu3 %v9122_v57 }
 0x2fb   : > { %2863 = vrot.lane.b32.xlu2 %v2734_v15, %s12525_s0 }
 0x2fc   : > { %3422 = vmatpush.bf16.msrb.mxu1 %v9139_v0 }
 0x2fe   : > { %3396 = vmatpush.bf16.msra.mxu3 %v9121_v38 }
 0x2ff   : > { %2851 = vrot.lane.b32.xlu1 %v10852_v10, %s12525_s0  ;;  %s7937_s0 = sshll.u32 %s596_s3, 4  ;;  %s7938_s0 = int_to_ptr.vmem [resolvable:$true] %s7937_s0 }
 0x307   : > { %2824 = vrot.lane.b32.xlu1 %v8154_v17, %s9473_s24  ;;  %s9421_s24 = scalar_lea.hbm %s12284_s19, 2 }
 0x335   : > { %v2831_v28 = vpop.permute.xlu2 %2830 }
 0x336   : > { %v2836_v37 = vsel %vm10920_vm9, %v2831_v28, %v2835_v20  ;;  %v9130_v20 = vld [vmem:[%s12540_s28 + $0x88] sm:$0xff] }
 0x337   : > { %2837 = vst [vmem:[#allocation2] sm:$0x7] %v2836_v37  ;;  %3409 = vmatpush.bf16.msrb.mxu0 %v9130_v20 }
 0x338   : > { %2842 = vst.msk [vmem:[#allocation2] sm:$0x3] %vm2841_vm10, %v10891_v24 }
 0x33b   : > { %3410 = vmatpush.bf16.msrb.mxu0 %v9129_v14 }
 0x33f   : > { %v2879_v10 = vld [vmem:[#allocation2] sm:$0x3] }
 0x340   : > { %3064 = vst [vmem:[#allocation1] ss:$4 sm:$0xff] %v2879_v10  ;;  %v2883_v53 = vld [vmem:[#allocation2] sm:$0x7] }
 0x341   : > { %v2891_v13 = vrot.slane %v2883_v53, 2 }
 0x343   : > { %v2897_v15 = vsel %vm837_vm0, %v2883_v53, %v2891_v13  ;;  %v2898_v55 = vsel %vm841_vm1, %v2883_v53, %v2891_v13 }
 0x344   : > { %v2919_v61 = vshrl.u32 %v2897_v15, 16  ;;  %v2922_v6 = vshll.u32 %v2897_v15, 16  ;;  %v2900_v28 = vrot.slane %v2898_v55, 2 }
 0x346   : > { %v2921_v42 = vrot.slane %v2919_v61, 6  ;;  %v2924_v40 = vrot.slane %v2922_v6, 7  ;;  %v2928_v54 = vshll.u32 %v2900_v28, 16 }
 0x348   : > { %v2925_v34 = vor.u32 %v2924_v40, %v2921_v42 }
 0x34a   : > { %v2926_v19 = vrot.slane %v2925_v34, 2 }
 0x34d   : > { %v2870_v7 = vpop.permute.xlu2 %2869 }
 0x355   : > { %v2846_v60 = vpop.permute.xlu0 %2845  ;;  %v2864_v51 = vpop.permute.xlu2 %2863 }
 0x356   : > { %v2849_v24 = vsel %vm10920_vm9, %v2846_v60, %v2848_v32 }
 0x357   : > { %2850 = vst [vmem:[#allocation2 + $0x4] sm:$0x7] %v2849_v24 }
 0x361   : > { %v2804_v50 = vpop.permute.xlu1 %2803 }
 0x362   : > { %2806 = vst.msk [vmem:[#allocation2 + $0xc] sm:$0x3] %vm2763_vm6, %v2804_v50 }
 0x367   : > { %v2876_v18 = vpop.permute.xlu0 %2875 }
 0x369   : > { %v2872_v1 = vld [vmem:[#allocation2 + $0xc] sm:$0x7]  ;;  %v2858_v43 = vpop.permute.xlu1 %2857 }
 0x36a   : > { %v2873_v22 = vsel %vm10920_vm9, %v2870_v7, %v2872_v1  ;;  %v2861_v52 = vsel %vm10920_vm9, %v2858_v43, %v2860_v41  ;;  %v9138_v1 = vld [vmem:[%s12540_s28 + $0xc8] sm:$0xff]  ;;  %v2930_v43 = vrot.slane %v2928_v54, 7 }
 0x36b   : > { %2874 = vst [vmem:[#allocation2 + $0xc] sm:$0x7] %v2873_v22  ;;  %3423 = vmatpush.bf16.msrb.mxu1 %v9138_v1 }
 0x36c   : > { %2878 = vst.msk [vmem:[#allocation2 + $0xc] sm:$0x3] %vm2841_vm10, %v2876_v18  ;;  %v2931_v57 = vsel %vm9823_vm8, %v2926_v19, %v2930_v43 }
 0x36d   : > { %2862 = vst [vmem:[#allocation2 + $0x8] sm:$0x7] %v2861_v52 }
 0x36e   : > { %2866 = vst.msk [vmem:[#allocation2 + $0x8] sm:$0x3] %vm2841_vm10, %v2864_v51 }
 0x371   : > { %v2852_v35 = vpop.permute.xlu1 %2851 }
 0x372   : > { %2854 = vst.msk [vmem:[#allocation2 + $0x4] sm:$0x3] %vm2841_vm10, %v2852_v35 }
 0x373   : > { %v2882_v59 = vld [vmem:[#allocation2 + $0xc] sm:$0x3] }
 0x374   : > { %v2886_v48 = vld [vmem:[#allocation2 + $0xc] sm:$0x7]  ;;  %3073 = vst [vmem:[#allocation1 + $0x3] ss:$4 sm:$0xff] %v2882_v59  ;;  %v9137_v59 = vld [vmem:[%s12540_s28 + $0xc0] sm:$0xff] }
 0x375   : > { %v2894_v44 = vrot.slane %v2886_v48, 2  ;;  %v2881_v31 = vld [vmem:[#allocation2 + $0x8] sm:$0x3]  ;;  %3424 = vmatpush.bf16.msrb.mxu1 %v9137_v59  ;;  %v2973_v34 = vld [vmem:[#allocation2 + $0xc] sm:$0x3] }
 0x376   : > { %v2885_v12 = vld [vmem:[#allocation2 + $0x8] sm:$0x7]  ;;  %3070 = vst [vmem:[#allocation1 + $0x2] ss:$4 sm:$0xff] %v2881_v31 }
 0x377   : > { %v2915_v21 = vsel %vm837_vm0, %v2886_v48, %v2894_v44  ;;  %v2893_v62 = vrot.slane %v2885_v12, 2  ;;  %v2916_v56 = vsel %vm841_vm1, %v2886_v48, %v2894_v44  ;;  %v2976_v52 = vld [vmem:[#allocation2 + $0x8] sm:$0x7]  ;;  %v2977_v48 = vld [vmem:[#allocation2 + $0xc] sm:$0x7] }
 0x378   : > { %v2958_v39 = vshrl.u32 %v2915_v21, 16  ;;  %v2961_v47 = vshll.u32 %v2915_v21, 16  ;;  %v2918_v60 = vrot.slane %v2916_v56, 2  ;;  %v2985_v38 = vrot.slane %v2977_v48, 2 }
 0x379   : > { %v2909_v17 = vsel %vm837_vm0, %v2885_v12, %v2893_v62  ;;  %v2910_v25 = vsel %vm841_vm1, %v2885_v12, %v2893_v62  ;;  %v2880_v27 = vld [vmem:[#allocation2 + $0x4] sm:$0x3]  ;;  %v2825_v8 = vpop.permute.xlu1 %2824  ;;  %v2984_v12 = vrot.slane %v2976_v52, 2 }
 0x37a   : > { %v2960_v37 = vrot.slane %v2958_v39, 6  ;;  %v2963_v10 = vrot.slane %v2961_v47, 7  ;;  %v2945_v2 = vshrl.u32 %v2909_v17, 16  ;;  %v2884_v32 = vld [vmem:[#allocation2 + $0x4] sm:$0x7]  ;;  %v2912_v24 = vrot.slane %v2910_v25, 2 }
 0x37b   : > { %v2948_v36 = vshll.u32 %v2909_v17, 16  ;;  %v2892_v30 = vrot.slane %v2884_v32, 2  ;;  %3067 = vst [vmem:[#allocation1 + $0x1] ss:$4 sm:$0xff] %v2880_v27  ;;  %v2967_v29 = vshll.u32 %v2918_v60, 16  ;;  %v2995_v47 = vsel %vm837_vm0, %v2976_v52, %v2984_v12 }
 0x37c   : > { %v2947_v5 = vrot.slane %v2945_v2, 6  ;;  %v2964_v50 = vor.u32 %v2963_v10, %v2960_v37  ;;  %2827 = vst.msk [vmem:[#allocation2 + $0x10] sm:$0x3] %vm2763_vm6, %v2825_v8  ;;  %v2954_v3 = vshll.u32 %v2912_v24, 16  ;;  %v2975_v51 = vld [vmem:[#allocation2 + $0x4] sm:$0x7]  ;;  %v3001_v42 = vsel %vm837_vm0, %v2977_v48, %v2985_v38 }
 0x37d   : > { %v2950_v7 = vrot.slane %v2948_v36, 7  ;;  %v2903_v46 = vsel %vm837_vm0, %v2884_v32, %v2892_v30  ;;  %v2904_v41 = vsel %vm841_vm1, %v2884_v32, %v2892_v30  ;;  %v2969_v49 = vrot.slane %v2967_v29, 7  ;;  %v2972_v27 = vld [vmem:[#allocation2 + $0x8] sm:$0x3]  ;;  %v2971_v60 = vld [vmem:[#allocation2 + $0x4] sm:$0x3] }
 0x37e   : > { %v2932_v23 = vshrl.u32 %v2903_v46, 16  ;;  %v2965_v53 = vrot.slane %v2964_v50, 2  ;;  %v2906_v18 = vrot.slane %v2904_v41, 2  ;;  %v2935_v9 = vshll.u32 %v2903_v46, 16 }
 0x37f   : > { %v2951_v33 = vor.u32 %v2950_v7, %v2947_v5  ;;  %v2956_v4 = vrot.slane %v2954_v3, 7  ;;  %v2983_v63 = vrot.slane %v2975_v51, 2  ;;  %v3024_v45 = vshrl.u32 %v2995_v47, 16 }
 0x380   : > { %v2934_v13 = vrot.slane %v2932_v23, 6  ;;  %v2937_v58 = vrot.slane %v2935_v9, 7  ;;  %v2941_v15 = vshll.u32 %v2906_v18, 16  ;;  %v2970_v6 = vsel %vm9823_vm8, %v2965_v53, %v2969_v49 }
 0x381   : > { %v2952_v22 = vrot.slane %v2951_v33, 2  ;;  %v2989_v39 = vsel %vm837_vm0, %v2975_v51, %v2983_v63  ;;  %v3027_v20 = vshll.u32 %v2995_v47, 16  ;;  %v3037_v28 = vshrl.u32 %v3001_v42, 16 }
 0x382   : > { %v3074_v35 = vld.sshfl [vmem:[#allocation1] sm:$0xff pattern:$0x73625140]  ;;  %v2938_v44 = vor.u32 %v2937_v58, %v2934_v13  ;;  %v2943_v21 = vrot.slane %v2941_v15, 7  ;;  %v3011_v40 = vshrl.u32 %v2989_v39, 16  ;;  %v3014_v56 = vshll.u32 %v2989_v39, 16 }
 0x383   : > { %v2957_v61 = vsel %vm9823_vm8, %v2952_v22, %v2956_v4  ;;  %3077 = vst [vmem:[#allocation1] ss:$4 sm:$0xff] %v2931_v57  ;;  %3383 = vmatmul.bf16.vlgmr.msra.gmra.mxu2 %v3074_v35  ;;  %v2978_v31 = vld [vmem:[#allocation2 + $0x10] sm:$0x7]  ;;  %v3040_v37 = vshll.u32 %v3001_v42, 16  ;;  %v2990_v10 = vsel %vm841_vm1, %v2975_v51, %v2983_v63  ;;  %v2996_v32 = vsel %vm841_vm1, %v2976_v52, %v2984_v12 }
 0x384   : > { %3083 = vst [vmem:[#allocation1 + $0x2] ss:$4 sm:$0xff] %v2957_v61  ;;  %v2939_v55 = vrot.slane %v2938_v44, 2  ;;  %v2986_v62 = vrot.slane %v2978_v31, 2  ;;  %v3013_v24 = vrot.slane %v3011_v40, 6  ;;  %v3016_v8 = vrot.slane %v3014_v56, 7 }
 0x385   : > { %3086 = vst [vmem:[#allocation1 + $0x3] ss:$4 sm:$0xff] %v2970_v6  ;;  %v3002_v5 = vsel %vm841_vm1, %v2977_v48, %v2985_v38  ;;  %v3026_v36 = vrot.slane %v3024_v45, 6  ;;  %v3029_v0 = vrot.slane %v3027_v20, 7  ;;  %v3039_v30 = vrot.slane %v3037_v28, 6 }
 0x386   : > { %v2944_v16 = vsel %vm9823_vm8, %v2939_v55, %v2943_v21  ;;  %v3007_v17 = vsel %vm837_vm0, %v2978_v31, %v2986_v62  ;;  %v3042_v50 = vrot.slane %v3040_v37, 7  ;;  %v2992_v7 = vrot.slane %v2990_v10, 2  ;;  %v2974_v1 = vld [vmem:[#allocation2 + $0x10] sm:$0x3]  ;;  %v9384_v55 = vld [vmem:[%s12542_s4] ss:$0 sm:$0xff] }
 0x387   : > { %3080 = vst [vmem:[#allocation1 + $0x1] ss:$4 sm:$0xff] %v2944_v16  ;;  %v3050_v25 = vshrl.u32 %v3007_v17, 16  ;;  %v3053_v2 = vshll.u32 %v3007_v17, 16  ;;  %v3008_v14 = vsel %vm841_vm1, %v2978_v31, %v2986_v62  ;;  %v2998_v29 = vrot.slane %v2996_v32, 2 }
 0x388   : > { %v3004_v33 = vrot.slane %v3002_v5, 2  ;;  %v3017_v46 = vor.u32 %v3016_v8, %v3013_v24  ;;  %v3030_v43 = vor.u32 %v3029_v0, %v3026_v36  ;;  %v3010_v41 = vrot.slane %v3008_v14, 2 }
 0x389   : > { %v3052_v3 = vrot.slane %v3050_v25, 6  ;;  %v3055_v19 = vrot.slane %v3053_v2, 7  ;;  %v3043_v23 = vor.u32 %v3042_v50, %v3039_v30  ;;  %v3020_v53 = vshll.u32 %v2992_v7, 16 }
 0x38a   : > { %v3033_v22 = vshll.u32 %v2998_v29, 16  ;;  %v3046_v18 = vshll.u32 %v3004_v33, 16  ;;  %v3018_v9 = vrot.slane %v3017_v46, 2  ;;  %v3031_v49 = vrot.slane %v3030_v43, 2 }
 0x38b   : > { %v3056_v52 = vor.u32 %v3055_v19, %v3052_v3  ;;  %v3059_v4 = vshll.u32 %v3010_v41, 16  ;;  %v3044_v13 = vrot.slane %v3043_v23, 2  ;;  %v3022_v51 = vrot.slane %v3020_v53, 7 }
 0x38c   : > { %v3035_v57 = vrot.slane %v3033_v22, 7  ;;  %v3048_v15 = vrot.slane %v3046_v18, 7  ;;  %v9475_v31 = vmov 0  }
 0x38d   : > { %v3057_v58 = vrot.slane %v3056_v52, 2  ;;  %v3023_v35 = vsel %vm9823_vm8, %v3018_v9, %v3022_v51  ;;  %v3061_v61 = vrot.slane %v3059_v4, 7  ;;  %622 = vst.msk [vmem:[#allocation3] sm:$0x7] %vm621_vm11, %v9475_v31 }
 0x38e   : > { %v3087_v54 = vld.sshfl [vmem:[#allocation1] sm:$0xff pattern:$0x73625140]  ;;  %v3036_v48 = vsel %vm9823_vm8, %v3031_v49, %v3035_v57  ;;  %v3049_v6 = vsel %vm9823_vm8, %v3044_v13, %v3048_v15  ;;  %623 = vst.msk [vmem:[#allocation3 + $0x4] sm:$0x7] %vm621_vm11, %v9475_v31 }
 0x38f   : > { %3090 = vst [vmem:[#allocation1] ss:$4 sm:$0xff] %v2971_v60  ;;  %3397 = vmatmul.bf16.vlgmr.msra.gmra.mxu3 %v3087_v54  ;;  %v3062_v44 = vsel %vm9823_vm8, %v3057_v58, %v3061_v61 }
 0x390   : > { %3093 = vst [vmem:[#allocation1 + $0x1] ss:$4 sm:$0xff] %v2972_v27 }
 0x391   : > { %3096 = vst [vmem:[#allocation1 + $0x2] ss:$4 sm:$0xff] %v2973_v34 }
 0x392   : > { %3099 = vst [vmem:[#allocation1 + $0x3] ss:$4 sm:$0xff] %v2974_v1 }
 0x393   : > { %624 = vst.msk [vmem:[#allocation3 + $0x8] sm:$0x7] %vm621_vm11, %v9475_v31 }
 0x394   : > { %627 = vst.msk [vmem:[#allocation3 + $0x14] sm:$0x7] %vm621_vm11, %v9475_v31  ;;  %v3479_v12 = vld [vmem:[#allocation3] sm:$0x3] }
 0x395   : > { %628 = vst [vmem:[#allocation4] sm:$0x7] %v9475_v31  ;;  %v3446_v36 = vld [vmem:[#allocation3 + $0x4] sm:$0x7]  ;;  %v3483_v22 = vld [vmem:[#allocation3] sm:$0x7] }
 0x396   : > { %633 = vst [vmem:[#allocation4 + $0x14] sm:$0x7] %v9475_v31  ;;  %v3491_v18 = vrot.slane %v3483_v22, 2 }
 0x397   : > { %625 = vst.msk [vmem:[#allocation3 + $0xc] sm:$0x7] %vm621_vm11, %v9475_v31 }
 0x398   : > { %626 = vst.msk [vmem:[#allocation3 + $0x10] sm:$0x7] %vm621_vm11, %v9475_v31  ;;  %v3497_v13 = vsel %vm837_vm0, %v3483_v22, %v3491_v18  ;;  %v3498_v57 = vsel %vm841_vm1, %v3483_v22, %v3491_v18 }
 0x399   : > { %v3100_v59 = vld.sshfl [vmem:[#allocation1] sm:$0xff pattern:$0x73625140]  ;;  %629 = vst [vmem:[#allocation4 + $0x4] sm:$0x7] %v9475_v31  ;;  %v3519_v15 = vshrl.u32 %v3497_v13, 16 }
 0x39a   : > { %3103 = vst [vmem:[#allocation1] ss:$4 sm:$0xff] %v3023_v35  ;;  %3411 = vmatmul.bf16.vlgmr.msrb.gmra.mxu0 %v3100_v59  ;;  %v3455_v30 = vld [vmem:[#allocation3 + $0x8] sm:$0x7]  ;;  %v3522_v35 = vshll.u32 %v3497_v13, 16 }
 0x39b   : > { %3106 = vst [vmem:[#allocation1 + $0x1] ss:$4 sm:$0xff] %v3036_v48  ;;  %v3500_v48 = vrot.slane %v3498_v57, 2 }
 0x39c   : > { %3109 = vst [vmem:[#allocation1 + $0x2] ss:$4 sm:$0xff] %v3049_v6 }
 0x39d   : > { %3112 = vst [vmem:[#allocation1 + $0x3] ss:$4 sm:$0xff] %v3062_v44  ;;  %v3521_v44 = vrot.slane %v3519_v15, 6 }
 0x39e   : > { %630 = vst [vmem:[#allocation4 + $0x8] sm:$0x7] %v9475_v31  ;;  %v3467_v23 = vld [vmem:[#allocation3 + $0xc] sm:$0x7] }
 0x39f   : > { %631 = vst [vmem:[#allocation4 + $0xc] sm:$0x7] %v9475_v31 }
 0x3a0   : > { %632 = vst [vmem:[#allocation4 + $0x10] sm:$0x7] %v9475_v31 }
 0x3a4   : > { %v3113_v63 = vld.sshfl [vmem:[#allocation1] sm:$0xff pattern:$0x73625140] }
 0x3a5   : > { %3425 = vmatmul.bf16.vlgmr.msrb.gmra.mxu1 %v3113_v63  ;;  %3924 = vst [vmem:[#allocation1] ss:$4 sm:$0xff] %v3479_v12  ;;  %v3524_v63 = vrot.slane %v3522_v35, 7 }
 0x406   : > { %v3384_v38 = vpop.f32.mrf.mxu2 }
 0x407   : > { %v3385_v62 = vadd.f32 %v9384_v55, %v3384_v38 }
 0x40e   : > { %v3386_v47 = vpop.f32.mrf.mxu2 }
 0x40f   : > { %v3387_v17 = vadd.f32 %v9384_v55, %v3386_v47 }
 0x412   : > { %v3398_v21 = vpop.f32.mrf.mxu3 }
 0x413   : > { %v3399_v39 = vadd.f32 %v3398_v21, %v3385_v62 }
 0x417   : > { %v3412_v16 = vpop.f32.mrf.mxu0 }
 0x418   : > { %v3413_v42 = vadd.f32 %v3412_v16, %v3399_v39  ;;  %v3525_v16 = vor.u32 %v3524_v63, %v3521_v44  ;;  %v3528_v39 = vshll.u32 %v3500_v48, 16 }
 0x41a   : > { %v3400_v40 = vpop.f32.mrf.mxu3 }
 0x41b   : > { %v3401_v20 = vadd.f32 %v3400_v40, %v3387_v17 }
 0x41f   : > { %v3414_v37 = vpop.f32.mrf.mxu0 }
 0x420   : > { %v3415_v25 = vadd.f32 %v3414_v37, %v3401_v20  ;;  %v3530_v37 = vrot.slane %v3528_v39, 7 }
 0x422   : > { %v3426_v56 = vpop.f32.mrf.mxu1 }
 0x423   : > { %v3427_v45 = vadd.f32 %v3426_v56, %v3413_v42 }
 0x425   : > { %v3431_v28 = vmax.f32 %v3427_v45, 0.0 }
 0x427   : > { %v3433_v10 = vpack.c.bf16 %v3431_v28, %v3431_v28  ;;  %v3526_v28 = vrot.slane %v3525_v16, 2 }
 0x429   : > { %v3436_v2 = vshrl.u32 %v3433_v10, 16  ;;  %v3439_v27 = vshll.u32 %v3433_v10, 16 }
 0x42a   : > { %v3428_v32 = vpop.f32.mrf.mxu1 }
 0x42b   : > { %v3438_v60 = vrot.slane %v3436_v2, 7  ;;  %v3449_v24 = vrot.slane %v3436_v2, 5  ;;  %v3450_v8 = vrot.slane %v3439_v27, 6  ;;  %v3429_v34 = vadd.f32 %v3428_v32, %v3415_v25 }
 0x42d   : > { %v3441_v0 = vor.u32 %v3439_v27, %v3438_v60  ;;  %v3451_v54 = vor.u32 %v3450_v8, %v3449_v24  ;;  %v3432_v50 = vmax.f32 %v3429_v34, 0.0  ;;  %v3531_v24 = vsel %vm9823_vm8, %v3526_v28, %v3530_v37 }
 0x42f   : > { %v3447_v7 = vsel %vm11078_vm12, %v3441_v0, %v3446_v36  ;;  %v3452_v14 = vrot.slane %v3451_v54, 4  ;;  %v3434_v3 = vpack.c.bf16 %v3432_v50, %v3432_v50  ;;  %v3476_v36 = vld [vmem:[#allocation3 + $0x10] sm:$0x7] }
 0x430   : > { %3448 = vst [vmem:[#allocation3 + $0x4] sm:$0x7] %v3447_v7 }
 0x431   : > { %v3456_v29 = vsel %vm11078_vm12, %v3452_v14, %v3455_v30  ;;  %v3459_v19 = vshrl.u32 %v3434_v3, 16  ;;  %v3462_v43 = vshll.u32 %v3434_v3, 16 }
 0x432   : > { %3457 = vst [vmem:[#allocation3 + $0x8] sm:$0x7] %v3456_v29 }
 0x433   : > { %v3461_v33 = vrot.slane %v3459_v19, 7  ;;  %v3470_v17 = vrot.slane %v3459_v19, 5  ;;  %v3471_v45 = vrot.slane %v3462_v43, 6 }
 0x435   : > { %v3464_v41 = vor.u32 %v3462_v43, %v3461_v33  ;;  %v3472_v27 = vor.u32 %v3471_v45, %v3470_v17 }
 0x437   : > { %v3480_v46 = vld [vmem:[#allocation3 + $0x4] sm:$0x3]  ;;  %v3468_v53 = vsel %vm11078_vm12, %v3464_v41, %v3467_v23  ;;  %v3473_v54 = vrot.slane %v3472_v27, 4  ;;  %v3571_v41 = vld [vmem:[#allocation3] sm:$0x6] }
 0x438   : > { %3927 = vst [vmem:[#allocation1 + $0x1] ss:$4 sm:$0xff] %v3480_v46  ;;  %v3484_v52 = vld [vmem:[#allocation3 + $0x4] sm:$0x7]  ;;  %v3579_v18 = vrot.slane %v3571_v41, 2 }
 0x439   : > { %v3481_v1 = vld [vmem:[#allocation3 + $0x8] sm:$0x3]  ;;  %3469 = vst [vmem:[#allocation3 + $0xc] sm:$0x7] %v3468_v53  ;;  %v3492_v49 = vrot.slane %v3484_v52, 2  ;;  %v3477_v29 = vsel %vm11078_vm12, %v3473_v54, %v3476_v36 }
 0x43a   : > { %3930 = vst [vmem:[#allocation1 + $0x2] ss:$4 sm:$0xff] %v3481_v1  ;;  %v3485_v9 = vld [vmem:[#allocation3 + $0x8] sm:$0x7]  ;;  %v3585_v15 = vsel %vm837_vm0, %v3571_v41, %v3579_v18  ;;  %v3587_v35 = vsel %vm841_vm1, %v3571_v41, %v3579_v18 }
 0x43b   : > { %v3493_v4 = vrot.slane %v3485_v9, 2  ;;  %v3503_v58 = vsel %vm837_vm0, %v3484_v52, %v3492_v49  ;;  %v3504_v38 = vsel %vm841_vm1, %v3484_v52, %v3492_v49  ;;  %3478 = vst [vmem:[#allocation3 + $0x10] sm:$0x7] %v3477_v29  ;;  %v3572_v52 = vld [vmem:[#allocation3 + $0x4] sm:$0x6]  ;;  %v8284_v44 = vrot.slane %v3587_v35, 9 }
 0x43c   : > { %v3532_v61 = vshrl.u32 %v3503_v58, 16  ;;  %v3535_v6 = vshll.u32 %v3503_v58, 16  ;;  %v3506_v40 = vrot.slane %v3504_v38, 2  ;;  %v3632_v16 = vld [vmem:[#allocation3 + $0x8] sm:$0x7] }
 0x43d   : > { %v3509_v59 = vsel %vm837_vm0, %v3485_v9, %v3493_v4  ;;  %v3510_v55 = vsel %vm841_vm1, %v3485_v9, %v3493_v4  ;;  %v3573_v9 = vld [vmem:[#allocation3 + $0x8] sm:$0x6]  ;;  %v3640_v28 = vrot.slane %v3632_v16, 2 }
 0x43e   : > { %v3545_v31 = vshrl.u32 %v3509_v59, 16  ;;  %v3548_v12 = vshll.u32 %v3509_v59, 16  ;;  %v3534_v21 = vrot.slane %v3532_v61, 6  ;;  %v3537_v62 = vrot.slane %v3535_v6, 7 }
 0x43f   : > { %v3512_v56 = vrot.slane %v3510_v55, 2  ;;  %v3541_v25 = vshll.u32 %v3506_v40, 16  ;;  %v3581_v58 = vrot.slane %v3573_v9, 2  ;;  %v8283_v6 = vrot.slane %v3585_v15, 9 }
 0x440   : > { %v3482_v51 = vld [vmem:[#allocation3 + $0xc] sm:$0x3]  ;;  %v3547_v47 = vrot.slane %v3545_v31, 6  ;;  %v3550_v42 = vrot.slane %v3548_v12, 7  ;;  %v3538_v20 = vor.u32 %v3537_v62, %v3534_v21  ;;  %v3631_v12 = vld [vmem:[#allocation3 + $0x4] sm:$0x7] }
 0x441   : > { %3933 = vst [vmem:[#allocation1 + $0x3] ss:$4 sm:$0xff] %v3482_v51  ;;  %v3554_v2 = vshll.u32 %v3512_v56, 16  ;;  %v3486_v60 = vld [vmem:[#allocation3 + $0xc] sm:$0x7]  ;;  %v3543_v34 = vrot.slane %v3541_v25, 7  ;;  %v3599_v63 = vsel %vm837_vm0, %v3573_v9, %v3581_v58  ;;  %v3601_v31 = vsel %vm841_vm1, %v3573_v9, %v3581_v58 }
 0x442   : > { %v3551_v10 = vor.u32 %v3550_v42, %v3547_v47  ;;  %v3539_v32 = vrot.slane %v3538_v20, 2  ;;  %v3494_v30 = vrot.slane %v3486_v60, 2  ;;  %v3574_v13 = vld [vmem:[#allocation3 + $0xc] sm:$0x6]  ;;  %v3580_v51 = vrot.slane %v3572_v52, 2 }
 0x443   : > { %v3556_v0 = vrot.slane %v3554_v2, 7  ;;  %v3582_v59 = vrot.slane %v3574_v13, 2  ;;  %v3614_v39 = vsel %vm10621_vm15, %v8283_v6, %v8284_v44  ;;  %v8287_v47 = vrot.slane %v3599_v63, 9  ;;  %v3633_v40 = vld [vmem:[#allocation3 + $0xc] sm:$0x7] }
 0x444   : > { %v3552_v8 = vrot.slane %v3551_v10, 2  ;;  %v3544_v7 = vsel %vm9823_vm8, %v3539_v32, %v3543_v34  ;;  %v3515_v3 = vsel %vm837_vm0, %v3486_v60, %v3494_v30  ;;  %v3516_v19 = vsel %vm841_vm1, %v3486_v60, %v3494_v30  ;;  %v3634_v20 = vld [vmem:[#allocation3 + $0x10] sm:$0x7] }
 0x445   : > { %v3558_v33 = vshrl.u32 %v3515_v3, 16  ;;  %v3518_v46 = vrot.slane %v3516_v19, 2  ;;  %v3561_v1 = vshll.u32 %v3515_v3, 16  ;;  %v3592_v48 = vsel %vm837_vm0, %v3572_v52, %v3580_v51  ;;  %v3630_v35 = vld [vmem:[#allocation3 + $0x10] sm:$0x3] }
 0x446   : > { %v3557_v14 = vsel %vm9823_vm8, %v3552_v8, %v3556_v0  ;;  %v3594_v61 = vsel %vm841_vm1, %v3572_v52, %v3580_v51  ;;  %v3606_v38 = vsel %vm837_vm0, %v3574_v13, %v3582_v59  ;;  %v3608_v55 = vsel %vm841_vm1, %v3574_v13, %v3582_v59  ;;  %v3629_v51 = vld [vmem:[#allocation3 + $0xc] sm:$0x3] }
 0x447   : > { %v3560_v43 = vrot.slane %v3558_v33, 6  ;;  %v3563_v23 = vrot.slane %v3561_v1, 7  ;;  %v3567_v53 = vshll.u32 %v3518_v46, 16  ;;  %v8285_v21 = vrot.slane %v3592_v48, 9  ;;  %v3627_v46 = vld [vmem:[#allocation3 + $0x4] sm:$0x3] }
 0x448   : > { %v11096_v50 = vld.sshfl [vmem:[#allocation1] sm:$0xff pattern:$0x73625140]  ;;  %v8286_v62 = vrot.slane %v3594_v61, 9  ;;  %v8288_v42 = vrot.slane %v3601_v31, 9  ;;  %v3639_v56 = vrot.slane %v3631_v12, 2  ;;  %v3652_v3 = vsel %vm841_vm1, %v3632_v16, %v3640_v28 }
 0x449   : > { %3936 = vst [vmem:[#allocation1] ss:$4 sm:$0xff] %v3531_v24  ;;  %v3564_v22 = vor.u32 %v3563_v23, %v3560_v43  ;;  %v3569_v4 = vrot.slane %v3567_v53, 7  ;;  %v8289_v17 = vrot.slane %v3606_v38, 9  ;;  %v8290_v45 = vrot.slane %v3608_v55, 9 }
 0x44a   : > { %3939 = vst [vmem:[#allocation1 + $0x1] ss:$4 sm:$0xff] %v3544_v7  ;;  %v3618_v10 = vsel %vm10621_vm15, %v8285_v21, %v8286_v62  ;;  %v3641_v25 = vrot.slane %v3633_v40, 2  ;;  %v3622_v2 = vsel %vm10621_vm15, %v8287_v47, %v8288_v42  ;;  %v3642_v27 = vrot.slane %v3634_v20, 2  ;;  %v3628_v1 = vld [vmem:[#allocation3 + $0x8] sm:$0x3] }
 0x44b   : > { %3942 = vst [vmem:[#allocation1 + $0x2] ss:$4 sm:$0xff] %v3557_v14  ;;  %v3565_v49 = vrot.slane %v3564_v22, 2  ;;  %v3645_v32 = vsel %vm837_vm0, %v3631_v12, %v3639_v56  ;;  %v3626_v60 = vsel %vm10621_vm15, %v8289_v17, %v8290_v45  ;;  %v3651_v24 = vsel %vm837_vm0, %v3632_v16, %v3640_v28  ;;  %v3719_v38 = vld [vmem:[#allocation3 + $0x4] sm:$0x6] }
 0x44c   : > { %v3657_v8 = vsel %vm837_vm0, %v3633_v40, %v3641_v25  ;;  %v3667_v34 = vshrl.u32 %v3645_v32, 16  ;;  %v3670_v36 = vshll.u32 %v3645_v32, 16  ;;  %v3663_v0 = vsel %vm837_vm0, %v3634_v20, %v3642_v27  ;;  %v3721_v17 = vld [vmem:[#allocation3 + $0xc] sm:$0x6]  ;;  %v3722_v28 = vld [vmem:[#allocation3 + $0x10] sm:$0x6] }
 0x44d   : > { %v3570_v57 = vsel %vm9823_vm8, %v3565_v49, %v3569_v4  ;;  %v3680_v54 = vshrl.u32 %v3651_v24, 16  ;;  %v3683_v30 = vshll.u32 %v3651_v24, 16  ;;  %v3646_v7 = vsel %vm841_vm1, %v3631_v12, %v3639_v56 }
 0x44e   : > { %3945 = vst [vmem:[#allocation1 + $0x3] ss:$4 sm:$0xff] %v3570_v57  ;;  %v3693_v14 = vshrl.u32 %v3657_v8, 16  ;;  %v3696_v29 = vshll.u32 %v3657_v8, 16  ;;  %v3706_v19 = vshrl.u32 %v3663_v0, 16  ;;  %v3709_v33 = vshll.u32 %v3663_v0, 16 }
 0x44f   : > { %v3669_v43 = vrot.slane %v3667_v34, 6  ;;  %v3672_v41 = vrot.slane %v3670_v36, 7  ;;  %v3648_v23 = vrot.slane %v3646_v7, 2  ;;  %v3682_v53 = vrot.slane %v3680_v54, 6  ;;  %v3782_v54 = vld [vmem:[#allocation3 + $0x14] sm:$0x7] }
 0x450   : > { %v3685_v22 = vrot.slane %v3683_v30, 7  ;;  %v3658_v52 = vsel %vm841_vm1, %v3633_v40, %v3641_v25  ;;  %v3654_v9 = vrot.slane %v3652_v3, 2  ;;  %v3664_v49 = vsel %vm841_vm1, %v3634_v20, %v3642_v27  ;;  %v3779_v3 = vld [vmem:[#allocation3 + $0x8] sm:$0x7] }
 0x451   : > { %v3695_v4 = vrot.slane %v3693_v14, 6  ;;  %v3698_v13 = vrot.slane %v3696_v29, 7  ;;  %v3708_v57 = vrot.slane %v3706_v19, 6  ;;  %v3711_v58 = vrot.slane %v3709_v33, 7 }
 0x452   : > { %v3673_v15 = vor.u32 %v3672_v41, %v3669_v43  ;;  %v3660_v59 = vrot.slane %v3658_v52, 2  ;;  %v3686_v48 = vor.u32 %v3685_v22, %v3682_v53  ;;  %v3666_v61 = vrot.slane %v3664_v49, 2  ;;  %v3780_v43 = vld [vmem:[#allocation3 + $0xc] sm:$0x7]  ;;  %v3781_v22 = vld [vmem:[#allocation3 + $0x10] sm:$0x7] }
 0x453   : > { %v3676_v6 = vshll.u32 %v3648_v23, 16  ;;  %v3699_v44 = vor.u32 %v3698_v13, %v3695_v4  ;;  %v3689_v63 = vshll.u32 %v3654_v9, 16  ;;  %v3712_v31 = vor.u32 %v3711_v58, %v3708_v57 }
 0x454   : > { %v3674_v12 = vrot.slane %v3673_v15, 2  ;;  %v3702_v55 = vshll.u32 %v3660_v59, 16  ;;  %v3687_v21 = vrot.slane %v3686_v48, 2  ;;  %v3715_v62 = vshll.u32 %v3666_v61, 16 }
 0x455   : > { %v3946_v37 = vld.sshfl [vmem:[#allocation1] sm:$0xff pattern:$0x73625140]  ;;  %v3678_v16 = vrot.slane %v3676_v6, 7  ;;  %v3700_v47 = vrot.slane %v3699_v44, 2  ;;  %v3691_v42 = vrot.slane %v3689_v63, 7 }
 0x456   : > { %3951 = vst [vmem:[#allocation1] ss:$4 sm:$0xff] %v3614_v39  ;;  %3948 = vrot.lane.b32.xlu2 %v3946_v37, %s12545_s27  ;;  %v3720_v39 = vld [vmem:[#allocation3 + $0x8] sm:$0x6]  ;;  %v3727_v40 = vrot.slane %v3719_v38, 2  ;;  %v3713_v56 = vrot.slane %v3712_v31, 2 }
 0x457   : > { %3954 = vst [vmem:[#allocation1 + $0x1] ss:$4 sm:$0xff] %v3618_v10  ;;  %v3679_v45 = vsel %vm9823_vm8, %v3674_v12, %v3678_v16  ;;  %v3704_v20 = vrot.slane %v3702_v55, 7  ;;  %v3692_v10 = vsel %vm9823_vm8, %v3687_v21, %v3691_v42  ;;  %v3728_v25 = vrot.slane %v3720_v39, 2 }
 0x458   : > { %3957 = vst [vmem:[#allocation1 + $0x2] ss:$4 sm:$0xff] %v3622_v2  ;;  %v3717_v2 = vrot.slane %v3715_v62, 7  ;;  %v3729_v32 = vrot.slane %v3721_v17, 2  ;;  %v3730_v24 = vrot.slane %v3722_v28, 2  ;;  %v3733_v8 = vsel %vm837_vm0, %v3719_v38, %v3727_v40 }
 0x459   : > { %3960 = vst [vmem:[#allocation1 + $0x3] ss:$4 sm:$0xff] %v3626_v60  ;;  %v3705_v27 = vsel %vm9823_vm8, %v3700_v47, %v3704_v20  ;;  %v3735_v34 = vsel %vm841_vm1, %v3719_v38, %v3727_v40  ;;  %v3740_v36 = vsel %vm837_vm0, %v3720_v39, %v3728_v25  ;;  %v3742_v0 = vsel %vm841_vm1, %v3720_v39, %v3728_v25  ;;  %v3775_v40 = vld [vmem:[#allocation3 + $0x8] sm:$0x3] }
 0x45a   : > { %v3718_v60 = vsel %vm9823_vm8, %v3713_v56, %v3717_v2  ;;  %v3747_v30 = vsel %vm837_vm0, %v3721_v17, %v3729_v32  ;;  %v3749_v7 = vsel %vm841_vm1, %v3721_v17, %v3729_v32  ;;  %v8291_v14 = vrot.slane %v3733_v8, 9  ;;  %v3778_v56 = vld [vmem:[#allocation3 + $0x14] sm:$0x3]  ;;  %v3776_v32 = vld [vmem:[#allocation3 + $0xc] sm:$0x3] }
 0x45b   : > { %v8292_v29 = vrot.slane %v3735_v34, 9  ;;  %v3754_v19 = vsel %vm837_vm0, %v3722_v28, %v3730_v24  ;;  %v3756_v33 = vsel %vm841_vm1, %v3722_v28, %v3730_v24  ;;  %v3790_v41 = vrot.slane %v3782_v54, 2  ;;  %v3777_v8 = vld [vmem:[#allocation3 + $0x10] sm:$0x3] }
 0x45c   : > { %v8295_v23 = vrot.slane %v3747_v30, 9  ;;  %v8296_v53 = vrot.slane %v3749_v7, 9  ;;  %v3787_v52 = vrot.slane %v3779_v3, 2  ;;  %v8297_v9 = vrot.slane %v3754_v19, 9 }
 0x45d   : > { %v8298_v49 = vrot.slane %v3756_v33, 9  ;;  %v3762_v4 = vsel %vm10621_vm15, %v8291_v14, %v8292_v29  ;;  %v3788_v13 = vrot.slane %v3780_v43, 2  ;;  %v3789_v58 = vrot.slane %v3781_v22, 2  ;;  %v9151_v29 = vld [vmem:[%s12270_s5 + $0x30] sm:$0xff] }
 0x45e   : > { %v3811_v15 = vsel %vm837_vm0, %v3782_v54, %v3790_v41  ;;  %v3793_v59 = vsel %vm837_vm0, %v3779_v3, %v3787_v52  ;;  %v3812_v63 = vsel %vm841_vm1, %v3782_v54, %v3790_v41  ;;  %v3794_v62 = vsel %vm841_vm1, %v3779_v3, %v3787_v52 }
 0x45f   : > { %v3774_v48 = vsel %vm10621_vm15, %v8297_v9, %v8298_v49  ;;  %v3799_v61 = vsel %vm837_vm0, %v3780_v43, %v3788_v13  ;;  %v3854_v6 = vshrl.u32 %v3811_v15, 16  ;;  %v3805_v44 = vsel %vm837_vm0, %v3781_v22, %v3789_v58  ;;  %v3870_v9 = vld [vmem:[#allocation3 + $0x14] sm:$0x6] }
 0x460   : > { %v11132_v18 = vld.sshfl [vmem:[#allocation1] sm:$0xff pattern:$0x73625140]  ;;  %v3815_v31 = vshrl.u32 %v3793_v59, 16  ;;  %v3818_v12 = vshll.u32 %v3793_v59, 16  ;;  %v3857_v38 = vshll.u32 %v3811_v15, 16  ;;  %v3800_v28 = vsel %vm841_vm1, %v3780_v43, %v3788_v13 }
 0x461   : > { %3963 = vst [vmem:[#allocation1] ss:$4 sm:$0xff] %v3627_v46  ;;  %v8293_v46 = vrot.slane %v3740_v36, 9  ;;  %v3828_v55 = vshrl.u32 %v3799_v61, 16  ;;  %v3831_v21 = vshll.u32 %v3799_v61, 16  ;;  %v3841_v16 = vshrl.u32 %v3805_v44, 16 }
 0x462   : > { %3966 = vst [vmem:[#allocation1 + $0x1] ss:$4 sm:$0xff] %v3628_v1  ;;  %v8294_v1 = vrot.slane %v3742_v0, 9  ;;  %v3844_v39 = vshll.u32 %v3805_v44, 16  ;;  %v3814_v47 = vrot.slane %v3812_v63, 2  ;;  %v3856_v42 = vrot.slane %v3854_v6, 6 }
 0x463   : > { %3969 = vst [vmem:[#allocation1 + $0x2] ss:$4 sm:$0xff] %v3629_v51  ;;  %v3817_v17 = vrot.slane %v3815_v31, 6  ;;  %v3859_v20 = vrot.slane %v3857_v38, 7  ;;  %v3830_v25 = vrot.slane %v3828_v55, 6  ;;  %v3833_v2 = vrot.slane %v3831_v21, 7 }
 0x464   : > { %3972 = vst [vmem:[#allocation1 + $0x3] ss:$4 sm:$0xff] %v3630_v35  ;;  %v3766_v57 = vsel %vm10621_vm15, %v8293_v46, %v8294_v1  ;;  %v3770_v35 = vsel %vm10621_vm15, %v8295_v23, %v8296_v53  ;;  %v3846_v24 = vrot.slane %v3844_v39, 7  ;;  %v3802_v34 = vrot.slane %v3800_v28, 2  ;;  %v9152_v36 = vld [vmem:[%s12270_s5 + $0x38] sm:$0xff]  ;;  %v9149_v63 = vld [vmem:[%s12270_s5 + $0x20] sm:$0xff] }
 0x465   : > { %v3860_v30 = vor.u32 %v3859_v20, %v3856_v42  ;;  %v3863_v7 = vshll.u32 %v3814_v47, 16  ;;  %v3834_v14 = vor.u32 %v3833_v2, %v3830_v25  ;;  %4350 = vmatpush.bf16.msrb.mxu2 %v9152_v36  ;;  %v3867_v23 = vld [vmem:[#allocation3 + $0x8] sm:$0x6]  ;;  %v3878_v61 = vrot.slane %v3870_v9, 2  ;;  %v9148_v47 = vld [vmem:[%s12270_s5 + $0x18] sm:$0xff]  ;;  %v9159_v25 = vld [vmem:[%s12270_s5 + $0x70] sm:$0xff] }
 0x466   : > { %v3837_v33 = vshll.u32 %v3802_v34, 16  ;;  %v3875_v15 = vrot.slane %v3867_v23, 2 }
 0x467   : > { %v3861_v43 = vrot.slane %v3860_v30, 2  ;;  %v3865_v41 = vrot.slane %v3863_v7, 7  ;;  %v3835_v53 = vrot.slane %v3834_v14, 2  ;;  %v3902_v21 = vsel %vm837_vm0, %v3870_v9, %v3878_v61  ;;  %v9180_v30 = vld [vmem:[%s12270_s5 + $0x118] sm:$0xff]  ;;  %v9179_v14 = vld [vmem:[%s12270_s5 + $0x110] sm:$0xff] }
 0x468   : > { %v3839_v13 = vrot.slane %v3837_v33, 7  ;;  %v3881_v38 = vsel %vm837_vm0, %v3867_v23, %v3875_v15  ;;  %v3883_v55 = vsel %vm841_vm1, %v3867_v23, %v3875_v15  ;;  %v8305_v20 = vrot.slane %v3902_v21, 9  ;;  %v4462_v7 = vld [vmem:[#allocation3] sm:$0x3]  ;;  %v9157_v33 = vld [vmem:[%s12270_s5 + $0x60] sm:$0xff] }
 0x469   : > { %4351 = vmatpush.bf16.msrb.mxu2 %v9151_v29  ;;  %v9156_v23 = vld [vmem:[%s12270_s5 + $0x58] sm:$0xff] }
 0x46a   : > { %v3840_v6 = vsel %vm9823_vm8, %v3835_v53, %v3839_v13  ;;  %v9174_v53 = vld [vmem:[%s12270_s5 + $0xe8] sm:$0xff] }
 0x46b   : > { %v3973_v37 = vld.sshfl [vmem:[#allocation1] sm:$0xff pattern:$0x73625140] }
 0x46c   : > { %3978 = vst [vmem:[#allocation1] ss:$4 sm:$0xff] %v3679_v45  ;;  %3975 = vrot.lane.b32.xlu0 %v3973_v37, %s12545_s27  ;;  %v3820_v45 = vrot.slane %v3818_v12, 7  ;;  %v3796_v37 = vrot.slane %v3794_v62, 2  ;;  %v3904_v62 = vsel %vm841_vm1, %v3870_v9, %v3878_v61  ;;  %v9155_v9 = vld [vmem:[%s12270_s5 + $0x50] sm:$0xff]  ;;  %v9164_v61 = vld [vmem:[%s12270_s5 + $0x98] sm:$0xff] }
 0x46d   : > { %3981 = vst [vmem:[#allocation1 + $0x1] ss:$4 sm:$0xff] %v3692_v10  ;;  %v3806_v10 = vsel %vm841_vm1, %v3781_v22, %v3789_v58  ;;  %v9150_v22 = vld [vmem:[%s12270_s5 + $0x28] sm:$0xff]  ;;  %v8306_v28 = vrot.slane %v3904_v62, 9 }
 0x46e   : > { %3984 = vst [vmem:[#allocation1 + $0x2] ss:$4 sm:$0xff] %v3705_v27  ;;  %v3821_v0 = vor.u32 %v3820_v45, %v3817_v17  ;;  %v3808_v54 = vrot.slane %v3806_v10, 2  ;;  %v3824_v3 = vshll.u32 %v3796_v37, 16  ;;  %4352 = vmatpush.bf16.msrb.mxu2 %v9150_v22  ;;  %v8299_v17 = vrot.slane %v3881_v38, 9  ;;  %v9177_v22 = vld [vmem:[%s12270_s5 + $0x100] sm:$0xff] }
 0x46f   : > { %3987 = vst [vmem:[#allocation1 + $0x3] ss:$4 sm:$0xff] %v3718_v60  ;;  %v3843_v60 = vrot.slane %v3841_v16, 6  ;;  %v8300_v45 = vrot.slane %v3883_v55, 9 }
 0x470   : > { %v3822_v46 = vrot.slane %v3821_v0, 2  ;;  %v3850_v1 = vshll.u32 %v3808_v54, 16  ;;  %v3826_v52 = vrot.slane %v3824_v3, 7  ;;  %v9146_v0 = vld [vmem:[%s12270_s5 + $0x8] sm:$0xff]  ;;  %v9145_v54 = vld [vmem:[%s12270_s5] sm:$0xff] }
 0x471   : > { %v3847_v19 = vor.u32 %v3846_v24, %v3843_v60  ;;  %v3910_v60 = vsel %vm10621_vm15, %v8299_v17, %v8300_v45  ;;  %v9158_v3 = vld [vmem:[%s12270_s5 + $0x68] sm:$0xff] }
 0x472   : > { %v3827_v58 = vsel %vm9823_vm8, %v3822_v46, %v3826_v52  ;;  %4353 = vmatpush.bf16.msrb.mxu2 %v9149_v63  ;;  %v9175_v46 = vld [vmem:[%s12270_s5 + $0xf0] sm:$0xff]  ;;  %v9166_v52 = vld [vmem:[%s12270_s5 + $0xa8] sm:$0xff] }
 0x473   : > { %v3848_v49 = vrot.slane %v3847_v19, 2  ;;  %v9176_v19 = vld [vmem:[%s12270_s5 + $0xf8] sm:$0xff]  ;;  %v9162_v63 = vld [vmem:[%s12270_s5 + $0x88] sm:$0xff] }
 0x474   : > { %4392 = vmatpush.bf16.msra.mxu1 %v9176_v19 }
 0x476   : > { %v11154_v51 = vld.sshfl [vmem:[#allocation1] sm:$0xff pattern:$0x73625140]  ;;  %4354 = vmatpush.bf16.msrb.mxu2 %v9148_v47 }
 0x477   : > { %3990 = vst [vmem:[#allocation1] ss:$4 sm:$0xff] %v3762_v4  ;;  %v3868_v4 = vld [vmem:[#allocation3 + $0xc] sm:$0x6] }
 0x478   : > { %3993 = vst [vmem:[#allocation1 + $0x1] ss:$4 sm:$0xff] %v3766_v57  ;;  %v3869_v57 = vld [vmem:[#allocation3 + $0x10] sm:$0x6]  ;;  %v3876_v44 = vrot.slane %v3868_v4, 2  ;;  %4393 = vmatpush.bf16.msra.mxu1 %v9175_v46 }
 0x479   : > { %3996 = vst [vmem:[#allocation1 + $0x2] ss:$4 sm:$0xff] %v3770_v35  ;;  %v3852_v35 = vrot.slane %v3850_v1, 7  ;;  %v3877_v12 = vrot.slane %v3869_v57, 2  ;;  %v9168_v1 = vld [vmem:[%s12270_s5 + $0xb8] sm:$0xff] }
 0x47a   : > { %3999 = vst [vmem:[#allocation1 + $0x3] ss:$4 sm:$0xff] %v3774_v48  ;;  %v3866_v48 = vsel %vm9823_vm8, %v3861_v43, %v3865_v41  ;;  %v3888_v16 = vsel %vm837_vm0, %v3868_v4, %v3876_v44  ;;  %v3890_v39 = vsel %vm841_vm1, %v3868_v4, %v3876_v44  ;;  %v9178_v43 = vld [vmem:[%s12270_s5 + $0x108] sm:$0xff]  ;;  %4378 = vmatpush.bf16.msra.mxu0 %v9168_v1  ;;  %v9167_v41 = vld [vmem:[%s12270_s5 + $0xb0] sm:$0xff]  ;;  %v9165_v4 = vld [vmem:[%s12270_s5 + $0xa0] sm:$0xff] }
 0x47b   : > { %v3853_v31 = vsel %vm9823_vm8, %v3848_v49, %v3852_v35  ;;  %v3895_v42 = vsel %vm837_vm0, %v3869_v57, %v3877_v12  ;;  %v8301_v37 = vrot.slane %v3888_v16, 9  ;;  %v8302_v10 = vrot.slane %v3890_v39, 9  ;;  %v9173_v49 = vld [vmem:[%s12270_s5 + $0xe0] sm:$0xff] }
 0x47c   : > { %v8303_v2 = vrot.slane %v3895_v42, 9  ;;  %4394 = vmatpush.bf16.msra.mxu1 %v9174_v53  ;;  %v9153_v35 = vld [vmem:[%s12270_s5 + $0x40] sm:$0xff] }
 0x47d   : > { %v3914_v34 = vsel %vm10621_vm15, %v8301_v37, %v8302_v10  ;;  %v9169_v44 = vld [vmem:[%s12270_s5 + $0xc0] sm:$0xff] }
 0x47e   : > { %4379 = vmatpush.bf16.msra.mxu0 %v9167_v41  ;;  %v9385_v42 = vld [vmem:[%s12271_s6] ss:$0 sm:$0xff]  ;;  %v4440_v41 = vld [vmem:[#allocation3 + $0x8] sm:$0x7] }
 0x480   : > { %4395 = vmatpush.bf16.msra.mxu1 %v9173_v49 }
 0x481   : > { %v4000_v27 = vld.sshfl [vmem:[#allocation1] sm:$0xff pattern:$0x73625140] }
 0x482   : > { %4005 = vst [vmem:[#allocation1] ss:$4 sm:$0xff] %v3775_v40  ;;  %4002 = vrot.lane.b32.xlu1 %v4000_v27, %s12545_s27  ;;  %v3897_v40 = vsel %vm841_vm1, %v3869_v57, %v3877_v12  ;;  %4380 = vmatpush.bf16.msra.mxu0 %v9166_v52  ;;  %v9154_v57 = vld [vmem:[%s12270_s5 + $0x48] sm:$0xff] }
 0x483   : > { %4008 = vst [vmem:[#allocation1 + $0x1] ss:$4 sm:$0xff] %v3776_v32  ;;  %v8304_v27 = vrot.slane %v3897_v40, 9  ;;  %v9147_v32 = vld [vmem:[%s12270_s5 + $0x10] sm:$0xff] }
 0x484   : > { %4011 = vst [vmem:[#allocation1 + $0x2] ss:$4 sm:$0xff] %v3777_v8  ;;  %v3922_v8 = vsel %vm10621_vm15, %v8305_v20, %v8306_v28  ;;  %4355 = vmatpush.bf16.msrb.mxu2 %v9147_v32 }
 0x485   : > { %4014 = vst [vmem:[#allocation1 + $0x3] ss:$4 sm:$0xff] %v3778_v56  ;;  %v9160_v56 = vld [vmem:[%s12270_s5 + $0x78] sm:$0xff]  ;;  %v3918_v36 = vsel %vm10621_vm15, %v8303_v2, %v8304_v27 }
 0x486   : > { %4364 = vmatpush.bf16.msrb.mxu3 %v9160_v56  ;;  %4381 = vmatpush.bf16.msra.mxu0 %v9165_v4 }
 0x488   : > { %4356 = vmatpush.bf16.msrb.mxu2 %v9146_v0 }
 0x48a   : > { %4365 = vmatpush.bf16.msrb.mxu3 %v9159_v25  ;;  %4382 = vmatpush.bf16.msra.mxu0 %v9164_v61 }
 0x48c   : > { %v11182_v59 = vld.sshfl [vmem:[#allocation1] sm:$0xff pattern:$0x73625140]  ;;  %4357 = vmatpush.bf16.msrb.mxu2 %v9145_v54 }
 0x48d   : > { %4017 = vst [vmem:[#allocation1] ss:$4 sm:$0xff] %v3827_v58  ;;  %v9172_v58 = vld [vmem:[%s12270_s5 + $0xd8] sm:$0xff] }
 0x48e   : > { %4020 = vst [vmem:[#allocation1 + $0x1] ss:$4 sm:$0xff] %v3840_v6  ;;  %4366 = vmatpush.bf16.msrb.mxu3 %v9158_v3  ;;  %4396 = vmatpush.bf16.msra.mxu1 %v9172_v58  ;;  %v9163_v6 = vld [vmem:[%s12270_s5 + $0x90] sm:$0xff]  ;;  %v4451_v58 = vld [vmem:[#allocation3 + $0xc] sm:$0x7] }
 0x48f   : > { %4023 = vst [vmem:[#allocation1 + $0x2] ss:$4 sm:$0xff] %v3853_v31  ;;  %4383 = vmatpush.bf16.msra.mxu0 %v9163_v6  ;;  %v9161_v31 = vld [vmem:[%s12270_s5 + $0x80] sm:$0xff] }
 0x490   : > { %4026 = vst [vmem:[#allocation1 + $0x3] ss:$4 sm:$0xff] %v3866_v48  ;;  %4410 = vmatpush.bf16.msra.mxu2 %v9180_v30  ;;  %v9171_v48 = vld [vmem:[%s12270_s5 + $0xd0] sm:$0xff] }
 0x492   : > { %4367 = vmatpush.bf16.msrb.mxu3 %v9157_v33  ;;  %4397 = vmatpush.bf16.msra.mxu1 %v9171_v48  ;;  %v4432_v33 = vld [vmem:[#allocation3 + $0x4] sm:$0x7] }
 0x493   : > { %4384 = vmatpush.bf16.msra.mxu0 %v9162_v63 }
 0x494   : > { %4411 = vmatpush.bf16.msra.mxu2 %v9179_v14 }
 0x496   : > { %4368 = vmatpush.bf16.msrb.mxu3 %v9156_v23 }
 0x497   : > { %v4027_v24 = vld.sshfl [vmem:[#allocation1] sm:$0xff pattern:$0x73625140]  ;;  %4385 = vmatpush.bf16.msra.mxu0 %v9161_v31 }
 0x498   : > { %4032 = vst [vmem:[#allocation1] ss:$4 sm:$0xff] %v3910_v60  ;;  %4029 = vrot.lane.b32.xlu2 %v4027_v24, %s12545_s27  ;;  %4412 = vmatpush.bf16.msra.mxu2 %v9178_v43 }
 0x499   : > { %4035 = vst [vmem:[#allocation1 + $0x1] ss:$4 sm:$0xff] %v3914_v34 }
 0x49a   : > { %4038 = vst [vmem:[#allocation1 + $0x2] ss:$4 sm:$0xff] %v3918_v36  ;;  %4369 = vmatpush.bf16.msrb.mxu3 %v9155_v9  ;;  %v4466_v9 = vld [vmem:[#allocation3] sm:$0x7] }
 0x49b   : > { %4041 = vst [vmem:[#allocation1 + $0x3] ss:$4 sm:$0xff] %v3922_v8  ;;  %v4474_v4 = vrot.slane %v4466_v9, 2 }
 0x49c   : > { %4413 = vmatpush.bf16.msra.mxu2 %v9177_v22 }
 0x49e   : > { %4370 = vmatpush.bf16.msrb.mxu3 %v9154_v57 }
 0x4a2   : > { %v4042_v29 = vld.sshfl [vmem:[#allocation1] sm:$0xff pattern:$0x73625140]  ;;  %4371 = vmatpush.bf16.msrb.mxu3 %v9153_v35  ;;  %v4480_v35 = vsel %vm837_vm0, %v4466_v9, %v4474_v4 }
 0x4a3   : > { %4907 = vst [vmem:[#allocation1] ss:$4 sm:$0xff] %v4462_v7  ;;  %v4502_v6 = vshrl.u32 %v4480_v35, 16  ;;  %v4505_v63 = vshll.u32 %v4480_v35, 16 }
 0x4b0   : > { %v3949_v13 = vpop.permute.xlu2 %3948 }
 0x4b1   : > { %v4045_v15 = vsel %vm4043_vm14, %v11096_v50, %v3949_v13  ;;  %v9170_v50 = vld [vmem:[%s12270_s5 + $0xc8] sm:$0xff] }
 0x4b2   : > { %4358 = vmatmul.bf16.vlgmr.msrb.gmra.mxu2 %v4045_v15  ;;  %4398 = vmatpush.bf16.msra.mxu1 %v9170_v50  ;;  %v4481_v50 = vsel %vm841_vm1, %v4466_v9, %v4474_v4 }
 0x4b6   : > { %4399 = vmatpush.bf16.msra.mxu1 %v9169_v44 }
 0x4c2   : > { %8451 = vmatmul.msk.bf16.vlgmr.msra.gmra.mxu2 %vm4043_vm14, %v4042_v29 }
 0x4de   : > { %v3976_v12 = vpop.permute.xlu0 %3975 }
 0x4df   : > { %v4048_v38 = vsel %vm4043_vm14, %v11132_v18, %v3976_v12 }
 0x4e0   : > { %4372 = vmatmul.bf16.vlgmr.msrb.gmra.mxu3 %v4048_v38 }
 0x4f2   : > { %v4030_v55 = vpop.permute.xlu2 %4029 }
 0x4f3   : > { %v4054_v21 = vsel %vm4043_vm14, %v11182_v59, %v4030_v55  ;;  %v4483_v55 = vrot.slane %v4481_v50, 2 }
 0x4f4   : > { %4400 = vmatmul.bf16.vlgmr.msra.gmra.mxu1 %v4054_v21  ;;  %v4003_v62 = vpop.permute.xlu1 %4002 }
 0x4f5   : > { %v4051_v16 = vsel %vm4043_vm14, %v11154_v51, %v4003_v62  ;;  %v4504_v62 = vrot.slane %v4502_v6, 6 }
 0x4f6   : > { %4386 = vmatmul.bf16.vlgmr.msra.gmra.mxu0 %v4051_v16  ;;  %v4507_v16 = vrot.slane %v4505_v63, 7 }
 0x535   : > { %v4359_v39 = vpop.f32.mrf.mxu2 }
 0x536   : > { %v4360_v56 = vadd.f32 %v9385_v42, %v4359_v39 }
 0x53d   : > { %v4361_v47 = vpop.f32.mrf.mxu2 }
 0x53e   : > { %v4362_v10 = vadd.f32 %v9385_v42, %v4361_v47 }
 0x545   : > { %v4415_v28 = vpop.f32.mrf.mxu2 }
 0x54d   : > { %v4417_v0 = vpop.f32.mrf.mxu2 }
 0x563   : > { %v4373_v40 = vpop.f32.mrf.mxu3 }
 0x564   : > { %v4374_v18 = vadd.f32 %v4373_v40, %v4360_v56 }
 0x56b   : > { %v4375_v37 = vpop.f32.mrf.mxu3 }
 0x56c   : > { %v4376_v2 = vadd.f32 %v4375_v37, %v4362_v10 }
 0x571   : > { %v4401_v17 = vpop.f32.mrf.mxu1 }
 0x573   : > { %v4387_v45 = vpop.f32.mrf.mxu0 }
 0x574   : > { %v4388_v20 = vadd.f32 %v4387_v45, %v4374_v18  ;;  %v4511_v18 = vshll.u32 %v4483_v55, 16 }
 0x576   : > { %v4402_v59 = vadd.f32 %v4401_v17, %v4388_v20 }
 0x578   : > { %v4416_v25 = vadd.f32 %v4415_v28, %v4402_v59  ;;  %v4508_v28 = vor.u32 %v4507_v16, %v4504_v62 }
 0x579   : > { %v4403_v24 = vpop.f32.mrf.mxu1 }
 0x57a   : > { %v4420_v51 = vmax.f32 %v4416_v25, 0.0 }
 0x57b   : > { %v4389_v27 = vpop.f32.mrf.mxu0 }
 0x57c   : > { %v4422_v32 = vpack.c.bf16 %v4420_v51, %v4420_v51  ;;  %v4390_v60 = vadd.f32 %v4389_v27, %v4376_v2  ;;  %v4513_v27 = vrot.slane %v4511_v18, 7 }
 0x57e   : > { %v4425_v8 = vshrl.u32 %v4422_v32, 16  ;;  %v4428_v34 = vshll.u32 %v4422_v32, 16  ;;  %v4404_v36 = vadd.f32 %v4403_v24, %v4390_v60  ;;  %v4459_v24 = vld [vmem:[#allocation3 + $0x10] sm:$0x7] }
 0x580   : > { %v4427_v54 = vrot.slane %v4425_v8, 7  ;;  %v4435_v30 = vrot.slane %v4425_v8, 5  ;;  %v4436_v7 = vrot.slane %v4428_v34, 6  ;;  %v4418_v14 = vadd.f32 %v4417_v0, %v4404_v36 }
 0x581   : > { %v4509_v8 = vrot.slane %v4508_v28, 2 }
 0x582   : > { %v4430_v29 = vor.u32 %v4428_v34, %v4427_v54  ;;  %v4437_v3 = vor.u32 %v4436_v7, %v4435_v30  ;;  %v4421_v19 = vmax.f32 %v4418_v14, 0.0 }
 0x584   : > { %v4433_v46 = vsel %vm11078_vm12, %v4430_v29, %v4432_v33  ;;  %v4438_v1 = vrot.slane %v4437_v3, 4  ;;  %v4423_v43 = vpack.c.bf16 %v4421_v19, %v4421_v19  ;;  %v4514_v33 = vsel %vm9823_vm8, %v4509_v8, %v4513_v27 }
 0x585   : > { %4434 = vst [vmem:[#allocation3 + $0x4] sm:$0x7] %v4433_v46  ;;  %v4554_v46 = vld [vmem:[#allocation3] sm:$0x6] }
 0x586   : > { %v4441_v23 = vsel %vm11078_vm12, %v4438_v1, %v4440_v41  ;;  %v4444_v53 = vshrl.u32 %v4423_v43, 16  ;;  %v4447_v52 = vshll.u32 %v4423_v43, 16 }
 0x587   : > { %4442 = vst [vmem:[#allocation3 + $0x8] sm:$0x7] %v4441_v23 }
 0x588   : > { %v4446_v22 = vrot.slane %v4444_v53, 7  ;;  %v4454_v12 = vrot.slane %v4444_v53, 5  ;;  %v4455_v38 = vrot.slane %v4447_v52, 6 }
 0x58a   : > { %v4449_v49 = vor.u32 %v4447_v52, %v4446_v22  ;;  %v4456_v47 = vor.u32 %v4455_v38, %v4454_v12 }
 0x58c   : > { %v4463_v13 = vld [vmem:[#allocation3 + $0x4] sm:$0x3]  ;;  %v4452_v15 = vsel %vm11078_vm12, %v4449_v49, %v4451_v58  ;;  %v4457_v59 = vrot.slane %v4456_v47, 4  ;;  %v4562_v49 = vrot.slane %v4554_v46, 2 }
 0x58d   : > { %4910 = vst [vmem:[#allocation1 + $0x1] ss:$4 sm:$0xff] %v4463_v13  ;;  %v4467_v48 = vld [vmem:[#allocation3 + $0x4] sm:$0x7] }
 0x58e   : > { %v4464_v57 = vld [vmem:[#allocation3 + $0x8] sm:$0x3]  ;;  %4453 = vst [vmem:[#allocation3 + $0xc] sm:$0x7] %v4452_v15  ;;  %v4475_v44 = vrot.slane %v4467_v48, 2  ;;  %v4460_v36 = vsel %vm11078_vm12, %v4457_v59, %v4459_v24  ;;  %v4568_v63 = vsel %vm837_vm0, %v4554_v46, %v4562_v49 }
 0x58f   : > { %4913 = vst [vmem:[#allocation1 + $0x2] ss:$4 sm:$0xff] %v4464_v57  ;;  %v4468_v61 = vld [vmem:[#allocation3 + $0x8] sm:$0x7]  ;;  %v4555_v13 = vld [vmem:[#allocation3 + $0x4] sm:$0x6] }
 0x590   : > { %v4476_v31 = vrot.slane %v4468_v61, 2  ;;  %v4486_v21 = vsel %vm837_vm0, %v4467_v48, %v4475_v44  ;;  %v4487_v37 = vsel %vm841_vm1, %v4467_v48, %v4475_v44  ;;  %4461 = vst [vmem:[#allocation3 + $0x10] sm:$0x7] %v4460_v36  ;;  %v4556_v58 = vld [vmem:[#allocation3 + $0x8] sm:$0x6]  ;;  %v4563_v6 = vrot.slane %v4555_v13, 2 }
 0x591   : > { %v4515_v42 = vshrl.u32 %v4486_v21, 16  ;;  %v4518_v40 = vshll.u32 %v4486_v21, 16  ;;  %v4489_v34 = vrot.slane %v4487_v37, 2  ;;  %v4564_v38 = vrot.slane %v4556_v58, 2 }
 0x592   : > { %v4492_v39 = vsel %vm837_vm0, %v4468_v61, %v4476_v31  ;;  %v4493_v25 = vsel %vm841_vm1, %v4468_v61, %v4476_v31  ;;  %v4570_v31 = vsel %vm841_vm1, %v4554_v46, %v4562_v49  ;;  %v8452_v21 = vrot.slane %v4568_v63, 9 }
 0x593   : > { %v4528_v17 = vshrl.u32 %v4492_v39, 16  ;;  %v4531_v45 = vshll.u32 %v4492_v39, 16  ;;  %v4517_v2 = vrot.slane %v4515_v42, 6  ;;  %v4520_v51 = vrot.slane %v4518_v40, 7  ;;  %v4614_v40 = vld [vmem:[#allocation3 + $0x4] sm:$0x7] }
 0x594   : > { %v4495_v54 = vrot.slane %v4493_v25, 2  ;;  %v4524_v1 = vshll.u32 %v4489_v34, 16  ;;  %v8453_v62 = vrot.slane %v4570_v31, 9  ;;  %v4575_v16 = vsel %vm837_vm0, %v4555_v13, %v4563_v6 }
 0x595   : > { %v4469_v56 = vld [vmem:[#allocation3 + $0xc] sm:$0x7]  ;;  %v4530_v32 = vrot.slane %v4528_v17, 6  ;;  %v4533_v60 = vrot.slane %v4531_v45, 7  ;;  %v4521_v30 = vor.u32 %v4520_v51, %v4517_v2  ;;  %v4577_v39 = vsel %vm841_vm1, %v4555_v13, %v4563_v6 }
 0x596   : > { %v4465_v20 = vld [vmem:[#allocation3 + $0xc] sm:$0x3]  ;;  %v4477_v10 = vrot.slane %v4469_v56, 2  ;;  %v4537_v23 = vshll.u32 %v4495_v54, 16  ;;  %v4526_v57 = vrot.slane %v4524_v1, 7  ;;  %v4582_v47 = vsel %vm837_vm0, %v4556_v58, %v4564_v38 }
 0x597   : > { %4916 = vst [vmem:[#allocation1 + $0x3] ss:$4 sm:$0xff] %v4465_v20  ;;  %v4534_v3 = vor.u32 %v4533_v60, %v4530_v32  ;;  %v4522_v22 = vrot.slane %v4521_v30, 2  ;;  %v4557_v61 = vld [vmem:[#allocation3 + $0xc] sm:$0x6]  ;;  %v4584_v42 = vsel %vm841_vm1, %v4556_v58, %v4564_v38  ;;  %v8454_v17 = vrot.slane %v4575_v16, 9 }
 0x598   : > { %v4498_v0 = vsel %vm837_vm0, %v4469_v56, %v4477_v10  ;;  %v4499_v7 = vsel %vm841_vm1, %v4469_v56, %v4477_v10  ;;  %v4539_v48 = vrot.slane %v4537_v23, 7  ;;  %v4565_v55 = vrot.slane %v4557_v61, 2  ;;  %v4615_v20 = vld [vmem:[#allocation3 + $0x8] sm:$0x7]  ;;  %v4616_v10 = vld [vmem:[#allocation3 + $0xc] sm:$0x7] }
 0x599   : > { %v4541_v14 = vshrl.u32 %v4498_v0, 16  ;;  %v4544_v29 = vshll.u32 %v4498_v0, 16  ;;  %v4501_v19 = vrot.slane %v4499_v7, 2  ;;  %v4535_v4 = vrot.slane %v4534_v3, 2  ;;  %v4617_v27 = vld [vmem:[#allocation3 + $0x10] sm:$0x7] }
 0x59a   : > { %v4527_v50 = vsel %vm9823_vm8, %v4522_v22, %v4526_v57  ;;  %v4589_v56 = vsel %vm837_vm0, %v4557_v61, %v4565_v55  ;;  %v4591_v18 = vsel %vm841_vm1, %v4557_v61, %v4565_v55  ;;  %v8455_v45 = vrot.slane %v4577_v39, 9  ;;  %v4610_v22 = vld [vmem:[#allocation3 + $0x4] sm:$0x3]  ;;  %v4613_v38 = vld [vmem:[#allocation3 + $0x10] sm:$0x3] }
 0x59b   : > { %v4543_v43 = vrot.slane %v4541_v14, 6  ;;  %v4546_v41 = vrot.slane %v4544_v29, 7  ;;  %v4550_v53 = vshll.u32 %v4501_v19, 16  ;;  %v4540_v12 = vsel %vm9823_vm8, %v4535_v4, %v4539_v48 }
 0x59c   : > { %v4597_v28 = vsel %vm10621_vm15, %v8452_v21, %v8453_v62  ;;  %v8456_v59 = vrot.slane %v4582_v47, 9  ;;  %v8457_v37 = vrot.slane %v4584_v42, 9  ;;  %v4622_v25 = vrot.slane %v4614_v40, 2 }
 0x59d   : > { %v4547_v52 = vor.u32 %v4546_v41, %v4543_v43  ;;  %v4552_v35 = vrot.slane %v4550_v53, 7  ;;  %v8458_v2 = vrot.slane %v4589_v56, 9  ;;  %v8459_v51 = vrot.slane %v4591_v18, 9  ;;  %v4702_v56 = vld [vmem:[#allocation3 + $0x4] sm:$0x6] }
 0x59e   : > { %v11336_v9 = vld.sshfl [vmem:[#allocation1] sm:$0xff pattern:$0x73625140]  ;;  %v4623_v32 = vrot.slane %v4615_v20, 2  ;;  %v4601_v24 = vsel %vm10621_vm15, %v8454_v17, %v8455_v45  ;;  %v4624_v8 = vrot.slane %v4616_v10, 2  ;;  %v4605_v34 = vsel %vm10621_vm15, %v8456_v59, %v8457_v37 }
 0x59f   : > { %4919 = vst [vmem:[#allocation1] ss:$4 sm:$0xff] %v4514_v33  ;;  %v4548_v15 = vrot.slane %v4547_v52, 2  ;;  %v4625_v36 = vrot.slane %v4617_v27, 2  ;;  %v4628_v0 = vsel %vm837_vm0, %v4614_v40, %v4622_v25  ;;  %v4609_v54 = vsel %vm10621_vm15, %v8458_v2, %v8459_v51  ;;  %v4611_v52 = vld [vmem:[#allocation3 + $0x8] sm:$0x3] }
 0x5a0   : > { %4922 = vst [vmem:[#allocation1 + $0x1] ss:$4 sm:$0xff] %v4527_v50  ;;  %v4634_v30 = vsel %vm837_vm0, %v4615_v20, %v4623_v32  ;;  %v4640_v7 = vsel %vm837_vm0, %v4616_v10, %v4624_v8  ;;  %v4650_v14 = vshrl.u32 %v4628_v0, 16  ;;  %v4653_v29 = vshll.u32 %v4628_v0, 16  ;;  %v4704_v2 = vld [vmem:[#allocation3 + $0xc] sm:$0x6] }
 0x5a1   : > { %v4553_v44 = vsel %vm9823_vm8, %v4548_v15, %v4552_v35  ;;  %4925 = vst [vmem:[#allocation1 + $0x2] ss:$4 sm:$0xff] %v4540_v12  ;;  %v4646_v3 = vsel %vm837_vm0, %v4617_v27, %v4625_v36  ;;  %v4663_v19 = vshrl.u32 %v4634_v30, 16  ;;  %v4666_v33 = vshll.u32 %v4634_v30, 16 }
 0x5a2   : > { %4928 = vst [vmem:[#allocation1 + $0x3] ss:$4 sm:$0xff] %v4553_v44  ;;  %v4629_v46 = vsel %vm841_vm1, %v4614_v40, %v4622_v25  ;;  %v4676_v1 = vshrl.u32 %v4640_v7, 16  ;;  %v4679_v43 = vshll.u32 %v4640_v7, 16  ;;  %v4635_v41 = vsel %vm841_vm1, %v4615_v20, %v4623_v32  ;;  %v4612_v44 = vld [vmem:[#allocation3 + $0xc] sm:$0x3] }
 0x5a3   : > { %v4689_v23 = vshrl.u32 %v4646_v3, 16  ;;  %v4692_v53 = vshll.u32 %v4646_v3, 16  ;;  %v4652_v49 = vrot.slane %v4650_v14, 6  ;;  %v4655_v4 = vrot.slane %v4653_v29, 7  ;;  %v4705_v32 = vld [vmem:[#allocation3 + $0x10] sm:$0x6] }
 0x5a4   : > { %v4631_v13 = vrot.slane %v4629_v46, 2  ;;  %v4665_v57 = vrot.slane %v4663_v19, 6  ;;  %v4668_v58 = vrot.slane %v4666_v33, 7  ;;  %v4641_v15 = vsel %vm841_vm1, %v4616_v10, %v4624_v8  ;;  %v4765_v19 = vld [vmem:[#allocation3 + $0x14] sm:$0x7] }
 0x5a5   : > { %v4637_v48 = vrot.slane %v4635_v41, 2  ;;  %v4647_v61 = vsel %vm841_vm1, %v4617_v27, %v4625_v36  ;;  %v4678_v50 = vrot.slane %v4676_v1, 6  ;;  %v4681_v6 = vrot.slane %v4679_v43, 7  ;;  %v4762_v41 = vld [vmem:[#allocation3 + $0x8] sm:$0x7] }
 0x5a6   : > { %v4691_v63 = vrot.slane %v4689_v23, 6  ;;  %v4694_v31 = vrot.slane %v4692_v53, 7  ;;  %v4656_v12 = vor.u32 %v4655_v4, %v4652_v49  ;;  %v4643_v55 = vrot.slane %v4641_v15, 2  ;;  %v4763_v49 = vld [vmem:[#allocation3 + $0xc] sm:$0x7] }
 0x5a7   : > { %v4669_v21 = vor.u32 %v4668_v58, %v4665_v57  ;;  %v4649_v62 = vrot.slane %v4647_v61, 2  ;;  %v4659_v16 = vshll.u32 %v4631_v13, 16  ;;  %v4682_v39 = vor.u32 %v4681_v6, %v4678_v50  ;;  %v4764_v58 = vld [vmem:[#allocation3 + $0x10] sm:$0x7] }
 0x5a8   : > { %v4672_v47 = vshll.u32 %v4637_v48, 16  ;;  %v4695_v42 = vor.u32 %v4694_v31, %v4691_v63  ;;  %v4657_v40 = vrot.slane %v4656_v12, 2  ;;  %v4685_v18 = vshll.u32 %v4643_v55, 16 }
 0x5a9   : > { %v4929_v60 = vld.sshfl [vmem:[#allocation1] sm:$0xff pattern:$0x73625140]  ;;  %v4670_v17 = vrot.slane %v4669_v21, 2  ;;  %v4698_v45 = vshll.u32 %v4649_v62, 16  ;;  %v4661_v20 = vrot.slane %v4659_v16, 7 }
 0x5aa   : > { %4934 = vst [vmem:[#allocation1] ss:$4 sm:$0xff] %v4597_v28  ;;  %4931 = vrot.lane.b32.xlu0 %v4929_v60, %s12545_s27  ;;  %v4703_v28 = vld [vmem:[#allocation3 + $0x8] sm:$0x6]  ;;  %v4683_v59 = vrot.slane %v4682_v39, 2  ;;  %v4674_v37 = vrot.slane %v4672_v47, 7 }
 0x5ab   : > { %4937 = vst [vmem:[#allocation1 + $0x1] ss:$4 sm:$0xff] %v4601_v24  ;;  %v4710_v10 = vrot.slane %v4702_v56, 2  ;;  %v4696_v25 = vrot.slane %v4695_v42, 2  ;;  %v4662_v51 = vsel %vm9823_vm8, %v4657_v40, %v4661_v20  ;;  %v4687_v27 = vrot.slane %v4685_v18, 7 }
 0x5ac   : > { %4940 = vst [vmem:[#allocation1 + $0x2] ss:$4 sm:$0xff] %v4605_v34  ;;  %v4675_v24 = vsel %vm9823_vm8, %v4670_v17, %v4674_v37  ;;  %v4711_v8 = vrot.slane %v4703_v28, 2  ;;  %v4700_v34 = vrot.slane %v4698_v45, 7  ;;  %v4712_v0 = vrot.slane %v4704_v2, 2 }
 0x5ad   : > { %4943 = vst [vmem:[#allocation1 + $0x3] ss:$4 sm:$0xff] %v4609_v54  ;;  %v4688_v36 = vsel %vm9823_vm8, %v4683_v59, %v4687_v27  ;;  %v4713_v30 = vrot.slane %v4705_v32, 2  ;;  %v4716_v7 = vsel %vm837_vm0, %v4702_v56, %v4710_v10  ;;  %v4718_v14 = vsel %vm841_vm1, %v4702_v56, %v4710_v10  ;;  %v4761_v10 = vld [vmem:[#allocation3 + $0x14] sm:$0x3] }
 0x5ae   : > { %v4701_v54 = vsel %vm9823_vm8, %v4696_v25, %v4700_v34  ;;  %v4723_v29 = vsel %vm837_vm0, %v4703_v28, %v4711_v8  ;;  %v4725_v3 = vsel %vm841_vm1, %v4703_v28, %v4711_v8  ;;  %v4730_v33 = vsel %vm837_vm0, %v4704_v2, %v4712_v0  ;;  %v4758_v25 = vld [vmem:[#allocation3 + $0x8] sm:$0x3]  ;;  %v4759_v27 = vld [vmem:[#allocation3 + $0xc] sm:$0x3] }
 0x5af   : > { %v4732_v46 = vsel %vm841_vm1, %v4704_v2, %v4712_v0  ;;  %v8460_v1 = vrot.slane %v4716_v7, 9  ;;  %v8461_v43 = vrot.slane %v4718_v14, 9  ;;  %v4737_v23 = vsel %vm837_vm0, %v4705_v32, %v4713_v30  ;;  %v4760_v7 = vld [vmem:[#allocation3 + $0x10] sm:$0x3] }
 0x5b0   : > { %v4739_v53 = vsel %vm841_vm1, %v4705_v32, %v4713_v30  ;;  %v4773_v4 = vrot.slane %v4765_v19, 2  ;;  %v8464_v13 = vrot.slane %v4730_v33, 9  ;;  %v8465_v57 = vrot.slane %v4732_v46, 9  ;;  %v9204_v33 = vld [vmem:[%s12272_s7 + $0xb8] sm:$0xff] }
 0x5b1   : > { %v4770_v15 = vrot.slane %v4762_v41, 2  ;;  %v8466_v48 = vrot.slane %v4737_v23, 9  ;;  %v8467_v61 = vrot.slane %v4739_v53, 9  ;;  %v4745_v50 = vsel %vm10621_vm15, %v8460_v1, %v8461_v43  ;;  %v9196_v23 = vld [vmem:[%s12272_s7 + $0x78] sm:$0xff]  ;;  %5360 = vmatpush.bf16.msrb.mxu0 %v9204_v33  ;;  %v9199_v33 = vld [vmem:[%s12272_s7 + $0x90] sm:$0xff] }
 0x5b2   : > { %v4771_v6 = vrot.slane %v4763_v49, 2  ;;  %v4772_v31 = vrot.slane %v4764_v58, 2  ;;  %v4794_v12 = vsel %vm837_vm0, %v4765_v19, %v4773_v4  ;;  %v4795_v47 = vsel %vm841_vm1, %v4765_v19, %v4773_v4  ;;  %5346 = vmatpush.bf16.msrb.mxu2 %v9196_v23  ;;  %v9195_v4 = vld [vmem:[%s12272_s7 + $0x70] sm:$0xff] }
 0x5b3   : > { %v4776_v55 = vsel %vm837_vm0, %v4762_v41, %v4770_v15  ;;  %v4757_v21 = vsel %vm10621_vm15, %v8466_v48, %v8467_v61  ;;  %v4837_v16 = vshrl.u32 %v4794_v12, 16  ;;  %v4840_v56 = vshll.u32 %v4794_v12, 16  ;;  %v4850_v61 = vld [vmem:[#allocation3 + $0x8] sm:$0x6]  ;;  %v4851_v12 = vld [vmem:[#allocation3 + $0xc] sm:$0x6] }
 0x5b4   : > { %v11368_v35 = vld.sshfl [vmem:[#allocation1] sm:$0xff pattern:$0x73625140]  ;;  %v4782_v62 = vsel %vm837_vm0, %v4763_v49, %v4771_v6  ;;  %v4788_v39 = vsel %vm837_vm0, %v4764_v58, %v4772_v31  ;;  %v4798_v42 = vshrl.u32 %v4776_v55, 16  ;;  %v4801_v40 = vshll.u32 %v4776_v55, 16 }
 0x5b5   : > { %4946 = vst [vmem:[#allocation1] ss:$4 sm:$0xff] %v4610_v22  ;;  %v8462_v22 = vrot.slane %v4723_v29, 9  ;;  %v4811_v18 = vshrl.u32 %v4782_v62, 16  ;;  %v4814_v17 = vshll.u32 %v4782_v62, 16  ;;  %v4824_v45 = vshrl.u32 %v4788_v39, 16 }
 0x5b6   : > { %4949 = vst [vmem:[#allocation1 + $0x1] ss:$4 sm:$0xff] %v4611_v52  ;;  %v8463_v52 = vrot.slane %v4725_v3, 9  ;;  %v4827_v20 = vshll.u32 %v4788_v39, 16  ;;  %v4797_v28 = vrot.slane %v4795_v47, 2  ;;  %v4839_v59 = vrot.slane %v4837_v16, 6  ;;  %5347 = vmatpush.bf16.msrb.mxu2 %v9195_v4 }
 0x5b7   : > { %4952 = vst [vmem:[#allocation1 + $0x2] ss:$4 sm:$0xff] %v4612_v44  ;;  %v4777_v37 = vsel %vm841_vm1, %v4762_v41, %v4770_v15  ;;  %v4800_v2 = vrot.slane %v4798_v42, 6  ;;  %v4783_v32 = vsel %vm841_vm1, %v4763_v49, %v4771_v6  ;;  %v4813_v8 = vrot.slane %v4811_v18, 6  ;;  %v9188_v29 = vld [vmem:[%s12272_s7 + $0x38] sm:$0xff]  ;;  %v9187_v41 = vld [vmem:[%s12272_s7 + $0x30] sm:$0xff] }
 0x5b8   : > { %4955 = vst [vmem:[#allocation1 + $0x3] ss:$4 sm:$0xff] %v4613_v38  ;;  %v4749_v63 = vsel %vm10621_vm15, %v8462_v22, %v8463_v52  ;;  %v4753_v38 = vsel %vm10621_vm15, %v8464_v13, %v8465_v57  ;;  %v4816_v34 = vrot.slane %v4814_v17, 7  ;;  %v4779_v0 = vrot.slane %v4777_v37, 2  ;;  %5332 = vmatpush.bf16.msra.mxu3 %v9188_v29  ;;  %v9203_v52 = vld [vmem:[%s12272_s7 + $0xb0] sm:$0xff]  ;;  %v9186_v6 = vld [vmem:[%s12272_s7 + $0x28] sm:$0xff] }
 0x5b9   : > { %v4829_v30 = vrot.slane %v4827_v20, 7  ;;  %v4785_v14 = vrot.slane %v4783_v32, 2  ;;  %v4846_v1 = vshll.u32 %v4797_v28, 16  ;;  %v4853_v13 = vld [vmem:[#allocation3 + $0x14] sm:$0x6]  ;;  %5361 = vmatpush.bf16.msrb.mxu0 %v9203_v52  ;;  %v9194_v62 = vld [vmem:[%s12272_s7 + $0x68] sm:$0xff] }
 0x5ba   : > { %v4817_v43 = vor.u32 %v4816_v34, %v4813_v8  ;;  %v4807_v53 = vshll.u32 %v4779_v0, 16  ;;  %v4858_v39 = vrot.slane %v4850_v61, 2  ;;  %v4859_v17 = vrot.slane %v4851_v12, 2  ;;  %5348 = vmatpush.bf16.msrb.mxu2 %v9194_v62  ;;  %v9193_v37 = vld [vmem:[%s12272_s7 + $0x60] sm:$0xff]  ;;  %v9200_v34 = vld [vmem:[%s12272_s7 + $0x98] sm:$0xff] }
 0x5bb   : > { %v4820_v49 = vshll.u32 %v4785_v14, 16  ;;  %v4848_v48 = vrot.slane %v4846_v1, 7  ;;  %v5464_v52 = vld [vmem:[#allocation4] sm:$0x3]  ;;  %v9192_v4 = vld [vmem:[%s12272_s7 + $0x58] sm:$0xff]  ;;  %v9209_v62 = vld [vmem:[%s12272_s7 + $0xe0] sm:$0xff] }
 0x5bc   : > { %5333 = vmatpush.bf16.msra.mxu3 %v9187_v41  ;;  %v4873_v32 = vsel %vm841_vm1, %v4851_v12, %v4859_v17 }
 0x5bd   : > { %v4822_v55 = vrot.slane %v4820_v49, 7  ;;  %v8471_v14 = vrot.slane %v4873_v32, 9 }
 0x5be   : > { %5349 = vmatpush.bf16.msrb.mxu2 %v9193_v37 }
 0x5bf   : > { %v4956_v60 = vld.sshfl [vmem:[#allocation1] sm:$0xff pattern:$0x73625140] }
 0x5c0   : > { %4961 = vst [vmem:[#allocation1] ss:$4 sm:$0xff] %v4662_v51  ;;  %4958 = vrot.lane.b32.xlu1 %v4956_v60, %s12545_s27  ;;  %v4803_v51 = vrot.slane %v4801_v40, 7  ;;  %v4842_v60 = vrot.slane %v4840_v56, 7  ;;  %v4861_v56 = vrot.slane %v4853_v13, 2  ;;  %5334 = vmatpush.bf16.msra.mxu3 %v9186_v6  ;;  %v9189_v6 = vld [vmem:[%s12272_s7 + $0x40] sm:$0xff] }
 0x5c1   : > { %4964 = vst [vmem:[#allocation1 + $0x1] ss:$4 sm:$0xff] %v4675_v24  ;;  %v4789_v24 = vsel %vm841_vm1, %v4764_v58, %v4772_v31 }
 0x5c2   : > { %4967 = vst [vmem:[#allocation1 + $0x2] ss:$4 sm:$0xff] %v4688_v36  ;;  %v4804_v3 = vor.u32 %v4803_v51, %v4800_v2  ;;  %v4791_v19 = vrot.slane %v4789_v24, 2  ;;  %v4843_v46 = vor.u32 %v4842_v60, %v4839_v59  ;;  %v9201_v59 = vld [vmem:[%s12272_s7 + $0xa0] sm:$0xff]  ;;  %v4885_v2 = vsel %vm837_vm0, %v4853_v13, %v4861_v56  ;;  %v9184_v60 = vld [vmem:[%s12272_s7 + $0x18] sm:$0xff]  ;;  %5350 = vmatpush.bf16.msrb.mxu2 %v9192_v4 }
 0x5c3   : > { %4970 = vst [vmem:[#allocation1 + $0x3] ss:$4 sm:$0xff] %v4701_v54  ;;  %v4826_v54 = vrot.slane %v4824_v45, 6  ;;  %v9185_v45 = vld [vmem:[%s12272_s7 + $0x20] sm:$0xff]  ;;  %v4887_v51 = vsel %vm841_vm1, %v4853_v13, %v4861_v56  ;;  %v9198_v13 = vld [vmem:[%s12272_s7 + $0x88] sm:$0xff] }
 0x5c4   : > { %v4805_v57 = vrot.slane %v4804_v3, 2  ;;  %v4833_v58 = vshll.u32 %v4791_v19, 16  ;;  %v4844_v15 = vrot.slane %v4843_v46, 2  ;;  %5335 = vmatpush.bf16.msra.mxu3 %v9185_v45  ;;  %v9183_v19 = vld [vmem:[%s12272_s7 + $0x10] sm:$0xff] }
 0x5c5   : > { %v4830_v22 = vor.u32 %v4829_v30, %v4826_v54  ;;  %v8474_v54 = vrot.slane %v4885_v2, 9  ;;  %v8475_v30 = vrot.slane %v4887_v51, 9 }
 0x5c6   : > { %v4835_v47 = vrot.slane %v4833_v58, 7  ;;  %v4849_v40 = vsel %vm9823_vm8, %v4844_v15, %v4848_v48  ;;  %v9191_v58 = vld [vmem:[%s12272_s7 + $0x50] sm:$0xff]  ;;  %v9197_v15 = vld [vmem:[%s12272_s7 + $0x80] sm:$0xff] }
 0x5c7   : > { %v4831_v31 = vrot.slane %v4830_v22, 2  ;;  %v9181_v22 = vld [vmem:[%s12272_s7] sm:$0xff]  ;;  %v9215_v48 = vld [vmem:[%s12272_s7 + $0x110] sm:$0xff]  ;;  %5351 = vmatpush.bf16.msrb.mxu2 %v9191_v58 }
 0x5c8   : > { %5336 = vmatpush.bf16.msra.mxu3 %v9184_v60 }
 0x5c9   : > { %v4836_v20 = vsel %vm9823_vm8, %v4831_v31, %v4835_v47  ;;  %v9212_v31 = vld [vmem:[%s12272_s7 + $0xf8] sm:$0xff]  ;;  %v9205_v47 = vld [vmem:[%s12272_s7 + $0xc0] sm:$0xff] }
 0x5ca   : > { %v11390_v44 = vld.sshfl [vmem:[#allocation1] sm:$0xff pattern:$0x73625140]  ;;  %5374 = vmatpush.bf16.msrb.mxu1 %v9212_v31  ;;  %v5468_v31 = vld [vmem:[#allocation4] sm:$0x7] }
 0x5cb   : > { %4973 = vst [vmem:[#allocation1] ss:$4 sm:$0xff] %v4745_v50  ;;  %v4818_v50 = vrot.slane %v4817_v43, 2  ;;  %v4905_v43 = vsel %vm10621_vm15, %v8474_v54, %v8475_v30 }
 0x5cc   : > { %4976 = vst [vmem:[#allocation1 + $0x1] ss:$4 sm:$0xff] %v4749_v63  ;;  %v4809_v63 = vrot.slane %v4807_v53, 7  ;;  %5337 = vmatpush.bf16.msra.mxu3 %v9183_v19  ;;  %v9182_v53 = vld [vmem:[%s12272_s7 + $0x8] sm:$0xff] }
 0x5cd   : > { %4979 = vst [vmem:[#allocation1 + $0x2] ss:$4 sm:$0xff] %v4753_v38  ;;  %v9202_v38 = vld [vmem:[%s12272_s7 + $0xa8] sm:$0xff]  ;;  %v4823_v18 = vsel %vm9823_vm8, %v4818_v50, %v4822_v55 }
 0x5ce   : > { %4982 = vst [vmem:[#allocation1 + $0x3] ss:$4 sm:$0xff] %v4757_v21  ;;  %v4852_v21 = vld [vmem:[#allocation3 + $0x10] sm:$0x6]  ;;  %v4810_v16 = vsel %vm9823_vm8, %v4805_v57, %v4809_v63  ;;  %5362 = vmatpush.bf16.msrb.mxu0 %v9202_v38  ;;  %v9216_v57 = vld [vmem:[%s12272_s7 + $0x118] sm:$0xff]  ;;  %v9213_v63 = vld [vmem:[%s12272_s7 + $0x100] sm:$0xff] }
 0x5cf   : > { %v4860_v28 = vrot.slane %v4852_v21, 2  ;;  %v9214_v50 = vld [vmem:[%s12272_s7 + $0x108] sm:$0xff] }
 0x5d0   : > { %5338 = vmatpush.bf16.msra.mxu3 %v9182_v53  ;;  %v9210_v38 = vld [vmem:[%s12272_s7 + $0xe8] sm:$0xff] }
 0x5d1   : > { %v4878_v24 = vsel %vm837_vm0, %v4852_v21, %v4860_v28  ;;  %v4880_v8 = vsel %vm841_vm1, %v4852_v21, %v4860_v28 }
 0x5d2   : > { %5363 = vmatpush.bf16.msrb.mxu0 %v9201_v59  ;;  %v8472_v29 = vrot.slane %v4878_v24, 9  ;;  %v8473_v3 = vrot.slane %v4880_v8, 9  ;;  %v9386_v59 = vld [vmem:[%s12273_s8] ss:$0 sm:$0xff] }
 0x5d4   : > { %v4901_v23 = vsel %vm10621_vm15, %v8472_v29, %v8473_v3  ;;  %5339 = vmatpush.bf16.msra.mxu3 %v9181_v22 }
 0x5d5   : > { %v4983_v36 = vld.sshfl [vmem:[#allocation1] sm:$0xff pattern:$0x73625140] }
 0x5d6   : > { %4988 = vst [vmem:[#allocation1] ss:$4 sm:$0xff] %v4758_v25  ;;  %4985 = vrot.lane.b32.xlu2 %v4983_v36, %s12545_s27  ;;  %v4866_v25 = vsel %vm841_vm1, %v4850_v61, %v4858_v39  ;;  %5364 = vmatpush.bf16.msrb.mxu0 %v9200_v34 }
 0x5d7   : > { %4991 = vst [vmem:[#allocation1 + $0x1] ss:$4 sm:$0xff] %v4759_v27  ;;  %v4871_v27 = vsel %vm837_vm0, %v4851_v12, %v4859_v17  ;;  %v8469_v0 = vrot.slane %v4866_v25, 9  ;;  %v9211_v12 = vld [vmem:[%s12272_s7 + $0xf0] sm:$0xff] }
 0x5d8   : > { %4994 = vst [vmem:[#allocation1 + $0x2] ss:$4 sm:$0xff] %v4760_v7  ;;  %v8470_v7 = vrot.slane %v4871_v27, 9  ;;  %5392 = vmatpush.bf16.msrb.mxu3 %v9216_v57  ;;  %5375 = vmatpush.bf16.msrb.mxu1 %v9211_v12 }
 0x5d9   : > { %4997 = vst [vmem:[#allocation1 + $0x3] ss:$4 sm:$0xff] %v4761_v10  ;;  %v4864_v10 = vsel %vm837_vm0, %v4850_v61, %v4858_v39  ;;  %v9190_v61 = vld [vmem:[%s12272_s7 + $0x48] sm:$0xff]  ;;  %v9207_v39 = vld [vmem:[%s12272_s7 + $0xd0] sm:$0xff] }
 0x5da   : > { %v8468_v36 = vrot.slane %v4864_v10, 9  ;;  %v4897_v41 = vsel %vm10621_vm15, %v8470_v7, %v8471_v14  ;;  %5365 = vmatpush.bf16.msrb.mxu0 %v9199_v33  ;;  %5352 = vmatpush.bf16.msrb.mxu2 %v9190_v61 }
 0x5dc   : > { %v4893_v46 = vsel %vm10621_vm15, %v8468_v36, %v8469_v0  ;;  %5393 = vmatpush.bf16.msrb.mxu3 %v9215_v48  ;;  %5376 = vmatpush.bf16.msrb.mxu1 %v9210_v38  ;;  %v5452_v38 = vld [vmem:[#allocation4 + $0xc] sm:$0x7] }
 0x5de   : > { %5366 = vmatpush.bf16.msrb.mxu0 %v9198_v13  ;;  %5353 = vmatpush.bf16.msrb.mxu2 %v9189_v6 }
 0x5e0   : > { %v11436_v42 = vld.sshfl [vmem:[#allocation1] sm:$0xff pattern:$0x73625140]  ;;  %5394 = vmatpush.bf16.msrb.mxu3 %v9214_v50  ;;  %5377 = vmatpush.bf16.msrb.mxu1 %v9209_v62  ;;  %v9222_v50 = vld [vmem:[%s12274_s9 + $0x28] sm:$0xff] }
 0x5e1   : > { %5000 = vst [vmem:[#allocation1] ss:$4 sm:$0xff] %v4810_v16  ;;  %v9208_v16 = vld [vmem:[%s12272_s7 + $0xd8] sm:$0xff]  ;;  %v9221_v62 = vld [vmem:[%s12274_s9 + $0x20] sm:$0xff] }
 0x5e2   : > { %5003 = vst [vmem:[#allocation1 + $0x1] ss:$4 sm:$0xff] %v4823_v18  ;;  %5367 = vmatpush.bf16.msrb.mxu0 %v9197_v15  ;;  %v9223_v15 = vld [vmem:[%s12274_s9 + $0x30] sm:$0xff] }
 0x5e3   : > { %5006 = vst [vmem:[#allocation1 + $0x2] ss:$4 sm:$0xff] %v4836_v20 }
 0x5e4   : > { %5009 = vst [vmem:[#allocation1 + $0x3] ss:$4 sm:$0xff] %v4849_v40  ;;  %5395 = vmatpush.bf16.msrb.mxu3 %v9213_v63  ;;  %5378 = vmatpush.bf16.msrb.mxu1 %v9208_v16 }
 0x5e8   : > { %5379 = vmatpush.bf16.msrb.mxu1 %v9207_v39 }
 0x5eb   : > { %v5010_v1 = vld.sshfl [vmem:[#allocation1] sm:$0xff pattern:$0x73625140] }
 0x5ec   : > { %5015 = vst [vmem:[#allocation1] ss:$4 sm:$0xff] %v4893_v46  ;;  %5012 = vrot.lane.b32.xlu0 %v5010_v1, %s12545_s27 }
 0x5ed   : > { %5018 = vst [vmem:[#allocation1 + $0x1] ss:$4 sm:$0xff] %v4897_v41  ;;  %v9227_v41 = vld [vmem:[%s12274_s9 + $0x50] sm:$0xff] }
 0x5ee   : > { %5021 = vst [vmem:[#allocation1 + $0x2] ss:$4 sm:$0xff] %v4901_v23  ;;  %v5431_v23 = vld [vmem:[#allocation4 + $0x4] sm:$0x7] }
 0x5ef   : > { %5024 = vst [vmem:[#allocation1 + $0x3] ss:$4 sm:$0xff] %v4905_v43  ;;  %v9224_v43 = vld [vmem:[%s12274_s9 + $0x38] sm:$0xff] }
 0x5f0   : > { %6605 = vmatpush.bf16.msra.mxu2 %v9224_v43 }
 0x5f4   : > { %6606 = vmatpush.bf16.msra.mxu2 %v9223_v15 }
 0x5f6   : > { %v5025_v49 = vld.sshfl [vmem:[#allocation1] sm:$0xff pattern:$0x73625140] }
 0x5f7   : > { %5909 = vst [vmem:[#allocation1] ss:$4 sm:$0xff] %v5464_v52 }
 0x5f8   : > { %6607 = vmatpush.bf16.msra.mxu2 %v9222_v50 }
 0x5fc   : > { %6608 = vmatpush.bf16.msra.mxu2 %v9221_v62 }
 0x61c   : > { %v4932_v55 = vpop.permute.xlu0 %4931 }
 0x61d   : > { %v5027_v21 = vsel %vm4043_vm14, %v11336_v9, %v4932_v55  ;;  %v9206_v9 = vld [vmem:[%s12272_s7 + $0xc8] sm:$0xff]  ;;  %v5476_v55 = vrot.slane %v5468_v31, 2 }
 0x61e   : > { %5340 = vmatmul.bf16.vlgmr.msra.gmra.mxu3 %v5027_v21  ;;  %5380 = vmatpush.bf16.msrb.mxu1 %v9206_v9  ;;  %v9232_v9 = vld [vmem:[%s12274_s9 + $0x78] sm:$0xff] }
 0x61f   : > { %6619 = vmatpush.bf16.msra.mxu3 %v9232_v9  ;;  %v5556_v9 = vld [vmem:[#allocation4] sm:$0x6] }
 0x622   : > { %5381 = vmatpush.bf16.msrb.mxu1 %v9205_v47  ;;  %v5482_v47 = vsel %vm837_vm0, %v5468_v31, %v5476_v55 }
 0x62e   : > { %8620 = vmatmul.msk.bf16.vlgmr.msrb.gmra.mxu3 %vm4043_vm14, %v5025_v49  ;;  %v5440_v49 = vld [vmem:[#allocation4 + $0x8] sm:$0x7] }
 0x630   : > { %v4986_v40 = vpop.permute.xlu2 %4985 }
 0x631   : > { %v5033_v56 = vsel %vm4043_vm14, %v11390_v44, %v4986_v40  ;;  %v9220_v40 = vld [vmem:[%s12274_s9 + $0x18] sm:$0xff] }
 0x632   : > { %5368 = vmatmul.bf16.vlgmr.msrb.gmra.mxu0 %v5033_v56  ;;  %v4959_v18 = vpop.permute.xlu1 %4958  ;;  %6609 = vmatpush.bf16.msra.mxu2 %v9220_v40 }
 0x633   : > { %v5030_v17 = vsel %vm4043_vm14, %v11368_v35, %v4959_v18 }
 0x634   : > { %5354 = vmatmul.bf16.vlgmr.msrb.gmra.mxu2 %v5030_v17  ;;  %v9231_v17 = vld [vmem:[%s12274_s9 + $0x70] sm:$0xff] }
 0x635   : > { %6620 = vmatpush.bf16.msra.mxu3 %v9231_v17  ;;  %v9246_v17 = vld [vmem:[%s12274_s9 + $0xe8] sm:$0xff] }
 0x65e   : > { %v5013_v45 = vpop.permute.xlu0 %5012 }
 0x65f   : > { %v5036_v20 = vsel %vm4043_vm14, %v11436_v42, %v5013_v45  ;;  %v9219_v45 = vld [vmem:[%s12274_s9 + $0x10] sm:$0xff] }
 0x660   : > { %5382 = vmatmul.bf16.vlgmr.msrb.gmra.mxu1 %v5036_v20  ;;  %v5504_v20 = vshrl.u32 %v5482_v47, 16  ;;  %6610 = vmatpush.bf16.msra.mxu2 %v9219_v45 }
 0x6a1   : > { %v5341_v28 = vpop.f32.mrf.mxu3 }
 0x6a2   : > { %v5342_v44 = vadd.f32 %v9386_v59, %v5341_v28  ;;  %v5507_v28 = vshll.u32 %v5482_v47, 16 }
 0x6a9   : > { %v5343_v37 = vpop.f32.mrf.mxu3 }
 0x6aa   : > { %v5344_v60 = vadd.f32 %v9386_v59, %v5343_v37  ;;  %v9240_v59 = vld [vmem:[%s12274_s9 + $0xb8] sm:$0xff]  ;;  %v5483_v37 = vsel %vm841_vm1, %v5468_v31, %v5476_v55 }
 0x6ab   : > { %6633 = vmatpush.bf16.msra.mxu0 %v9240_v59  ;;  %v9255_v59 = vld [vmem:[%s12274_s9 + $0x130] sm:$0xff] }
 0x6af   : > { %v5369_v2 = vpop.f32.mrf.mxu0 }
 0x6b1   : > { %v5397_v51 = vpop.f32.mrf.mxu3 }
 0x6b7   : > { %v5355_v10 = vpop.f32.mrf.mxu2  ;;  %v5371_v36 = vpop.f32.mrf.mxu0 }
 0x6b8   : > { %v5356_v25 = vadd.f32 %v5355_v10, %v5342_v44 }
 0x6b9   : > { %v5399_v3 = vpop.f32.mrf.mxu3 }
 0x6ba   : > { %v5370_v27 = vadd.f32 %v5369_v2, %v5356_v25 }
 0x6bf   : > { %v5357_v32 = vpop.f32.mrf.mxu2 }
 0x6c0   : > { %v5358_v8 = vadd.f32 %v5357_v32, %v5344_v60  ;;  %v9218_v32 = vld [vmem:[%s12274_s9 + $0x8] sm:$0xff]  ;;  %v5506_v60 = vrot.slane %v5504_v20, 6 }
 0x6c1   : > { %6611 = vmatpush.bf16.msra.mxu2 %v9218_v32 }
 0x6c2   : > { %v5372_v54 = vadd.f32 %v5371_v36, %v5358_v8  ;;  %v9229_v36 = vld [vmem:[%s12274_s9 + $0x60] sm:$0xff] }
 0x6dd   : > { %v5383_v35 = vpop.f32.mrf.mxu1 }
 0x6de   : > { %v5384_v24 = vadd.f32 %v5383_v35, %v5370_v27  ;;  %v9239_v27 = vld [vmem:[%s12274_s9 + $0xb0] sm:$0xff]  ;;  %v5485_v35 = vrot.slane %v5483_v37, 2 }
 0x6df   : > { %6634 = vmatpush.bf16.msra.mxu0 %v9239_v27 }
 0x6e0   : > { %v5398_v34 = vadd.f32 %v5397_v51, %v5384_v24  ;;  %v9230_v51 = vld [vmem:[%s12274_s9 + $0x68] sm:$0xff]  ;;  %v5509_v24 = vrot.slane %v5507_v28, 7 }
 0x6e1   : > { %6621 = vmatpush.bf16.msra.mxu3 %v9230_v51  ;;  %v9226_v28 = vld [vmem:[%s12274_s9 + $0x48] sm:$0xff] }
 0x6e2   : > { %v5402_v42 = vmax.f32 %v5398_v34, 0.0 }
 0x6e4   : > { %v5419_v0 = vpack.c.bf16 %v5402_v42, %v5402_v42 }
 0x6e5   : > { %v5385_v30 = vpop.f32.mrf.mxu1  ;;  %6622 = vmatpush.bf16.msra.mxu3 %v9229_v36  ;;  %v9225_v36 = vld [vmem:[%s12274_s9 + $0x40] sm:$0xff] }
 0x6e6   : > { %v5422_v7 = vshrl.u32 %v5419_v0, 16  ;;  %v5425_v14 = vshll.u32 %v5419_v0, 16  ;;  %v5386_v29 = vadd.f32 %v5385_v30, %v5372_v54  ;;  %v5510_v0 = vor.u32 %v5509_v24, %v5506_v60  ;;  %v9235_v60 = vld [vmem:[%s12274_s9 + $0x90] sm:$0xff]  ;;  %v9245_v24 = vld [vmem:[%s12274_s9 + $0xe0] sm:$0xff] }
 0x6e7   : > { %v5513_v54 = vshll.u32 %v5485_v35, 16 }
 0x6e8   : > { %v5424_v19 = vrot.slane %v5422_v7, 7  ;;  %v5434_v33 = vrot.slane %v5422_v7, 5  ;;  %v5435_v46 = vrot.slane %v5425_v14, 6  ;;  %v5400_v1 = vadd.f32 %v5399_v3, %v5386_v29  ;;  %v9217_v29 = vld [vmem:[%s12274_s9] sm:$0xff] }
 0x6e9   : > { %6612 = vmatpush.bf16.msra.mxu2 %v9217_v29 }
 0x6ea   : > { %v5427_v53 = vor.u32 %v5425_v14, %v5424_v19  ;;  %v5436_v22 = vor.u32 %v5435_v46, %v5434_v33  ;;  %v5403_v52 = vmax.f32 %v5400_v1, 0.0  ;;  %v5461_v46 = vld [vmem:[#allocation4 + $0x10] sm:$0x7] }
 0x6ec   : > { %v5432_v4 = vsel %vm11559_vm2, %v5427_v53, %v5431_v23  ;;  %v5437_v13 = vrot.slane %v5436_v22, 4  ;;  %v11565_v57 = vadd.f32 %v5403_v52, %v5402_v42  ;;  %v5420_v58 = vpack.c.bf16 %v5403_v52, %v5403_v52  ;;  %v9228_v53 = vld [vmem:[%s12274_s9 + $0x58] sm:$0xff]  ;;  %v9238_v22 = vld [vmem:[%s12274_s9 + $0xa8] sm:$0xff] }
 0x6ed   : > { %5433 = vst [vmem:[#allocation4 + $0x4] sm:$0x7] %v5432_v4  ;;  %v9248_v52 = vld [vmem:[%s12274_s9 + $0xf8] sm:$0xff]  ;;  %v5515_v4 = vrot.slane %v5513_v54, 7  ;;  %6635 = vmatpush.bf16.msra.mxu0 %v9238_v22  ;;  %6623 = vmatpush.bf16.msra.mxu3 %v9228_v53 }
 0x6ee   : > { %v5441_v48 = vsel %vm11559_vm2, %v5437_v13, %v5440_v49  ;;  %v5444_v61 = vshrl.u32 %v5420_v58, 16  ;;  %v5447_v63 = vshll.u32 %v5420_v58, 16  ;;  %v5511_v49 = vrot.slane %v5510_v0, 2  ;;  %6647 = vmatpush.bf16.msra.mxu1 %v9248_v52  ;;  %v9244_v53 = vld [vmem:[%s12274_s9 + $0xd8] sm:$0xff]  ;;  %v9253_v52 = vld [vmem:[%s12274_s9 + $0x120] sm:$0xff] }
 0x6ef   : > { %5442 = vst [vmem:[#allocation4 + $0x8] sm:$0x7] %v5441_v48 }
 0x6f0   : > { %v5446_v6 = vrot.slane %v5444_v61, 7  ;;  %v5455_v25 = vrot.slane %v5444_v61, 5  ;;  %v5456_v2 = vrot.slane %v5447_v63, 6 }
 0x6f1   : > { %6624 = vmatpush.bf16.msra.mxu3 %v9227_v41 }
 0x6f2   : > { %v5449_v12 = vor.u32 %v5447_v63, %v5446_v6  ;;  %v5457_v42 = vor.u32 %v5456_v2, %v5455_v25  ;;  %v9237_v6 = vld [vmem:[%s12274_s9 + $0xa0] sm:$0xff]  ;;  %v9247_v63 = vld [vmem:[%s12274_s9 + $0xf0] sm:$0xff]  ;;  %v5564_v2 = vrot.slane %v5556_v9, 2 }
 0x6f3   : > { %6636 = vmatpush.bf16.msra.mxu0 %v9237_v6  ;;  %6648 = vmatpush.bf16.msra.mxu1 %v9247_v63  ;;  %v9233_v6 = vld [vmem:[%s12274_s9 + $0x80] sm:$0xff]  ;;  %v9243_v63 = vld [vmem:[%s12274_s9 + $0xd0] sm:$0xff] }
 0x6f4   : > { %v5465_v21 = vld [vmem:[#allocation4 + $0x4] sm:$0x3]  ;;  %v5453_v39 = vsel %vm11559_vm2, %v5449_v12, %v5452_v38  ;;  %v5458_v33 = vrot.slane %v5457_v42, 4  ;;  %v5570_v29 = vsel %vm837_vm0, %v5556_v9, %v5564_v2 }
 0x6f5   : > { %5912 = vst [vmem:[#allocation1 + $0x1] ss:$4 sm:$0xff] %v5465_v21  ;;  %v5469_v56 = vld [vmem:[#allocation4 + $0x4] sm:$0x7]  ;;  %6625 = vmatpush.bf16.msra.mxu3 %v9226_v28  ;;  %v9242_v28 = vld [vmem:[%s12274_s9 + $0xc8] sm:$0xff] }
 0x6f6   : > { %v5466_v16 = vld [vmem:[#allocation4 + $0x8] sm:$0x3]  ;;  %5454 = vst [vmem:[#allocation4 + $0xc] sm:$0x7] %v5453_v39  ;;  %v5477_v10 = vrot.slane %v5469_v56, 2  ;;  %v5462_v61 = vsel %vm11559_vm2, %v5458_v33, %v5461_v46  ;;  %v5516_v39 = vsel %vm9823_vm8, %v5511_v49, %v5515_v4  ;;  %v9263_v49 = vld [vmem:[%s12274_s9 + $0x170] sm:$0xff] }
 0x6f7   : > { %5915 = vst [vmem:[#allocation1 + $0x2] ss:$4 sm:$0xff] %v5466_v16  ;;  %v5470_v18 = vld [vmem:[#allocation4 + $0x8] sm:$0x7]  ;;  %v5557_v32 = vld [vmem:[#allocation4 + $0x4] sm:$0x6]  ;;  %6649 = vmatpush.bf16.msra.mxu1 %v9246_v17 }
 0x6f8   : > { %v5478_v44 = vrot.slane %v5470_v18, 2  ;;  %v5488_v8 = vsel %vm837_vm0, %v5469_v56, %v5477_v10  ;;  %v5489_v43 = vsel %vm841_vm1, %v5469_v56, %v5477_v10  ;;  %5463 = vst [vmem:[#allocation4 + $0x10] sm:$0x7] %v5462_v61  ;;  %v9256_v21 = vld [vmem:[%s12274_s9 + $0x138] sm:$0xff]  ;;  %v5565_v33 = vrot.slane %v5557_v32, 2 }
 0x6f9   : > { %v5517_v30 = vshrl.u32 %v5488_v8, 16  ;;  %v5520_v7 = vshll.u32 %v5488_v8, 16  ;;  %v5491_v31 = vrot.slane %v5489_v43, 2  ;;  %6661 = vmatpush.bf16.msrb.mxu2 %v9256_v21  ;;  %v5558_v42 = vld [vmem:[#allocation4 + $0x8] sm:$0x6]  ;;  %6626 = vmatpush.bf16.msra.mxu3 %v9225_v36  ;;  %v8621_v4 = vrot.slane %v5570_v29, 9 }
 0x6fa   : > { %v5494_v34 = vsel %vm837_vm0, %v5470_v18, %v5478_v44  ;;  %v5495_v23 = vsel %vm841_vm1, %v5470_v18, %v5478_v44  ;;  %v9236_v18 = vld [vmem:[%s12274_s9 + $0x98] sm:$0xff] }
 0x6fb   : > { %v5530_v3 = vshrl.u32 %v5494_v34, 16  ;;  %v5533_v19 = vshll.u32 %v5494_v34, 16  ;;  %v5519_v13 = vrot.slane %v5517_v30, 6  ;;  %v5522_v58 = vrot.slane %v5520_v7, 7  ;;  %6637 = vmatpush.bf16.msra.mxu0 %v9236_v18  ;;  %v9254_v7 = vld [vmem:[%s12274_s9 + $0x128] sm:$0xff]  ;;  %6650 = vmatpush.bf16.msra.mxu1 %v9245_v24  ;;  %v9241_v24 = vld [vmem:[%s12274_s9 + $0xc0] sm:$0xff] }
 0x6fc   : > { %v5497_v12 = vrot.slane %v5495_v23, 2  ;;  %v5526_v45 = vshll.u32 %v5491_v31, 16  ;;  %v9234_v23 = vld [vmem:[%s12274_s9 + $0x88] sm:$0xff]  ;;  %v11700_v31 = vld [vmem:[#allocation4 + $0x8] sm:$0x7] }
 0x6fd   : > { %v5467_v14 = vld [vmem:[#allocation4 + $0xc] sm:$0x3]  ;;  %v5532_v15 = vrot.slane %v5530_v3, 6  ;;  %v5535_v48 = vrot.slane %v5533_v19, 7  ;;  %v5523_v62 = vor.u32 %v5522_v58, %v5519_v13  ;;  %6662 = vmatpush.bf16.msrb.mxu2 %v9255_v59  ;;  %v5572_v3 = vsel %vm841_vm1, %v5556_v9, %v5564_v2  ;;  %v9260_v29 = vld [vmem:[%s12274_s9 + $0x158] sm:$0xff] }
 0x6fe   : > { %v5471_v1 = vld [vmem:[#allocation4 + $0xc] sm:$0x7]  ;;  %5918 = vst [vmem:[#allocation1 + $0x3] ss:$4 sm:$0xff] %v5467_v14  ;;  %v5539_v20 = vshll.u32 %v5497_v12, 16  ;;  %v5528_v8 = vrot.slane %v5526_v45, 7  ;;  %v5577_v58 = vsel %vm837_vm0, %v5557_v32, %v5565_v33 }
 0x6ff   : > { %v5479_v50 = vrot.slane %v5471_v1, 2  ;;  %v5536_v47 = vor.u32 %v5535_v48, %v5532_v15  ;;  %v5524_v51 = vrot.slane %v5523_v62, 2  ;;  %v5559_v30 = vld [vmem:[#allocation4 + $0xc] sm:$0x6]  ;;  %v9264_v14 = vld [vmem:[%s12274_s9 + $0x178] sm:$0xff]  ;;  %6638 = vmatpush.bf16.msra.mxu0 %v9235_v60  ;;  %v8622_v13 = vrot.slane %v5572_v3, 9  ;;  %6651 = vmatpush.bf16.msra.mxu1 %v9244_v53 }
 0x700   : > { %v5541_v34 = vrot.slane %v5539_v20, 7  ;;  %v5567_v22 = vrot.slane %v5559_v30, 2  ;;  %6675 = vmatpush.bf16.msrb.mxu3 %v9264_v14  ;;  %v5579_v15 = vsel %vm841_vm1, %v5557_v32, %v5565_v33  ;;  %v9252_v62 = vld [vmem:[%s12274_s9 + $0x118] sm:$0xff]  ;;  %v5625_v18 = vrot.slane %v11700_v31, 2  ;;  %v11718_v20 = vld [vmem:[#allocation4 + $0x10] sm:$0x7] }
 0x701   : > { %v5500_v38 = vsel %vm837_vm0, %v5471_v1, %v5479_v50  ;;  %v5501_v55 = vsel %vm841_vm1, %v5471_v1, %v5479_v50  ;;  %v5537_v27 = vrot.slane %v5536_v47, 2  ;;  %v5529_v19 = vsel %vm9823_vm8, %v5524_v51, %v5528_v8  ;;  %6663 = vmatpush.bf16.msrb.mxu2 %v9254_v7  ;;  %v5616_v50 = vld [vmem:[#allocation4 + $0x4] sm:$0x7]  ;;  %v9261_v32 = vld [vmem:[%s12274_s9 + $0x160] sm:$0xff]  ;;  %v9270_v8 = vld [vmem:[%s12274_s9 + $0x1a8] sm:$0xff] }
 0x702   : > { %v5503_v16 = vrot.slane %v5501_v55, 2  ;;  %v5543_v40 = vshrl.u32 %v5500_v38, 16  ;;  %v5546_v56 = vshll.u32 %v5500_v38, 16  ;;  %v5566_v1 = vrot.slane %v5558_v42, 2  ;;  %v9272_v38 = vld [vmem:[%s12274_s9 + $0x1b8] sm:$0xff] }
 0x703   : > { %v5542_v46 = vsel %vm9823_vm8, %v5537_v27, %v5541_v34  ;;  %6639 = vmatpush.bf16.msra.mxu0 %v9234_v23  ;;  %v5591_v12 = vsel %vm837_vm0, %v5559_v30, %v5567_v22  ;;  %v5593_v41 = vsel %vm841_vm1, %v5559_v30, %v5567_v22  ;;  %v8623_v55 = vrot.slane %v5577_v58, 9  ;;  %6652 = vmatpush.bf16.msra.mxu1 %v9243_v63  ;;  %v9280_v34 = vld [vmem:[%s12274_s9 + $0x1f8] sm:$0xff]  ;;  %v5614_v58 = vld [vmem:[#allocation4 + $0xc] sm:$0x3] }
 0x704   : > { %v5545_v37 = vrot.slane %v5543_v40, 6  ;;  %v5548_v10 = vrot.slane %v5546_v56, 7  ;;  %v5552_v44 = vshll.u32 %v5503_v16, 16  ;;  %v5584_v48 = vsel %vm837_vm0, %v5558_v42, %v5566_v1  ;;  %6676 = vmatpush.bf16.msrb.mxu3 %v9263_v49  ;;  %v11712_v40 = vld [vmem:[#allocation4 + $0xc] sm:$0x7]  ;;  %v9262_v56 = vld [vmem:[%s12274_s9 + $0x168] sm:$0xff] }
 0x705   : > { %v5919_v25 = vld.sshfl [vmem:[#allocation1] sm:$0xff pattern:$0x73625140]  ;;  %v5586_v61 = vsel %vm841_vm1, %v5558_v42, %v5566_v1  ;;  %v8624_v21 = vrot.slane %v5579_v15, 9  ;;  %6664 = vmatpush.bf16.msrb.mxu2 %v9253_v52  ;;  %v5599_v16 = vsel %vm10621_vm15, %v8621_v4, %v8622_v13  ;;  %v5624_v47 = vrot.slane %v5616_v50, 2  ;;  %v9279_v1 = vld [vmem:[%s12274_s9 + $0x1f0] sm:$0xff] }
 0x706   : > { %5922 = vst [vmem:[#allocation1] ss:$4 sm:$0xff] %v5516_v39  ;;  %6613 = vmatmul.bf16.vlgmr.msra.gmra.mxu2 %v5919_v25  ;;  %v5549_v35 = vor.u32 %v5548_v10, %v5545_v37  ;;  %v5554_v54 = vrot.slane %v5552_v44, 7  ;;  %v8625_v39 = vrot.slane %v5584_v48, 9  ;;  %v8626_v9 = vrot.slane %v5586_v61, 9  ;;  %v9271_v37 = vld [vmem:[%s12274_s9 + $0x1b0] sm:$0xff] }
 0x707   : > { %5925 = vst [vmem:[#allocation1 + $0x1] ss:$4 sm:$0xff] %v5529_v19  ;;  %v8627_v17 = vrot.slane %v5591_v12, 9  ;;  %v8628_v45 = vrot.slane %v5593_v41, 9  ;;  %6640 = vmatpush.bf16.msra.mxu0 %v9233_v6  ;;  %v5603_v10 = vsel %vm10621_vm15, %v8623_v55, %v8624_v21  ;;  %v5626_v44 = vrot.slane %v11712_v40, 2  ;;  %v9251_v25 = vld [vmem:[%s12274_s9 + $0x110] sm:$0xff]  ;;  %6653 = vmatpush.bf16.msra.mxu1 %v9242_v28 }
 0x708   : > { %v5550_v0 = vrot.slane %v5549_v35, 2  ;;  %5928 = vst [vmem:[#allocation1 + $0x2] ss:$4 sm:$0xff] %v5542_v46  ;;  %v5607_v2 = vsel %vm10621_vm15, %v8625_v39, %v8626_v9  ;;  %v5630_v51 = vsel %vm837_vm0, %v5616_v50, %v5624_v47  ;;  %v5627_v27 = vrot.slane %v11718_v20, 2  ;;  %6677 = vmatpush.bf16.msrb.mxu3 %v9262_v56  ;;  %v9249_v52 = vld [vmem:[%s12274_s9 + $0x100] sm:$0xff]  ;;  %v9259_v15 = vld [vmem:[%s12274_s9 + $0x150] sm:$0xff] }
 0x709   : > { %6665 = vmatpush.bf16.msrb.mxu2 %v9252_v62  ;;  %v5636_v35 = vsel %vm837_vm0, %v11700_v31, %v5625_v18  ;;  %v5611_v60 = vsel %vm10621_vm15, %v8627_v17, %v8628_v45  ;;  %v5631_v42 = vsel %vm841_vm1, %v5616_v50, %v5624_v47  ;;  %v5652_v36 = vshrl.u32 %v5630_v51, 16  ;;  %v9269_v49 = vld [vmem:[%s12274_s9 + $0x1a0] sm:$0xff]  ;;  %v9288_v48 = vld [vmem:[%s12274_s9 + $0x238] sm:$0xff]  ;;  %v9278_v62 = vld [vmem:[%s12274_s9 + $0x1e8] sm:$0xff] }
 0x70a   : > { %v5555_v43 = vsel %vm9823_vm8, %v5550_v0, %v5554_v54  ;;  %v5642_v0 = vsel %vm837_vm0, %v11712_v40, %v5626_v44  ;;  %v9250_v54 = vld [vmem:[%s12274_s9 + $0x108] sm:$0xff]  ;;  %v5655_v30 = vshll.u32 %v5630_v51, 16  ;;  %v5665_v7 = vshrl.u32 %v5636_v35, 16  ;;  %v5612_v61 = vld [vmem:[#allocation4 + $0x4] sm:$0x3]  ;;  %v9257_v51 = vld [vmem:[%s12274_s9 + $0x140] sm:$0xff] }
 0x70b   : > { %5931 = vst [vmem:[#allocation1 + $0x3] ss:$4 sm:$0xff] %v5555_v43  ;;  %6689 = vmatpush.bf16.msrb.mxu0 %v9272_v38  ;;  %v5648_v14 = vsel %vm837_vm0, %v11718_v20, %v5627_v27  ;;  %v5668_v3 = vshll.u32 %v5636_v35, 16  ;;  %6654 = vmatpush.bf16.msra.mxu1 %v9241_v24  ;;  %v5633_v19 = vrot.slane %v5631_v42, 2  ;;  %v5678_v33 = vshrl.u32 %v5642_v0, 16  ;;  %v9268_v9 = vld [vmem:[%s12274_s9 + $0x198] sm:$0xff] }
 0x70c   : > { %6678 = vmatpush.bf16.msrb.mxu3 %v9261_v32  ;;  %v5681_v46 = vshll.u32 %v5642_v0, 16  ;;  %v5637_v43 = vsel %vm841_vm1, %v11700_v31, %v5625_v18  ;;  %v5654_v23 = vrot.slane %v5652_v36, 6  ;;  %v5691_v53 = vshrl.u32 %v5648_v14, 16  ;;  %v5615_v6 = vld [vmem:[#allocation4 + $0x10] sm:$0x3]  ;;  %v9258_v56 = vld [vmem:[%s12274_s9 + $0x148] sm:$0xff] }
 0x70d   : > { %6666 = vmatpush.bf16.msrb.mxu2 %v9251_v25  ;;  %v5694_v22 = vshll.u32 %v5648_v14, 16  ;;  %v5657_v4 = vrot.slane %v5655_v30, 7  ;;  %v5667_v13 = vrot.slane %v5665_v7, 6  ;;  %v5670_v50 = vrot.slane %v5668_v3, 7  ;;  %v5613_v12 = vld [vmem:[#allocation4 + $0x8] sm:$0x3] }
 0x70e   : > { %v5643_v63 = vsel %vm841_vm1, %v11712_v40, %v5626_v44  ;;  %v5639_v41 = vrot.slane %v5637_v43, 2  ;;  %v5649_v38 = vsel %vm841_vm1, %v11718_v20, %v5627_v27  ;;  %v5680_v55 = vrot.slane %v5678_v33, 6  ;;  %v9287_v18 = vld [vmem:[%s12274_s9 + $0x230] sm:$0xff]  ;;  %v9286_v27 = vld [vmem:[%s12274_s9 + $0x228] sm:$0xff]  ;;  %v5704_v35 = vld [vmem:[#allocation4 + $0x4] sm:$0x6] }
 0x70f   : > { %6690 = vmatpush.bf16.msrb.mxu0 %v9271_v37  ;;  %6703 = vmatpush.bf16.msrb.mxu1 %v9280_v34  ;;  %v5683_v21 = vrot.slane %v5681_v46, 7  ;;  %v5696_v39 = vrot.slane %v5694_v22, 7  ;;  %v5658_v47 = vor.u32 %v5657_v4, %v5654_v23  ;;  %v5645_v40 = vrot.slane %v5643_v63, 2  ;;  %v9277_v37 = vld [vmem:[%s12274_s9 + $0x1e0] sm:$0xff]  ;;  %v9267_v44 = vld [vmem:[%s12274_s9 + $0x190] sm:$0xff]  ;;  %v9276_v36 = vld [vmem:[%s12274_s9 + $0x1d8] sm:$0xff] }
 0x710   : > { %6679 = vmatpush.bf16.msrb.mxu3 %v9260_v29  ;;  %v5671_v17 = vor.u32 %v5670_v50, %v5667_v13  ;;  %v5651_v45 = vrot.slane %v5649_v38, 2  ;;  %v5661_v20 = vshll.u32 %v5633_v19, 16  ;;  %v5674_v28 = vshll.u32 %v5639_v41, 16  ;;  %v5705_v34 = vld [vmem:[#allocation4 + $0x8] sm:$0x6]  ;;  %v9266_v7 = vld [vmem:[%s12274_s9 + $0x188] sm:$0xff] }
 0x711   : > { %6667 = vmatpush.bf16.msrb.mxu2 %v9250_v54  ;;  %v5659_v25 = vrot.slane %v5658_v47, 2  ;;  %v5706_v54 = vld [vmem:[#allocation4 + $0xc] sm:$0x6]  ;;  %v5707_v30 = vld [vmem:[#allocation4 + $0x10] sm:$0x6]  ;;  %v5712_v29 = vrot.slane %v5704_v35, 2 }
 0x712   : > { %v5932_v59 = vld.sshfl [vmem:[#allocation1] sm:$0xff pattern:$0x73625140]  ;;  %v5672_v32 = vrot.slane %v5671_v17, 2  ;;  %v5663_v24 = vrot.slane %v5661_v20, 7  ;;  %v9275_v22 = vld [vmem:[%s12274_s9 + $0x1d0] sm:$0xff] }
 0x713   : > { %5935 = vst [vmem:[#allocation1] ss:$4 sm:$0xff] %v5599_v16  ;;  %6627 = vmatmul.bf16.vlgmr.msra.gmra.mxu3 %v5932_v59  ;;  %6691 = vmatpush.bf16.msrb.mxu0 %v9270_v8  ;;  %v5693_v16 = vrot.slane %v5691_v53, 6  ;;  %v5684_v59 = vor.u32 %v5683_v21, %v5680_v55  ;;  %v5676_v8 = vrot.slane %v5674_v28, 7  ;;  %v9285_v33 = vld [vmem:[%s12274_s9 + $0x220] sm:$0xff]  ;;  %v5714_v53 = vrot.slane %v5706_v54, 2 }
 0x714   : > { %5938 = vst [vmem:[#allocation1 + $0x1] ss:$4 sm:$0xff] %v5603_v10  ;;  %6704 = vmatpush.bf16.msrb.mxu1 %v9279_v1  ;;  %6680 = vmatpush.bf16.msrb.mxu3 %v9259_v15  ;;  %v5664_v14 = vsel %vm9823_vm8, %v5659_v25, %v5663_v24  ;;  %v5713_v1 = vrot.slane %v5705_v34, 2  ;;  %v9265_v4 = vld [vmem:[%s12274_s9 + $0x180] sm:$0xff]  ;;  %v5718_v13 = vsel %vm837_vm0, %v5704_v35, %v5712_v29  ;;  %v5767_v50 = vld [vmem:[#allocation4 + $0x14] sm:$0x7] }
 0x715   : > { %5941 = vst [vmem:[#allocation1 + $0x2] ss:$4 sm:$0xff] %v5607_v2  ;;  %6668 = vmatpush.bf16.msrb.mxu2 %v9249_v52  ;;  %v5697_v10 = vor.u32 %v5696_v39, %v5693_v16  ;;  %v5687_v2 = vshll.u32 %v5645_v40, 16  ;;  %v5685_v42 = vrot.slane %v5684_v59, 2  ;;  %v5677_v46 = vsel %vm9823_vm8, %v5672_v32, %v5676_v8  ;;  %v5764_v38 = vld [vmem:[#allocation4 + $0x8] sm:$0x7] }
 0x716   : > { %5944 = vst [vmem:[#allocation1 + $0x3] ss:$4 sm:$0xff] %v5611_v60  ;;  %v5700_v60 = vshll.u32 %v5651_v45, 16  ;;  %v5725_v15 = vsel %vm837_vm0, %v5705_v34, %v5713_v1  ;;  %v5734_v63 = vsel %vm841_vm1, %v5706_v54, %v5714_v53  ;;  %v5765_v39 = vld [vmem:[#allocation4 + $0xc] sm:$0x7]  ;;  %v5772_v17 = vrot.slane %v5764_v38, 2 }
 0x717   : > { %6692 = vmatpush.bf16.msrb.mxu0 %v9269_v49  ;;  %v5698_v0 = vrot.slane %v5697_v10, 2  ;;  %v5689_v3 = vrot.slane %v5687_v2, 7  ;;  %v5715_v49 = vrot.slane %v5707_v30, 2  ;;  %v8634_v40 = vrot.slane %v5734_v63, 9  ;;  %v9273_v28 = vld [vmem:[%s12274_s9 + $0x1c0] sm:$0xff] }
 0x718   : > { %6705 = vmatpush.bf16.msrb.mxu1 %v9278_v62  ;;  %6681 = vmatpush.bf16.msrb.mxu3 %v9258_v56  ;;  %v5702_v43 = vrot.slane %v5700_v60, 7  ;;  %v8631_v62 = vrot.slane %v5725_v15, 9  ;;  %v5766_v56 = vld [vmem:[#allocation4 + $0x10] sm:$0x7]  ;;  %v9282_v60 = vld [vmem:[%s12274_s9 + $0x208] sm:$0xff] }
 0x719   : > { %6717 = vmatpush.bf16.msra.mxu2 %v9288_v48  ;;  %v5690_v23 = vsel %vm9823_vm8, %v5685_v42, %v5689_v3  ;;  %v5727_v48 = vsel %vm841_vm1, %v5705_v34, %v5713_v1  ;;  %v5739_v55 = vsel %vm837_vm0, %v5707_v30, %v5715_v49  ;;  %v5741_v21 = vsel %vm841_vm1, %v5707_v30, %v5715_v49  ;;  %v5760_v1 = vld [vmem:[#allocation4 + $0x8] sm:$0x3] }
 0x71a   : > { %v5703_v52 = vsel %vm9823_vm8, %v5698_v0, %v5702_v43  ;;  %v8632_v16 = vrot.slane %v5727_v48, 9  ;;  %v8635_v45 = vrot.slane %v5739_v55, 9  ;;  %v8636_v20 = vrot.slane %v5741_v21, 9  ;;  %v9281_v0 = vld [vmem:[%s12274_s9 + $0x200] sm:$0xff] }
 0x71b   : > { %6693 = vmatpush.bf16.msrb.mxu0 %v9268_v9  ;;  %v5775_v9 = vrot.slane %v5767_v50, 2  ;;  %v5774_v25 = vrot.slane %v5766_v56, 2 }
 0x71c   : > { %6706 = vmatpush.bf16.msrb.mxu1 %v9277_v37  ;;  %6682 = vmatpush.bf16.msrb.mxu3 %v9257_v51  ;;  %v5773_v37 = vrot.slane %v5765_v39, 2  ;;  %v5759_v32 = vsel %vm10621_vm15, %v8635_v45, %v8636_v20  ;;  %v5853_v20 = vld [vmem:[#allocation4 + $0xc] sm:$0x6] }
 0x71d   : > { %v5945_v31 = vld.sshfl [vmem:[#allocation1] sm:$0xff pattern:$0x73625140]  ;;  %6718 = vmatpush.bf16.msra.mxu2 %v9287_v18  ;;  %v9283_v18 = vld [vmem:[%s12274_s9 + $0x210] sm:$0xff]  ;;  %v5796_v2 = vsel %vm837_vm0, %v5767_v50, %v5775_v9  ;;  %v5790_v8 = vsel %vm837_vm0, %v5766_v56, %v5774_v25  ;;  %v5797_v34 = vsel %vm841_vm1, %v5767_v50, %v5775_v9  ;;  %v5791_v49 = vsel %vm841_vm1, %v5766_v56, %v5774_v25 }
 0x71e   : > { %5954 = vst [vmem:[#allocation1 + $0x2] ss:$4 sm:$0xff] %v5614_v58  ;;  %6641 = vmatmul.bf16.vlgmr.msra.gmra.mxu0 %v5945_v31  ;;  %v5720_v58 = vsel %vm841_vm1, %v5704_v35, %v5712_v29  ;;  %v9274_v31 = vld [vmem:[%s12274_s9 + $0x1c8] sm:$0xff]  ;;  %v5784_v35 = vsel %vm837_vm0, %v5765_v39, %v5773_v37  ;;  %v5839_v24 = vshrl.u32 %v5796_v2, 16  ;;  %v5829_v29 = vshll.u32 %v5790_v8, 16 }
 0x71f   : > { %5957 = vst [vmem:[#allocation1 + $0x3] ss:$4 sm:$0xff] %v5615_v6  ;;  %6694 = vmatpush.bf16.msrb.mxu0 %v9267_v44  ;;  %v5732_v6 = vsel %vm837_vm0, %v5706_v54, %v5714_v53  ;;  %v8630_v41 = vrot.slane %v5720_v58, 9  ;;  %v5751_v44 = vsel %vm10621_vm15, %v8631_v62, %v8632_v16  ;;  %v5842_v54 = vshll.u32 %v5796_v2, 16  ;;  %v5761_v53 = vld [vmem:[#allocation4 + $0xc] sm:$0x3] }
 0x720   : > { %5948 = vst [vmem:[#allocation1] ss:$4 sm:$0xff] %v5612_v61  ;;  %6707 = vmatpush.bf16.msrb.mxu1 %v9276_v36  ;;  %v9284_v61 = vld [vmem:[%s12274_s9 + $0x218] sm:$0xff]  ;;  %v8633_v47 = vrot.slane %v5732_v6, 9  ;;  %v5813_v30 = vshrl.u32 %v5784_v35, 16  ;;  %v5799_v3 = vrot.slane %v5797_v34, 2 }
 0x721   : > { %5951 = vst [vmem:[#allocation1 + $0x1] ss:$4 sm:$0xff] %v5613_v12  ;;  %6719 = vmatpush.bf16.msra.mxu2 %v9286_v27  ;;  %v8629_v12 = vrot.slane %v5718_v13, 9  ;;  %v5778_v27 = vsel %vm837_vm0, %v5764_v38, %v5772_v17  ;;  %v5762_v50 = vld [vmem:[#allocation4 + $0x10] sm:$0x3] }
 0x722   : > { %v5755_v51 = vsel %vm10621_vm15, %v8633_v47, %v8634_v40  ;;  %v5800_v42 = vshrl.u32 %v5778_v27, 16  ;;  %v5803_v36 = vshll.u32 %v5778_v27, 16  ;;  %v5852_v40 = vld [vmem:[#allocation4 + $0x8] sm:$0x6] }
 0x723   : > { %6695 = vmatpush.bf16.msrb.mxu0 %v9266_v7  ;;  %v5747_v59 = vsel %vm10621_vm15, %v8629_v12, %v8630_v41  ;;  %v5816_v7 = vshll.u32 %v5784_v35, 16  ;;  %v5848_v41 = vshll.u32 %v5799_v3, 16 }
 0x724   : > { %6708 = vmatpush.bf16.msrb.mxu1 %v9275_v22  ;;  %v5802_v43 = vrot.slane %v5800_v42, 6  ;;  %v5785_v22 = vsel %vm841_vm1, %v5765_v39, %v5773_v37 }
 0x725   : > { %6720 = vmatpush.bf16.msra.mxu2 %v9285_v33  ;;  %v5779_v33 = vsel %vm841_vm1, %v5764_v38, %v5772_v17  ;;  %v5818_v13 = vrot.slane %v5816_v7, 7  ;;  %v5787_v6 = vrot.slane %v5785_v22, 2  ;;  %v5850_v47 = vrot.slane %v5848_v41, 7 }
 0x726   : > { %v5781_v15 = vrot.slane %v5779_v33, 2 }
 0x727   : > { %6696 = vmatpush.bf16.msrb.mxu0 %v9265_v4  ;;  %v5815_v4 = vrot.slane %v5813_v30, 6  ;;  %v5822_v62 = vshll.u32 %v5787_v6, 16 }
 0x728   : > { %v5958_v19 = vld.sshfl [vmem:[#allocation1] sm:$0xff pattern:$0x73625140]  ;;  %6709 = vmatpush.bf16.msrb.mxu1 %v9274_v31  ;;  %v5793_v31 = vrot.slane %v5791_v49, 2  ;;  %v5809_v55 = vshll.u32 %v5781_v15, 16 }
 0x729   : > { %6655 = vmatmul.bf16.vlgmr.msra.gmra.mxu1 %v5958_v19  ;;  %5961 = vst [vmem:[#allocation1] ss:$4 sm:$0xff] %v5664_v14  ;;  %6721 = vmatpush.bf16.msra.mxu2 %v9284_v61  ;;  %v5826_v14 = vshrl.u32 %v5790_v8, 16  ;;  %v5841_v19 = vrot.slane %v5839_v24, 6  ;;  %v5831_v61 = vrot.slane %v5829_v29, 7  ;;  %v5819_v38 = vor.u32 %v5818_v13, %v5815_v4 }
 0x72a   : > { %5964 = vst [vmem:[#allocation1 + $0x1] ss:$4 sm:$0xff] %v5677_v46  ;;  %v5763_v46 = vld [vmem:[#allocation4 + $0x14] sm:$0x3]  ;;  %v5835_v39 = vshll.u32 %v5793_v31, 16  ;;  %v5811_v17 = vrot.slane %v5809_v55, 7 }
 0x72b   : > { %5967 = vst [vmem:[#allocation1 + $0x2] ss:$4 sm:$0xff] %v5690_v23  ;;  %v5805_v23 = vrot.slane %v5803_v36, 7  ;;  %v5828_v48 = vrot.slane %v5826_v14, 6  ;;  %v5820_v56 = vrot.slane %v5819_v38, 2 }
 0x72c   : > { %5970 = vst [vmem:[#allocation1 + $0x3] ss:$4 sm:$0xff] %v5703_v52  ;;  %6710 = vmatpush.bf16.msrb.mxu1 %v9273_v28  ;;  %v5844_v52 = vrot.slane %v5842_v54, 7  ;;  %v5824_v28 = vrot.slane %v5822_v62, 7  ;;  %v6773_v49 = vld [vmem:[#allocation3] sm:$0x3] }
 0x72d   : > { %6722 = vmatpush.bf16.msra.mxu2 %v9283_v18  ;;  %v5806_v63 = vor.u32 %v5805_v23, %v5802_v43  ;;  %v5832_v21 = vor.u32 %v5831_v61, %v5828_v48  ;;  %v5855_v18 = vld [vmem:[#allocation4 + $0x14] sm:$0x6] }
 0x72e   : > { %v5845_v12 = vor.u32 %v5844_v52, %v5841_v19  ;;  %v5825_v27 = vsel %vm9823_vm8, %v5820_v56, %v5824_v28 }
 0x72f   : > { %v5807_v16 = vrot.slane %v5806_v63, 2  ;;  %v5833_v45 = vrot.slane %v5832_v21, 2 }
 0x730   : > { %v5846_v9 = vrot.slane %v5845_v12, 2 }
 0x731   : > { %6723 = vmatpush.bf16.msra.mxu2 %v9282_v60  ;;  %v5812_v37 = vsel %vm9823_vm8, %v5807_v16, %v5811_v17 }
 0x732   : > { %v5851_v2 = vsel %vm9823_vm8, %v5846_v9, %v5850_v47 }
 0x733   : > { %v5971_v10 = vld.sshfl [vmem:[#allocation1] sm:$0xff pattern:$0x73625140] }
 0x734   : > { %6669 = vmatmul.bf16.vlgmr.msrb.gmra.mxu2 %v5971_v10  ;;  %5974 = vst [vmem:[#allocation1] ss:$4 sm:$0xff] %v5747_v59  ;;  %v5854_v59 = vld [vmem:[#allocation4 + $0x10] sm:$0x6]  ;;  %v5860_v10 = vrot.slane %v5852_v40, 2 }
 0x735   : > { %5977 = vst [vmem:[#allocation1 + $0x1] ss:$4 sm:$0xff] %v5751_v44  ;;  %6724 = vmatpush.bf16.msra.mxu2 %v9281_v0  ;;  %v5837_v44 = vrot.slane %v5835_v39, 7  ;;  %v5862_v60 = vrot.slane %v5854_v59, 2 }
 0x736   : > { %5980 = vst [vmem:[#allocation1 + $0x2] ss:$4 sm:$0xff] %v5755_v51  ;;  %v5863_v51 = vrot.slane %v5855_v18, 2  ;;  %v5866_v24 = vsel %vm837_vm0, %v5852_v40, %v5860_v10  ;;  %v5868_v8 = vsel %vm841_vm1, %v5852_v40, %v5860_v10 }
 0x737   : > { %5983 = vst [vmem:[#allocation1 + $0x3] ss:$4 sm:$0xff] %v5759_v32  ;;  %v5861_v32 = vrot.slane %v5853_v20, 2  ;;  %v5838_v35 = vsel %vm9823_vm8, %v5833_v45, %v5837_v44  ;;  %v5880_v54 = vsel %vm837_vm0, %v5854_v59, %v5862_v60  ;;  %v5882_v30 = vsel %vm841_vm1, %v5854_v59, %v5862_v60 }
 0x738   : > { %v5887_v34 = vsel %vm837_vm0, %v5855_v18, %v5863_v51  ;;  %v5889_v42 = vsel %vm841_vm1, %v5855_v18, %v5863_v51  ;;  %v8637_v7 = vrot.slane %v5866_v24, 9  ;;  %v8638_v14 = vrot.slane %v5868_v8, 9 }
 0x739   : > { %v5873_v36 = vsel %vm837_vm0, %v5853_v20, %v5861_v32  ;;  %v5875_v0 = vsel %vm841_vm1, %v5853_v20, %v5861_v32  ;;  %v8643_v29 = vrot.slane %v5887_v34, 9  ;;  %v8644_v3 = vrot.slane %v5889_v42, 9 }
 0x73a   : > { %v8639_v19 = vrot.slane %v5873_v36, 9  ;;  %v8640_v33 = vrot.slane %v5875_v0, 9  ;;  %v5895_v43 = vsel %vm10621_vm15, %v8637_v7, %v8638_v14 }
 0x73c   : > { %v5899_v22 = vsel %vm10621_vm15, %v8639_v19, %v8640_v33 }
 0x73e   : > { %v5984_v58 = vld.sshfl [vmem:[#allocation1] sm:$0xff pattern:$0x73625140] }
 0x73f   : > { %6683 = vmatmul.bf16.vlgmr.msrb.gmra.mxu3 %v5984_v58  ;;  %5987 = vst [vmem:[#allocation1] ss:$4 sm:$0xff] %v5760_v1  ;;  %v8642_v1 = vrot.slane %v5882_v30, 9 }
 0x740   : > { %5990 = vst [vmem:[#allocation1 + $0x1] ss:$4 sm:$0xff] %v5761_v53  ;;  %v5907_v53 = vsel %vm10621_vm15, %v8643_v29, %v8644_v3  ;;  %v6743_v29 = vld [vmem:[#allocation3 + $0x4] sm:$0x7] }
 0x741   : > { %5993 = vst [vmem:[#allocation1 + $0x2] ss:$4 sm:$0xff] %v5762_v50  ;;  %v9387_v50 = vld [vmem:[%s12275_s10] ss:$0 sm:$0xff] }
 0x742   : > { %5996 = vst [vmem:[#allocation1 + $0x3] ss:$4 sm:$0xff] %v5763_v46  ;;  %v8641_v46 = vrot.slane %v5880_v54, 9 }
 0x744   : > { %v5903_v52 = vsel %vm10621_vm15, %v8641_v46, %v8642_v1  ;;  %v6751_v46 = vld [vmem:[#allocation3 + $0x8] sm:$0x7] }
 0x749   : > { %v5997_v25 = vld.sshfl [vmem:[#allocation1] sm:$0xff pattern:$0x73625140] }
 0x74a   : > { %6697 = vmatmul.bf16.vlgmr.msrb.gmra.mxu0 %v5997_v25  ;;  %6000 = vst [vmem:[#allocation1] ss:$4 sm:$0xff] %v5812_v37 }
 0x74b   : > { %6003 = vst [vmem:[#allocation1 + $0x1] ss:$4 sm:$0xff] %v5825_v27 }
 0x74c   : > { %6006 = vst [vmem:[#allocation1 + $0x2] ss:$4 sm:$0xff] %v5838_v35 }
 0x74d   : > { %6009 = vst [vmem:[#allocation1 + $0x3] ss:$4 sm:$0xff] %v5851_v2 }
 0x754   : > { %v6010_v23 = vld.sshfl [vmem:[#allocation1] sm:$0xff pattern:$0x73625140] }
 0x755   : > { %6711 = vmatmul.bf16.vlgmr.msrb.gmra.mxu1 %v6010_v23  ;;  %6013 = vst [vmem:[#allocation1] ss:$4 sm:$0xff] %v5895_v43 }
 0x756   : > { %6016 = vst [vmem:[#allocation1 + $0x1] ss:$4 sm:$0xff] %v5899_v22  ;;  %v6777_v22 = vld [vmem:[#allocation3] sm:$0x7] }
 0x757   : > { %6019 = vst [vmem:[#allocation1 + $0x2] ss:$4 sm:$0xff] %v5903_v52 }
 0x758   : > { %6022 = vst [vmem:[#allocation1 + $0x3] ss:$4 sm:$0xff] %v5907_v53 }
 0x75f   : > { %v6023_v4 = vld.sshfl [vmem:[#allocation1] sm:$0xff pattern:$0x73625140] }
 0x760   : > { %6725 = vmatmul.bf16.vlgmr.msra.gmra.mxu2 %v6023_v4  ;;  %7218 = vst [vmem:[#allocation1] ss:$4 sm:$0xff] %v6773_v49  ;;  %v6785_v49 = vrot.slane %v6777_v22, 2 }
 0x789   : > { %v6614_v13 = vpop.f32.mrf.mxu2 }
 0x78a   : > { %v6615_v63 = vadd.f32 %v9387_v50, %v6614_v13 }
 0x791   : > { %v6616_v15 = vpop.f32.mrf.mxu2 }
 0x792   : > { %v6617_v62 = vadd.f32 %v9387_v50, %v6616_v15 }
 0x796   : > { %v6628_v58 = vpop.f32.mrf.mxu3 }
 0x797   : > { %v6629_v12 = vadd.f32 %v6628_v58, %v6615_v63  ;;  %v6762_v58 = vld [vmem:[#allocation3 + $0xc] sm:$0x7] }
 0x79b   : > { %v6642_v48 = vpop.f32.mrf.mxu0 }
 0x79c   : > { %v6643_v55 = vadd.f32 %v6642_v48, %v6629_v12  ;;  %v6791_v48 = vsel %vm837_vm0, %v6777_v22, %v6785_v49 }
 0x79d   : > { %v6813_v63 = vshrl.u32 %v6791_v48, 16  ;;  %v6816_v12 = vshll.u32 %v6791_v48, 16 }
 0x79e   : > { %v6630_v6 = vpop.f32.mrf.mxu3 }
 0x79f   : > { %v6631_v39 = vadd.f32 %v6630_v6, %v6617_v62  ;;  %v6792_v6 = vsel %vm841_vm1, %v6777_v22, %v6785_v49 }
 0x7a3   : > { %v6644_v41 = vpop.f32.mrf.mxu0 }
 0x7a4   : > { %v6645_v17 = vadd.f32 %v6644_v41, %v6631_v39  ;;  %v6818_v39 = vrot.slane %v6816_v12, 7 }
 0x7a6   : > { %v6656_v61 = vpop.f32.mrf.mxu1 }
 0x7a7   : > { %v6657_v16 = vadd.f32 %v6656_v61, %v6643_v55 }
 0x7ae   : > { %v6658_v38 = vpop.f32.mrf.mxu1 }
 0x7af   : > { %v6659_v45 = vadd.f32 %v6658_v38, %v6645_v17 }
 0x7b7   : > { %v6670_v31 = vpop.f32.mrf.mxu2 }
 0x7b8   : > { %v6671_v9 = vadd.f32 %v6670_v31, %v6657_v16  ;;  %v6815_v16 = vrot.slane %v6813_v63, 6 }
 0x7bf   : > { %v6672_v47 = vpop.f32.mrf.mxu2 }
 0x7c0   : > { %v6673_v59 = vadd.f32 %v6672_v47, %v6659_v45 }
 0x7c2   : > { %v6684_v21 = vpop.f32.mrf.mxu3 }
 0x7c3   : > { %v6685_v56 = vadd.f32 %v6684_v21, %v6671_v9  ;;  %v6794_v21 = vrot.slane %v6792_v6, 2 }
 0x7c5   : > { %v6822_v17 = vshll.u32 %v6794_v21, 16 }
 0x7c7   : > { %v6698_v40 = vpop.f32.mrf.mxu0 }
 0x7c8   : > { %v6699_v20 = vadd.f32 %v6698_v40, %v6685_v56 }
 0x7ca   : > { %v6686_v28 = vpop.f32.mrf.mxu3 }
 0x7cb   : > { %v6687_v44 = vadd.f32 %v6686_v28, %v6673_v59  ;;  %v6819_v59 = vor.u32 %v6818_v39, %v6815_v16 }
 0x7cf   : > { %v6700_v2 = vpop.f32.mrf.mxu0 }
 0x7d0   : > { %v6701_v32 = vadd.f32 %v6700_v2, %v6687_v44 }
 0x7d2   : > { %v6712_v18 = vpop.f32.mrf.mxu1 }
 0x7d3   : > { %v6713_v37 = vadd.f32 %v6712_v18, %v6699_v20 }
 0x7da   : > { %v6714_v27 = vpop.f32.mrf.mxu1 }
 0x7db   : > { %v6715_v60 = vadd.f32 %v6714_v27, %v6701_v32  ;;  %v6824_v27 = vrot.slane %v6822_v17, 7 }
 0x7e3   : > { %v6726_v10 = vpop.f32.mrf.mxu2 }
 0x7e4   : > { %v6727_v25 = vadd.f32 %v6726_v10, %v6713_v37 }
 0x7e6   : > { %v6731_v51 = vmax.f32 %v6727_v25, 0.0 }
 0x7e8   : > { %v6733_v35 = vpack.c.bf16 %v6731_v51, %v6731_v51 }
 0x7ea   : > { %v6736_v24 = vshrl.u32 %v6733_v35, 16  ;;  %v6739_v8 = vshll.u32 %v6733_v35, 16 }
 0x7eb   : > { %v6728_v34 = vpop.f32.mrf.mxu2 }
 0x7ec   : > { %v6738_v42 = vrot.slane %v6736_v24, 7  ;;  %v6746_v36 = vrot.slane %v6736_v24, 5  ;;  %v6747_v0 = vrot.slane %v6739_v8, 6  ;;  %v6729_v54 = vadd.f32 %v6728_v34, %v6715_v60  ;;  %v6770_v60 = vld [vmem:[#allocation3 + $0x10] sm:$0x7] }
 0x7ed   : > { %v6820_v24 = vrot.slane %v6819_v59, 2 }
 0x7ee   : > { %v6741_v30 = vor.u32 %v6739_v8, %v6738_v42  ;;  %v6748_v7 = vor.u32 %v6747_v0, %v6746_v36  ;;  %v6732_v14 = vmax.f32 %v6729_v54, 0.0 }
 0x7f0   : > { %v6744_v3 = vsel %vm11078_vm12, %v6741_v30, %v6743_v29  ;;  %v6749_v19 = vrot.slane %v6748_v7, 4  ;;  %v6734_v33 = vpack.c.bf16 %v6732_v14, %v6732_v14 }
 0x7f1   : > { %6745 = vst [vmem:[#allocation3 + $0x4] sm:$0x7] %v6744_v3  ;;  %v6825_v3 = vsel %vm9823_vm8, %v6820_v24, %v6824_v27 }
 0x7f2   : > { %v6752_v1 = vsel %vm11078_vm12, %v6749_v19, %v6751_v46  ;;  %v6755_v43 = vshrl.u32 %v6734_v33, 16  ;;  %v6758_v53 = vshll.u32 %v6734_v33, 16  ;;  %v6865_v19 = vld [vmem:[#allocation3] sm:$0x6] }
 0x7f3   : > { %6753 = vst [vmem:[#allocation3 + $0x8] sm:$0x7] %v6752_v1 }
 0x7f4   : > { %v6757_v23 = vrot.slane %v6755_v43, 7  ;;  %v6765_v38 = vrot.slane %v6755_v43, 5  ;;  %v6766_v55 = vrot.slane %v6758_v53, 6 }
 0x7f6   : > { %v6760_v52 = vor.u32 %v6758_v53, %v6757_v23  ;;  %v6767_v47 = vor.u32 %v6766_v55, %v6765_v38 }
 0x7f8   : > { %v6774_v4 = vld [vmem:[#allocation3 + $0x4] sm:$0x3]  ;;  %v6763_v15 = vsel %vm11078_vm12, %v6760_v52, %v6762_v58  ;;  %v6768_v37 = vrot.slane %v6767_v47, 4  ;;  %v6873_v52 = vrot.slane %v6865_v19, 2 }
 0x7f9   : > { %7221 = vst [vmem:[#allocation1 + $0x1] ss:$4 sm:$0xff] %v6774_v4  ;;  %v6778_v61 = vld [vmem:[#allocation3 + $0x4] sm:$0x7] }
 0x7fa   : > { %v6775_v13 = vld [vmem:[#allocation3 + $0x8] sm:$0x3]  ;;  %6764 = vst [vmem:[#allocation3 + $0xc] sm:$0x7] %v6763_v15  ;;  %v6786_v31 = vrot.slane %v6778_v61, 2  ;;  %v6771_v34 = vsel %vm11078_vm12, %v6768_v37, %v6770_v60  ;;  %v6879_v12 = vsel %vm837_vm0, %v6865_v19, %v6873_v52 }
 0x7fb   : > { %7224 = vst [vmem:[#allocation1 + $0x2] ss:$4 sm:$0xff] %v6775_v13  ;;  %v6779_v50 = vld [vmem:[#allocation3 + $0x8] sm:$0x7]  ;;  %v6866_v4 = vld [vmem:[#allocation3 + $0x4] sm:$0x6] }
 0x7fc   : > { %v6787_v41 = vrot.slane %v6779_v50, 2  ;;  %v6797_v62 = vsel %vm837_vm0, %v6778_v61, %v6786_v31  ;;  %v6798_v10 = vsel %vm841_vm1, %v6778_v61, %v6786_v31  ;;  %6772 = vst [vmem:[#allocation3 + $0x10] sm:$0x7] %v6771_v34  ;;  %v6867_v58 = vld [vmem:[#allocation3 + $0x8] sm:$0x6]  ;;  %v6874_v63 = vrot.slane %v6866_v4, 2 }
 0x7fd   : > { %v6826_v40 = vshrl.u32 %v6797_v62, 16  ;;  %v6829_v56 = vshll.u32 %v6797_v62, 16  ;;  %v6800_v8 = vrot.slane %v6798_v10, 2  ;;  %v6875_v55 = vrot.slane %v6867_v58, 2 }
 0x7fe   : > { %v6803_v9 = vsel %vm837_vm0, %v6779_v50, %v6787_v41  ;;  %v6804_v25 = vsel %vm841_vm1, %v6779_v50, %v6787_v41  ;;  %v6881_v41 = vsel %vm841_vm1, %v6865_v19, %v6873_v52  ;;  %v8933_v62 = vrot.slane %v6879_v12, 9 }
 0x7ff   : > { %v6839_v45 = vshrl.u32 %v6803_v9, 16  ;;  %v6842_v20 = vshll.u32 %v6803_v9, 16  ;;  %v6828_v2 = vrot.slane %v6826_v40, 6  ;;  %v6831_v51 = vrot.slane %v6829_v56, 7  ;;  %v6925_v56 = vld [vmem:[#allocation3 + $0x4] sm:$0x7] }
 0x800   : > { %v6806_v36 = vrot.slane %v6804_v25, 2  ;;  %v6835_v33 = vshll.u32 %v6800_v8, 16  ;;  %v8934_v16 = vrot.slane %v6881_v41, 9  ;;  %v6886_v39 = vsel %vm837_vm0, %v6866_v4, %v6874_v63 }
 0x801   : > { %v6780_v18 = vld [vmem:[#allocation3 + $0xc] sm:$0x7]  ;;  %v6841_v32 = vrot.slane %v6839_v45, 6  ;;  %v6844_v35 = vrot.slane %v6842_v20, 7  ;;  %v6832_v0 = vor.u32 %v6831_v51, %v6828_v2  ;;  %v6888_v9 = vsel %vm841_vm1, %v6866_v4, %v6874_v63 }
 0x802   : > { %v6776_v28 = vld [vmem:[#allocation3 + $0xc] sm:$0x3]  ;;  %v6788_v44 = vrot.slane %v6780_v18, 2  ;;  %v6848_v5 = vshll.u32 %v6806_v36, 16  ;;  %v6837_v13 = vrot.slane %v6835_v33, 7  ;;  %v6893_v47 = vsel %vm837_vm0, %v6867_v58, %v6875_v55 }
 0x803   : > { %7227 = vst [vmem:[#allocation1 + $0x3] ss:$4 sm:$0xff] %v6776_v28  ;;  %v6845_v14 = vor.u32 %v6844_v35, %v6841_v32  ;;  %v6833_v23 = vrot.slane %v6832_v0, 2  ;;  %v6868_v50 = vld [vmem:[#allocation3 + $0xc] sm:$0x6]  ;;  %v6895_v40 = vsel %vm841_vm1, %v6867_v58, %v6875_v55  ;;  %v8935_v45 = vrot.slane %v6886_v39, 9 }
 0x804   : > { %v6809_v42 = vsel %vm837_vm0, %v6780_v18, %v6788_v44  ;;  %v6810_v54 = vsel %vm841_vm1, %v6780_v18, %v6788_v44  ;;  %v6850_v61 = vrot.slane %v6848_v5, 7  ;;  %v6876_v21 = vrot.slane %v6868_v50, 2  ;;  %v6926_v28 = vld [vmem:[#allocation3 + $0x8] sm:$0x7]  ;;  %v6927_v44 = vld [vmem:[#allocation3 + $0xc] sm:$0x7] }
 0x805   : > { %v6852_v30 = vshrl.u32 %v6809_v42, 16  ;;  %v6855_v7 = vshll.u32 %v6809_v42, 16  ;;  %v6812_v29 = vrot.slane %v6810_v54, 2  ;;  %v6846_v49 = vrot.slane %v6845_v14, 2  ;;  %v6928_v27 = vld [vmem:[#allocation3 + $0x10] sm:$0x7] }
 0x806   : > { %v6838_v6 = vsel %vm9823_vm8, %v6833_v23, %v6837_v13  ;;  %v6900_v18 = vsel %vm837_vm0, %v6868_v50, %v6876_v21  ;;  %v6902_v17 = vsel %vm841_vm1, %v6868_v50, %v6876_v21  ;;  %v8936_v20 = vrot.slane %v6888_v9, 9  ;;  %v6921_v23 = vld [vmem:[#allocation3 + $0x4] sm:$0x3]  ;;  %v6924_v55 = vld [vmem:[#allocation3 + $0x10] sm:$0x3] }
 0x807   : > { %v6854_v46 = vrot.slane %v6852_v30, 6  ;;  %v6857_v1 = vrot.slane %v6855_v7, 7  ;;  %v6861_v43 = vshll.u32 %v6812_v29, 16  ;;  %v6851_v38 = vsel %vm9823_vm8, %v6846_v49, %v6850_v61 }
 0x808   : > { %v6908_v59 = vsel %vm10621_vm15, %v8933_v62, %v8934_v16  ;;  %v8937_v37 = vrot.slane %v6893_v47, 9  ;;  %v8938_v10 = vrot.slane %v6895_v40, 9  ;;  %v6933_v25 = vrot.slane %v6925_v56, 2 }
 0x809   : > { %v6858_v53 = vor.u32 %v6857_v1, %v6854_v46  ;;  %v6863_v48 = vrot.slane %v6861_v43, 7  ;;  %v8939_v2 = vrot.slane %v6900_v18, 9  ;;  %v8940_v51 = vrot.slane %v6902_v17, 9  ;;  %v7013_v18 = vld [vmem:[#allocation3 + $0x4] sm:$0x6] }
 0x80a   : > { %v11918_v22 = vld.sshfl [vmem:[#allocation1] sm:$0xff pattern:$0x73625140]  ;;  %v6934_v32 = vrot.slane %v6926_v28, 2  ;;  %v6912_v60 = vsel %vm10621_vm15, %v8935_v45, %v8936_v20  ;;  %v6935_v24 = vrot.slane %v6927_v44, 2  ;;  %v6916_v8 = vsel %vm10621_vm15, %v8937_v37, %v8938_v10 }
 0x80b   : > { %7230 = vst [vmem:[#allocation1] ss:$4 sm:$0xff] %v6825_v3  ;;  %v6859_v15 = vrot.slane %v6858_v53, 2  ;;  %v6936_v34 = vrot.slane %v6928_v27, 2  ;;  %v6939_v42 = vsel %vm837_vm0, %v6925_v56, %v6933_v25  ;;  %v6920_v36 = vsel %vm10621_vm15, %v8939_v2, %v8940_v51  ;;  %v6922_v53 = vld [vmem:[#allocation3 + $0x8] sm:$0x3] }
 0x80c   : > { %7233 = vst [vmem:[#allocation1 + $0x1] ss:$4 sm:$0xff] %v6838_v6  ;;  %v6945_v0 = vsel %vm837_vm0, %v6926_v28, %v6934_v32  ;;  %v6951_v54 = vsel %vm837_vm0, %v6927_v44, %v6935_v24  ;;  %v6961_v30 = vshrl.u32 %v6939_v42, 16  ;;  %v6964_v7 = vshll.u32 %v6939_v42, 16  ;;  %v7015_v2 = vld [vmem:[#allocation3 + $0xc] sm:$0x6] }
 0x80d   : > { %v6864_v31 = vsel %vm9823_vm8, %v6859_v15, %v6863_v48  ;;  %7236 = vst [vmem:[#allocation1 + $0x2] ss:$4 sm:$0xff] %v6851_v38  ;;  %v6957_v14 = vsel %vm837_vm0, %v6928_v27, %v6936_v34  ;;  %v6974_v29 = vshrl.u32 %v6945_v0, 16  ;;  %v6977_v3 = vshll.u32 %v6945_v0, 16 }
 0x80e   : > { %7239 = vst [vmem:[#allocation1 + $0x3] ss:$4 sm:$0xff] %v6864_v31  ;;  %v6940_v19 = vsel %vm841_vm1, %v6925_v56, %v6933_v25  ;;  %v6987_v33 = vshrl.u32 %v6951_v54, 16  ;;  %v6990_v46 = vshll.u32 %v6951_v54, 16  ;;  %v6946_v1 = vsel %vm841_vm1, %v6926_v28, %v6934_v32  ;;  %v6923_v31 = vld [vmem:[#allocation3 + $0xc] sm:$0x3] }
 0x80f   : > { %v7000_v5 = vshrl.u32 %v6957_v14, 16  ;;  %v7003_v43 = vshll.u32 %v6957_v14, 16  ;;  %v6963_v52 = vrot.slane %v6961_v30, 6  ;;  %v6966_v49 = vrot.slane %v6964_v7, 7  ;;  %v7016_v32 = vld [vmem:[#allocation3 + $0x10] sm:$0x6] }
 0x810   : > { %v6942_v4 = vrot.slane %v6940_v19, 2  ;;  %v6976_v13 = vrot.slane %v6974_v29, 6  ;;  %v6979_v58 = vrot.slane %v6977_v3, 7  ;;  %v6952_v15 = vsel %vm841_vm1, %v6927_v44, %v6935_v24  ;;  %v7076_v29 = vld [vmem:[#allocation3 + $0x14] sm:$0x7] }
 0x811   : > { %v6948_v61 = vrot.slane %v6946_v1, 2  ;;  %v6958_v50 = vsel %vm841_vm1, %v6928_v27, %v6936_v34  ;;  %v6989_v6 = vrot.slane %v6987_v33, 6  ;;  %v6992_v63 = vrot.slane %v6990_v46, 7  ;;  %v7073_v1 = vld [vmem:[#allocation3 + $0x8] sm:$0x7] }
 0x812   : > { %v7002_v12 = vrot.slane %v7000_v5, 6  ;;  %v7005_v41 = vrot.slane %v7003_v43, 7  ;;  %v6967_v38 = vor.u32 %v6966_v49, %v6963_v52  ;;  %v6954_v21 = vrot.slane %v6952_v15, 2  ;;  %v7074_v52 = vld [vmem:[#allocation3 + $0xc] sm:$0x7] }
 0x813   : > { %v6980_v62 = vor.u32 %v6979_v58, %v6976_v13  ;;  %v6960_v16 = vrot.slane %v6958_v50, 2  ;;  %v6970_v39 = vshll.u32 %v6942_v4, 16  ;;  %v6993_v9 = vor.u32 %v6992_v63, %v6989_v6  ;;  %v7075_v58 = vld [vmem:[#allocation3 + $0x10] sm:$0x7] }
 0x814   : > { %v6983_v47 = vshll.u32 %v6948_v61, 16  ;;  %v7006_v40 = vor.u32 %v7005_v41, %v7002_v12  ;;  %v6968_v56 = vrot.slane %v6967_v38, 2  ;;  %v6996_v17 = vshll.u32 %v6954_v21, 16 }
 0x815   : > { %v7240_v35 = vld.sshfl [vmem:[#allocation1] sm:$0xff pattern:$0x73625140]  ;;  %v6981_v45 = vrot.slane %v6980_v62, 2  ;;  %v7009_v20 = vshll.u32 %v6960_v16, 16  ;;  %v6972_v28 = vrot.slane %v6970_v39, 7 }
 0x816   : > { %7242 = vrot.lane.b32.xlu2 %v7240_v35, %s12545_s27  ;;  %7245 = vst [vmem:[#allocation1] ss:$4 sm:$0xff] %v6908_v59  ;;  %v7014_v59 = vld [vmem:[#allocation3 + $0x8] sm:$0x6]  ;;  %v6994_v37 = vrot.slane %v6993_v9, 2  ;;  %v6985_v10 = vrot.slane %v6983_v47, 7 }
 0x817   : > { %7248 = vst [vmem:[#allocation1 + $0x1] ss:$4 sm:$0xff] %v6912_v60  ;;  %v7021_v44 = vrot.slane %v7013_v18, 2  ;;  %v7007_v25 = vrot.slane %v7006_v40, 2  ;;  %v6973_v51 = vsel %vm9823_vm8, %v6968_v56, %v6972_v28  ;;  %v6998_v27 = vrot.slane %v6996_v17, 7  ;;  %v9296_v40 = vld [vmem:[%s12276_s11 + $0x38] sm:$0xff] }
 0x818   : > { %7251 = vst [vmem:[#allocation1 + $0x2] ss:$4 sm:$0xff] %v6916_v8  ;;  %v6986_v60 = vsel %vm9823_vm8, %v6981_v45, %v6985_v10  ;;  %v7022_v24 = vrot.slane %v7014_v59, 2  ;;  %v7011_v8 = vrot.slane %v7009_v20, 7  ;;  %v7023_v42 = vrot.slane %v7015_v2, 2  ;;  %7643 = vmatpush.bf16.msra.mxu3 %v9296_v40  ;;  %v9295_v28 = vld [vmem:[%s12276_s11 + $0x30] sm:$0xff] }
 0x819   : > { %7254 = vst [vmem:[#allocation1 + $0x3] ss:$4 sm:$0xff] %v6920_v36  ;;  %v6999_v34 = vsel %vm9823_vm8, %v6994_v37, %v6998_v27  ;;  %v7024_v0 = vrot.slane %v7016_v32, 2  ;;  %v7027_v54 = vsel %vm837_vm0, %v7013_v18, %v7021_v44  ;;  %v7029_v30 = vsel %vm841_vm1, %v7013_v18, %v7021_v44  ;;  %v7072_v27 = vld [vmem:[#allocation3 + $0x14] sm:$0x3] }
 0x81a   : > { %v7012_v36 = vsel %vm9823_vm8, %v7007_v25, %v7011_v8  ;;  %v7034_v7 = vsel %vm837_vm0, %v7014_v59, %v7022_v24  ;;  %v7036_v14 = vsel %vm841_vm1, %v7014_v59, %v7022_v24  ;;  %v7041_v3 = vsel %vm837_vm0, %v7015_v2, %v7023_v42  ;;  %v9304_v59 = vld [vmem:[%s12276_s11 + $0x78] sm:$0xff]  ;;  %v7070_v24 = vld [vmem:[#allocation3 + $0xc] sm:$0x3] }
 0x81b   : > { %v7043_v19 = vsel %vm841_vm1, %v7015_v2, %v7023_v42  ;;  %v8941_v33 = vrot.slane %v7027_v54, 9  ;;  %v8942_v46 = vrot.slane %v7029_v30, 9  ;;  %v7048_v5 = vsel %vm837_vm0, %v7016_v32, %v7024_v0  ;;  %7657 = vmatpush.bf16.msra.mxu0 %v9304_v59  ;;  %v9294_v54 = vld [vmem:[%s12276_s11 + $0x28] sm:$0xff] }
 0x81c   : > { %v7050_v43 = vsel %vm841_vm1, %v7016_v32, %v7024_v0  ;;  %v7084_v49 = vrot.slane %v7076_v29, 2  ;;  %v8945_v4 = vrot.slane %v7041_v3, 9  ;;  %v8946_v13 = vrot.slane %v7043_v19, 9  ;;  %v7069_v32 = vld [vmem:[#allocation3 + $0x8] sm:$0x3]  ;;  %7644 = vmatpush.bf16.msra.mxu3 %v9295_v28 }
 0x81d   : > { %v7081_v15 = vrot.slane %v7073_v1, 2  ;;  %v8947_v61 = vrot.slane %v7048_v5, 9  ;;  %v8948_v50 = vrot.slane %v7050_v43, 9  ;;  %v7056_v6 = vsel %vm10621_vm15, %v8941_v33, %v8942_v46  ;;  %v9293_v43 = vld [vmem:[%s12276_s11 + $0x20] sm:$0xff] }
 0x81e   : > { %v7082_v63 = vrot.slane %v7074_v52, 2  ;;  %v7083_v41 = vrot.slane %v7075_v58, 2  ;;  %v7105_v38 = vsel %vm837_vm0, %v7076_v29, %v7084_v49  ;;  %v7106_v56 = vsel %vm841_vm1, %v7076_v29, %v7084_v49  ;;  %v7071_v29 = vld [vmem:[#allocation3 + $0x10] sm:$0x3] }
 0x81f   : > { %v7087_v21 = vsel %vm837_vm0, %v7073_v1, %v7081_v15  ;;  %v7068_v62 = vsel %vm10621_vm15, %v8947_v61, %v8948_v50  ;;  %v7148_v39 = vshrl.u32 %v7105_v38, 16  ;;  %v7151_v9 = vshll.u32 %v7105_v38, 16  ;;  %v9292_v50 = vld [vmem:[%s12276_s11 + $0x18] sm:$0xff] }
 0x820   : > { %v11950_v48 = vld.sshfl [vmem:[#allocation1] sm:$0xff pattern:$0x73625140]  ;;  %v7093_v16 = vsel %vm837_vm0, %v7074_v52, %v7082_v63  ;;  %v7099_v47 = vsel %vm837_vm0, %v7075_v58, %v7083_v41  ;;  %v7109_v18 = vshrl.u32 %v7087_v21, 16  ;;  %v7112_v17 = vshll.u32 %v7087_v21, 16  ;;  %7645 = vmatpush.bf16.msra.mxu3 %v9294_v54  ;;  %v9324_v54 = vld [vmem:[%s12276_s11 + $0x118] sm:$0xff] }
 0x821   : > { %7257 = vst [vmem:[#allocation1] ss:$4 sm:$0xff] %v6921_v23  ;;  %v8943_v23 = vrot.slane %v7034_v7, 9  ;;  %v7122_v45 = vshrl.u32 %v7093_v16, 16  ;;  %v7125_v20 = vshll.u32 %v7093_v16, 16  ;;  %v7135_v37 = vshrl.u32 %v7099_v47, 16 }
 0x822   : > { %7260 = vst [vmem:[#allocation1 + $0x1] ss:$4 sm:$0xff] %v6922_v53  ;;  %v8944_v53 = vrot.slane %v7036_v14, 9  ;;  %v7138_v10 = vshll.u32 %v7099_v47, 16  ;;  %v7108_v44 = vrot.slane %v7106_v56, 2  ;;  %v7150_v25 = vrot.slane %v7148_v39, 6 }
 0x823   : > { %7263 = vst [vmem:[#allocation1 + $0x2] ss:$4 sm:$0xff] %v6923_v31  ;;  %v7153_v2 = vrot.slane %v7151_v9, 7  ;;  %v7094_v8 = vsel %vm841_vm1, %v7074_v52, %v7082_v63  ;;  %v7124_v42 = vrot.slane %v7122_v45, 6  ;;  %v7137_v7 = vrot.slane %v7135_v37, 6 }
 0x824   : > { %7266 = vst [vmem:[#allocation1 + $0x3] ss:$4 sm:$0xff] %v6924_v55  ;;  %v7060_v12 = vsel %vm10621_vm15, %v8943_v23, %v8944_v53  ;;  %v7064_v55 = vsel %vm10621_vm15, %v8945_v4, %v8946_v13  ;;  %v7140_v14 = vrot.slane %v7138_v10, 7  ;;  %v7096_v3 = vrot.slane %v7094_v8, 2  ;;  %7646 = vmatpush.bf16.msra.mxu3 %v9293_v43  ;;  %v9312_v43 = vld [vmem:[%s12276_s11 + $0xb8] sm:$0xff] }
 0x825   : > { %v7154_v46 = vor.u32 %v7153_v2, %v7150_v25  ;;  %7671 = vmatpush.bf16.msra.mxu1 %v9312_v43  ;;  %v7879_v43 = vld [vmem:[%s12282_s17] sm:$0xff] }
 0x826   : > { %v7141_v53 = vor.u32 %v7140_v14, %v7137_v7  ;;  %v7131_v52 = vshll.u32 %v7096_v3, 16  ;;  %v9301_v3 = vld [vmem:[%s12276_s11 + $0x60] sm:$0xff] }
 0x827   : > { %v7155_v13 = vrot.slane %v7154_v46, 2  ;;  %v9300_v46 = vld [vmem:[%s12276_s11 + $0x58] sm:$0xff] }
 0x828   : > { %v7133_v38 = vrot.slane %v7131_v52, 7  ;;  %7647 = vmatpush.bf16.msra.mxu3 %v9292_v50  ;;  %v9297_v52 = vld [vmem:[%s12276_s11 + $0x40] sm:$0xff] }
 0x829   : > { %v7853_v50 = vld [vmem:[%s12280_s15 + $0x60] sm:$0xff] }
 0x82b   : > { %v7267_v35 = vld.sshfl [vmem:[#allocation1] sm:$0xff pattern:$0x73625140] }
 0x82c   : > { %7269 = vrot.lane.b32.xlu1 %v7267_v35, %s12545_s27  ;;  %7272 = vst [vmem:[#allocation1] ss:$4 sm:$0xff] %v6973_v51  ;;  %v7088_v51 = vsel %vm841_vm1, %v7073_v1, %v7081_v15  ;;  %v7111_v35 = vrot.slane %v7109_v18, 6  ;;  %v7157_v1 = vshll.u32 %v7108_v44, 16  ;;  %v7161_v15 = vld [vmem:[#allocation3 + $0x8] sm:$0x6] }
 0x82d   : > { %7275 = vst [vmem:[#allocation1 + $0x1] ss:$4 sm:$0xff] %v6986_v60  ;;  %v7114_v60 = vrot.slane %v7112_v17, 7  ;;  %v7090_v30 = vrot.slane %v7088_v51, 2  ;;  %v9291_v18 = vld [vmem:[%s12276_s11 + $0x10] sm:$0xff] }
 0x82e   : > { %7278 = vst [vmem:[#allocation1 + $0x2] ss:$4 sm:$0xff] %v6999_v34  ;;  %v7100_v34 = vsel %vm841_vm1, %v7075_v58, %v7083_v41  ;;  %v7159_v58 = vrot.slane %v7157_v1, 7  ;;  %v7162_v41 = vld [vmem:[#allocation3 + $0xc] sm:$0x6]  ;;  %7648 = vmatpush.bf16.msra.mxu3 %v9291_v18  ;;  %v9303_v51 = vld [vmem:[%s12276_s11 + $0x70] sm:$0xff] }
 0x82f   : > { %7281 = vst [vmem:[#allocation1 + $0x3] ss:$4 sm:$0xff] %v7012_v36  ;;  %v7127_v36 = vrot.slane %v7125_v20, 7  ;;  %v7115_v19 = vor.u32 %v7114_v60, %v7111_v35  ;;  %v7102_v33 = vrot.slane %v7100_v34, 2  ;;  %v7118_v23 = vshll.u32 %v7090_v30, 16  ;;  %7658 = vmatpush.bf16.msra.mxu0 %v9303_v51  ;;  %v9302_v34 = vld [vmem:[%s12276_s11 + $0x68] sm:$0xff] }
 0x830   : > { %v7160_v9 = vsel %vm9823_vm8, %v7155_v13, %v7159_v58  ;;  %v7170_v56 = vrot.slane %v7162_v41, 2  ;;  %v9299_v1 = vld [vmem:[%s12276_s11 + $0x50] sm:$0xff]  ;;  %v9309_v58 = vld [vmem:[%s12276_s11 + $0xa0] sm:$0xff]  ;;  %v9306_v18 = vld [vmem:[%s12276_s11 + $0x88] sm:$0xff] }
 0x831   : > { %v7128_v5 = vor.u32 %v7127_v36, %v7124_v42  ;;  %v7116_v49 = vrot.slane %v7115_v19, 2  ;;  %v7144_v4 = vshll.u32 %v7102_v33, 16  ;;  %v7120_v63 = vrot.slane %v7118_v23, 7  ;;  %v9323_v33 = vld [vmem:[%s12276_s11 + $0x110] sm:$0xff]  ;;  %v9298_v23 = vld [vmem:[%s12276_s11 + $0x48] sm:$0xff] }
 0x832   : > { %v7182_v10 = vsel %vm837_vm0, %v7162_v41, %v7170_v56  ;;  %v7184_v44 = vsel %vm841_vm1, %v7162_v41, %v7170_v56  ;;  %7649 = vmatpush.bf16.msra.mxu3 %v9290_v26  ;;  %v7855_v13 = vld [vmem:[%s12280_s15 + $0x70] sm:$0xff]  ;;  %v7850_v41 = vld [vmem:[%s12280_s15 + $0x48] sm:$0xff]  ;;  %v7845_v56 = vld [vmem:[%s12280_s15 + $0x20] sm:$0xff]  ;;  %v5405_v26 = vrot.slane %v11565_v57, 4 }
 0x833   : > { %v7129_v61 = vrot.slane %v7128_v5, 2  ;;  %v7121_v21 = vsel %vm9823_vm8, %v7116_v49, %v7120_v63  ;;  %v7146_v16 = vrot.slane %v7144_v4, 7  ;;  %v8952_v8 = vrot.slane %v7184_v44, 9  ;;  %7659 = vmatpush.bf16.msra.mxu0 %v9302_v34  ;;  %v9321_v5 = vld [vmem:[%s12276_s11 + $0x100] sm:$0xff]  ;;  %v9310_v49 = vld [vmem:[%s12276_s11 + $0xa8] sm:$0xff]  ;;  %v7856_v4 = vld [vmem:[%s12280_s15 + $0x78] sm:$0xff] }
 0x834   : > { %v7852_v63 = vld [vmem:[%s12280_s15 + $0x58] sm:$0xff]  ;;  %v7841_v44 = vld [vmem:[%s12280_s15] sm:$0xff]  ;;  %v9315_v51 = vld [vmem:[%s12276_s11 + $0xd0] sm:$0xff] }
 0x835   : > { %v7134_v40 = vsel %vm9823_vm8, %v7129_v61, %v7133_v38  ;;  %v9308_v38 = vld [vmem:[%s12276_s11 + $0x98] sm:$0xff] }
 0x836   : > { %v11972_v31 = vld.sshfl [vmem:[#allocation1] sm:$0xff pattern:$0x73625140] }
 0x837   : > { %7284 = vst [vmem:[#allocation1] ss:$4 sm:$0xff] %v7056_v6  ;;  %v7164_v6 = vld [vmem:[#allocation3 + $0x14] sm:$0x6]  ;;  %7660 = vmatpush.bf16.msra.mxu0 %v9301_v3 }
 0x838   : > { %7287 = vst [vmem:[#allocation1 + $0x1] ss:$4 sm:$0xff] %v7060_v12  ;;  %v7142_v12 = vrot.slane %v7141_v53, 2  ;;  %v7172_v47 = vrot.slane %v7164_v6, 2  ;;  %v9311_v53 = vld [vmem:[%s12276_s11 + $0xb0] sm:$0xff] }
 0x839   : > { %7290 = vst [vmem:[#allocation1 + $0x2] ss:$4 sm:$0xff] %v7064_v55  ;;  %v7163_v55 = vld [vmem:[#allocation3 + $0x10] sm:$0x6]  ;;  %7672 = vmatpush.bf16.msra.mxu1 %v9311_v53 }
 0x83a   : > { %7293 = vst [vmem:[#allocation1 + $0x3] ss:$4 sm:$0xff] %v7068_v62  ;;  %v7169_v62 = vrot.slane %v7161_v15, 2  ;;  %v7147_v17 = vsel %vm9823_vm8, %v7142_v12, %v7146_v16  ;;  %v7171_v45 = vrot.slane %v7163_v55, 2  ;;  %v7196_v59 = vsel %vm837_vm0, %v7164_v6, %v7172_v47  ;;  %v7851_v12 = vld [vmem:[%s12280_s15 + $0x50] sm:$0xff] }
 0x83b   : > { %v7198_v37 = vsel %vm841_vm1, %v7164_v6, %v7172_v47  ;;  %v8955_v35 = vrot.slane %v7196_v59, 9  ;;  %7661 = vmatpush.bf16.msra.mxu0 %v9300_v46  ;;  %v7847_v16 = vld [vmem:[%s12280_s15 + $0x30] sm:$0xff]  ;;  %v9317_v59 = vld [vmem:[%s12276_s11 + $0xe0] sm:$0xff]  ;;  %vm7734_vm8 = vcmask 7168  }
 0x83c   : > { %v7175_v20 = vsel %vm837_vm0, %v7161_v15, %v7169_v62  ;;  %v7177_v28 = vsel %vm841_vm1, %v7161_v15, %v7169_v62  ;;  %v7189_v25 = vsel %vm837_vm0, %v7163_v55, %v7171_v45  ;;  %v7191_v2 = vsel %vm841_vm1, %v7163_v55, %v7171_v45  ;;  %v7854_v15 = vld [vmem:[%s12280_s15 + $0x68] sm:$0xff]  ;;  %v9320_v55 = vld [vmem:[%s12276_s11 + $0xf8] sm:$0xff]  ;;  %v9319_v47 = vld [vmem:[%s12276_s11 + $0xf0] sm:$0xff] }
 0x83d   : > { %v8956_v60 = vrot.slane %v7198_v37, 9  ;;  %v8953_v42 = vrot.slane %v7189_v25, 9  ;;  %v8954_v36 = vrot.slane %v7191_v2, 9  ;;  %7673 = vmatpush.bf16.msra.mxu1 %v9310_v49  ;;  %7685 = vmatpush.bf16.msrb.mxu2 %v9320_v55  ;;  %v7844_v45 = vld [vmem:[%s12280_s15 + $0x18] sm:$0xff]  ;;  %v7842_v37 = vld [vmem:[%s12280_s15 + $0x8] sm:$0xff]  ;;  %v7885_v46 = vld [vmem:[%s12282_s17 + $0x30] sm:$0xff] }
 0x83e   : > { %v9316_v25 = vld [vmem:[%s12276_s11 + $0xd8] sm:$0xff]  ;;  %vm7721_vm1 = vcmask 261120  }
 0x83f   : > { %v7216_v14 = vsel %vm10621_vm15, %v8955_v35, %v8956_v60  ;;  %v7212_v19 = vsel %vm10621_vm15, %v8953_v42, %v8954_v36  ;;  %7662 = vmatpush.bf16.msra.mxu0 %v9299_v1  ;;  %v9314_v35 = vld [vmem:[%s12276_s11 + $0xc8] sm:$0xff]  ;;  %v9313_v42 = vld [vmem:[%s12276_s11 + $0xc0] sm:$0xff]  ;;  %v7881_v1 = vld [vmem:[%s12282_s17 + $0x10] sm:$0xff] }
 0x841   : > { %v7294_v0 = vld.sshfl [vmem:[#allocation1] sm:$0xff pattern:$0x73625140]  ;;  %7674 = vmatpush.bf16.msra.mxu1 %v9309_v58  ;;  %7686 = vmatpush.bf16.msrb.mxu2 %v9319_v47 }
 0x842   : > { %7296 = vrot.lane.b32.xlu1 %v7294_v0, %s12545_s27  ;;  %7299 = vst [vmem:[#allocation1] ss:$4 sm:$0xff] %v7069_v32  ;;  %v8950_v32 = vrot.slane %v7177_v28, 9  ;;  %v9289_v0 = vld [vmem:[%s12276_s11] sm:$0xff] }
 0x843   : > { %7302 = vst [vmem:[#allocation1 + $0x1] ss:$4 sm:$0xff] %v7070_v24  ;;  %v8951_v24 = vrot.slane %v7182_v10, 9  ;;  %7650 = vmatpush.bf16.msra.mxu3 %v9289_v0  ;;  %7663 = vmatpush.bf16.msra.mxu0 %v9298_v23  ;;  %v9305_v28 = vld [vmem:[%s12276_s11 + $0x80] sm:$0xff]  ;;  %v9476_v10 = vmov 16.0  }
 0x844   : > { %7305 = vst [vmem:[#allocation1 + $0x2] ss:$4 sm:$0xff] %v7071_v29  ;;  %9391 = vrcp.f32 %v9476_v10 }
 0x845   : > { %7308 = vst [vmem:[#allocation1 + $0x3] ss:$4 sm:$0xff] %v7072_v27  ;;  %v8949_v27 = vrot.slane %v7175_v20, 9  ;;  %v7208_v29 = vsel %vm10621_vm15, %v8951_v24, %v8952_v8  ;;  %7675 = vmatpush.bf16.msra.mxu1 %v9308_v38  ;;  %v7843_v20 = vld [vmem:[%s12280_s15 + $0x10] sm:$0xff] }
 0x847   : > { %v7204_v30 = vsel %vm10621_vm15, %v8949_v27, %v8950_v32  ;;  %7703 = vmatpush.bf16.msrb.mxu3 %v9324_v54  ;;  %7664 = vmatpush.bf16.msra.mxu0 %v9297_v52  ;;  %v5406_v27 = vadd.f32 %v5405_v26, %v11565_v57  ;;  %v7857_v52 = vld [vmem:[%s12281_s16] sm:$0x1] }
 0x849   : > { %v5407_v60 = vrot.slane %v5406_v27, 2 }
 0x84a   : > { %v9392_v2 = vpop.eup %9391 }
 0x84b   : > { %7704 = vmatpush.bf16.msrb.mxu3 %v9323_v33  ;;  %7858 = vmatpush.msrb.mxu0 %v7856_v4  ;;  %v5412_v32 = vmul.f32 16.0, %v9392_v2  ;;  %v5408_v36 = vadd.f32 %v5407_v60, %v5406_v27  ;;  %vm5416_vm0 = vweird.f32 %v9392_v2  ;;  %v7886_v33 = vld [vmem:[%s12282_s17 + $0x38] sm:$0xff]  ;;  %v7759_v27 = vlaneseq }
 0x84c   : > { %v12009_v39 = vld.sshfl [vmem:[#allocation1] sm:$0xff pattern:$0x73625140] }
 0x84d   : > { %7311 = vst [vmem:[#allocation1] ss:$4 sm:$0xff] %v7121_v21  ;;  %7859 = vmatpush.msrb.mxu0 %v7855_v13  ;;  %v7848_v21 = vld [vmem:[%s12280_s15 + $0x38] sm:$0xff]  ;;  %v5413_v34 = vsub.f32 1.0, %v5412_v32  ;;  %v5409_v0 = vrot.slane %v5408_v36, 1  ;;  %v7760_v32 = vshrl.u32 %v7759_v27, 7 }
 0x84e   : > { %7314 = vst [vmem:[#allocation1 + $0x1] ss:$4 sm:$0xff] %v7134_v40  ;;  %v7846_v40 = vld [vmem:[%s12280_s15 + $0x28] sm:$0xff] }
 0x84f   : > { %7317 = vst [vmem:[#allocation1 + $0x2] ss:$4 sm:$0xff] %v7147_v17  ;;  %7705 = vmatpush.bf16.msrb.mxu3 %v9322_v11  ;;  %7860 = vmatpush.msrb.mxu0 %v7854_v15  ;;  %v9318_v17 = vld [vmem:[%s12276_s11 + $0xe8] sm:$0xff]  ;;  %v5414_v57 = vmul.f32 %v9392_v2, %v5413_v34  ;;  %v7883_v11 = vld [vmem:[%s12282_s17 + $0x20] sm:$0xff]  ;;  %v9478_v34 = vmov -1.0  }
 0x850   : > { %7320 = vst [vmem:[#allocation1 + $0x3] ss:$4 sm:$0xff] %v7160_v9  ;;  %v9307_v9 = vld [vmem:[%s12276_s11 + $0x90] sm:$0xff]  ;;  %7687 = vmatpush.bf16.msrb.mxu2 %v9318_v17 }
 0x851   : > { %7861 = vmatpush.msrb.mxu0 %v7853_v50  ;;  %7676 = vmatpush.bf16.msra.mxu1 %v9307_v9  ;;  %v5415_v54 = vadd.f32 %v9392_v2, %v5414_v57  ;;  %v9390_v57 = vld [vmem:[#allocation5] ss:$0 sm:$0xff] }
 0x853   : > { %7706 = vmatpush.bf16.msrb.mxu3 %v9321_v5  ;;  %7862 = vmatpush.msrb.mxu0 %v7852_v63  ;;  %v7880_v5 = vld [vmem:[%s12282_s17 + $0x8] sm:$0xff] }
 0x854   : > { %7688 = vmatpush.bf16.msrb.mxu2 %v9317_v59 }
 0x855   : > { %7863 = vmatpush.msrb.mxu0 %v7851_v12  ;;  %7677 = vmatpush.bf16.msra.mxu1 %v9306_v18 }
 0x857   : > { %v7321_v7 = vld.sshfl [vmem:[#allocation1] sm:$0xff pattern:$0x73625140]  ;;  %7864 = vmatpush.msrb.mxu0 %v7850_v41 }
 0x858   : > { %7323 = vrot.lane.b32.xlu0 %v7321_v7, %s12545_s27  ;;  %7326 = vst [vmem:[#allocation1] ss:$4 sm:$0xff] %v7204_v30  ;;  %7689 = vmatpush.bf16.msrb.mxu2 %v9316_v25  ;;  %v5410_v30 = vadd.f32 %v5409_v0, %v5408_v36  ;;  %v5417_v7 = vsel %vm5416_vm0, %v9392_v2, %v5415_v54  ;;  %v9479_v36 = vmov -0.3333333   ;;  %v9480_v0 = vmov 0.33333337  }
 0x859   : > { %7329 = vst [vmem:[#allocation1 + $0x1] ss:$4 sm:$0xff] %v7208_v29  ;;  %7678 = vmatpush.bf16.msra.mxu1 %v9305_v28  ;;  %s9415_s27 = sshra.s32 %s7940_s29, 4  ;;  %s9416_s27 = int_to_ptr.hbm [resolvable:$true] %s9415_s27 }
 0x85a   : > { %7332 = vst [vmem:[#allocation1 + $0x2] ss:$4 sm:$0xff] %v7212_v19  ;;  %p9422_p0 = scmp.lt.s32.totalorder %s9416_s27, %s12284_s19 }
 0x85b   : > { %7335 = vst [vmem:[#allocation1 + $0x3] ss:$4 sm:$0xff] %v7216_v14  ;;  %v5418_v14 = vmul.f32 %v5417_v7, %v5410_v30  ;;  %v9481_v30 = vmov 1.0  }
 0x85c   : > { %7690 = vmatpush.bf16.msrb.mxu2 %v9315_v51 }
 0x85d   : > { %7899 = vmatpush.msrb.mxu1 %v7886_v33 }
 0x85f   : > { %7900 = vmatpush.msrb.mxu1 %v7885_v46 }
 0x860   : > { %7691 = vmatpush.bf16.msrb.mxu2 %v9314_v35  ;;  %v7761_v35 = vcvt.s32.f32 %v7760_v32 }
 0x862   : > { %v7336_v62 = vld.sshfl [vmem:[#allocation1] sm:$0xff pattern:$0x73625140]  ;;  %v7766_v60 = vmul.f32 0.6666667, %v7761_v35 }
 0x864   : > { %7692 = vmatpush.bf16.msrb.mxu2 %v9313_v42 }
 0x870   : > { %v7243_v61 = vpop.permute.xlu2 %7242 }
 0x871   : > { %v7338_v6 = vsel %vm4043_vm14, %v11918_v22, %v7243_v61  ;;  %v7849_v22 = vld [vmem:[%s12280_s15 + $0x40] sm:$0xff] }
 0x872   : > { %7651 = vmatmul.bf16.vlgmr.msra.gmra.mxu3 %v7338_v6  ;;  %7865 = vmatpush.msrb.mxu0 %v7849_v22  ;;  %v9388_v61 = vld [vmem:[%s12277_s12] ss:$0 sm:$0xff] }
 0x874   : > { %7866 = vmatpush.msrb.mxu0 %v7848_v21 }
 0x876   : > { %7867 = vmatpush.msrb.mxu0 %v7847_v16 }
 0x878   : > { %7868 = vmatpush.msrb.mxu0 %v7846_v40 }
 0x87a   : > { %7869 = vmatpush.msrb.mxu0 %v7845_v56 }
 0x87c   : > { %7870 = vmatpush.msrb.mxu0 %v7844_v45 }
 0x87e   : > { %7871 = vmatpush.msrb.mxu0 %v7843_v20 }
 0x880   : > { %7872 = vmatpush.msrb.mxu0 %v7842_v37 }
 0x882   : > { %9101 = vmatmul.msk.bf16.vlgmr.msrb.gmra.mxu3 %vm4043_vm14, %v7336_v62  ;;  %7873 = vmatpush.msrb.mxu0 %v7841_v44  ;;  %v9389_v62 = vld [vmem:[%s12278_s13] ss:$0 sm:$0xff] }
 0x883   : > { %v7887_v44 = vld [vmem:[%s12283_s18] sm:$0x1] }
 0x89e   : > { %v7270_v24 = vpop.permute.xlu1 %7269 }
 0x89f   : > { %v7341_v8 = vsel %vm4043_vm14, %v11950_v48, %v7270_v24  ;;  %v9102_v24 = vadd.f32 -1.0, %v7766_v60 }
 0x8a0   : > { %7665 = vmatmul.bf16.vlgmr.msra.gmra.mxu0 %v7341_v8 }
 0x8a1   : > { %7777 = vst [vmem:[#allocation1] ss:$2 sm:$0xff] %v9102_v24 }
 0x8a2   : > { %7779 = vst [vmem:[#allocation1 + $0x1] ss:$2 sm:$0xff] %v9102_v24 }
 0x8a3   : > { %7781 = vst [vmem:[#allocation1 + $0x10] ss:$2 sm:$0xff] %v9102_v24 }
 0x8a4   : > { %7783 = vst [vmem:[#allocation1 + $0x11] ss:$2 sm:$0xff] %v9102_v24 }
 0x8a9   : > { %v7784_v8 = vld.sshfl [vmem:[#allocation1] sm:$0xff pattern:$0x75316420] }
 0x8aa   : > { %7818 = vst [vmem:[#allocation1] ss:$2 sm:$0xff] %v9478_v34 }
 0x8ab   : > { %v7785_v42 = vld.sshfl [vmem:[#allocation1 + $0x10] sm:$0xff pattern:$0x75316420]  ;;  %7820 = vst [vmem:[#allocation1 + $0x1] ss:$2 sm:$0xff] %v9479_v36 }
 0x8ac   : > { %7822 = vst [vmem:[#allocation1 + $0x10] ss:$2 sm:$0xff] %v9480_v0 }
 0x8ad   : > { %7824 = vst [vmem:[#allocation1 + $0x11] ss:$2 sm:$0xff] %v9481_v30 }
 0x8b0   : > { %7874 = vmatmul.f32.vlgmr.msrb.gmra.mxu0 %v5418_v14 }
 0x8b4   : > { %v7297_v29 = vpop.permute.xlu1 %7296 }
 0x8b5   : > { %v7344_v48 = vsel %vm4043_vm14, %v11972_v31, %v7297_v29  ;;  %v7884_v31 = vld [vmem:[%s12282_s17 + $0x28] sm:$0xff] }
 0x8b6   : > { %7679 = vmatmul.bf16.vlgmr.msra.gmra.mxu1 %v7344_v48 }
 0x8b7   : > { %7901 = vmatpush.msrb.mxu1 %v7884_v31 }
 0x8b9   : > { %7902 = vmatpush.msrb.mxu1 %v7883_v11 }
 0x8ca   : > { %v7324_v3 = vpop.permute.xlu0 %7323 }
 0x8cb   : > { %v7347_v19 = vsel %vm4043_vm14, %v12009_v39, %v7324_v3  ;;  %v7882_v39 = vld [vmem:[%s12282_s17 + $0x18] sm:$0xff] }
 0x8cc   : > { %7693 = vmatmul.bf16.vlgmr.msrb.gmra.mxu2 %v7347_v19  ;;  %7903 = vmatpush.msrb.mxu1 %v7882_v39 }
 0x8ce   : > { %7904 = vmatpush.msrb.mxu1 %v7881_v1 }
 0x8d0   : > { %7905 = vmatpush.msrb.mxu1 %v7880_v5 }
 0x8d2   : > { %7906 = vmatpush.msrb.mxu1 %v7879_v43 }
 0x8f5   : > { %v7652_v58 = vpop.f32.mrf.mxu3 }
 0x8f6   : > { %v7653_v6 = vadd.f32 %v9388_v61, %v7652_v58 }
 0x8fd   : > { %v7654_v15 = vpop.f32.mrf.mxu3 }
 0x8fe   : > { %v7655_v55 = vadd.f32 %v9388_v61, %v7654_v15 }
 0x905   : > { %v7708_v41 = vpop.f32.mrf.mxu3 }
 0x90d   : > { %v7710_v20 = vpop.f32.mrf.mxu3 }
 0x91d   : > { %v7666_v23 = vpop.f32.mrf.mxu0 }
 0x91e   : > { %v7667_v63 = vadd.f32 %v7666_v23, %v7653_v6 }
 0x925   : > { %v7668_v53 = vpop.f32.mrf.mxu0 }
 0x926   : > { %v7669_v9 = vadd.f32 %v7668_v53, %v7655_v55 }
 0x92d   : > { %v7875_v49 = vpop.f32.mrf.mxu0 }
 0x92e   : > { %v7876_v4 = vadd.f32 %v7875_v49, %v7857_v52 }
 0x930   : > { %v7878_v13 = vmax.f32 %v7876_v4, 0.0 }
 0x932   : > { %9103 = vmatmul.msk.f32.vlgmr.msrb.gmra.mxu1 %vm4043_vm14, %v7878_v13 }
 0x933   : > { %v7680_v50 = vpop.f32.mrf.mxu1 }
 0x934   : > { %v7681_v12 = vadd.f32 %v7680_v50, %v7667_v63 }
 0x93b   : > { %v7682_v16 = vpop.f32.mrf.mxu1 }
 0x93c   : > { %v7683_v40 = vadd.f32 %v7682_v16, %v7669_v9 }
 0x94f   : > { %v7694_v22 = vpop.f32.mrf.mxu2 }
 0x950   : > { %v7695_v38 = vadd.f32 %v7694_v22, %v7681_v12 }
 0x952   : > { %v7709_v21 = vadd.f32 %v7708_v41, %v7695_v38 }
 0x954   : > { %v7713_v47 = vmax.f32 %v7709_v21, 0.0 }
 0x956   : > { %v7719_v56 = vmul.f32 %v9389_v62, %v7713_v47 }
 0x957   : > { %v7696_v18 = vpop.f32.mrf.mxu2 }
 0x958   : > { %v7697_v17 = vadd.f32 %v7696_v18, %v7683_v40  ;;  %v7722_v45 = vsel %vm7721_vm1, %v7719_v56, 0.0  ;;  %v7825_v18 = vld.sshfl [vmem:[#allocation1] sm:$0xff pattern:$0x75316420] }
 0x959   : > { %7723 = vadd.xlane.f32.xlu2 %v7722_v45 }
 0x95a   : > { %v7711_v28 = vadd.f32 %v7710_v20, %v7697_v17  ;;  %v7826_v17 = vld.sshfl [vmem:[#allocation1 + $0x10] sm:$0xff pattern:$0x75316420] }
 0x95c   : > { %v7714_v59 = vmax.f32 %v7711_v28, 0.0 }
 0x95e   : > { %v7720_v37 = vmul.f32 %v9389_v62, %v7714_v59 }
 0x960   : > { %v7725_v10 = vsel %vm7721_vm1, %v7720_v37, 0.0 }
 0x961   : > { %7726 = vadd.xlane.f32.xlu0 %v7725_v10 }
 0x9af   : > { %v7908_v26 = vpop.f32.mrf.mxu1 }
 0x9b0   : > { %v7909_v25 = vadd.f32 %v7908_v26, %v7887_v44 }
 0x9b2   : > { %9393 = vtanh.f32 %v7909_v25 }
 0x9b8   : > { %v9394_v2 = vpop.eup %9393 }
 0x9b9   : > { %v12220_v51 = vmul.f32 0.1, %v9394_v2 }
 0x9bb   : > { %7915 = vrot.lane.b32.xlu1 %v12220_v51, %s9477_s2  ;;  %s9417_s2 = scalar_lea.hbm %s9416_s27, 1 }
 0x9bc   : > { %p9418_p11 = scmp.ne.s32.totalorder %s9416_s27, %s9417_s2  ;;  %p9423_p1 = scmp.lt.s32.totalorder %s9421_s24, %s9417_s2 }
 0x9be   : > { %p9419_p12 = pnand %p9418_p11, %p9624_p5  ;;  %p9424_p2 = por %p9423_p1, %p9422_p0 }
 0x9c0   : > { %p9420_p13 = pneg %p9419_p12 }
 0x9c2   : > { %p9425_p3 = pnand %p9424_p2, %p9420_p13 }
 0x9cc   : > { %v7724_v54 = vpop.xlane.xlu2 %7723 }
 0x9cd   : > { %v7732_v7 = vadd.f32 %v9390_v57, %v7724_v54 }
 0x9cf   : > { %v7735_v48 = vsel %vm7734_vm8, %v7732_v7, -inf }
 0x9d4   : > { %v7727_v14 = vpop.xlane.xlu0 %7726 }
 0x9d5   : > { %v7733_v29 = vadd.f32 %v9390_v57, %v7727_v14 }
 0x9d7   : > { %v7736_v3 = vsel %vm7734_vm8, %v7733_v29, -inf }
 0x9d8   : > { %v7737_v19 = vmax.f32 %v7735_v48, %v7736_v3 }
 0x9da   : > { %v7738_v33 = vrot.slane %v7737_v19, 4 }
 0x9dc   : > { %v7739_v46 = vmax.f32 %v7737_v19, %v7738_v33 }
 0x9de   : > { %v7740_v31 = vrot.slane %v7739_v46, 2 }
 0x9e0   : > { %v7741_v11 = vmax.f32 %v7739_v46, %v7740_v31 }
 0x9e2   : > { %v7742_v39 = vrot.slane %v7741_v11, 1 }
 0x9e4   : > { %v7743_v1 = vmax.f32 %v7741_v11, %v7742_v39 }
 0x9e6   : > { %v7744_v5 = vsub.f32 %v7732_v7, %v7743_v1  ;;  %v7745_v43 = vsub.f32 %v7733_v29, %v7743_v1 }
 0x9e8   : > { %v7746_v23 = vmul.f32 1.442695, %v7744_v5  ;;  %v7748_v53 = vmul.f32 1.442695, %v7745_v43 }
 0x9ea   : > { %9395 = vpow2.f32 %v7746_v23 }
 0x9eb   : > { %9397 = vpow2.f32 %v7748_v53 }
 0x9f0   : > { %v9396_v52 = vpop.eup %9395 }
 0x9f1   : > { %v9398_v49 = vpop.eup %9397  ;;  %v7750_v4 = vsel %vm7734_vm8, %v9396_v52, 0.0  ;;  %v7788_v13 = vmul.f32 %v9396_v52, %v7784_v8  ;;  %v7829_v28 = vmul.f32 %v9396_v52, %v7825_v18 }
 0x9f2   : > { %v7751_v58 = vsel %vm7734_vm8, %v9398_v49, 0.0  ;;  %v7789_v15 = vmul.f32 %v9398_v49, %v7785_v42  ;;  %v7830_v59 = vmul.f32 %v9398_v49, %v7826_v17 }
 0x9f3   : > { %v7752_v61 = vadd.f32 %v7751_v58, %v7750_v4  ;;  %v7790_v50 = vsel %vm7734_vm8, %v7788_v13, 0.0  ;;  %v7831_v2 = vsel %vm7734_vm8, %v7829_v28, 0.0 }
 0x9f4   : > { %v7791_v6 = vsel %vm7734_vm8, %v7789_v15, 0.0  ;;  %v7832_v27 = vsel %vm7734_vm8, %v7830_v59, 0.0 }
 0x9f5   : > { %v7753_v63 = vrot.slane %v7752_v61, 4  ;;  %v7792_v12 = vadd.f32 %v7791_v6, %v7790_v50  ;;  %v7833_v8 = vadd.f32 %v7832_v27, %v7831_v2 }
 0x9f7   : > { %v7754_v41 = vadd.f32 %v7753_v63, %v7752_v61  ;;  %v7793_v55 = vrot.slane %v7792_v12, 4  ;;  %v7834_v34 = vrot.slane %v7833_v8, 4 }
 0x9f9   : > { %v7755_v22 = vrot.slane %v7754_v41, 2  ;;  %v7794_v16 = vadd.f32 %v7793_v55, %v7792_v12  ;;  %v7835_v42 = vadd.f32 %v7834_v34, %v7833_v8 }
 0x9fb   : > { %v7756_v38 = vadd.f32 %v7755_v22, %v7754_v41  ;;  %v7795_v9 = vrot.slane %v7794_v16, 2  ;;  %v7836_v36 = vrot.slane %v7835_v42, 2 }
 0x9fd   : > { %v7757_v21 = vrot.slane %v7756_v38, 1  ;;  %v7796_v40 = vadd.f32 %v7795_v9, %v7794_v16  ;;  %v7837_v57 = vadd.f32 %v7836_v36, %v7835_v42 }
 0x9ff   : > { %v7758_v62 = vadd.f32 %v7757_v21, %v7756_v38  ;;  %v7797_v37 = vrot.slane %v7796_v40, 1  ;;  %v7838_v0 = vrot.slane %v7837_v57, 1 }
 0xa01   : > { %9399 = vrcp.f32 %v7758_v62  ;;  %v7810_v20 = vand.u32 2147483648, %v7758_v62  ;;  %v7808_v44 = vand.u32 2147483647, %v7758_v62  ;;  %vm7804_vm13 = vweird.f32 %v7758_v62 }
 0xa02   : > { %v7798_v32 = vadd.f32 %v7797_v37, %v7796_v40  ;;  %v7839_v54 = vadd.f32 %v7838_v0, %v7837_v57 }
 0xa03   : > { %v7811_v25 = vor.u32 1.1754944e-38, %v7810_v20  ;;  %vm7809_vm4 = vcmp.eq.f32.partialorder %v7808_v44, 8.507059e+37 }
 0xa07   : > { %v9400_v47 = vpop.eup %9399 }
 0xa08   : > { %v7800_v56 = vmul.f32 %v9400_v47, %v7758_v62  ;;  %vm7805_vm15 = vweird.f32 %v9400_v47 }
 0xa09   : > { %vm7806_vm3 = vmor %vm7804_vm13, %vm7805_vm15 }
 0xa0a   : > { %v7801_v45 = vsub.f32 1.0, %v7800_v56 }
 0xa0c   : > { %v7802_v10 = vmul.f32 %v9400_v47, %v7801_v45 }
 0xa0e   : > { %v7803_v26 = vadd.f32 %v9400_v47, %v7802_v10 }
 0xa10   : > { %v7807_v35 = vsel %vm7806_vm3, %v9400_v47, %v7803_v26 }
 0xa11   : > { %v7812_v60 = vsel %vm7809_vm4, %v7811_v25, %v7807_v35 }
 0xa12   : > { %v7813_v24 = vmul.f32 %v7812_v60, %v7798_v32  ;;  %v7840_v30 = vmul.f32 %v7839_v54, %v7812_v60 }
 0xa14   : > { %v7913_v29 = vadd.f32 %v12220_v51, %v7813_v24 }
 0xa2d   : > { %v7916_v7 = vpop.permute.xlu1 %7915 }
 0xa2e   : > { %v7918_v14 = vadd.f32 %v7916_v7, %v7840_v30 }
 0xa30   : > { %7920 = vrot.lane.b32.xlu1 %v7918_v14, %s9482_s23 }
 0xaa2   : > { %v7921_v48 = vpop.permute.xlu1 %7920 }
 0xaa3   : > { %v7923_v3 = vsel %vm7734_vm8, %v7913_v29, %v7921_v48 }
 0xaa4   : > { %7925 = vst.msk [vmem:[%s596_s3] sm:$0x1] %vm7924_vm5, %v7923_v3 }
 0xaa5   : > { %9428 = shalt.err (!%p9425_p3)
}
 0xaa6   : > { %9326 = dma.vmem_to_hbm [thread:$0]  (%p9624_p5), %s7938_s0, 16, %s7940_s29, %s7927_s25  }
 0xaa7 PF: > { %p9332_p4 = scmp.ge.s32.totalorder %s9463_s22, 2  ;;  %s7951_s3 = sand.u32 1, %s9451_s20  }
 0xaa8   : > { %s7952_s14 = scalar_lea.sflag [#allocation7], %s7951_s3 }
 0xaa9   : > { %p9329_p7 = pnand %p9332_p4, %p9628_p6 }
 0xaab   : > { %p9330_p8 = pneg %p9329_p7 }
 0xaad   : > { %9446 = dma.done.wait (%p9330_p8), %s7952_s14, 16  }
 0xaae   : > { %9448 = vsyncadd (%p9330_p8), %s7952_s14, 4294967280  ;;  %s12549_s22 = sld [smem:[#allocation10_spill]]  ;;  %s12552_s20 = smov %s9455_s21 }
 0xaaf   : > { %s12550_s27 = sld [smem:[#allocation9_spill]] }
 0xab0   : > { %s12551_s1 = sld [smem:[#allocation11_spill]] }
 0xab4   : > { %p31_p9 = scmp.ge.s32.totalorder %s12549_s22, 4  }
 0xab5   : > { %s12553_s21 = smov %s12550_s27 }
 0xab6   :  { %33 = sbr.rel (!%p31_p9) target bundleno = 9 (0x9), region = 421 }
 0xabb   :  { %7957 = vsyncpa [#allocation7], 1 }
 0xabc   :  { %7959 = vsyncpa [#allocation7 + $0x1], 1 }

</bundles_post_ra>
